<compile_context>
chip_gen: v7x
topology: tpu7x:2x2x1
jax: 0.10.0
libtpu: 0.0.40
codegen_flags: <defaults>
</compile_context>

<pallas_src>
import math

import numpy as np
import jax
import jax.numpy as jnp
from jax.experimental import pallas as pl
from jax.experimental.pallas import tpu as pltpu

LEAKY_SLOPE = 0.2   # TODO(synk): `activation` undefined in reference; LeakyReLU(0.2) assumed.
BN_EPS = 1e-5
OUTPUT_VAR = 1.0    # TODO(synk): `opt.output_var` undefined in reference.
KSIZE = 3


def _leaky(x):
    return jnp.where(x > 0, x, LEAKY_SLOPE * x)


def _batchnorm_rows(y, bn):
    # y: (M, C) channel-last rows; bn: (2, C) = [gamma; beta]; train-mode batch stats.
    mean = jnp.mean(y, axis=0, keepdims=True)
    var = jnp.mean(jnp.square(y - mean), axis=0, keepdims=True)
    scale = bn[0:1, :] * jax.lax.rsqrt(var + BN_EPS)
    return y * scale + (bn[1:2, :] - mean * scale)


# ------------------------------ fused kernel ------------------------------- #

def _make_kernel(B, H, W, planes, c4_pad):
    HW = H * W
    M = B * HW
    _C0, C1, C2, C3, C4 = planes
    CMU = C4 // 2
    NT = KSIZE * KSIZE

    def kernel(x_ref, rep_ref, tap_ref, shift_ref, linw_ref, linb_ref,
               w1_ref, w2_ref, w3_ref, w4_ref, b4_ref,
               bn1_ref, bn2_ref, bn3_ref, mu_ref):
        # ---- Linear(hidden -> H*W) + bias + double LeakyReLU, per output row. ----
        # Batch rows are replicated to all H*W spatial rows with rank-1 broadcast
        # products so every MXU op stays well shaped (no 2-row / 2-deep matmuls);
        # the redundant compute is ~0.5 MFLOP.
        x = x_ref[...]                              # (B, hidden)
        rep = rep_ref[...]                          # (M, B) 0/1 batch-replication columns
        x_exp = rep[:, 0:1] * x[0:1, :]
        for b in range(1, B):
            x_exp = x_exp + rep[:, b:b + 1] * x[b:b + 1, :]
        a = jnp.dot(x_exp, linw_ref[...], preferred_element_type=jnp.float32)
        a = a + linb_ref[...]
        a = _leaky(_leaky(a))                       # act(lin) + act at top of conv loop

        # ---- conv #1 (single input channel): tap-mask select + rank-1 update ----
        w1 = w1_ref[...]                            # (9, C1) flipped/flattened ConvT weight
        y = jnp.zeros((M, C1), jnp.float32)
        for t in range(NT):
            tmask = tap_ref[t * M:(t + 1) * M, :]                 # (M, H*W)
            col = jnp.sum(a * tmask, axis=1, keepdims=True)       # shifted input column (M, 1)
            y = y + col * w1[t:t + 1, :]
        y = _leaky(_batchnorm_rows(y, bn1_ref[...]))              # conv bias cancelled by BN

        # ---- conv #2..#4 as sums of 9 shift-matrix matmuls ----
        def conv(act, w_ref, cin, cout):
            acc = jnp.zeros((M, cout), jnp.float32)
            for t in range(NT):
                st = shift_ref[t * M:(t + 1) * M, :]              # (M, M)
                sh = jnp.dot(st, act, preferred_element_type=jnp.float32)
                wt = w_ref[t * cin:(t + 1) * cin, :]              # (cin, cout)
                acc = acc + jnp.dot(sh, wt, preferred_element_type=jnp.float32)
            return acc

        y = _leaky(_batchnorm_rows(conv(y, w2_ref, C1, C2), bn2_ref[...]))
        y = _leaky(_batchnorm_rows(conv(y, w3_ref, C2, C3), bn3_ref[...]))
        y = conv(y, w4_ref, C3, c4_pad) + b4_ref[...]             # last conv keeps its (+0.5) bias
        mu_ref[...] = 1.0 / (1.0 + jnp.exp(-y[:, :CMU]))          # sigmoid of first half channels

    return kernel


def make_forward(cfg):
    B, H, W = cfg["batch"], cfg["H"], cfg["W"]
    planes = cfg["planes"]
    c4_pad = cfg["c4_pad"]
    M = B * H * W
    CMU = planes[4] // 2

    kernel = _make_kernel(B, H, W, planes, c4_pad)
    vspec = pl.BlockSpec(memory_space=pltpu.MemorySpace.VMEM)
    call = pl.pallas_call(
        kernel,
        out_shape=jax.ShapeDtypeStruct((M, CMU), jnp.float32),
        in_specs=[vspec] * 14,
        out_specs=pl.BlockSpec(memory_space=pltpu.MemorySpace.VMEM),
    )

    def forward(kp, x):
        mu_rows = call(x, kp["rep"], kp["tap"], kp["shift"], kp["lin_w"], kp["lin_b"],
                       kp["w1"], kp["w2"], kp["w3"], kp["w4"], kp["b4"],
                       kp["bn1"], kp["bn2"], kp["bn3"])
        mu = mu_rows.reshape(B, H, W, CMU).transpose(0, 3, 1, 2)   # NCHW for the module's API
        sigma = jnp.full_like(mu, OUTPUT_VAR)
        return mu, sigma

    return forward


# --------------------------- init / static tables --------------------------- #

def _build_shift_and_tap(B, H, W):
    # Shift matrices S_t (row r_out picks the spatially shifted source row of the
    # same batch image, zero at the 1-pixel padded border) and the per-tap column
    # masks used for the 1-channel first conv, plus the batch-replication matrix.
    HW = H * W
    M = B * HW
    shift = np.zeros((KSIZE * KSIZE, M, M), np.float32)
    tap = np.zeros((KSIZE * KSIZE, M, HW), np.float32)
    rep = np.zeros((M, B), np.float32)
    for b in range(B):
        for i in range(H):
            for j in range(W):
                r = b * HW + i * W + j
                rep[r, b] = 1.0
                for kh in range(KSIZE):
                    for kw in range(KSIZE):
                        t = kh * KSIZE + kw
                        ii, jj = i + kh - 1, j + kw - 1
                        if 0 <= ii < H and 0 <= jj < W:
                            s = ii * W + jj
                            shift[t, r, b * HW + s] = 1.0
                            tap[t, r, s] = 1.0
    return (jnp.asarray(shift.reshape(KSIZE * KSIZE * M, M)),
            jnp.asarray(tap.reshape(KSIZE * KSIZE * M, HW)),
            jnp.asarray(rep))


def _flatten_convT_weight(w_ct):
    # w_ct: (Cin, Cout, 3, 3) torch ConvTranspose2d layout.  The equivalent
    # stride-1 "same" conv uses the spatially flipped, channel-swapped kernel;
    # pack tap (kh, kw) as rows [(kh*3+kw)*Cin + cin, cout].
    cin, cout = w_ct.shape[0], w_ct.shape[1]
    w_flip = w_ct[:, :, ::-1, ::-1]                     # (Cin, Cout, 3, 3)
    w_taps = jnp.transpose(w_flip, (2, 3, 0, 1))        # (3, 3, Cin, Cout)
    return w_taps.reshape(KSIZE * KSIZE * cin, cout)


def init_model(key, hidden_dim, output_dims, batch):
    c_img, H, W = output_dims
    assert output_dims[-1] < 16, (
        "TODO(synk): pads=[None,0,1,1,1] branch (output width >= 16) not implemented")
    ngf = 64
    planes = [None, ngf * 4, ngf * 2, ngf, c_img * 2]
    # conv_transpose_in_dim with k=3, stride=1, pad=1 preserves spatial dims,
    # so every layer runs at the output resolution (H, W).
    c0 = math.ceil(hidden_dim / (H * W))
    assert c0 == 1, "TODO(synk): planes[0] > 1 (hidden_dim > H*W) not implemented in fused kernel"
    planes[0] = c0

    keys = jax.random.split(key, 16)
    kidx = 0

    def nxt():
        nonlocal kidx
        k = keys[kidx]
        kidx += 1
        return k

    # Linear(hidden_dim -> planes[0]*H*W)
    lin_out = planes[0] * H * W
    bnd = 1.0 / math.sqrt(hidden_dim)
    lin_w = jax.random.uniform(nxt(), (lin_out, hidden_dim), jnp.float32, -bnd, bnd)
    lin_b = jax.random.uniform(nxt(), (lin_out,), jnp.float32, -bnd, bnd)

    convs, bns = [], []
    for l in range(1, 5):
        cin, cout = planes[l - 1], planes[l]
        bnd = 1.0 / math.sqrt(cin * KSIZE * KSIZE)
        w = jax.random.uniform(nxt(), (cin, cout, KSIZE, KSIZE), jnp.float32, -bnd, bnd)
        b = jax.random.uniform(nxt(), (cout,), jnp.float32, -bnd, bnd)
        if l == 4:
            b = b + 0.5          # self.convs[-1].bias.data.add_(0.5)
        convs.append((w, b))
        if l < 4:
            g = 1.0 + 0.1 * jax.random.normal(nxt(), (cout,), jnp.float32)
            bb = 0.1 * jax.random.normal(nxt(), (cout,), jnp.float32)
            bns.append((g, bb))

    # torch-layout params (used only by the pure-JAX reference)
    tparams = {"lin_w": lin_w, "lin_b": lin_b, "convs": convs, "bns": bns}

    # kernel-layout params: all flattening / flipping / packing done once here.
    shift, tap, rep = _build_shift_and_tap(batch, H, W)
    c4_pad = 128
    w4_flat = _flatten_convT_weight(convs[3][0])                          # (9*C3, C4)
    w4p = jnp.zeros((w4_flat.shape[0], c4_pad), jnp.float32).at[:, :planes[4]].set(w4_flat)
    b4p = jnp.zeros((1, c4_pad), jnp.float32).at[0, :planes[4]].set(convs[3][1])
    kparams = {
        "rep": rep, "tap": tap, "shift": shift,
        "lin_w": lin_w.T, "lin_b": lin_b.reshape(1, lin_out),
        "w1": _flatten_convT_weight(convs[0][0]),
        "w2": _flatten_convT_weight(convs[1][0]),
        "w3": _flatten_convT_weight(convs[2][0]),
        "w4": w4p, "b4": b4p,
        "bn1": jnp.stack(bns[0]), "bn2": jnp.stack(bns[1]), "bn3": jnp.stack(bns[2]),
    }
    cfg = {"batch": batch, "H": H, "W": W, "planes": tuple(planes), "c4_pad": c4_pad,
           "hidden_dim": hidden_dim, "output_dims": tuple(output_dims)}
    return kparams, tparams, cfg


# ------------------------- pure-JAX reference (torch semantics) ------------------------- #

def _conv_transpose2d_ref(x, w_ct, b, pad):
    # Direct transcription of torch ConvTranspose2d (stride 1): input pixel (yi, xi)
    # scatters x[:, i, yi, xi] * W[i, o, kh, kw] to output (yi + kh - pad, xi + kw - pad).
    cin, cout, k, _ = w_ct.shape
    n, _, h, w = x.shape
    canvas = jnp.zeros((n, cout, h + k - 1, w + k - 1), x.dtype)
    for kh in range(k):
        for kw in range(k):
            term = jnp.einsum("bihw,io->bohw", x, w_ct[:, :, kh, kw])
            canvas = canvas.at[:, :, kh:kh + h, kw:kw + w].add(term)
    out = canvas[:, :, pad:h + k - 1 - pad, pad:w + k - 1 - pad]
    return out + b.reshape(1, -1, 1, 1)


def reference(tparams, x, cfg):
    B, H, W = cfg["batch"], cfg["H"], cfg["W"]
    planes = cfg["planes"]
    h = x @ tparams["lin_w"].T + tparams["lin_b"]
    h = _leaky(h)
    cur = h.reshape(B, planes[0], H, W)
    for l in range(4):
        cur = _leaky(cur)
        w_ct, b = tparams["convs"][l]
        cur = _conv_transpose2d_ref(cur, w_ct, b, pad=1)
        if l < 3:
            g, bb = tparams["bns"][l]
            mean = jnp.mean(cur, axis=(0, 2, 3), keepdims=True)
            var = jnp.mean(jnp.square(cur - mean), axis=(0, 2, 3), keepdims=True)
            cur = ((cur - mean) / jnp.sqrt(var + BN_EPS)) * g.reshape(1, -1, 1, 1) \
                  + bb.reshape(1, -1, 1, 1)
    c_half = cur.shape[1] // 2
    mu = jax.nn.sigmoid(cur[:, :c_half])
    sigma = jnp.full_like(mu, OUTPUT_VAR)
    return mu, sigma


# ------------------------------------ main ------------------------------------ #

if __name__ == "__main__":
    hidden_dim = 32
    output_dims = (1, 8, 8)     # (C, H, W); W < 16 selects the pads=[1,1,1,1] branch
    batch = 2

    root = jax.random.PRNGKey(0)
    k_param, k_x = jax.random.split(root)
    kparams, tparams, cfg = init_model(k_param, hidden_dim, output_dims, batch)
    x = jax.random.normal(k_x, (batch, hidden_dim), jnp.float32)

    forward = jax.jit(make_forward(cfg))
    mu, sigma = forward(kparams, x)
    mu, sigma = jax.block_until_ready((mu, sigma))

    mu_ref, sigma_ref = reference(tparams, x, cfg)
    np.testing.assert_allclose(np.asarray(mu), np.asarray(mu_ref), rtol=1e-3, atol=1e-3)
    np.testing.assert_allclose(np.asarray(sigma), np.asarray(sigma_ref), rtol=0, atol=0)
    assert mu.shape == (batch, output_dims[0], output_dims[1], output_dims[2])
    print("KERNEL_OK")
</pallas_src>

<mosaic_0001>
module attributes {stable_mosaic.version = 11 : i64} {
  func.func @kernel(%arg0: memref<2x32xf32, #tpu.memory_space<vmem>>, %arg1: memref<128x2xf32, #tpu.memory_space<vmem>>, %arg2: memref<1152x64xf32, #tpu.memory_space<vmem>>, %arg3: memref<1152x128xf32, #tpu.memory_space<vmem>>, %arg4: memref<32x64xf32, #tpu.memory_space<vmem>>, %arg5: memref<1x64xf32, #tpu.memory_space<vmem>>, %arg6: memref<9x256xf32, #tpu.memory_space<vmem>>, %arg7: memref<2304x128xf32, #tpu.memory_space<vmem>>, %arg8: memref<1152x64xf32, #tpu.memory_space<vmem>>, %arg9: memref<576x128xf32, #tpu.memory_space<vmem>>, %arg10: memref<1x128xf32, #tpu.memory_space<vmem>>, %arg11: memref<2x256xf32, #tpu.memory_space<vmem>>, %arg12: memref<2x128xf32, #tpu.memory_space<vmem>>, %arg13: memref<2x64xf32, #tpu.memory_space<vmem>>, %arg14: memref<128x1xf32, #tpu.memory_space<vmem>>) attributes {dimension_semantics = [], scalar_prefetch = 0 : i64, scratch_operands = 0 : i64, tpu.core_type = #tpu.core_type<tc>} {
    %c0 = arith.constant 0 : index
    %c0_0 = arith.constant 0 : index
    %0 = vector.load %arg0[%c0, %c0_0] : memref<2x32xf32, #tpu.memory_space<vmem>>, vector<2x32xf32>
    %c0_1 = arith.constant 0 : index
    %c0_2 = arith.constant 0 : index
    %1 = vector.load %arg1[%c0_1, %c0_2] : memref<128x2xf32, #tpu.memory_space<vmem>>, vector<128x2xf32>
    %2 = vector.extract_strided_slice %1 {offsets = [0, 0], sizes = [128, 1], strides = [1, 1]} : vector<128x2xf32> to vector<128x1xf32>
    %3 = vector.extract_strided_slice %0 {offsets = [0, 0], sizes = [1, 32], strides = [1, 1]} : vector<2x32xf32> to vector<1x32xf32>
    %4 = vector.broadcast %2 : vector<128x1xf32> to vector<128x32xf32>
    %5 = vector.broadcast %3 : vector<1x32xf32> to vector<128x32xf32>
    %6 = arith.mulf %4, %5 : vector<128x32xf32>
    %7 = vector.extract_strided_slice %1 {offsets = [0, 1], sizes = [128, 1], strides = [1, 1]} : vector<128x2xf32> to vector<128x1xf32>
    %8 = vector.extract_strided_slice %0 {offsets = [1, 0], sizes = [1, 32], strides = [1, 1]} : vector<2x32xf32> to vector<1x32xf32>
    %9 = vector.broadcast %7 : vector<128x1xf32> to vector<128x32xf32>
    %10 = vector.broadcast %8 : vector<1x32xf32> to vector<128x32xf32>
    %11 = arith.mulf %9, %10 : vector<128x32xf32>
    %12 = arith.addf %6, %11 : vector<128x32xf32>
    %c0_3 = arith.constant 0 : index
    %c0_4 = arith.constant 0 : index
    %13 = vector.load %arg4[%c0_3, %c0_4] : memref<32x64xf32, #tpu.memory_space<vmem>>, vector<32x64xf32>
    %cst = arith.constant dense<0.000000e+00> : vector<128x64xf32>
    %14 = tpu.matmul %12, %13, %cst {dimension_numbers = #tpu.dot_dimension_numbers<[1], [0], [0], [1], [0, 0, 1, 1], [], []>} : vector<128x32xf32>, vector<32x64xf32>, vector<128x64xf32> -> vector<128x64xf32>
    %c0_5 = arith.constant 0 : index
    %c0_6 = arith.constant 0 : index
    %15 = vector.load %arg5[%c0_5, %c0_6] : memref<1x64xf32, #tpu.memory_space<vmem>>, vector<1x64xf32>
    %16 = vector.broadcast %15 : vector<1x64xf32> to vector<128x64xf32>
    %17 = arith.addf %14, %16 : vector<128x64xf32>
    %cst_7 = arith.constant 0.000000e+00 : f32
    %18 = vector.broadcast %cst_7 : f32 to vector<128x64xf32>
    %19 = arith.cmpf ogt, %17, %18 : vector<128x64xf32>
    %cst_8 = arith.constant 2.000000e-01 : f32
    %20 = vector.broadcast %cst_8 : f32 to vector<128x64xf32>
    %21 = arith.mulf %20, %17 : vector<128x64xf32>
    %22 = arith.select %19, %17, %21 : vector<128x64xi1>, vector<128x64xf32>
    %cst_9 = arith.constant 0.000000e+00 : f32
    %23 = vector.broadcast %cst_9 : f32 to vector<128x64xf32>
    %24 = arith.cmpf ogt, %22, %23 : vector<128x64xf32>
    %cst_10 = arith.constant 2.000000e-01 : f32
    %25 = vector.broadcast %cst_10 : f32 to vector<128x64xf32>
    %26 = arith.mulf %25, %22 : vector<128x64xf32>
    %27 = arith.select %24, %22, %26 : vector<128x64xi1>, vector<128x64xf32>
    %c0_11 = arith.constant 0 : index
    %c0_12 = arith.constant 0 : index
    %28 = vector.load %arg6[%c0_11, %c0_12] : memref<9x256xf32, #tpu.memory_space<vmem>>, vector<9x256xf32>
    %cst_13 = arith.constant 0.000000e+00 : f32
    %29 = vector.broadcast %cst_13 : f32 to vector<128x256xf32>
    %c0_14 = arith.constant 0 : index
    %c0_15 = arith.constant 0 : index
    %30 = vector.load %arg2[%c0_14, %c0_15] : memref<1152x64xf32, #tpu.memory_space<vmem>>, vector<128x64xf32>
    %31 = arith.mulf %27, %30 : vector<128x64xf32>
    %cst_16 = arith.constant dense<0.000000e+00> : vector<128xf32>
    %32 = vector.multi_reduction <add>, %31, %cst_16 [1] : vector<128x64xf32> to vector<128xf32>
    %33 = vector.shape_cast %32 : vector<128xf32> to vector<128x1xf32>
    %34 = vector.extract_strided_slice %28 {offsets = [0, 0], sizes = [1, 256], strides = [1, 1]} : vector<9x256xf32> to vector<1x256xf32>
    %35 = vector.broadcast %33 : vector<128x1xf32> to vector<128x256xf32>
    %36 = vector.broadcast %34 : vector<1x256xf32> to vector<128x256xf32>
    %37 = arith.mulf %35, %36 : vector<128x256xf32>
    %38 = arith.addf %29, %37 : vector<128x256xf32>
    %c128 = arith.constant 128 : index
    %c0_17 = arith.constant 0 : index
    %39 = vector.load %arg2[%c128, %c0_17] : memref<1152x64xf32, #tpu.memory_space<vmem>>, vector<128x64xf32>
    %40 = arith.mulf %27, %39 : vector<128x64xf32>
    %cst_18 = arith.constant dense<0.000000e+00> : vector<128xf32>
    %41 = vector.multi_reduction <add>, %40, %cst_18 [1] : vector<128x64xf32> to vector<128xf32>
    %42 = vector.shape_cast %41 : vector<128xf32> to vector<128x1xf32>
    %43 = vector.extract_strided_slice %28 {offsets = [1, 0], sizes = [1, 256], strides = [1, 1]} : vector<9x256xf32> to vector<1x256xf32>
    %44 = vector.broadcast %42 : vector<128x1xf32> to vector<128x256xf32>
    %45 = vector.broadcast %43 : vector<1x256xf32> to vector<128x256xf32>
    %46 = arith.mulf %44, %45 : vector<128x256xf32>
    %47 = arith.addf %38, %46 : vector<128x256xf32>
    %c256 = arith.constant 256 : index
    %c0_19 = arith.constant 0 : index
    %48 = vector.load %arg2[%c256, %c0_19] : memref<1152x64xf32, #tpu.memory_space<vmem>>, vector<128x64xf32>
    %49 = arith.mulf %27, %48 : vector<128x64xf32>
    %cst_20 = arith.constant dense<0.000000e+00> : vector<128xf32>
    %50 = vector.multi_reduction <add>, %49, %cst_20 [1] : vector<128x64xf32> to vector<128xf32>
    %51 = vector.shape_cast %50 : vector<128xf32> to vector<128x1xf32>
    %52 = vector.extract_strided_slice %28 {offsets = [2, 0], sizes = [1, 256], strides = [1, 1]} : vector<9x256xf32> to vector<1x256xf32>
    %53 = vector.broadcast %51 : vector<128x1xf32> to vector<128x256xf32>
    %54 = vector.broadcast %52 : vector<1x256xf32> to vector<128x256xf32>
    %55 = arith.mulf %53, %54 : vector<128x256xf32>
    %56 = arith.addf %47, %55 : vector<128x256xf32>
    %c384 = arith.constant 384 : index
    %c0_21 = arith.constant 0 : index
    %57 = vector.load %arg2[%c384, %c0_21] : memref<1152x64xf32, #tpu.memory_space<vmem>>, vector<128x64xf32>
    %58 = arith.mulf %27, %57 : vector<128x64xf32>
    %cst_22 = arith.constant dense<0.000000e+00> : vector<128xf32>
    %59 = vector.multi_reduction <add>, %58, %cst_22 [1] : vector<128x64xf32> to vector<128xf32>
    %60 = vector.shape_cast %59 : vector<128xf32> to vector<128x1xf32>
    %61 = vector.extract_strided_slice %28 {offsets = [3, 0], sizes = [1, 256], strides = [1, 1]} : vector<9x256xf32> to vector<1x256xf32>
    %62 = vector.broadcast %60 : vector<128x1xf32> to vector<128x256xf32>
    %63 = vector.broadcast %61 : vector<1x256xf32> to vector<128x256xf32>
    %64 = arith.mulf %62, %63 : vector<128x256xf32>
    %65 = arith.addf %56, %64 : vector<128x256xf32>
    %c512 = arith.constant 512 : index
    %c0_23 = arith.constant 0 : index
    %66 = vector.load %arg2[%c512, %c0_23] : memref<1152x64xf32, #tpu.memory_space<vmem>>, vector<128x64xf32>
    %67 = arith.mulf %27, %66 : vector<128x64xf32>
    %cst_24 = arith.constant dense<0.000000e+00> : vector<128xf32>
    %68 = vector.multi_reduction <add>, %67, %cst_24 [1] : vector<128x64xf32> to vector<128xf32>
    %69 = vector.shape_cast %68 : vector<128xf32> to vector<128x1xf32>
    %70 = vector.extract_strided_slice %28 {offsets = [4, 0], sizes = [1, 256], strides = [1, 1]} : vector<9x256xf32> to vector<1x256xf32>
    %71 = vector.broadcast %69 : vector<128x1xf32> to vector<128x256xf32>
    %72 = vector.broadcast %70 : vector<1x256xf32> to vector<128x256xf32>
    %73 = arith.mulf %71, %72 : vector<128x256xf32>
    %74 = arith.addf %65, %73 : vector<128x256xf32>
    %c640 = arith.constant 640 : index
    %c0_25 = arith.constant 0 : index
    %75 = vector.load %arg2[%c640, %c0_25] : memref<1152x64xf32, #tpu.memory_space<vmem>>, vector<128x64xf32>
    %76 = arith.mulf %27, %75 : vector<128x64xf32>
    %cst_26 = arith.constant dense<0.000000e+00> : vector<128xf32>
    %77 = vector.multi_reduction <add>, %76, %cst_26 [1] : vector<128x64xf32> to vector<128xf32>
    %78 = vector.shape_cast %77 : vector<128xf32> to vector<128x1xf32>
    %79 = vector.extract_strided_slice %28 {offsets = [5, 0], sizes = [1, 256], strides = [1, 1]} : vector<9x256xf32> to vector<1x256xf32>
    %80 = vector.broadcast %78 : vector<128x1xf32> to vector<128x256xf32>
    %81 = vector.broadcast %79 : vector<1x256xf32> to vector<128x256xf32>
    %82 = arith.mulf %80, %81 : vector<128x256xf32>
    %83 = arith.addf %74, %82 : vector<128x256xf32>
    %c768 = arith.constant 768 : index
    %c0_27 = arith.constant 0 : index
    %84 = vector.load %arg2[%c768, %c0_27] : memref<1152x64xf32, #tpu.memory_space<vmem>>, vector<128x64xf32>
    %85 = arith.mulf %27, %84 : vector<128x64xf32>
    %cst_28 = arith.constant dense<0.000000e+00> : vector<128xf32>
    %86 = vector.multi_reduction <add>, %85, %cst_28 [1] : vector<128x64xf32> to vector<128xf32>
    %87 = vector.shape_cast %86 : vector<128xf32> to vector<128x1xf32>
    %88 = vector.extract_strided_slice %28 {offsets = [6, 0], sizes = [1, 256], strides = [1, 1]} : vector<9x256xf32> to vector<1x256xf32>
    %89 = vector.broadcast %87 : vector<128x1xf32> to vector<128x256xf32>
    %90 = vector.broadcast %88 : vector<1x256xf32> to vector<128x256xf32>
    %91 = arith.mulf %89, %90 : vector<128x256xf32>
    %92 = arith.addf %83, %91 : vector<128x256xf32>
    %c896 = arith.constant 896 : index
    %c0_29 = arith.constant 0 : index
    %93 = vector.load %arg2[%c896, %c0_29] : memref<1152x64xf32, #tpu.memory_space<vmem>>, vector<128x64xf32>
    %94 = arith.mulf %27, %93 : vector<128x64xf32>
    %cst_30 = arith.constant dense<0.000000e+00> : vector<128xf32>
    %95 = vector.multi_reduction <add>, %94, %cst_30 [1] : vector<128x64xf32> to vector<128xf32>
    %96 = vector.shape_cast %95 : vector<128xf32> to vector<128x1xf32>
    %97 = vector.extract_strided_slice %28 {offsets = [7, 0], sizes = [1, 256], strides = [1, 1]} : vector<9x256xf32> to vector<1x256xf32>
    %98 = vector.broadcast %96 : vector<128x1xf32> to vector<128x256xf32>
    %99 = vector.broadcast %97 : vector<1x256xf32> to vector<128x256xf32>
    %100 = arith.mulf %98, %99 : vector<128x256xf32>
    %101 = arith.addf %92, %100 : vector<128x256xf32>
    %c1024 = arith.constant 1024 : index
    %c0_31 = arith.constant 0 : index
    %102 = vector.load %arg2[%c1024, %c0_31] : memref<1152x64xf32, #tpu.memory_space<vmem>>, vector<128x64xf32>
    %103 = arith.mulf %27, %102 : vector<128x64xf32>
    %cst_32 = arith.constant dense<0.000000e+00> : vector<128xf32>
    %104 = vector.multi_reduction <add>, %103, %cst_32 [1] : vector<128x64xf32> to vector<128xf32>
    %105 = vector.shape_cast %104 : vector<128xf32> to vector<128x1xf32>
    %106 = vector.extract_strided_slice %28 {offsets = [8, 0], sizes = [1, 256], strides = [1, 1]} : vector<9x256xf32> to vector<1x256xf32>
    %107 = vector.broadcast %105 : vector<128x1xf32> to vector<128x256xf32>
    %108 = vector.broadcast %106 : vector<1x256xf32> to vector<128x256xf32>
    %109 = arith.mulf %107, %108 : vector<128x256xf32>
    %110 = arith.addf %101, %109 : vector<128x256xf32>
    %c0_33 = arith.constant 0 : index
    %c0_34 = arith.constant 0 : index
    %111 = vector.load %arg11[%c0_33, %c0_34] : memref<2x256xf32, #tpu.memory_space<vmem>>, vector<2x256xf32>
    %cst_35 = arith.constant dense<0.000000e+00> : vector<256xf32>
    %112 = vector.multi_reduction <add>, %110, %cst_35 [0] : vector<128x256xf32> to vector<256xf32>
    %113 = vector.shape_cast %112 : vector<256xf32> to vector<1x256xf32>
    %cst_36 = arith.constant 1.280000e+02 : f32
    %114 = vector.broadcast %cst_36 : f32 to vector<1x256xf32>
    %115 = arith.divf %113, %114 : vector<1x256xf32>
    %116 = vector.broadcast %115 : vector<1x256xf32> to vector<128x256xf32>
    %117 = arith.subf %110, %116 : vector<128x256xf32>
    %118 = arith.mulf %117, %117 : vector<128x256xf32>
    %cst_37 = arith.constant dense<0.000000e+00> : vector<256xf32>
    %119 = vector.multi_reduction <add>, %118, %cst_37 [0] : vector<128x256xf32> to vector<256xf32>
    %120 = vector.shape_cast %119 : vector<256xf32> to vector<1x256xf32>
    %cst_38 = arith.constant 1.280000e+02 : f32
    %121 = vector.broadcast %cst_38 : f32 to vector<1x256xf32>
    %122 = arith.divf %120, %121 : vector<1x256xf32>
    %123 = vector.extract_strided_slice %111 {offsets = [0, 0], sizes = [1, 256], strides = [1, 1]} : vector<2x256xf32> to vector<1x256xf32>
    %cst_39 = arith.constant 9.99999974E-6 : f32
    %124 = vector.broadcast %cst_39 : f32 to vector<1x256xf32>
    %125 = arith.addf %122, %124 : vector<1x256xf32>
    %126 = math.rsqrt %125 : vector<1x256xf32>
    %127 = arith.mulf %123, %126 : vector<1x256xf32>
    %128 = vector.broadcast %127 : vector<1x256xf32> to vector<128x256xf32>
    %129 = arith.mulf %110, %128 : vector<128x256xf32>
    %130 = vector.extract_strided_slice %111 {offsets = [1, 0], sizes = [1, 256], strides = [1, 1]} : vector<2x256xf32> to vector<1x256xf32>
    %131 = arith.mulf %115, %127 : vector<1x256xf32>
    %132 = arith.subf %130, %131 : vector<1x256xf32>
    %133 = vector.broadcast %132 : vector<1x256xf32> to vector<128x256xf32>
    %134 = arith.addf %129, %133 : vector<128x256xf32>
    %cst_40 = arith.constant 0.000000e+00 : f32
    %135 = vector.broadcast %cst_40 : f32 to vector<128x256xf32>
    %136 = arith.cmpf ogt, %134, %135 : vector<128x256xf32>
    %cst_41 = arith.constant 2.000000e-01 : f32
    %137 = vector.broadcast %cst_41 : f32 to vector<128x256xf32>
    %138 = arith.mulf %137, %134 : vector<128x256xf32>
    %139 = arith.select %136, %134, %138 : vector<128x256xi1>, vector<128x256xf32>
    %cst_42 = arith.constant 0.000000e+00 : f32
    %140 = vector.broadcast %cst_42 : f32 to vector<128x128xf32>
    %c0_43 = arith.constant 0 : index
    %c0_44 = arith.constant 0 : index
    %141 = vector.load %arg3[%c0_43, %c0_44] : memref<1152x128xf32, #tpu.memory_space<vmem>>, vector<128x128xf32>
    %cst_45 = arith.constant dense<0.000000e+00> : vector<128x256xf32>
    %142 = tpu.matmul %141, %139, %cst_45 {dimension_numbers = #tpu.dot_dimension_numbers<[1], [0], [0], [1], [0, 0, 1, 1], [], []>} : vector<128x128xf32>, vector<128x256xf32>, vector<128x256xf32> -> vector<128x256xf32>
    %c0_46 = arith.constant 0 : index
    %c0_47 = arith.constant 0 : index
    %143 = vector.load %arg7[%c0_46, %c0_47] : memref<2304x128xf32, #tpu.memory_space<vmem>>, vector<256x128xf32>
    %cst_48 = arith.constant dense<0.000000e+00> : vector<128x128xf32>
    %144 = tpu.matmul %142, %143, %cst_48 {dimension_numbers = #tpu.dot_dimension_numbers<[1], [0], [0], [1], [0, 0, 1, 1], [], []>} : vector<128x256xf32>, vector<256x128xf32>, vector<128x128xf32> -> vector<128x128xf32>
    %145 = arith.addf %140, %144 : vector<128x128xf32>
    %c128_49 = arith.constant 128 : index
    %c0_50 = arith.constant 0 : index
    %146 = vector.load %arg3[%c128_49, %c0_50] : memref<1152x128xf32, #tpu.memory_space<vmem>>, vector<128x128xf32>
    %cst_51 = arith.constant dense<0.000000e+00> : vector<128x256xf32>
    %147 = tpu.matmul %146, %139, %cst_51 {dimension_numbers = #tpu.dot_dimension_numbers<[1], [0], [0], [1], [0, 0, 1, 1], [], []>} : vector<128x128xf32>, vector<128x256xf32>, vector<128x256xf32> -> vector<128x256xf32>
    %c256_52 = arith.constant 256 : index
    %c0_53 = arith.constant 0 : index
    %148 = vector.load %arg7[%c256_52, %c0_53] : memref<2304x128xf32, #tpu.memory_space<vmem>>, vector<256x128xf32>
    %cst_54 = arith.constant dense<0.000000e+00> : vector<128x128xf32>
    %149 = tpu.matmul %147, %148, %cst_54 {dimension_numbers = #tpu.dot_dimension_numbers<[1], [0], [0], [1], [0, 0, 1, 1], [], []>} : vector<128x256xf32>, vector<256x128xf32>, vector<128x128xf32> -> vector<128x128xf32>
    %150 = arith.addf %145, %149 : vector<128x128xf32>
    %c256_55 = arith.constant 256 : index
    %c0_56 = arith.constant 0 : index
    %151 = vector.load %arg3[%c256_55, %c0_56] : memref<1152x128xf32, #tpu.memory_space<vmem>>, vector<128x128xf32>
    %cst_57 = arith.constant dense<0.000000e+00> : vector<128x256xf32>
    %152 = tpu.matmul %151, %139, %cst_57 {dimension_numbers = #tpu.dot_dimension_numbers<[1], [0], [0], [1], [0, 0, 1, 1], [], []>} : vector<128x128xf32>, vector<128x256xf32>, vector<128x256xf32> -> vector<128x256xf32>
    %c512_58 = arith.constant 512 : index
    %c0_59 = arith.constant 0 : index
    %153 = vector.load %arg7[%c512_58, %c0_59] : memref<2304x128xf32, #tpu.memory_space<vmem>>, vector<256x128xf32>
    %cst_60 = arith.constant dense<0.000000e+00> : vector<128x128xf32>
    %154 = tpu.matmul %152, %153, %cst_60 {dimension_numbers = #tpu.dot_dimension_numbers<[1], [0], [0], [1], [0, 0, 1, 1], [], []>} : vector<128x256xf32>, vector<256x128xf32>, vector<128x128xf32> -> vector<128x128xf32>
    %155 = arith.addf %150, %154 : vector<128x128xf32>
    %c384_61 = arith.constant 384 : index
    %c0_62 = arith.constant 0 : index
    %156 = vector.load %arg3[%c384_61, %c0_62] : memref<1152x128xf32, #tpu.memory_space<vmem>>, vector<128x128xf32>
    %cst_63 = arith.constant dense<0.000000e+00> : vector<128x256xf32>
    %157 = tpu.matmul %156, %139, %cst_63 {dimension_numbers = #tpu.dot_dimension_numbers<[1], [0], [0], [1], [0, 0, 1, 1], [], []>} : vector<128x128xf32>, vector<128x256xf32>, vector<128x256xf32> -> vector<128x256xf32>
    %c768_64 = arith.constant 768 : index
    %c0_65 = arith.constant 0 : index
    %158 = vector.load %arg7[%c768_64, %c0_65] : memref<2304x128xf32, #tpu.memory_space<vmem>>, vector<256x128xf32>
    %cst_66 = arith.constant dense<0.000000e+00> : vector<128x128xf32>
    %159 = tpu.matmul %157, %158, %cst_66 {dimension_numbers = #tpu.dot_dimension_numbers<[1], [0], [0], [1], [0, 0, 1, 1], [], []>} : vector<128x256xf32>, vector<256x128xf32>, vector<128x128xf32> -> vector<128x128xf32>
    %160 = arith.addf %155, %159 : vector<128x128xf32>
    %c512_67 = arith.constant 512 : index
    %c0_68 = arith.constant 0 : index
    %161 = vector.load %arg3[%c512_67, %c0_68] : memref<1152x128xf32, #tpu.memory_space<vmem>>, vector<128x128xf32>
    %cst_69 = arith.constant dense<0.000000e+00> : vector<128x256xf32>
    %162 = tpu.matmul %161, %139, %cst_69 {dimension_numbers = #tpu.dot_dimension_numbers<[1], [0], [0], [1], [0, 0, 1, 1], [], []>} : vector<128x128xf32>, vector<128x256xf32>, vector<128x256xf32> -> vector<128x256xf32>
    %c1024_70 = arith.constant 1024 : index
    %c0_71 = arith.constant 0 : index
    %163 = vector.load %arg7[%c1024_70, %c0_71] : memref<2304x128xf32, #tpu.memory_space<vmem>>, vector<256x128xf32>
    %cst_72 = arith.constant dense<0.000000e+00> : vector<128x128xf32>
    %164 = tpu.matmul %162, %163, %cst_72 {dimension_numbers = #tpu.dot_dimension_numbers<[1], [0], [0], [1], [0, 0, 1, 1], [], []>} : vector<128x256xf32>, vector<256x128xf32>, vector<128x128xf32> -> vector<128x128xf32>
    %165 = arith.addf %160, %164 : vector<128x128xf32>
    %c640_73 = arith.constant 640 : index
    %c0_74 = arith.constant 0 : index
    %166 = vector.load %arg3[%c640_73, %c0_74] : memref<1152x128xf32, #tpu.memory_space<vmem>>, vector<128x128xf32>
    %cst_75 = arith.constant dense<0.000000e+00> : vector<128x256xf32>
    %167 = tpu.matmul %166, %139, %cst_75 {dimension_numbers = #tpu.dot_dimension_numbers<[1], [0], [0], [1], [0, 0, 1, 1], [], []>} : vector<128x128xf32>, vector<128x256xf32>, vector<128x256xf32> -> vector<128x256xf32>
    %c1280 = arith.constant 1280 : index
    %c0_76 = arith.constant 0 : index
    %168 = vector.load %arg7[%c1280, %c0_76] : memref<2304x128xf32, #tpu.memory_space<vmem>>, vector<256x128xf32>
    %cst_77 = arith.constant dense<0.000000e+00> : vector<128x128xf32>
    %169 = tpu.matmul %167, %168, %cst_77 {dimension_numbers = #tpu.dot_dimension_numbers<[1], [0], [0], [1], [0, 0, 1, 1], [], []>} : vector<128x256xf32>, vector<256x128xf32>, vector<128x128xf32> -> vector<128x128xf32>
    %170 = arith.addf %165, %169 : vector<128x128xf32>
    %c768_78 = arith.constant 768 : index
    %c0_79 = arith.constant 0 : index
    %171 = vector.load %arg3[%c768_78, %c0_79] : memref<1152x128xf32, #tpu.memory_space<vmem>>, vector<128x128xf32>
    %cst_80 = arith.constant dense<0.000000e+00> : vector<128x256xf32>
    %172 = tpu.matmul %171, %139, %cst_80 {dimension_numbers = #tpu.dot_dimension_numbers<[1], [0], [0], [1], [0, 0, 1, 1], [], []>} : vector<128x128xf32>, vector<128x256xf32>, vector<128x256xf32> -> vector<128x256xf32>
    %c1536 = arith.constant 1536 : index
    %c0_81 = arith.constant 0 : index
    %173 = vector.load %arg7[%c1536, %c0_81] : memref<2304x128xf32, #tpu.memory_space<vmem>>, vector<256x128xf32>
    %cst_82 = arith.constant dense<0.000000e+00> : vector<128x128xf32>
    %174 = tpu.matmul %172, %173, %cst_82 {dimension_numbers = #tpu.dot_dimension_numbers<[1], [0], [0], [1], [0, 0, 1, 1], [], []>} : vector<128x256xf32>, vector<256x128xf32>, vector<128x128xf32> -> vector<128x128xf32>
    %175 = arith.addf %170, %174 : vector<128x128xf32>
    %c896_83 = arith.constant 896 : index
    %c0_84 = arith.constant 0 : index
    %176 = vector.load %arg3[%c896_83, %c0_84] : memref<1152x128xf32, #tpu.memory_space<vmem>>, vector<128x128xf32>
    %cst_85 = arith.constant dense<0.000000e+00> : vector<128x256xf32>
    %177 = tpu.matmul %176, %139, %cst_85 {dimension_numbers = #tpu.dot_dimension_numbers<[1], [0], [0], [1], [0, 0, 1, 1], [], []>} : vector<128x128xf32>, vector<128x256xf32>, vector<128x256xf32> -> vector<128x256xf32>
    %c1792 = arith.constant 1792 : index
    %c0_86 = arith.constant 0 : index
    %178 = vector.load %arg7[%c1792, %c0_86] : memref<2304x128xf32, #tpu.memory_space<vmem>>, vector<256x128xf32>
    %cst_87 = arith.constant dense<0.000000e+00> : vector<128x128xf32>
    %179 = tpu.matmul %177, %178, %cst_87 {dimension_numbers = #tpu.dot_dimension_numbers<[1], [0], [0], [1], [0, 0, 1, 1], [], []>} : vector<128x256xf32>, vector<256x128xf32>, vector<128x128xf32> -> vector<128x128xf32>
    %180 = arith.addf %175, %179 : vector<128x128xf32>
    %c1024_88 = arith.constant 1024 : index
    %c0_89 = arith.constant 0 : index
    %181 = vector.load %arg3[%c1024_88, %c0_89] : memref<1152x128xf32, #tpu.memory_space<vmem>>, vector<128x128xf32>
    %cst_90 = arith.constant dense<0.000000e+00> : vector<128x256xf32>
    %182 = tpu.matmul %181, %139, %cst_90 {dimension_numbers = #tpu.dot_dimension_numbers<[1], [0], [0], [1], [0, 0, 1, 1], [], []>} : vector<128x128xf32>, vector<128x256xf32>, vector<128x256xf32> -> vector<128x256xf32>
    %c2048 = arith.constant 2048 : index
    %c0_91 = arith.constant 0 : index
    %183 = vector.load %arg7[%c2048, %c0_91] : memref<2304x128xf32, #tpu.memory_space<vmem>>, vector<256x128xf32>
    %cst_92 = arith.constant dense<0.000000e+00> : vector<128x128xf32>
    %184 = tpu.matmul %182, %183, %cst_92 {dimension_numbers = #tpu.dot_dimension_numbers<[1], [0], [0], [1], [0, 0, 1, 1], [], []>} : vector<128x256xf32>, vector<256x128xf32>, vector<128x128xf32> -> vector<128x128xf32>
    %185 = arith.addf %180, %184 : vector<128x128xf32>
    %c0_93 = arith.constant 0 : index
    %c0_94 = arith.constant 0 : index
    %186 = vector.load %arg12[%c0_93, %c0_94] : memref<2x128xf32, #tpu.memory_space<vmem>>, vector<2x128xf32>
    %cst_95 = arith.constant dense<0.000000e+00> : vector<128xf32>
    %187 = vector.multi_reduction <add>, %185, %cst_95 [0] : vector<128x128xf32> to vector<128xf32>
    %188 = vector.shape_cast %187 : vector<128xf32> to vector<1x128xf32>
    %cst_96 = arith.constant 1.280000e+02 : f32
    %189 = vector.broadcast %cst_96 : f32 to vector<1x128xf32>
    %190 = arith.divf %188, %189 : vector<1x128xf32>
    %191 = vector.broadcast %190 : vector<1x128xf32> to vector<128x128xf32>
    %192 = arith.subf %185, %191 : vector<128x128xf32>
    %193 = arith.mulf %192, %192 : vector<128x128xf32>
    %cst_97 = arith.constant dense<0.000000e+00> : vector<128xf32>
    %194 = vector.multi_reduction <add>, %193, %cst_97 [0] : vector<128x128xf32> to vector<128xf32>
    %195 = vector.shape_cast %194 : vector<128xf32> to vector<1x128xf32>
    %cst_98 = arith.constant 1.280000e+02 : f32
    %196 = vector.broadcast %cst_98 : f32 to vector<1x128xf32>
    %197 = arith.divf %195, %196 : vector<1x128xf32>
    %198 = vector.extract_strided_slice %186 {offsets = [0, 0], sizes = [1, 128], strides = [1, 1]} : vector<2x128xf32> to vector<1x128xf32>
    %cst_99 = arith.constant 9.99999974E-6 : f32
    %199 = vector.broadcast %cst_99 : f32 to vector<1x128xf32>
    %200 = arith.addf %197, %199 : vector<1x128xf32>
    %201 = math.rsqrt %200 : vector<1x128xf32>
    %202 = arith.mulf %198, %201 : vector<1x128xf32>
    %203 = vector.broadcast %202 : vector<1x128xf32> to vector<128x128xf32>
    %204 = arith.mulf %185, %203 : vector<128x128xf32>
    %205 = vector.extract_strided_slice %186 {offsets = [1, 0], sizes = [1, 128], strides = [1, 1]} : vector<2x128xf32> to vector<1x128xf32>
    %206 = arith.mulf %190, %202 : vector<1x128xf32>
    %207 = arith.subf %205, %206 : vector<1x128xf32>
    %208 = vector.broadcast %207 : vector<1x128xf32> to vector<128x128xf32>
    %209 = arith.addf %204, %208 : vector<128x128xf32>
    %cst_100 = arith.constant 0.000000e+00 : f32
    %210 = vector.broadcast %cst_100 : f32 to vector<128x128xf32>
    %211 = arith.cmpf ogt, %209, %210 : vector<128x128xf32>
    %cst_101 = arith.constant 2.000000e-01 : f32
    %212 = vector.broadcast %cst_101 : f32 to vector<128x128xf32>
    %213 = arith.mulf %212, %209 : vector<128x128xf32>
    %214 = arith.select %211, %209, %213 : vector<128x128xi1>, vector<128x128xf32>
    %cst_102 = arith.constant 0.000000e+00 : f32
    %215 = vector.broadcast %cst_102 : f32 to vector<128x64xf32>
    %c0_103 = arith.constant 0 : index
    %c0_104 = arith.constant 0 : index
    %216 = vector.load %arg3[%c0_103, %c0_104] : memref<1152x128xf32, #tpu.memory_space<vmem>>, vector<128x128xf32>
    %cst_105 = arith.constant dense<0.000000e+00> : vector<128x128xf32>
    %217 = tpu.matmul %216, %214, %cst_105 {dimension_numbers = #tpu.dot_dimension_numbers<[1], [0], [0], [1], [0, 0, 1, 1], [], []>} : vector<128x128xf32>, vector<128x128xf32>, vector<128x128xf32> -> vector<128x128xf32>
    %c0_106 = arith.constant 0 : index
    %c0_107 = arith.constant 0 : index
    %218 = vector.load %arg8[%c0_106, %c0_107] : memref<1152x64xf32, #tpu.memory_space<vmem>>, vector<128x64xf32>
    %cst_108 = arith.constant dense<0.000000e+00> : vector<128x64xf32>
    %219 = tpu.matmul %217, %218, %cst_108 {dimension_numbers = #tpu.dot_dimension_numbers<[1], [0], [0], [1], [0, 0, 1, 1], [], []>} : vector<128x128xf32>, vector<128x64xf32>, vector<128x64xf32> -> vector<128x64xf32>
    %220 = arith.addf %215, %219 : vector<128x64xf32>
    %c128_109 = arith.constant 128 : index
    %c0_110 = arith.constant 0 : index
    %221 = vector.load %arg3[%c128_109, %c0_110] : memref<1152x128xf32, #tpu.memory_space<vmem>>, vector<128x128xf32>
    %cst_111 = arith.constant dense<0.000000e+00> : vector<128x128xf32>
    %222 = tpu.matmul %221, %214, %cst_111 {dimension_numbers = #tpu.dot_dimension_numbers<[1], [0], [0], [1], [0, 0, 1, 1], [], []>} : vector<128x128xf32>, vector<128x128xf32>, vector<128x128xf32> -> vector<128x128xf32>
    %c128_112 = arith.constant 128 : index
    %c0_113 = arith.constant 0 : index
    %223 = vector.load %arg8[%c128_112, %c0_113] : memref<1152x64xf32, #tpu.memory_space<vmem>>, vector<128x64xf32>
    %cst_114 = arith.constant dense<0.000000e+00> : vector<128x64xf32>
    %224 = tpu.matmul %222, %223, %cst_114 {dimension_numbers = #tpu.dot_dimension_numbers<[1], [0], [0], [1], [0, 0, 1, 1], [], []>} : vector<128x128xf32>, vector<128x64xf32>, vector<128x64xf32> -> vector<128x64xf32>
    %225 = arith.addf %220, %224 : vector<128x64xf32>
    %c256_115 = arith.constant 256 : index
    %c0_116 = arith.constant 0 : index
    %226 = vector.load %arg3[%c256_115, %c0_116] : memref<1152x128xf32, #tpu.memory_space<vmem>>, vector<128x128xf32>
    %cst_117 = arith.constant dense<0.000000e+00> : vector<128x128xf32>
    %227 = tpu.matmul %226, %214, %cst_117 {dimension_numbers = #tpu.dot_dimension_numbers<[1], [0], [0], [1], [0, 0, 1, 1], [], []>} : vector<128x128xf32>, vector<128x128xf32>, vector<128x128xf32> -> vector<128x128xf32>
    %c256_118 = arith.constant 256 : index
    %c0_119 = arith.constant 0 : index
    %228 = vector.load %arg8[%c256_118, %c0_119] : memref<1152x64xf32, #tpu.memory_space<vmem>>, vector<128x64xf32>
    %cst_120 = arith.constant dense<0.000000e+00> : vector<128x64xf32>
    %229 = tpu.matmul %227, %228, %cst_120 {dimension_numbers = #tpu.dot_dimension_numbers<[1], [0], [0], [1], [0, 0, 1, 1], [], []>} : vector<128x128xf32>, vector<128x64xf32>, vector<128x64xf32> -> vector<128x64xf32>
    %230 = arith.addf %225, %229 : vector<128x64xf32>
    %c384_121 = arith.constant 384 : index
    %c0_122 = arith.constant 0 : index
    %231 = vector.load %arg3[%c384_121, %c0_122] : memref<1152x128xf32, #tpu.memory_space<vmem>>, vector<128x128xf32>
    %cst_123 = arith.constant dense<0.000000e+00> : vector<128x128xf32>
    %232 = tpu.matmul %231, %214, %cst_123 {dimension_numbers = #tpu.dot_dimension_numbers<[1], [0], [0], [1], [0, 0, 1, 1], [], []>} : vector<128x128xf32>, vector<128x128xf32>, vector<128x128xf32> -> vector<128x128xf32>
    %c384_124 = arith.constant 384 : index
    %c0_125 = arith.constant 0 : index
    %233 = vector.load %arg8[%c384_124, %c0_125] : memref<1152x64xf32, #tpu.memory_space<vmem>>, vector<128x64xf32>
    %cst_126 = arith.constant dense<0.000000e+00> : vector<128x64xf32>
    %234 = tpu.matmul %232, %233, %cst_126 {dimension_numbers = #tpu.dot_dimension_numbers<[1], [0], [0], [1], [0, 0, 1, 1], [], []>} : vector<128x128xf32>, vector<128x64xf32>, vector<128x64xf32> -> vector<128x64xf32>
    %235 = arith.addf %230, %234 : vector<128x64xf32>
    %c512_127 = arith.constant 512 : index
    %c0_128 = arith.constant 0 : index
    %236 = vector.load %arg3[%c512_127, %c0_128] : memref<1152x128xf32, #tpu.memory_space<vmem>>, vector<128x128xf32>
    %cst_129 = arith.constant dense<0.000000e+00> : vector<128x128xf32>
    %237 = tpu.matmul %236, %214, %cst_129 {dimension_numbers = #tpu.dot_dimension_numbers<[1], [0], [0], [1], [0, 0, 1, 1], [], []>} : vector<128x128xf32>, vector<128x128xf32>, vector<128x128xf32> -> vector<128x128xf32>
    %c512_130 = arith.constant 512 : index
    %c0_131 = arith.constant 0 : index
    %238 = vector.load %arg8[%c512_130, %c0_131] : memref<1152x64xf32, #tpu.memory_space<vmem>>, vector<128x64xf32>
    %cst_132 = arith.constant dense<0.000000e+00> : vector<128x64xf32>
    %239 = tpu.matmul %237, %238, %cst_132 {dimension_numbers = #tpu.dot_dimension_numbers<[1], [0], [0], [1], [0, 0, 1, 1], [], []>} : vector<128x128xf32>, vector<128x64xf32>, vector<128x64xf32> -> vector<128x64xf32>
    %240 = arith.addf %235, %239 : vector<128x64xf32>
    %c640_133 = arith.constant 640 : index
    %c0_134 = arith.constant 0 : index
    %241 = vector.load %arg3[%c640_133, %c0_134] : memref<1152x128xf32, #tpu.memory_space<vmem>>, vector<128x128xf32>
    %cst_135 = arith.constant dense<0.000000e+00> : vector<128x128xf32>
    %242 = tpu.matmul %241, %214, %cst_135 {dimension_numbers = #tpu.dot_dimension_numbers<[1], [0], [0], [1], [0, 0, 1, 1], [], []>} : vector<128x128xf32>, vector<128x128xf32>, vector<128x128xf32> -> vector<128x128xf32>
    %c640_136 = arith.constant 640 : index
    %c0_137 = arith.constant 0 : index
    %243 = vector.load %arg8[%c640_136, %c0_137] : memref<1152x64xf32, #tpu.memory_space<vmem>>, vector<128x64xf32>
    %cst_138 = arith.constant dense<0.000000e+00> : vector<128x64xf32>
    %244 = tpu.matmul %242, %243, %cst_138 {dimension_numbers = #tpu.dot_dimension_numbers<[1], [0], [0], [1], [0, 0, 1, 1], [], []>} : vector<128x128xf32>, vector<128x64xf32>, vector<128x64xf32> -> vector<128x64xf32>
    %245 = arith.addf %240, %244 : vector<128x64xf32>
    %c768_139 = arith.constant 768 : index
    %c0_140 = arith.constant 0 : index
    %246 = vector.load %arg3[%c768_139, %c0_140] : memref<1152x128xf32, #tpu.memory_space<vmem>>, vector<128x128xf32>
    %cst_141 = arith.constant dense<0.000000e+00> : vector<128x128xf32>
    %247 = tpu.matmul %246, %214, %cst_141 {dimension_numbers = #tpu.dot_dimension_numbers<[1], [0], [0], [1], [0, 0, 1, 1], [], []>} : vector<128x128xf32>, vector<128x128xf32>, vector<128x128xf32> -> vector<128x128xf32>
    %c768_142 = arith.constant 768 : index
    %c0_143 = arith.constant 0 : index
    %248 = vector.load %arg8[%c768_142, %c0_143] : memref<1152x64xf32, #tpu.memory_space<vmem>>, vector<128x64xf32>
    %cst_144 = arith.constant dense<0.000000e+00> : vector<128x64xf32>
    %249 = tpu.matmul %247, %248, %cst_144 {dimension_numbers = #tpu.dot_dimension_numbers<[1], [0], [0], [1], [0, 0, 1, 1], [], []>} : vector<128x128xf32>, vector<128x64xf32>, vector<128x64xf32> -> vector<128x64xf32>
    %250 = arith.addf %245, %249 : vector<128x64xf32>
    %c896_145 = arith.constant 896 : index
    %c0_146 = arith.constant 0 : index
    %251 = vector.load %arg3[%c896_145, %c0_146] : memref<1152x128xf32, #tpu.memory_space<vmem>>, vector<128x128xf32>
    %cst_147 = arith.constant dense<0.000000e+00> : vector<128x128xf32>
    %252 = tpu.matmul %251, %214, %cst_147 {dimension_numbers = #tpu.dot_dimension_numbers<[1], [0], [0], [1], [0, 0, 1, 1], [], []>} : vector<128x128xf32>, vector<128x128xf32>, vector<128x128xf32> -> vector<128x128xf32>
    %c896_148 = arith.constant 896 : index
    %c0_149 = arith.constant 0 : index
    %253 = vector.load %arg8[%c896_148, %c0_149] : memref<1152x64xf32, #tpu.memory_space<vmem>>, vector<128x64xf32>
    %cst_150 = arith.constant dense<0.000000e+00> : vector<128x64xf32>
    %254 = tpu.matmul %252, %253, %cst_150 {dimension_numbers = #tpu.dot_dimension_numbers<[1], [0], [0], [1], [0, 0, 1, 1], [], []>} : vector<128x128xf32>, vector<128x64xf32>, vector<128x64xf32> -> vector<128x64xf32>
    %255 = arith.addf %250, %254 : vector<128x64xf32>
    %c1024_151 = arith.constant 1024 : index
    %c0_152 = arith.constant 0 : index
    %256 = vector.load %arg3[%c1024_151, %c0_152] : memref<1152x128xf32, #tpu.memory_space<vmem>>, vector<128x128xf32>
    %cst_153 = arith.constant dense<0.000000e+00> : vector<128x128xf32>
    %257 = tpu.matmul %256, %214, %cst_153 {dimension_numbers = #tpu.dot_dimension_numbers<[1], [0], [0], [1], [0, 0, 1, 1], [], []>} : vector<128x128xf32>, vector<128x128xf32>, vector<128x128xf32> -> vector<128x128xf32>
    %c1024_154 = arith.constant 1024 : index
    %c0_155 = arith.constant 0 : index
    %258 = vector.load %arg8[%c1024_154, %c0_155] : memref<1152x64xf32, #tpu.memory_space<vmem>>, vector<128x64xf32>
    %cst_156 = arith.constant dense<0.000000e+00> : vector<128x64xf32>
    %259 = tpu.matmul %257, %258, %cst_156 {dimension_numbers = #tpu.dot_dimension_numbers<[1], [0], [0], [1], [0, 0, 1, 1], [], []>} : vector<128x128xf32>, vector<128x64xf32>, vector<128x64xf32> -> vector<128x64xf32>
    %260 = arith.addf %255, %259 : vector<128x64xf32>
    %c0_157 = arith.constant 0 : index
    %c0_158 = arith.constant 0 : index
    %261 = vector.load %arg13[%c0_157, %c0_158] : memref<2x64xf32, #tpu.memory_space<vmem>>, vector<2x64xf32>
    %cst_159 = arith.constant dense<0.000000e+00> : vector<64xf32>
    %262 = vector.multi_reduction <add>, %260, %cst_159 [0] : vector<128x64xf32> to vector<64xf32>
    %263 = vector.shape_cast %262 : vector<64xf32> to vector<1x64xf32>
    %cst_160 = arith.constant 1.280000e+02 : f32
    %264 = vector.broadcast %cst_160 : f32 to vector<1x64xf32>
    %265 = arith.divf %263, %264 : vector<1x64xf32>
    %266 = vector.broadcast %265 : vector<1x64xf32> to vector<128x64xf32>
    %267 = arith.subf %260, %266 : vector<128x64xf32>
    %268 = arith.mulf %267, %267 : vector<128x64xf32>
    %cst_161 = arith.constant dense<0.000000e+00> : vector<64xf32>
    %269 = vector.multi_reduction <add>, %268, %cst_161 [0] : vector<128x64xf32> to vector<64xf32>
    %270 = vector.shape_cast %269 : vector<64xf32> to vector<1x64xf32>
    %cst_162 = arith.constant 1.280000e+02 : f32
    %271 = vector.broadcast %cst_162 : f32 to vector<1x64xf32>
    %272 = arith.divf %270, %271 : vector<1x64xf32>
    %273 = vector.extract_strided_slice %261 {offsets = [0, 0], sizes = [1, 64], strides = [1, 1]} : vector<2x64xf32> to vector<1x64xf32>
    %cst_163 = arith.constant 9.99999974E-6 : f32
    %274 = vector.broadcast %cst_163 : f32 to vector<1x64xf32>
    %275 = arith.addf %272, %274 : vector<1x64xf32>
    %276 = math.rsqrt %275 : vector<1x64xf32>
    %277 = arith.mulf %273, %276 : vector<1x64xf32>
    %278 = vector.broadcast %277 : vector<1x64xf32> to vector<128x64xf32>
    %279 = arith.mulf %260, %278 : vector<128x64xf32>
    %280 = vector.extract_strided_slice %261 {offsets = [1, 0], sizes = [1, 64], strides = [1, 1]} : vector<2x64xf32> to vector<1x64xf32>
    %281 = arith.mulf %265, %277 : vector<1x64xf32>
    %282 = arith.subf %280, %281 : vector<1x64xf32>
    %283 = vector.broadcast %282 : vector<1x64xf32> to vector<128x64xf32>
    %284 = arith.addf %279, %283 : vector<128x64xf32>
    %cst_164 = arith.constant 0.000000e+00 : f32
    %285 = vector.broadcast %cst_164 : f32 to vector<128x64xf32>
    %286 = arith.cmpf ogt, %284, %285 : vector<128x64xf32>
    %cst_165 = arith.constant 2.000000e-01 : f32
    %287 = vector.broadcast %cst_165 : f32 to vector<128x64xf32>
    %288 = arith.mulf %287, %284 : vector<128x64xf32>
    %289 = arith.select %286, %284, %288 : vector<128x64xi1>, vector<128x64xf32>
    %cst_166 = arith.constant 0.000000e+00 : f32
    %290 = vector.broadcast %cst_166 : f32 to vector<128x128xf32>
    %c0_167 = arith.constant 0 : index
    %c0_168 = arith.constant 0 : index
    %291 = vector.load %arg3[%c0_167, %c0_168] : memref<1152x128xf32, #tpu.memory_space<vmem>>, vector<128x128xf32>
    %cst_169 = arith.constant dense<0.000000e+00> : vector<128x64xf32>
    %292 = tpu.matmul %291, %289, %cst_169 {dimension_numbers = #tpu.dot_dimension_numbers<[1], [0], [0], [1], [0, 0, 1, 1], [], []>} : vector<128x128xf32>, vector<128x64xf32>, vector<128x64xf32> -> vector<128x64xf32>
    %c0_170 = arith.constant 0 : index
    %c0_171 = arith.constant 0 : index
    %293 = vector.load %arg9[%c0_170, %c0_171] : memref<576x128xf32, #tpu.memory_space<vmem>>, vector<64x128xf32>
    %cst_172 = arith.constant dense<0.000000e+00> : vector<128x128xf32>
    %294 = tpu.matmul %292, %293, %cst_172 {dimension_numbers = #tpu.dot_dimension_numbers<[1], [0], [0], [1], [0, 0, 1, 1], [], []>} : vector<128x64xf32>, vector<64x128xf32>, vector<128x128xf32> -> vector<128x128xf32>
    %295 = arith.addf %290, %294 : vector<128x128xf32>
    %c128_173 = arith.constant 128 : index
    %c0_174 = arith.constant 0 : index
    %296 = vector.load %arg3[%c128_173, %c0_174] : memref<1152x128xf32, #tpu.memory_space<vmem>>, vector<128x128xf32>
    %cst_175 = arith.constant dense<0.000000e+00> : vector<128x64xf32>
    %297 = tpu.matmul %296, %289, %cst_175 {dimension_numbers = #tpu.dot_dimension_numbers<[1], [0], [0], [1], [0, 0, 1, 1], [], []>} : vector<128x128xf32>, vector<128x64xf32>, vector<128x64xf32> -> vector<128x64xf32>
    %c64 = arith.constant 64 : index
    %c0_176 = arith.constant 0 : index
    %298 = vector.load %arg9[%c64, %c0_176] : memref<576x128xf32, #tpu.memory_space<vmem>>, vector<64x128xf32>
    %cst_177 = arith.constant dense<0.000000e+00> : vector<128x128xf32>
    %299 = tpu.matmul %297, %298, %cst_177 {dimension_numbers = #tpu.dot_dimension_numbers<[1], [0], [0], [1], [0, 0, 1, 1], [], []>} : vector<128x64xf32>, vector<64x128xf32>, vector<128x128xf32> -> vector<128x128xf32>
    %300 = arith.addf %295, %299 : vector<128x128xf32>
    %c256_178 = arith.constant 256 : index
    %c0_179 = arith.constant 0 : index
    %301 = vector.load %arg3[%c256_178, %c0_179] : memref<1152x128xf32, #tpu.memory_space<vmem>>, vector<128x128xf32>
    %cst_180 = arith.constant dense<0.000000e+00> : vector<128x64xf32>
    %302 = tpu.matmul %301, %289, %cst_180 {dimension_numbers = #tpu.dot_dimension_numbers<[1], [0], [0], [1], [0, 0, 1, 1], [], []>} : vector<128x128xf32>, vector<128x64xf32>, vector<128x64xf32> -> vector<128x64xf32>
    %c128_181 = arith.constant 128 : index
    %c0_182 = arith.constant 0 : index
    %303 = vector.load %arg9[%c128_181, %c0_182] : memref<576x128xf32, #tpu.memory_space<vmem>>, vector<64x128xf32>
    %cst_183 = arith.constant dense<0.000000e+00> : vector<128x128xf32>
    %304 = tpu.matmul %302, %303, %cst_183 {dimension_numbers = #tpu.dot_dimension_numbers<[1], [0], [0], [1], [0, 0, 1, 1], [], []>} : vector<128x64xf32>, vector<64x128xf32>, vector<128x128xf32> -> vector<128x128xf32>
    %305 = arith.addf %300, %304 : vector<128x128xf32>
    %c384_184 = arith.constant 384 : index
    %c0_185 = arith.constant 0 : index
    %306 = vector.load %arg3[%c384_184, %c0_185] : memref<1152x128xf32, #tpu.memory_space<vmem>>, vector<128x128xf32>
    %cst_186 = arith.constant dense<0.000000e+00> : vector<128x64xf32>
    %307 = tpu.matmul %306, %289, %cst_186 {dimension_numbers = #tpu.dot_dimension_numbers<[1], [0], [0], [1], [0, 0, 1, 1], [], []>} : vector<128x128xf32>, vector<128x64xf32>, vector<128x64xf32> -> vector<128x64xf32>
    %c192 = arith.constant 192 : index
    %c0_187 = arith.constant 0 : index
    %308 = vector.load %arg9[%c192, %c0_187] : memref<576x128xf32, #tpu.memory_space<vmem>>, vector<64x128xf32>
    %cst_188 = arith.constant dense<0.000000e+00> : vector<128x128xf32>
    %309 = tpu.matmul %307, %308, %cst_188 {dimension_numbers = #tpu.dot_dimension_numbers<[1], [0], [0], [1], [0, 0, 1, 1], [], []>} : vector<128x64xf32>, vector<64x128xf32>, vector<128x128xf32> -> vector<128x128xf32>
    %310 = arith.addf %305, %309 : vector<128x128xf32>
    %c512_189 = arith.constant 512 : index
    %c0_190 = arith.constant 0 : index
    %311 = vector.load %arg3[%c512_189, %c0_190] : memref<1152x128xf32, #tpu.memory_space<vmem>>, vector<128x128xf32>
    %cst_191 = arith.constant dense<0.000000e+00> : vector<128x64xf32>
    %312 = tpu.matmul %311, %289, %cst_191 {dimension_numbers = #tpu.dot_dimension_numbers<[1], [0], [0], [1], [0, 0, 1, 1], [], []>} : vector<128x128xf32>, vector<128x64xf32>, vector<128x64xf32> -> vector<128x64xf32>
    %c256_192 = arith.constant 256 : index
    %c0_193 = arith.constant 0 : index
    %313 = vector.load %arg9[%c256_192, %c0_193] : memref<576x128xf32, #tpu.memory_space<vmem>>, vector<64x128xf32>
    %cst_194 = arith.constant dense<0.000000e+00> : vector<128x128xf32>
    %314 = tpu.matmul %312, %313, %cst_194 {dimension_numbers = #tpu.dot_dimension_numbers<[1], [0], [0], [1], [0, 0, 1, 1], [], []>} : vector<128x64xf32>, vector<64x128xf32>, vector<128x128xf32> -> vector<128x128xf32>
    %315 = arith.addf %310, %314 : vector<128x128xf32>
    %c640_195 = arith.constant 640 : index
    %c0_196 = arith.constant 0 : index
    %316 = vector.load %arg3[%c640_195, %c0_196] : memref<1152x128xf32, #tpu.memory_space<vmem>>, vector<128x128xf32>
    %cst_197 = arith.constant dense<0.000000e+00> : vector<128x64xf32>
    %317 = tpu.matmul %316, %289, %cst_197 {dimension_numbers = #tpu.dot_dimension_numbers<[1], [0], [0], [1], [0, 0, 1, 1], [], []>} : vector<128x128xf32>, vector<128x64xf32>, vector<128x64xf32> -> vector<128x64xf32>
    %c320 = arith.constant 320 : index
    %c0_198 = arith.constant 0 : index
    %318 = vector.load %arg9[%c320, %c0_198] : memref<576x128xf32, #tpu.memory_space<vmem>>, vector<64x128xf32>
    %cst_199 = arith.constant dense<0.000000e+00> : vector<128x128xf32>
    %319 = tpu.matmul %317, %318, %cst_199 {dimension_numbers = #tpu.dot_dimension_numbers<[1], [0], [0], [1], [0, 0, 1, 1], [], []>} : vector<128x64xf32>, vector<64x128xf32>, vector<128x128xf32> -> vector<128x128xf32>
    %320 = arith.addf %315, %319 : vector<128x128xf32>
    %c768_200 = arith.constant 768 : index
    %c0_201 = arith.constant 0 : index
    %321 = vector.load %arg3[%c768_200, %c0_201] : memref<1152x128xf32, #tpu.memory_space<vmem>>, vector<128x128xf32>
    %cst_202 = arith.constant dense<0.000000e+00> : vector<128x64xf32>
    %322 = tpu.matmul %321, %289, %cst_202 {dimension_numbers = #tpu.dot_dimension_numbers<[1], [0], [0], [1], [0, 0, 1, 1], [], []>} : vector<128x128xf32>, vector<128x64xf32>, vector<128x64xf32> -> vector<128x64xf32>
    %c384_203 = arith.constant 384 : index
    %c0_204 = arith.constant 0 : index
    %323 = vector.load %arg9[%c384_203, %c0_204] : memref<576x128xf32, #tpu.memory_space<vmem>>, vector<64x128xf32>
    %cst_205 = arith.constant dense<0.000000e+00> : vector<128x128xf32>
    %324 = tpu.matmul %322, %323, %cst_205 {dimension_numbers = #tpu.dot_dimension_numbers<[1], [0], [0], [1], [0, 0, 1, 1], [], []>} : vector<128x64xf32>, vector<64x128xf32>, vector<128x128xf32> -> vector<128x128xf32>
    %325 = arith.addf %320, %324 : vector<128x128xf32>
    %c896_206 = arith.constant 896 : index
    %c0_207 = arith.constant 0 : index
    %326 = vector.load %arg3[%c896_206, %c0_207] : memref<1152x128xf32, #tpu.memory_space<vmem>>, vector<128x128xf32>
    %cst_208 = arith.constant dense<0.000000e+00> : vector<128x64xf32>
    %327 = tpu.matmul %326, %289, %cst_208 {dimension_numbers = #tpu.dot_dimension_numbers<[1], [0], [0], [1], [0, 0, 1, 1], [], []>} : vector<128x128xf32>, vector<128x64xf32>, vector<128x64xf32> -> vector<128x64xf32>
    %c448 = arith.constant 448 : index
    %c0_209 = arith.constant 0 : index
    %328 = vector.load %arg9[%c448, %c0_209] : memref<576x128xf32, #tpu.memory_space<vmem>>, vector<64x128xf32>
    %cst_210 = arith.constant dense<0.000000e+00> : vector<128x128xf32>
    %329 = tpu.matmul %327, %328, %cst_210 {dimension_numbers = #tpu.dot_dimension_numbers<[1], [0], [0], [1], [0, 0, 1, 1], [], []>} : vector<128x64xf32>, vector<64x128xf32>, vector<128x128xf32> -> vector<128x128xf32>
    %330 = arith.addf %325, %329 : vector<128x128xf32>
    %c1024_211 = arith.constant 1024 : index
    %c0_212 = arith.constant 0 : index
    %331 = vector.load %arg3[%c1024_211, %c0_212] : memref<1152x128xf32, #tpu.memory_space<vmem>>, vector<128x128xf32>
    %cst_213 = arith.constant dense<0.000000e+00> : vector<128x64xf32>
    %332 = tpu.matmul %331, %289, %cst_213 {dimension_numbers = #tpu.dot_dimension_numbers<[1], [0], [0], [1], [0, 0, 1, 1], [], []>} : vector<128x128xf32>, vector<128x64xf32>, vector<128x64xf32> -> vector<128x64xf32>
    %c512_214 = arith.constant 512 : index
    %c0_215 = arith.constant 0 : index
    %333 = vector.load %arg9[%c512_214, %c0_215] : memref<576x128xf32, #tpu.memory_space<vmem>>, vector<64x128xf32>
    %cst_216 = arith.constant dense<0.000000e+00> : vector<128x128xf32>
    %334 = tpu.matmul %332, %333, %cst_216 {dimension_numbers = #tpu.dot_dimension_numbers<[1], [0], [0], [1], [0, 0, 1, 1], [], []>} : vector<128x64xf32>, vector<64x128xf32>, vector<128x128xf32> -> vector<128x128xf32>
    %335 = arith.addf %330, %334 : vector<128x128xf32>
    %c0_217 = arith.constant 0 : index
    %c0_218 = arith.constant 0 : index
    %336 = vector.load %arg10[%c0_217, %c0_218] : memref<1x128xf32, #tpu.memory_space<vmem>>, vector<1x128xf32>
    %337 = vector.broadcast %336 : vector<1x128xf32> to vector<128x128xf32>
    %338 = arith.addf %335, %337 : vector<128x128xf32>
    %339 = vector.extract_strided_slice %338 {offsets = [0, 0], sizes = [128, 1], strides = [1, 1]} : vector<128x128xf32> to vector<128x1xf32>
    %cst_219 = arith.constant 0.000000e+00 : f32
    %340 = vector.broadcast %cst_219 : f32 to vector<128x1xf32>
    %341 = arith.subf %340, %339 : vector<128x1xf32>
    %342 = math.exp %341 : vector<128x1xf32>
    %cst_220 = arith.constant 1.000000e+00 : f32
    %343 = vector.broadcast %cst_220 : f32 to vector<128x1xf32>
    %344 = arith.addf %343, %342 : vector<128x1xf32>
    %cst_221 = arith.constant 1.000000e+00 : f32
    %345 = vector.broadcast %cst_221 : f32 to vector<128x1xf32>
    %346 = arith.divf %345, %344 : vector<128x1xf32>
    %c0_222 = arith.constant 0 : index
    %c0_223 = arith.constant 0 : index
    %347 = vector.load %arg14[%c0_222, %c0_223] : memref<128x1xf32, #tpu.memory_space<vmem>>, vector<128x1xf32>
    tpu.vector_store %arg14[%c0_222, %c0_223], %346 {strides = array<i32>} : memref<128x1xf32, #tpu.memory_space<vmem>>, vector<128x1xf32>,
    return
  }
}

</mosaic_0001>

<bundles_post_ra>
// kernel: forward.1
= control target key start
LH: loop header
LB: loop body
LE: loop exit
PB: predicated region body
PF: predicated region fallthrough
CT: control target
= control target key end

     0   :  { %19 = vsyncpa [#allocation3], 0  ;;  %s18386_s29 = smov [#allocation2]   ;;  %s24840_s0 = inlined_call_operand.vmem [shape: f32[2,32], index: 0, kind: input, shape index: {}]   ;;  %s24841_s1 = inlined_call_operand.vmem [shape: f32[128,2], index: 1, kind: input, shape index: {}]   ;;  %s24842_s2 = inlined_call_operand.vmem [shape: f32[1152,64], index: 2, kind: input, shape index: {}]   ;;  %s24843_s3 = inlined_call_operand.vmem [shape: f32[1152,128], index: 3, kind: input, shape index: {}]   ;;  %s24844_s4 = inlined_call_operand.vmem [shape: f32[32,64], index: 4, kind: input, shape index: {}]   ;;  %s24845_s5 = inlined_call_operand.vmem [shape: f32[1,64], index: 5, kind: input, shape index: {}]   ;;  %s24846_s6 = inlined_call_operand.vmem [shape: f32[9,256], index: 6, kind: input, shape index: {}]   ;;  %s24847_s7 = inlined_call_operand.vmem [shape: f32[2304,128], index: 7, kind: input, shape index: {}]   ;;  %s24848_s8 = inlined_call_operand.vmem [shape: f32[1152,64], index: 8, kind: input, shape index: {}]   ;;  %s24849_s9 = inlined_call_operand.hbm [shape: f32[576,128], index: 9, kind: input, shape index: {}]   ;;  %s24850_s10 = inlined_call_operand.vmem [shape: f32[1,128], index: 10, kind: input, shape index: {}]   ;;  %s24851_s11 = inlined_call_operand.vmem [shape: f32[2,256], index: 11, kind: input, shape index: {}]   ;;  %s24852_s12 = inlined_call_operand.vmem [shape: f32[2,128], index: 12, kind: input, shape index: {}]   ;;  %s24853_s13 = inlined_call_operand.vmem [shape: f32[2,64], index: 13, kind: input, shape index: {}]   ;;  %s24854_s14 = inlined_call_operand.vmem [shape: f32[128,1], index: 14, kind: output, shape index: {}]  }
   0x1   :  { %s43_s30 = sshll.u32 %s18386_s29, 4  ;;  %s18362_s17 = scalar_lea.hbm %s24849_s9, 9216  ;;  %s44_s30 = int_to_ptr.vmem [resolvable:$true] %s43_s30 }
   0x2   :  { %p18363_p0 = scmp.ne.s32.totalorder %s24849_s9, %s18362_s17  ;;  %p18366_p1 = scmp.lt.u32.totalorder %s18362_s17, %s24849_s9 }
   0x4   :  { %p18368_p2 = pnand %p18366_p1, %p18363_p0 }
   0x6   :  { %18371 = shalt.err (!%p18368_p2)
}
   0x7   :  { %s18372_s22 = scalar_lea.vmem %s44_s30, 9216  ;;  %p18377_p4 = scmp.lt.s32.totalorder %s44_s30, %s44_s30 }
   0x8   :  { %p18373_p3 = scmp.ne.s32.totalorder %s44_s30, %s18372_s22  ;;  %p18378_p5 = scmp.lt.s32.totalorder %s18372_s22, %s18372_s22 }
   0xa   :  { %p18379_p6 = por %p18378_p5, %p18377_p4 }
   0xc   :  { %p18380_p7 = pnand %p18379_p6, %p18373_p3 }
   0xe   :  { %18383 = shalt.err (!%p18380_p7)
}
   0xf   :  { %s18387_s23 = smov 128   ;;  %s18388_s24 = smov 8  }
  0x10   :  { %49 = dma.hbm_to_vmem [thread:$0]  %s24849_s9, 9216, %s44_s30, [#allocation3], %s18387_s23, %s18387_s23, %s18388_s24  }
  0x11   :  { %18384 = dma.done.wait [#allocation3], 9216  }
  0x12   :  { %18385 = vsyncadd [#allocation3], 4294958080  ;;  %v18389_v0 = vmov 0   ;;  %v63_v1 = vld [vmem:[%s24841_s1 + $0x8] sm:$0xff]  ;;  %v62_v2 = vld [vmem:[%s24841_s1] sm:$0xff]  ;;  %v18390_v3 = vmov 1   ;;  %v158_v24 = vlaneseq }
  0x13   :  { %17997 = vset.pattern.permute.xlu1 %v18389_v0  ;;  %17995 = vset.pattern.permute.xlu0 %v18389_v0  ;;  %v278_v4 = vld [vmem:[%s24844_s4] sm:$0xff]  ;;  %v279_v5 = vld [vmem:[%s24844_s4 + $0x8] sm:$0xff]  ;;  %v280_v6 = vld [vmem:[%s24844_s4 + $0x10] sm:$0xff]  ;;  %vm289_vm0 = vcmask 261120   ;;  %vm24896_vm3 = vcmask 523264  }
  0x14   :  { %85 = vperm.xlu1 %17997, %v63_v1   ;;  %80 = vperm.xlu0 %17995, %v62_v2   ;;  %v281_v7 = vld [vmem:[%s24844_s4 + $0x18] sm:$0xff]  ;;  %v64_v8 = vld [vmem:[%s24841_s1 + $0x10] sm:$0xff]  ;;  %v16132_v9 = vpack.c.bf16 %v279_v5, %v278_v4  ;;  %v66_v12 = vld [vmem:[%s24841_s1 + $0x20] sm:$0xff]  ;;  %v18540_v25 = vshrl.u32 %v158_v24, 7 }
  0x15   :  { %v16136_v10 = vpack.c.bf16 %v281_v7, %v280_v6  ;;  %v65_v11 = vld [vmem:[%s24841_s1 + $0x18] sm:$0xff]  ;;  %v67_v13 = vld [vmem:[%s24841_s1 + $0x28] sm:$0xff]  ;;  %v68_v14 = vld [vmem:[%s24841_s1 + $0x30] sm:$0xff] }
  0x16   :  { %16133 = vmatprep.subr.bf16.mxu0 %v16132_v9  ;;  %v69_v15 = vld [vmem:[%s24841_s1 + $0x38] sm:$0xff]  ;;  %v70_v16 = vld [vmem:[%s24841_s1 + $0x40] sm:$0xff]  ;;  %v71_v17 = vld [vmem:[%s24841_s1 + $0x48] sm:$0xff]  ;;  %24897 = vst [vmem:[#allocation5_spill] sm:$0xff] %v18540_v25  ;;  %v18543_v26 = vsub.s32 0, %v18540_v25  ;;  %v18546_v27 = vsub.s32 1, %v18540_v25 }
  0x17   :  { %16135 = vmatpush3.bf16.msra.mxu0 %v16132_v9  ;;  %v72_v18 = vld [vmem:[%s24841_s1 + $0x50] sm:$0xff]  ;;  %v73_v19 = vld [vmem:[%s24841_s1 + $0x58] sm:$0xff]  ;;  %v74_v20 = vld [vmem:[%s24841_s1 + $0x60] sm:$0xff] }
  0x18   :  { %17998 = vset.pattern.permute.xlu1 %v18390_v3  ;;  %17996 = vset.pattern.permute.xlu0 %v18390_v3  ;;  %v75_v21 = vld [vmem:[%s24841_s1 + $0x68] sm:$0xff]  ;;  %v76_v22 = vld [vmem:[%s24841_s1 + $0x70] sm:$0xff]  ;;  %v77_v23 = vld [vmem:[%s24841_s1 + $0x78] sm:$0xff]  ;;  %24898 = vst [vmem:[#allocation6_spill] sm:$0xff] %v18543_v26 }
  0x19   :  { %183 = vperm.xlu1 %17998, %v63_v1   ;;  %179 = vperm.xlu0 %17996, %v62_v2   ;;  %24899 = vst [vmem:[#allocation7_spill] sm:$0xff] %v18546_v27  ;;  %v61_v28 = vld [vmem:[%s24840_s0] sm:$0x3] }
  0x1a   :  { %16137 = vmatprep.subr.bf16.mxu0 %v16136_v10  ;;  %v18552_v31 = vrot.slane %v61_v28, %v18543_v26  ;;  %v18555_v32 = vrot.slane %v61_v28, %v18546_v27 }
  0x1b   :  { %16139 = vmatpush3.bf16.msra.mxu0 %v16136_v10 }
  0x1d   :  { %17999 = vset.pattern.permute.xlu1 %v18389_v0  ;;  %187 = vperm.xlu0 %17996, %v64_v8  }
  0x1e   :  { %90 = vperm.xlu1 %17999, %v64_v8  }
  0x21   :  { %191 = vperm.xlu0 %17996, %v65_v11  }
  0x22   :  { %95 = vperm.xlu1 %17999, %v65_v11  }
  0x25   :  { %195 = vperm.xlu0 %17996, %v66_v12  }
  0x26   :  { %100 = vperm.xlu1 %17999, %v66_v12  }
  0x29   :  { %199 = vperm.xlu0 %17996, %v67_v13  }
  0x2a   :  { %105 = vperm.xlu1 %17999, %v67_v13  }
  0x2d   :  { %203 = vperm.xlu0 %17996, %v68_v14  }
  0x2e   :  { %110 = vperm.xlu1 %17999, %v68_v14  }
  0x31   :  { %207 = vperm.xlu0 %17996, %v69_v15  }
  0x32   :  { %115 = vperm.xlu1 %17999, %v69_v15  }
  0x35   :  { %211 = vperm.xlu0 %17996, %v70_v16  }
  0x36   :  { %120 = vperm.xlu1 %17999, %v70_v16  }
  0x39   :  { %215 = vperm.xlu0 %17996, %v71_v17  }
  0x3a   :  { %125 = vperm.xlu1 %17999, %v71_v17  }
  0x3d   :  { %219 = vperm.xlu0 %17996, %v72_v18  }
  0x3e   :  { %130 = vperm.xlu1 %17999, %v72_v18  }
  0x41   :  { %223 = vperm.xlu0 %17996, %v73_v19  }
  0x42   :  { %135 = vperm.xlu1 %17999, %v73_v19  }
  0x45   :  { %227 = vperm.xlu0 %17996, %v74_v20  }
  0x46   :  { %140 = vperm.xlu1 %17999, %v74_v20  }
  0x49   :  { %231 = vperm.xlu0 %17996, %v75_v21  }
  0x4a   :  { %145 = vperm.xlu1 %17999, %v75_v21  }
  0x4d   :  { %235 = vperm.xlu0 %17996, %v76_v22  }
  0x4e   :  { %150 = vperm.xlu1 %17999, %v76_v22  }
  0x51   :  { %239 = vperm.xlu0 %17996, %v77_v23  }
  0x52   :  { %155 = vperm.xlu1 %17999, %v77_v23  }
  0x93   :  { %v81_v29 = vpop.permute.xlu0 %80  ;;  %v86_v30 = vpop.permute.xlu1 %85 }
  0x94   :  { %v162_v35 = vmul.f32 %v18552_v31, %v81_v29  ;;  %v163_v36 = vmul.f32 %v18552_v31, %v86_v30 }
  0x98   :  { %v184_v33 = vpop.permute.xlu1 %183  ;;  %v180_v34 = vpop.permute.xlu0 %179 }
  0x99   :  { %v247_v37 = vmul.f32 %v18555_v32, %v184_v33  ;;  %v246_v38 = vmul.f32 %v18555_v32, %v180_v34 }
  0x9b   :  { %v263_v39 = vadd.f32 %v247_v37, %v163_v36  ;;  %v262_v40 = vadd.f32 %v246_v38, %v162_v35 }
  0x9c   :  { %v188_v41 = vpop.permute.xlu0 %187 }
  0x9d   :  { %v248_v42 = vmul.f32 %v18555_v32, %v188_v41  ;;  %v91_v43 = vpop.permute.xlu1 %90  ;;  %14236 = vmatprep.mubr.msk.f32.mxu0 %vm289_vm0, %v262_v40 }
  0x9e   :  { %v164_v44 = vmul.f32 %v18552_v31, %v91_v43  ;;  %14237 = vmatmul.mubr.msk.f32.vlgmr.msra.gmra.mrb[0].mxu0 %vm289_vm0, %v263_v39 }
  0xa0   :  { %v264_v45 = vadd.f32 %v248_v42, %v164_v44  ;;  %v192_v46 = vpop.permute.xlu0 %191 }
  0xa1   :  { %v249_v47 = vmul.f32 %v18555_v32, %v192_v46  ;;  %v96_v48 = vpop.permute.xlu1 %95 }
  0xa2   :  { %v165_v49 = vmul.f32 %v18552_v31, %v96_v48  ;;  %14239 = vmatprep.mubr.msk.f32.mxu0 %vm289_vm0, %v264_v45 }
  0xa4   :  { %v265_v50 = vadd.f32 %v249_v47, %v165_v49  ;;  %v196_v51 = vpop.permute.xlu0 %195 }
  0xa5   :  { %v250_v52 = vmul.f32 %v18555_v32, %v196_v51  ;;  %v101_v53 = vpop.permute.xlu1 %100 }
  0xa6   :  { %v166_v54 = vmul.f32 %v18552_v31, %v101_v53  ;;  %14240 = vmatmul.mubr.msk.f32.gmra.mrb[2].mxu0 %vm289_vm0, %v265_v50 }
  0xa8   :  { %v266_v55 = vadd.f32 %v250_v52, %v166_v54  ;;  %v200_v56 = vpop.permute.xlu0 %199  ;;  %v18608_v52 = vld [vmem:[%s24845_s5] ss:$0 sm:$0xff] }
  0xa9   :  { %v251_v57 = vmul.f32 %v18555_v32, %v200_v56  ;;  %v106_v58 = vpop.permute.xlu1 %105 }
  0xaa   :  { %v167_v59 = vmul.f32 %v18552_v31, %v106_v58  ;;  %14242 = vmatprep.mubr.msk.f32.mxu0 %vm289_vm0, %v266_v55  ;;  %v737_v58 = vld [vmem:[%s24842_s2 + $0x88] sm:$0xff] }
  0xac   :  { %v267_v60 = vadd.f32 %v251_v57, %v167_v59  ;;  %v204_v61 = vpop.permute.xlu0 %203  ;;  %v584_v59 = vld [vmem:[%s24842_s2 + $0x8] sm:$0xff] }
  0xad   :  { %v252_v62 = vmul.f32 %v18555_v32, %v204_v61  ;;  %v111_v63 = vpop.permute.xlu1 %110 }
  0xae   :  { %v168_v0 = vmul.f32 %v18552_v31, %v111_v63  ;;  %14243 = vmatmul.mubr.msk.f32.gmra.mrb[4].mxu0 %vm289_vm0, %v267_v60  ;;  %v1041_v63 = vld [vmem:[%s24842_s2 + $0x188] sm:$0xff] }
  0xb0   :  { %v268_v1 = vadd.f32 %v252_v62, %v168_v0  ;;  %v208_v2 = vpop.permute.xlu0 %207  ;;  %v889_v62 = vld [vmem:[%s24842_s2 + $0x108] sm:$0xff] }
  0xb1   :  { %v253_v3 = vmul.f32 %v18555_v32, %v208_v2  ;;  %v116_v4 = vpop.permute.xlu1 %115 }
  0xb2   :  { %v169_v5 = vmul.f32 %v18552_v31, %v116_v4  ;;  %14245 = vmatprep.mubr.msk.f32.mxu0 %vm289_vm0, %v268_v1 }
  0xb4   :  { %v269_v6 = vadd.f32 %v253_v3, %v169_v5  ;;  %v212_v7 = vpop.permute.xlu0 %211 }
  0xb5   :  { %v254_v8 = vmul.f32 %v18555_v32, %v212_v7  ;;  %v121_v9 = vpop.permute.xlu1 %120 }
  0xb6   :  { %v170_v10 = vmul.f32 %v18552_v31, %v121_v9  ;;  %14246 = vmatmul.mubr.msk.f32.gmra.mrb[6].mxu0 %vm289_vm0, %v269_v6  ;;  %v1193_v9 = vld [vmem:[%s24842_s2 + $0x208] sm:$0xff] }
  0xb8   :  { %v270_v11 = vadd.f32 %v254_v8, %v170_v10  ;;  %v216_v12 = vpop.permute.xlu0 %215  ;;  %v1345_v8 = vld [vmem:[%s24842_s2 + $0x288] sm:$0xff] }
  0xb9   :  { %v255_v13 = vmul.f32 %v18555_v32, %v216_v12  ;;  %v126_v14 = vpop.permute.xlu1 %125 }
  0xba   :  { %v171_v15 = vmul.f32 %v18552_v31, %v126_v14  ;;  %14248 = vmatprep.mubr.msk.f32.mxu0 %vm289_vm0, %v270_v11 }
  0xbc   :  { %v271_v16 = vadd.f32 %v255_v13, %v171_v15  ;;  %v220_v17 = vpop.permute.xlu0 %219 }
  0xbd   :  { %v256_v18 = vmul.f32 %v18555_v32, %v220_v17  ;;  %v131_v19 = vpop.permute.xlu1 %130  ;;  %v1497_v17 = vld [vmem:[%s24842_s2 + $0x308] sm:$0xff] }
  0xbe   :  { %v172_v20 = vmul.f32 %v18552_v31, %v131_v19  ;;  %14249 = vmatmul.mubr.msk.f32.gmra.mrb[8].mxu0 %vm289_vm0, %v271_v16 }
  0xc0   :  { %v272_v21 = vadd.f32 %v256_v18, %v172_v20  ;;  %v224_v22 = vpop.permute.xlu0 %223  ;;  %v1649_v18 = vld [vmem:[%s24842_s2 + $0x388] sm:$0xff] }
  0xc1   :  { %v257_v23 = vmul.f32 %v18555_v32, %v224_v22  ;;  %v136_v24 = vpop.permute.xlu1 %135 }
  0xc2   :  { %v173_v28 = vmul.f32 %v18552_v31, %v136_v24  ;;  %14251 = vmatprep.mubr.msk.f32.mxu0 %vm289_vm0, %v272_v21 }
  0xc4   :  { %v273_v29 = vadd.f32 %v257_v23, %v173_v28  ;;  %v228_v30 = vpop.permute.xlu0 %227 }
  0xc5   :  { %v258_v33 = vmul.f32 %v18555_v32, %v228_v30  ;;  %v141_v34 = vpop.permute.xlu1 %140  ;;  %v1801_v30 = vld [vmem:[%s24842_s2 + $0x408] sm:$0xff] }
  0xc6   :  { %v174_v35 = vmul.f32 %v18552_v31, %v141_v34  ;;  %14252 = vmatmul.mubr.msk.f32.gmra.mrb[10].mxu0 %vm289_vm0, %v273_v29 }
  0xc8   :  { %v274_v36 = vadd.f32 %v258_v33, %v174_v35  ;;  %v232_v37 = vpop.permute.xlu0 %231  ;;  %v583_v33 = vld [vmem:[%s24842_s2] sm:$0xff] }
  0xc9   :  { %v259_v38 = vmul.f32 %v18555_v32, %v232_v37  ;;  %v146_v39 = vpop.permute.xlu1 %145 }
  0xca   :  { %v175_v40 = vmul.f32 %v18552_v31, %v146_v39  ;;  %14254 = vmatprep.mubr.msk.f32.mxu0 %vm289_vm0, %v274_v36  ;;  %v736_v39 = vld [vmem:[%s24842_s2 + $0x80] sm:$0xff] }
  0xcc   :  { %v275_v41 = vadd.f32 %v259_v38, %v175_v40  ;;  %v236_v42 = vpop.permute.xlu0 %235  ;;  %v1040_v40 = vld [vmem:[%s24842_s2 + $0x180] sm:$0xff] }
  0xcd   :  { %v260_v43 = vmul.f32 %v18555_v32, %v236_v42  ;;  %v151_v44 = vpop.permute.xlu1 %150 }
  0xce   :  { %v176_v45 = vmul.f32 %v18552_v31, %v151_v44  ;;  %14255 = vmatmul.mubr.msk.f32.gmra.mrb[12].mxu0 %vm289_vm0, %v275_v41 }
  0xd0   :  { %v276_v46 = vadd.f32 %v260_v43, %v176_v45  ;;  %v240_v47 = vpop.permute.xlu0 %239 }
  0xd1   :  { %v261_v48 = vmul.f32 %v18555_v32, %v240_v47  ;;  %v156_v49 = vpop.permute.xlu1 %155 }
  0xd2   :  { %v177_v50 = vmul.f32 %v18552_v31, %v156_v49  ;;  %14257 = vmatprep.mubr.msk.f32.mxu0 %vm289_vm0, %v276_v46  ;;  %v888_v49 = vld [vmem:[%s24842_s2 + $0x100] sm:$0xff] }
  0xd4   :  { %v277_v51 = vadd.f32 %v261_v48, %v177_v50  ;;  %v1192_v50 = vld [vmem:[%s24842_s2 + $0x200] sm:$0xff] }
  0xd6   :  { %14258 = vmatmul.mubr.msk.f32.gmra.mrb[14].mxu0 %vm289_vm0, %v277_v51 }
 0x171   :  { %v14238_v53 = vpop.f32.mrb[0].mxu0 }
 0x172   :  { %v410_v54 = vadd.f32 %v14238_v53, %v18608_v52  ;;  %v404_v55 = vpop.f32.mrb[1].mxu0 }
 0x173   :  { %v405_v57 = vadd.f32 %v18608_v52, %v404_v55 }
 0x174   :  { %vm484_vm1 = vcmp.gt.f32.partialorder %v410_v54, 0.0  ;;  %v500_v56 = vmul.f32 0.2, %v410_v54 }
 0x175   :  { %v499_v0 = vmul.f32 0.2, %v405_v57  ;;  %vm483_vm4 = vcmp.gt.f32.partialorder %v405_v57, 0.0 }
 0x176   :  { %v516_v32 = vsel %vm484_vm1, %v410_v54, %v500_v56 }
 0x177   :  { %vm532_vm2 = vcmp.gt.f32.partialorder %v516_v32, 0.0  ;;  %v548_v31 = vmul.f32 0.2, %v516_v32  ;;  %v515_v10 = vsel %vm483_vm4, %v405_v57, %v499_v0  ;;  %v1344_v57 = vld [vmem:[%s24842_s2 + $0x280] sm:$0xff] }
 0x178   :  { %v547_v15 = vmul.f32 0.2, %v515_v10  ;;  %vm531_vm5 = vcmp.gt.f32.partialorder %v515_v10, 0.0 }
 0x179   :  { %v564_v60 = vsel %vm532_vm2, %v516_v32, %v548_v31  ;;  %v14241_v61 = vpop.f32.mrb[2].mxu0  ;;  %v1648_v31 = vld [vmem:[%s24842_s2 + $0x380] sm:$0xff] }
 0x17a   :  { %v18624_v1 = vpop.f32.mrb[3].mxu0  ;;  %v753_v2 = vmul.f32 %v737_v58, %v564_v60  ;;  %v600_v3 = vmul.f32 %v584_v59, %v564_v60  ;;  %v905_v6 = vmul.f32 %v889_v62, %v564_v60  ;;  %v1057_v7 = vmul.f32 %v1041_v63, %v564_v60 }
 0x17b   :  { %v1361_v13 = vmul.f32 %v1345_v8, %v564_v60  ;;  %v1209_v14 = vmul.f32 %v1193_v9, %v564_v60  ;;  %v1513_v24 = vmul.f32 %v1497_v17, %v564_v60  ;;  %v1665_v28 = vmul.f32 %v1649_v18, %v564_v60 }
 0x17c   :  { %v771_v4 = vsel %vm24896_vm3, %v753_v2, 0.0  ;;  %v619_v5 = vsel %vm24896_vm3, %v600_v3, 0.0  ;;  %v923_v11 = vsel %vm24896_vm3, %v905_v6, 0.0  ;;  %v1075_v12 = vsel %vm24896_vm3, %v1057_v7, 0.0 }
 0x17d   :  { %772 = vadd.xlane.f32.xlu1 %v771_v4  ;;  %620 = vadd.xlane.f32.xlu0 %v619_v5  ;;  %v1379_v22 = vsel %vm24896_vm3, %v1361_v13, 0.0  ;;  %v1227_v23 = vsel %vm24896_vm3, %v1209_v14, 0.0  ;;  %v563_v29 = vsel %vm531_vm5, %v515_v10, %v547_v15  ;;  %v1531_v34 = vsel %vm24896_vm3, %v1513_v24, 0.0  ;;  %v1496_v4 = vld [vmem:[%s24842_s2 + $0x300] sm:$0xff]  ;;  %v739_v13 = vld [vmem:[%s24842_s2 + $0x98] sm:$0xff] }
 0x17e   :  { %v1683_v35 = vsel %vm24896_vm3, %v1665_v28, 0.0  ;;  %v1817_v36 = vmul.f32 %v1801_v30, %v564_v60  ;;  %v599_v37 = vmul.f32 %v583_v33, %v563_v29  ;;  %v420_v41 = vadd.f32 %v14241_v61, %v18608_v52  ;;  %v1800_v5 = vld [vmem:[%s24842_s2 + $0x400] sm:$0xff]  ;;  %v1043_v24 = vld [vmem:[%s24842_s2 + $0x198] sm:$0xff] }
 0x17f   :  { %v752_v47 = vmul.f32 %v736_v39, %v563_v29  ;;  %v1056_v48 = vmul.f32 %v1040_v40, %v563_v29  ;;  %v904_v55 = vmul.f32 %v888_v49, %v563_v29  ;;  %v1208_v56 = vmul.f32 %v1192_v50, %v563_v29  ;;  %v1651_v49 = vld [vmem:[%s24842_s2 + $0x398] sm:$0xff] }
 0x180   :  { %v1835_v45 = vsel %vm24896_vm3, %v1817_v36, 0.0  ;;  %v616_v46 = vsel %vm24896_vm3, %v599_v37, 0.0  ;;  %v502_v51 = vmul.f32 0.2, %v420_v41  ;;  %vm486_vm6 = vcmp.gt.f32.partialorder %v420_v41, 0.0  ;;  %v1195_v36 = vld [vmem:[%s24842_s2 + $0x218] sm:$0xff] }
 0x181   :  { %924 = vadd.xlane.f32.xlu1 %v923_v11  ;;  %1076 = vadd.xlane.f32.xlu0 %v1075_v12  ;;  %v14244_v16 = vpop.f32.mrb[4].mxu0  ;;  %v768_v53 = vsel %vm24896_vm3, %v752_v47, 0.0  ;;  %v1072_v54 = vsel %vm24896_vm3, %v1056_v48, 0.0  ;;  %v920_v62 = vsel %vm24896_vm3, %v904_v55, 0.0  ;;  %v1224_v63 = vsel %vm24896_vm3, %v1208_v56, 0.0  ;;  %v586_v12 = vld [vmem:[%s24842_s2 + $0x18] sm:$0xff] }
 0x182   :  { %v18643_v19 = vadd.f32 %v14244_v16, %v18608_v52  ;;  %v424_v20 = vpop.f32.mrb[5].mxu0  ;;  %v518_v58 = vsel %vm486_vm6, %v420_v41, %v502_v51  ;;  %v1360_v0 = vmul.f32 %v1344_v57, %v563_v29  ;;  %v1664_v2 = vmul.f32 %v1648_v31, %v563_v29  ;;  %v1347_v37 = vld [vmem:[%s24842_s2 + $0x298] sm:$0xff]  ;;  %v738_v31 = vld [vmem:[%s24842_s2 + $0x90] sm:$0xff] }
 0x183   :  { %v18646_v21 = vadd.f32 %v18608_v52, %v424_v20  ;;  %v550_v3 = vmul.f32 0.2, %v518_v58  ;;  %vm534_vm7 = vcmp.gt.f32.partialorder %v518_v58, 0.0  ;;  %v1512_v8 = vmul.f32 %v1496_v4, %v563_v29  ;;  %v1499_v50 = vld [vmem:[%s24842_s2 + $0x318] sm:$0xff]  ;;  %v585_v4 = vld [vmem:[%s24842_s2 + $0x10] sm:$0xff] }
 0x184   :  { %v1376_v6 = vsel %vm24896_vm3, %v1360_v0, 0.0  ;;  %v1680_v7 = vsel %vm24896_vm3, %v1664_v2, 0.0  ;;  %v1816_v9 = vmul.f32 %v1800_v5, %v563_v29  ;;  %v415_v14 = vadd.f32 %v18608_v52, %v18624_v1  ;;  %v891_v1 = vld [vmem:[%s24842_s2 + $0x118] sm:$0xff]  ;;  %v1194_v5 = vld [vmem:[%s24842_s2 + $0x210] sm:$0xff] }
 0x185   :  { %1380 = vadd.xlane.f32.xlu1 %v1379_v22  ;;  %1228 = vadd.xlane.f32.xlu0 %v1227_v23  ;;  %v566_v10 = vsel %vm534_vm7, %v518_v58, %v550_v3  ;;  %v1528_v18 = vsel %vm24896_vm3, %v1512_v8, 0.0  ;;  %v1803_v57 = vld [vmem:[%s24842_s2 + $0x418] sm:$0xff]  ;;  %vm488_vm10 = vcmp.gt.f32.partialorder %v18643_v19, 0.0  ;;  %vm487_vm12 = vcmp.gt.f32.partialorder %v18646_v21, 0.0 }
 0x186   :  { %v1832_v20 = vsel %vm24896_vm3, %v1816_v9, 0.0  ;;  %v602_v22 = vmul.f32 %v586_v12, %v566_v10  ;;  %v755_v23 = vmul.f32 %v739_v13, %v566_v10  ;;  %v501_v28 = vmul.f32 0.2, %v415_v14 }
 0x187   :  { %vm485_vm8 = vcmp.gt.f32.partialorder %v415_v14, 0.0  ;;  %v1059_v33 = vmul.f32 %v1043_v24, %v566_v10  ;;  %v1363_v47 = vmul.f32 %v1347_v37, %v566_v10  ;;  %v1515_v55 = vmul.f32 %v1499_v50, %v566_v10 }
 0x188   :  { %v625_v29 = vsel %vm24896_vm3, %v602_v22, 0.0  ;;  %v777_v30 = vsel %vm24896_vm3, %v755_v23, 0.0  ;;  %v1819_v2 = vmul.f32 %v1803_v57, %v566_v10  ;;  %v1042_v22 = vld [vmem:[%s24842_s2 + $0x190] sm:$0xff]  ;;  %v893_v57 = vld [vmem:[%s24842_s2 + $0x128] sm:$0xff] }
 0x189   :  { %1532 = vadd.xlane.f32.xlu1 %v1531_v34  ;;  %1684 = vadd.xlane.f32.xlu0 %v1683_v35  ;;  %v14247_v38 = vpop.f32.mrb[6].mxu0  ;;  %v907_v34 = vmul.f32 %v891_v1, %v566_v10  ;;  %v1537_v0 = vsel %vm24896_vm3, %v1515_v55, 0.0  ;;  %v1802_v23 = vld [vmem:[%s24842_s2 + $0x410] sm:$0xff] }
 0x18a   :  { %v18666_v42 = vadd.f32 %v14247_v38, %v18608_v52  ;;  %v434_v43 = vpop.f32.mrb[7].mxu0  ;;  %v517_v38 = vsel %vm485_vm8, %v415_v14, %v501_v28 }
 0x18b   :  { %v18669_v44 = vadd.f32 %v18608_v52, %v434_v43  ;;  %v1081_v43 = vsel %vm24896_vm3, %v1059_v33, 0.0  ;;  %v549_v48 = vmul.f32 0.2, %v517_v38  ;;  %vm533_vm9 = vcmp.gt.f32.partialorder %v517_v38, 0.0  ;;  %v588_v33 = vld [vmem:[%s24842_s2 + $0x28] sm:$0xff] }
 0x18c   :  { %vm490_vm14 = vcmp.gt.f32.partialorder %v18666_v42, 0.0 }
 0x18d   :  { %1836 = vadd.xlane.f32.xlu0 %v1835_v45  ;;  %617 = vadd.xlane.f32.xlu1 %v616_v46  ;;  %v929_v45 = vsel %vm24896_vm3, %v907_v34, 0.0  ;;  %v1211_v46 = vmul.f32 %v1195_v36, %v566_v10  ;;  %v565_v56 = vsel %vm533_vm9, %v517_v38, %v549_v48  ;;  %v503_v34 = vmul.f32 0.2, %v18646_v21 }
 0x18e   :  { %v754_v3 = vmul.f32 %v738_v31, %v565_v56  ;;  %v601_v8 = vmul.f32 %v585_v4, %v565_v56  ;;  %v1210_v9 = vmul.f32 %v1194_v5, %v565_v56  ;;  %v1058_v1 = vmul.f32 %v1042_v22, %v565_v56  ;;  %v587_v31 = vld [vmem:[%s24842_s2 + $0x20] sm:$0xff] }
 0x18f   :  { %v1233_v51 = vsel %vm24896_vm3, %v1211_v46, 0.0  ;;  %v1818_v28 = vmul.f32 %v1802_v23, %v565_v56  ;;  %v892_v4 = vld [vmem:[%s24842_s2 + $0x120] sm:$0xff]  ;;  %vm489_vm0 = vcmp.gt.f32.partialorder %v18669_v44, 0.0 }
 0x190   :  { %v622_v13 = vsel %vm24896_vm3, %v601_v8, 0.0  ;;  %v1230_v14 = vsel %vm24896_vm3, %v1210_v9, 0.0  ;;  %v1501_v8 = vld [vmem:[%s24842_s2 + $0x328] sm:$0xff]  ;;  %v1044_v9 = vld [vmem:[%s24842_s2 + $0x1a0] sm:$0xff] }
 0x191   :  { %v14250_v32 = vpop.f32.mrb[8].mxu0  ;;  %769 = vadd.xlane.f32.xlu0 %v768_v53  ;;  %1073 = vadd.xlane.f32.xlu1 %v1072_v54  ;;  %v1385_v53 = vsel %vm24896_vm3, %v1363_v47, 0.0  ;;  %v1667_v54 = vmul.f32 %v1651_v49, %v566_v10  ;;  %v890_v10 = vld [vmem:[%s24842_s2 + $0x110] sm:$0xff]  ;;  %v1838_v36 = vsel %vm24896_vm3, %v1818_v28, 0.0 }
 0x192   :  { %v18688_v59 = vadd.f32 %v14250_v32, %v18608_v52  ;;  %v444_v60 = vpop.f32.mrb[9].mxu0 }
 0x193   :  { %v18691_v61 = vadd.f32 %v18608_v52, %v444_v60 }
 0x194   :  { %vm492_vm2 = vcmp.gt.f32.partialorder %v18688_v59, 0.0 }
 0x195   :  { %921 = vadd.xlane.f32.xlu0 %v920_v62  ;;  %1225 = vadd.xlane.f32.xlu1 %v1224_v63  ;;  %v1689_v63 = vsel %vm24896_vm3, %v1667_v54, 0.0  ;;  %vm491_vm4 = vcmp.gt.f32.partialorder %v18691_v61, 0.0 }
 0x199   :  { %v14253_v11 = vpop.f32.mrb[10].mxu0  ;;  %1377 = vadd.xlane.f32.xlu0 %v1376_v6  ;;  %1681 = vadd.xlane.f32.xlu1 %v1680_v7  ;;  %v504_v6 = vmul.f32 0.2, %v18643_v19  ;;  %v774_v7 = vsel %vm24896_vm3, %v754_v3, 0.0  ;;  %v1349_v3 = vld [vmem:[%s24842_s2 + $0x2a8] sm:$0xff] }
 0x19a   :  { %v18712_v15 = vadd.f32 %v14253_v11, %v18608_v52  ;;  %v454_v16 = vpop.f32.mrb[11].mxu0  ;;  %v1346_v11 = vld [vmem:[%s24842_s2 + $0x290] sm:$0xff] }
 0x19b   :  { %v18715_v17 = vadd.f32 %v18608_v52, %v454_v16  ;;  %v520_v12 = vsel %vm488_vm10, %v18643_v19, %v504_v6  ;;  %v906_v16 = vmul.f32 %v890_v10, %v565_v56 }
 0x19c   :  { %vm536_vm11 = vcmp.gt.f32.partialorder %v520_v12, 0.0  ;;  %vm494_vm7 = vcmp.gt.f32.partialorder %v18712_v15, 0.0 }
 0x19d   :  { %1529 = vadd.xlane.f32.xlu0 %v1528_v18  ;;  %1833 = vadd.xlane.f32.xlu1 %v1832_v20  ;;  %v1362_v18 = vmul.f32 %v1346_v11, %v565_v56  ;;  %v552_v20 = vmul.f32 0.2, %v520_v12  ;;  %v926_v19 = vsel %vm24896_vm3, %v906_v16, 0.0  ;;  %v1500_v16 = vld [vmem:[%s24842_s2 + $0x320] sm:$0xff]  ;;  %vm493_vm8 = vcmp.gt.f32.partialorder %v18715_v17, 0.0 }
 0x19f   :  { %v1382_v24 = vsel %vm24896_vm3, %v1362_v18, 0.0  ;;  %v506_v18 = vmul.f32 0.2, %v18666_v42 }
 0x1a1   :  { %v14256_v35 = vpop.f32.mrb[12].mxu0  ;;  %626 = vadd.xlane.f32.xlu0 %v625_v29  ;;  %778 = vadd.xlane.f32.xlu1 %v777_v30  ;;  %v18790_v29 = vsel %vm536_vm11, %v520_v12, %v552_v20  ;;  %v1498_v30 = vld [vmem:[%s24842_s2 + $0x310] sm:$0xff]  ;;  %v522_v28 = vsel %vm490_vm14, %v18666_v42, %v506_v18  ;;  %v505_v42 = vmul.f32 0.2, %v18669_v44 }
 0x1a2   :  { %v18734_v39 = vadd.f32 %v14256_v35, %v18608_v52  ;;  %v464_v40 = vpop.f32.mrb[13].mxu0  ;;  %v1078_v35 = vsel %vm24896_vm3, %v1058_v1, 0.0  ;;  %v1514_v37 = vmul.f32 %v1498_v30, %v565_v56  ;;  %v604_v38 = vmul.f32 %v588_v33, %v18790_v29  ;;  %v1652_v1 = vld [vmem:[%s24842_s2 + $0x3a0] sm:$0xff] }
 0x1a3   :  { %v18737_v41 = vadd.f32 %v18608_v52, %v464_v40  ;;  %v1650_v40 = vld [vmem:[%s24842_s2 + $0x390] sm:$0xff]  ;;  %v1517_v12 = vmul.f32 %v1501_v8, %v18790_v29  ;;  %vm538_vm15 = vcmp.gt.f32.partialorder %v522_v28, 0.0 }
 0x1a4   :  { %v1534_v46 = vsel %vm24896_vm3, %v1514_v37, 0.0  ;;  %v631_v47 = vsel %vm24896_vm3, %v604_v38, 0.0  ;;  %v1666_v48 = vmul.f32 %v1650_v40, %v565_v56  ;;  %v740_v37 = vld [vmem:[%s24842_s2 + $0xa0] sm:$0xff]  ;;  %vm496_vm11 = vcmp.gt.f32.partialorder %v18734_v39, 0.0 }
 0x1a5   :  { %1082 = vadd.xlane.f32.xlu0 %v1081_v43  ;;  %930 = vadd.xlane.f32.xlu1 %v929_v45  ;;  %v1045_v43 = vld [vmem:[%s24842_s2 + $0x1a8] sm:$0xff]  ;;  %v519_v45 = vsel %vm487_vm12, %v18646_v21, %v503_v34  ;;  %v1543_v20 = vsel %vm24896_vm3, %v1517_v12, 0.0  ;;  %v1804_v38 = vld [vmem:[%s24842_s2 + $0x420] sm:$0xff]  ;;  %v1350_v12 = vld [vmem:[%s24842_s2 + $0x2b0] sm:$0xff] }
 0x1a6   :  { %v1061_v49 = vmul.f32 %v1045_v43, %v18790_v29  ;;  %v551_v50 = vmul.f32 0.2, %v519_v45  ;;  %vm535_vm13 = vcmp.gt.f32.partialorder %v519_v45, 0.0  ;;  %v1686_v21 = vsel %vm24896_vm3, %v1666_v48, 0.0  ;;  %v743_v48 = vld [vmem:[%s24842_s2 + $0xb8] sm:$0xff] }
 0x1a8   :  { %v1087_v54 = vsel %vm24896_vm3, %v1061_v49, 0.0  ;;  %v521_v49 = vsel %vm489_vm0, %v18669_v44, %v505_v42 }
 0x1a9   :  { %v14259_v32 = vpop.f32.mrb[14].mxu0  ;;  %1234 = vadd.xlane.f32.xlu0 %v1233_v51  ;;  %1386 = vadd.xlane.f32.xlu1 %v1385_v53  ;;  %v741_v51 = vld [vmem:[%s24842_s2 + $0xa8] sm:$0xff]  ;;  %vm537_vm1 = vcmp.gt.f32.partialorder %v521_v49, 0.0 }
 0x1aa   :  { %v18756_v58 = vadd.f32 %v14259_v32, %v18608_v52  ;;  %v474_v60 = vpop.f32.mrb[15].mxu0  ;;  %v1197_v53 = vld [vmem:[%s24842_s2 + $0x228] sm:$0xff]  ;;  %v757_v55 = vmul.f32 %v741_v51, %v18790_v29  ;;  %v18823_v32 = vsel %vm535_vm13, %v519_v45, %v551_v50  ;;  %vm495_vm13 = vcmp.gt.f32.partialorder %v18737_v41, 0.0 }
 0x1ab   :  { %v18759_v62 = vadd.f32 %v18608_v52, %v474_v60  ;;  %v1841_v52 = vsel %vm24896_vm3, %v1819_v2, 0.0  ;;  %v1213_v56 = vmul.f32 %v1197_v53, %v18790_v29  ;;  %v603_v2 = vmul.f32 %v587_v31, %v18823_v32 }
 0x1ac   :  { %v783_v60 = vsel %vm24896_vm3, %v757_v55, 0.0  ;;  %v756_v43 = vmul.f32 %v740_v37, %v18823_v32  ;;  %v1820_v45 = vmul.f32 %v1804_v38, %v18823_v32  ;;  %v1348_v55 = vld [vmem:[%s24842_s2 + $0x2a0] sm:$0xff] }
 0x1ad   :  { %1690 = vadd.xlane.f32.xlu0 %v1689_v63  ;;  %1538 = vadd.xlane.f32.xlu1 %v1537_v0  ;;  %v1239_v63 = vsel %vm24896_vm3, %v1213_v56, 0.0  ;;  %v909_v0 = vmul.f32 %v893_v57, %v18790_v29  ;;  %v628_v6 = vsel %vm24896_vm3, %v603_v2, 0.0  ;;  %v895_v56 = vld [vmem:[%s24842_s2 + $0x138] sm:$0xff]  ;;  %v1364_v31 = vmul.f32 %v1348_v55, %v18823_v32  ;;  %v742_v2 = vld [vmem:[%s24842_s2 + $0xb0] sm:$0xff] }
 0x1ae   :  { %v780_v50 = vsel %vm24896_vm3, %v756_v43, 0.0  ;;  %v1844_v51 = vsel %vm24896_vm3, %v1820_v45, 0.0  ;;  %vm497_vm0 = vcmp.gt.f32.partialorder %v18759_v62, 0.0 }
 0x1af   :  { %v935_v5 = vsel %vm24896_vm3, %v909_v0, 0.0  ;;  %v590_v0 = vld [vmem:[%s24842_s2 + $0x38] sm:$0xff] }
 0x1b1   :  { %1842 = vadd.xlane.f32.xlu0 %v1841_v52  ;;  %775 = vadd.xlane.f32.xlu1 %v774_v7  ;;  %v1365_v52 = vmul.f32 %v1349_v3, %v18790_v29  ;;  %v908_v7 = vmul.f32 %v892_v4, %v18823_v32  ;;  %v1388_v3 = vsel %vm24896_vm3, %v1364_v31, 0.0  ;;  %v591_v31 = vld [vmem:[%s24842_s2 + $0x40] sm:$0xff] }
 0x1b3   :  { %v1391_v10 = vsel %vm24896_vm3, %v1365_v52, 0.0  ;;  %v932_v11 = vsel %vm24896_vm3, %v908_v7, 0.0  ;;  %v1198_v52 = vld [vmem:[%s24842_s2 + $0x230] sm:$0xff] }
 0x1b5   :  { %623 = vadd.xlane.f32.xlu0 %v622_v13  ;;  %1231 = vadd.xlane.f32.xlu1 %v1230_v14  ;;  %v1060_v13 = vmul.f32 %v1044_v9, %v18823_v32  ;;  %v1653_v14 = vld [vmem:[%s24842_s2 + $0x3a8] sm:$0xff] }
 0x1b6   :  { %v1669_v23 = vmul.f32 %v1653_v14, %v18790_v29 }
 0x1b7   :  { %v1084_v22 = vsel %vm24896_vm3, %v1060_v13, 0.0 }
 0x1b8   :  { %v1695_v30 = vsel %vm24896_vm3, %v1669_v23, 0.0  ;;  %v508_v23 = vmul.f32 0.2, %v18688_v59 }
 0x1b9   :  { %927 = vadd.xlane.f32.xlu0 %v926_v19  ;;  %1383 = vadd.xlane.f32.xlu1 %v1382_v24  ;;  %v1516_v19 = vmul.f32 %v1500_v16, %v18823_v32  ;;  %v1805_v24 = vld [vmem:[%s24842_s2 + $0x428] sm:$0xff] }
 0x1ba   :  { %v1821_v34 = vmul.f32 %v1805_v24, %v18790_v29 }
 0x1bb   :  { %v1540_v33 = vsel %vm24896_vm3, %v1516_v19, 0.0 }
 0x1bc   :  { %v1847_v29 = vsel %vm24896_vm3, %v1821_v34, 0.0  ;;  %v524_v34 = vsel %vm492_vm2, %v18688_v59, %v508_v23  ;;  %v1806_v59 = vld [vmem:[%s24842_s2 + $0x430] sm:$0xff] }
 0x1bd   :  { %1079 = vadd.xlane.f32.xlu0 %v1078_v35  ;;  %1839 = vadd.xlane.f32.xlu1 %v1838_v36  ;;  %v1668_v35 = vmul.f32 %v1652_v1, %v18823_v32  ;;  %v554_v36 = vmul.f32 0.2, %v522_v28  ;;  %vm540_vm5 = vcmp.gt.f32.partialorder %v524_v34, 0.0 }
 0x1bf   :  { %v1692_v40 = vsel %vm24896_vm3, %v1668_v35, 0.0  ;;  %v507_v35 = vmul.f32 0.2, %v18691_v61 }
 0x1c1   :  { %1535 = vadd.xlane.f32.xlu0 %v1534_v46  ;;  %632 = vadd.xlane.f32.xlu1 %v631_v47  ;;  %v18890_v46 = vsel %vm538_vm15, %v522_v28, %v554_v36  ;;  %v1196_v47 = vld [vmem:[%s24842_s2 + $0x220] sm:$0xff]  ;;  %v523_v43 = vsel %vm491_vm4, %v18691_v61, %v507_v35  ;;  %v592_v61 = vld [vmem:[%s24842_s2 + $0x48] sm:$0xff]  ;;  %vm498_vm15 = vcmp.gt.f32.partialorder %v18756_v58, 0.0 }
 0x1c2   :  { %v1212_v53 = vmul.f32 %v1196_v47, %v18823_v32  ;;  %v606_v32 = vmul.f32 %v590_v0, %v18890_v46  ;;  %vm539_vm6 = vcmp.gt.f32.partialorder %v523_v43, 0.0  ;;  %v745_v35 = vld [vmem:[%s24842_s2 + $0xc8] sm:$0xff] }
 0x1c4   :  { %v1236_v44 = vsel %vm24896_vm3, %v1212_v53, 0.0  ;;  %v637_v7 = vsel %vm24896_vm3, %v606_v32, 0.0  ;;  %v1807_v53 = vld [vmem:[%s24842_s2 + $0x438] sm:$0xff]  ;;  %v894_v32 = vld [vmem:[%s24842_s2 + $0x130] sm:$0xff] }
 0x1c5   :  { %1687 = vadd.xlane.f32.xlu0 %v1686_v21  ;;  %1088 = vadd.xlane.f32.xlu1 %v1087_v54  ;;  %v759_v21 = vmul.f32 %v743_v48, %v18890_v46  ;;  %v553_v54 = vmul.f32 0.2, %v521_v49  ;;  %v1823_v55 = vmul.f32 %v1807_v53, %v18890_v46 }
 0x1c7   :  { %v789_v57 = vsel %vm24896_vm3, %v759_v21, 0.0  ;;  %v1853_v0 = vsel %vm24896_vm3, %v1823_v55, 0.0 }
 0x1c9   :  { %784 = vadd.xlane.f32.xlu0 %v783_v60  ;;  %1240 = vadd.xlane.f32.xlu1 %v1239_v63  ;;  %v911_v60 = vmul.f32 %v895_v56, %v18890_v46  ;;  %v18913_v63 = vsel %vm537_vm1, %v521_v49, %v553_v54 }
 0x1ca   :  { %v1366_v18 = vmul.f32 %v1350_v12, %v18913_v63  ;;  %v1822_v49 = vmul.f32 %v1806_v59, %v18913_v63  ;;  %v1048_v12 = vld [vmem:[%s24842_s2 + $0x1c0] sm:$0xff] }
 0x1cb   :  { %v941_v4 = vsel %vm24896_vm3, %v911_v60, 0.0  ;;  %v1200_v59 = vld [vmem:[%s24842_s2 + $0x240] sm:$0xff] }
 0x1cc   :  { %v1394_v24 = vsel %vm24896_vm3, %v1366_v18, 0.0  ;;  %v1850_v54 = vsel %vm24896_vm3, %v1822_v49, 0.0  ;;  %v19051_v18 = vsub.s32 3, %v18540_v25 }
 0x1cd   :  { %936 = vadd.xlane.f32.xlu0 %v935_v5  ;;  %629 = vadd.xlane.f32.xlu1 %v628_v6  ;;  %v758_v5 = vmul.f32 %v742_v2, %v18913_v63  ;;  %v1047_v6 = vld [vmem:[%s24842_s2 + $0x1b8] sm:$0xff] }
 0x1ce   :  { %v1063_v9 = vmul.f32 %v1047_v6, %v18890_v46  ;;  %24901 = vst [vmem:[#allocation9_spill] sm:$0xff] %v19051_v18 }
 0x1cf   :  { %v786_v8 = vsel %vm24896_vm3, %v758_v5, 0.0  ;;  %v896_v5 = vld [vmem:[%s24842_s2 + $0x140] sm:$0xff] }
 0x1d0   :  { %v1093_v13 = vsel %vm24896_vm3, %v1063_v9, 0.0 }
 0x1d1   :  { %1392 = vadd.xlane.f32.xlu0 %v1391_v10  ;;  %933 = vadd.xlane.f32.xlu1 %v932_v11  ;;  %v1214_v10 = vmul.f32 %v1198_v52, %v18913_v63  ;;  %v1199_v11 = vld [vmem:[%s24842_s2 + $0x238] sm:$0xff]  ;;  %v19026_v52 = vsub.s32 2, %v18540_v25 }
 0x1d2   :  { %v1215_v16 = vmul.f32 %v1199_v11, %v18890_v46  ;;  %v1046_v11 = vld [vmem:[%s24842_s2 + $0x1b0] sm:$0xff] }
 0x1d3   :  { %v1242_v14 = vsel %vm24896_vm3, %v1214_v10, 0.0  ;;  %24900 = vst [vmem:[#allocation8_spill] sm:$0xff] %v19026_v52 }
 0x1d4   :  { %v1245_v19 = vsel %vm24896_vm3, %v1215_v16, 0.0 }
 0x1d5   :  { %1544 = vadd.xlane.f32.xlu0 %v1543_v20  ;;  %1085 = vadd.xlane.f32.xlu1 %v1084_v22  ;;  %v1351_v20 = vld [vmem:[%s24842_s2 + $0x2b8] sm:$0xff]  ;;  %v1502_v22 = vld [vmem:[%s24842_s2 + $0x330] sm:$0xff] }
 0x1d6   :  { %v1367_v1 = vmul.f32 %v1351_v20, %v18890_v46  ;;  %v1518_v28 = vmul.f32 %v1502_v22, %v18913_v63 }
 0x1d8   :  { %v1397_v36 = vsel %vm24896_vm3, %v1367_v1, 0.0  ;;  %v1546_v37 = vsel %vm24896_vm3, %v1518_v28, 0.0 }
 0x1d9   :  { %1696 = vadd.xlane.f32.xlu0 %v1695_v30  ;;  %1541 = vadd.xlane.f32.xlu1 %v1540_v33  ;;  %v1503_v30 = vld [vmem:[%s24842_s2 + $0x338] sm:$0xff]  ;;  %v1654_v33 = vld [vmem:[%s24842_s2 + $0x3b0] sm:$0xff] }
 0x1da   :  { %v1519_v38 = vmul.f32 %v1503_v30, %v18890_v46  ;;  %v1670_v42 = vmul.f32 %v1654_v33, %v18913_v63 }
 0x1dc   :  { %v1549_v45 = vsel %vm24896_vm3, %v1519_v38, 0.0  ;;  %v1698_v47 = vsel %vm24896_vm3, %v1670_v42, 0.0  ;;  %v1274_v38 = vsub.s32 4, %v18540_v25 }
 0x1dd   :  { %1848 = vadd.xlane.f32.xlu0 %v1847_v29  ;;  %1693 = vadd.xlane.f32.xlu1 %v1692_v40  ;;  %v556_v29 = vmul.f32 0.2, %v524_v34  ;;  %v1655_v40 = vld [vmem:[%s24842_s2 + $0x3b8] sm:$0xff] }
 0x1de   :  { %v1671_v48 = vmul.f32 %v1655_v40, %v18890_v46  ;;  %v19005_v46 = vld [vmem:[%s24846_s6] sm:$0xff] }
 0x1df   :  { %v19023_v6 = vrot.slane %v19005_v46, %v18546_v27  ;;  %v19035_v9 = vrot.slane %v19005_v46, %v18543_v26  ;;  %v19055_v23 = vrot.slane %v19005_v46, %v19026_v52 }
 0x1e0   :  { %v1701_v21 = vsel %vm24896_vm3, %v1671_v48, 0.0  ;;  %v1426_v48 = vsub.s32 5, %v18540_v25 }
 0x1e1   :  { %781 = vadd.xlane.f32.xlu0 %v780_v50  ;;  %1845 = vadd.xlane.f32.xlu1 %v1844_v51  ;;  %v18981_v50 = vsel %vm540_vm5, %v524_v34, %v556_v29  ;;  %v555_v51 = vmul.f32 0.2, %v523_v43 }
 0x1e2   :  { %v608_v56 = vmul.f32 %v592_v61, %v18981_v50  ;;  %v761_v49 = vmul.f32 %v745_v35, %v18981_v50  ;;  %v1504_v35 = vld [vmem:[%s24842_s2 + $0x340] sm:$0xff] }
 0x1e4   :  { %v643_v2 = vsel %vm24896_vm3, %v608_v56, 0.0  ;;  %v19096_v56 = vrot.slane %v19005_v46, %v1274_v38 }
 0x1e5   :  { %1237 = vadd.xlane.f32.xlu0 %v1236_v44  ;;  %790 = vadd.xlane.f32.xlu1 %v789_v57  ;;  %v589_v44 = vld [vmem:[%s24842_s2 + $0x30] sm:$0xff]  ;;  %v18996_v57 = vsel %vm539_vm6, %v523_v43, %v555_v51 }
 0x1e6   :  { %v605_v60 = vmul.f32 %v589_v44, %v18913_v63  ;;  %v912_v16 = vmul.f32 %v896_v5, %v18996_v57  ;;  %v1064_v1 = vmul.f32 %v1048_v12, %v18996_v57  ;;  %v19108_v5 = vrot.slane %v19005_v46, %v1426_v48 }
 0x1e8   :  { %v1096_v61 = vsel %vm24896_vm3, %v1064_v1, 0.0 }
 0x1e9   :  { %1389 = vadd.xlane.f32.xlu0 %v1388_v3  ;;  %942 = vadd.xlane.f32.xlu1 %v941_v4  ;;  %v607_v3 = vmul.f32 %v591_v31, %v18996_v57  ;;  %v19013_v4 = vld [vmem:[%s24846_s6 + $0x8] sm:$0xff]  ;;  %v1216_v31 = vmul.f32 %v1200_v59, %v18996_v57 }
 0x1ea   :  { %v19039_v10 = vrot.slane %v19013_v4, %v18543_v26  ;;  %v19079_v40 = vrot.slane %v19013_v4, %v19051_v18  ;;  %v19099_v44 = vrot.slane %v19013_v4, %v1274_v38 }
 0x1ed   :  { %638 = vadd.xlane.f32.xlu0 %v637_v7  ;;  %787 = vadd.xlane.f32.xlu1 %v786_v8  ;;  %v634_v7 = vsel %vm24896_vm3, %v605_v60, 0.0  ;;  %v19031_v8 = vrot.slane %v19013_v4, %v18546_v27 }
 0x1f1   :  { %1094 = vadd.xlane.f32.xlu0 %v1093_v13  ;;  %1243 = vadd.xlane.f32.xlu1 %v1242_v14  ;;  %v640_v13 = vsel %vm24896_vm3, %v607_v3, 0.0  ;;  %v910_v14 = vmul.f32 %v894_v32, %v18913_v63  ;;  %v1730_v3 = vsub.s32 7, %v18540_v25  ;;  %v1352_v32 = vld [vmem:[%s24842_s2 + $0x2c0] sm:$0xff] }
 0x1f3   :  { %v19137_v38 = vrot.slane %v19013_v4, %v1730_v3 }
 0x1f5   :  { %1246 = vadd.xlane.f32.xlu0 %v1245_v19  ;;  %1395 = vadd.xlane.f32.xlu1 %v1394_v24  ;;  %v19059_v19 = vrot.slane %v19013_v4, %v19026_v52  ;;  %v1062_v24 = vmul.f32 %v1046_v11, %v18913_v63  ;;  %v19074_v63 = vrot.slane %v19005_v46, %v19051_v18 }
 0x1f9   :  { %1398 = vadd.xlane.f32.xlu0 %v1397_v36  ;;  %1547 = vadd.xlane.f32.xlu1 %v1546_v37  ;;  %v938_v36 = vsel %vm24896_vm3, %v910_v14, 0.0  ;;  %v944_v37 = vsel %vm24896_vm3, %v912_v16, 0.0 }
 0x1fd   :  { %1550 = vadd.xlane.f32.xlu0 %v1549_v45  ;;  %1699 = vadd.xlane.f32.xlu1 %v1698_v47  ;;  %v1090_v47 = vsel %vm24896_vm3, %v1062_v24, 0.0 }
 0x201   :  { %1702 = vadd.xlane.f32.xlu0 %v1701_v21  ;;  %1851 = vadd.xlane.f32.xlu1 %v1850_v54  ;;  %v1578_v21 = vsub.s32 6, %v18540_v25  ;;  %v897_v54 = vld [vmem:[%s24842_s2 + $0x148] sm:$0xff] }
 0x202   :  { %v913_v14 = vmul.f32 %v897_v54, %v18981_v50  ;;  %v19150_v54 = vld [vmem:[%s24846_s6 + $0x10] ss:$0 sm:$0xff] }
 0x203   :  { %v19119_v24 = vrot.slane %v19013_v4, %v1578_v21 }
 0x205   :  { %1854 = vadd.xlane.f32.xlu0 %v1853_v0  ;;  %644 = vadd.xlane.f32.xlu1 %v643_v2 }
 0x209   :  { %635 = vadd.xlane.f32.xlu0 %v634_v7  ;;  %641 = vadd.xlane.f32.xlu1 %v640_v13  ;;  %v19111_v7 = vrot.slane %v19013_v4, %v1426_v48  ;;  %v795_v13 = vsel %vm24896_vm3, %v761_v49, 0.0  ;;  %v947_v4 = vsel %vm24896_vm3, %v913_v14, 0.0 }
 0x20a   :  { %v773_v20 = vpop.xlane.xlu1 %772  ;;  %v621_v22 = vpop.xlane.xlu0 %620 }
 0x20b   :  { %v826_v28 = vmul.f32 %v19023_v6, %v773_v20  ;;  %v827_v30 = vmul.f32 %v19031_v8, %v773_v20  ;;  %v674_v33 = vmul.f32 %v19035_v9, %v621_v22  ;;  %v675_v34 = vmul.f32 %v19039_v10, %v621_v22 }
 0x20c   :  { %v19116_v22 = vrot.slane %v19005_v46, %v1578_v21 }
 0x20d   :  { %v858_v42 = vadd.f32 %v826_v28, %v674_v33  ;;  %v859_v29 = vadd.f32 %v827_v30, %v675_v34  ;;  %939 = vadd.xlane.f32.xlu0 %v938_v36  ;;  %945 = vadd.xlane.f32.xlu1 %v944_v37  ;;  %v1248_v30 = vsel %vm24896_vm3, %v1216_v31, 0.0  ;;  %v1368_v33 = vmul.f32 %v1352_v32, %v18996_v57  ;;  %v1049_v34 = vld [vmem:[%s24842_s2 + $0x1c8] sm:$0xff] }
 0x20e   :  { %v925_v43 = vpop.xlane.xlu1 %924  ;;  %v1077_v45 = vpop.xlane.xlu0 %1076  ;;  %v510_v36 = vmul.f32 0.2, %v18712_v15  ;;  %v19134_v37 = vrot.slane %v19005_v46, %v1730_v3  ;;  %v1520_v46 = vmul.f32 %v1504_v35, %v18996_v57  ;;  %v1353_v35 = vld [vmem:[%s24842_s2 + $0x2c8] sm:$0xff] }
 0x20f   :  { %v978_v51 = vmul.f32 %v19055_v23, %v925_v43  ;;  %v979_v53 = vmul.f32 %v19059_v19, %v925_v43  ;;  %v1130_v55 = vmul.f32 %v19074_v63, %v1077_v45  ;;  %v1131_v2 = vmul.f32 %v19079_v40, %v1077_v45 }
 0x210   :  { %v1400_v21 = vsel %vm24896_vm3, %v1368_v33, 0.0  ;;  %v526_v31 = vsel %vm494_vm7, %v18712_v15, %v510_v36  ;;  %v1808_v36 = vld [vmem:[%s24842_s2 + $0x440] sm:$0xff] }
 0x211   :  { %v1010_v60 = vadd.f32 %v978_v51, %v858_v42  ;;  %v1011_v0 = vadd.f32 %v979_v53, %v859_v29  ;;  %1091 = vadd.xlane.f32.xlu0 %v1090_v47  ;;  %1097 = vadd.xlane.f32.xlu1 %v1096_v61  ;;  %v1065_v51 = vmul.f32 %v1049_v34, %v18981_v50  ;;  %v558_v34 = vmul.f32 0.2, %v526_v31 }
 0x212   :  { %v1381_v11 = vpop.xlane.xlu1 %1380  ;;  %v1229_v12 = vpop.xlane.xlu0 %1228  ;;  %vm542_vm9 = vcmp.gt.f32.partialorder %v526_v31, 0.0 }
 0x213   :  { %v1162_v16 = vadd.f32 %v1130_v55, %v1010_v60  ;;  %v1163_v20 = vadd.f32 %v1131_v2, %v1011_v0  ;;  %v1282_v1 = vmul.f32 %v19096_v56, %v1229_v12  ;;  %v1283_v28 = vmul.f32 %v19099_v44, %v1229_v12  ;;  %v19155_v55 = vld [vmem:[%s24846_s6 + $0x18] ss:$0 sm:$0xff]  ;;  %v1201_v60 = vld [vmem:[%s24842_s2 + $0x248] sm:$0xff]  ;;  %v1656_v0 = vld [vmem:[%s24842_s2 + $0x3c0] sm:$0xff] }
 0x214   :  { %v1434_v42 = vmul.f32 %v19108_v5, %v1381_v11  ;;  %v1435_v29 = vmul.f32 %v19111_v7, %v1381_v11  ;;  %v1672_v33 = vmul.f32 %v1656_v0, %v18996_v57 }
 0x215   :  { %796 = vadd.xlane.f32.xlu0 %v795_v13  ;;  %1249 = vadd.xlane.f32.xlu1 %v1248_v30  ;;  %v1314_v59 = vadd.f32 %v1282_v1, %v1162_v16  ;;  %v1315_v43 = vadd.f32 %v1283_v28, %v1163_v20  ;;  %v1099_v16 = vsel %vm24896_vm3, %v1065_v51, 0.0  ;;  %v1552_v20 = vsel %vm24896_vm3, %v1520_v46, 0.0 }
 0x216   :  { %v1533_v45 = vpop.xlane.xlu1 %1532  ;;  %v1685_v47 = vpop.xlane.xlu0 %1684  ;;  %v1217_v30 = vmul.f32 %v1201_v60, %v18981_v50  ;;  %v19197_v60 = vsel %vm542_vm9, %v526_v31, %v558_v34  ;;  %v1659_v34 = vld [vmem:[%s24842_s2 + $0x3d8] sm:$0xff] }
 0x217   :  { %v1586_v48 = vmul.f32 %v19116_v22, %v1533_v45  ;;  %v1587_v49 = vmul.f32 %v19119_v24, %v1533_v45  ;;  %v1466_v53 = vadd.f32 %v1434_v42, %v1314_v59  ;;  %v1467_v61 = vadd.f32 %v1435_v29, %v1315_v43 }
 0x218   :  { %v1738_v32 = vmul.f32 %v19134_v37, %v1685_v47  ;;  %v1739_v11 = vmul.f32 %v19137_v38, %v1685_v47  ;;  %v509_v42 = vmul.f32 0.2, %v18715_v17  ;;  %v1251_v46 = vsel %vm24896_vm3, %v1217_v30, 0.0 }
 0x219   :  { %948 = vadd.xlane.f32.xlu0 %v947_v4  ;;  %1401 = vadd.xlane.f32.xlu1 %v1400_v21  ;;  %v1618_v2 = vadd.f32 %v1586_v48, %v1466_v53  ;;  %v1619_v3 = vadd.f32 %v1587_v49, %v1467_v61  ;;  %v1704_v53 = vsel %vm24896_vm3, %v1672_v33, 0.0  ;;  %v1369_v61 = vmul.f32 %v1353_v35, %v18981_v50  ;;  %v1505_v21 = vld [vmem:[%s24842_s2 + $0x348] sm:$0xff] }
 0x21a   :  { %v1837_v12 = vpop.xlane.xlu0 %1836  ;;  %v618_v13 = vpop.xlane.xlu1 %617  ;;  %v1824_v4 = vmul.f32 %v1808_v36, %v18996_v57  ;;  %v1521_v31 = vmul.f32 %v1505_v21, %v18981_v50 }
 0x21b   :  { %v1890_v15 = vmul.f32 %v19150_v54, %v1837_v12  ;;  %v1891_v14 = vmul.f32 %v19155_v55, %v1837_v12  ;;  %v1770_v1 = vadd.f32 %v1738_v32, %v1618_v2  ;;  %v1771_v28 = vadd.f32 %v1739_v11, %v1619_v3  ;;  %v594_v3 = vld [vmem:[%s24842_s2 + $0x58] sm:$0xff] }
 0x21c   :  { %v672_v47 = vmul.f32 %v19035_v9, %v618_v13  ;;  %v673_v48 = vmul.f32 %v19039_v10, %v618_v13  ;;  %v525_v12 = vsel %vm493_vm8, %v18715_v17, %v509_v42 }
 0x21d   :  { %1100 = vadd.xlane.f32.xlu0 %v1099_v16  ;;  %1553 = vadd.xlane.f32.xlu1 %v1552_v20  ;;  %v19182_v29 = vadd.f32 %v1890_v15, %v1770_v1  ;;  %v19184_v59 = vadd.f32 %v1891_v14, %v1771_v28  ;;  %v1657_v14 = vld [vmem:[%s24842_s2 + $0x3c8] sm:$0xff]  ;;  %v1403_v20 = vsel %vm24896_vm3, %v1369_v61, 0.0  ;;  %v1856_v1 = vsel %vm24896_vm3, %v1824_v4, 0.0 }
 0x21e   :  { %v770_v43 = vpop.xlane.xlu0 %769  ;;  %v1074_v45 = vpop.xlane.xlu1 %1073  ;;  %v610_v28 = vmul.f32 %v594_v3, %v19197_v60  ;;  %vm541_vm10 = vcmp.gt.f32.partialorder %v525_v12, 0.0  ;;  %v557_v35 = vmul.f32 0.2, %v525_v12  ;;  %v1675_v61 = vmul.f32 %v1659_v34, %v19197_v60  ;;  %v1811_v3 = vld [vmem:[%s24842_s2 + $0x458] sm:$0xff] }
 0x21f   :  { %24902 = vst [vmem:[#allocation10_spill] sm:$0xff] %v19182_v29  ;;  %24903 = vst [vmem:[#allocation11_spill] sm:$0xff] %v19184_v59  ;;  %v824_v49 = vmul.f32 %v19023_v6, %v770_v43  ;;  %v825_v51 = vmul.f32 %v19031_v8, %v770_v43  ;;  %v1128_v16 = vmul.f32 %v19074_v63, %v1074_v45 }
 0x220   :  { %v1129_v17 = vmul.f32 %v19079_v40, %v1074_v45  ;;  %v1673_v43 = vmul.f32 %v1657_v14, %v18981_v50 }
 0x221   :  { %v856_v0 = vadd.f32 %v824_v49, %v672_v47  ;;  %v857_v2 = vadd.f32 %v825_v51, %v673_v48  ;;  %1252 = vadd.xlane.f32.xlu0 %v1251_v46  ;;  %1705 = vadd.xlane.f32.xlu1 %v1704_v53  ;;  %v1555_v46 = vsel %vm24896_vm3, %v1521_v31, 0.0  ;;  %v649_v53 = vsel %vm24896_vm3, %v610_v28, 0.0  ;;  %v746_v28 = vld [vmem:[%s24842_s2 + $0xd0] sm:$0xff] }
 0x222   :  { %v922_v32 = vpop.xlane.xlu0 %921  ;;  %v1226_v11 = vpop.xlane.xlu1 %1225 }
 0x223   :  { %v976_v13 = vmul.f32 %v19055_v23, %v922_v32  ;;  %v977_v15 = vmul.f32 %v19059_v19, %v922_v32  ;;  %v1280_v49 = vmul.f32 %v19096_v56, %v1226_v11  ;;  %v1281_v45 = vmul.f32 %v19099_v44, %v1226_v11 }
 0x224   :  { %v19234_v32 = vsel %vm541_vm10, %v525_v12, %v557_v35 }
 0x225   :  { %v1008_v30 = vadd.f32 %v976_v13, %v856_v0  ;;  %v1009_v33 = vadd.f32 %v977_v15, %v857_v2  ;;  %1404 = vadd.xlane.f32.xlu0 %v1403_v20  ;;  %1857 = vadd.xlane.f32.xlu1 %v1856_v1  ;;  %v1809_v2 = vld [vmem:[%s24842_s2 + $0x448] sm:$0xff]  ;;  %v1707_v15 = vsel %vm24896_vm3, %v1673_v43, 0.0  ;;  %v744_v1 = vld [vmem:[%s24842_s2 + $0xc0] sm:$0xff] }
 0x226   :  { %v1378_v36 = vpop.xlane.xlu0 %1377  ;;  %v1682_v42 = vpop.xlane.xlu1 %1681 }
 0x227   :  { %v1160_v47 = vadd.f32 %v1128_v16, %v1008_v30  ;;  %v1161_v48 = vadd.f32 %v1129_v17, %v1009_v33  ;;  %v1432_v51 = vmul.f32 %v19108_v5, %v1378_v36  ;;  %v1433_v0 = vmul.f32 %v19111_v7, %v1378_v36 }
 0x228   :  { %v1736_v12 = vmul.f32 %v19134_v37, %v1682_v42  ;;  %v1713_v17 = vsel %vm24896_vm3, %v1675_v61, 0.0  ;;  %v1825_v30 = vmul.f32 %v1809_v2, %v18981_v50  ;;  %v1827_v33 = vmul.f32 %v1811_v3, %v19197_v60  ;;  %v898_v2 = vld [vmem:[%s24842_s2 + $0x150] sm:$0xff] }
 0x229   :  { %v1312_v4 = vadd.f32 %v1280_v49, %v1160_v47  ;;  %v1313_v21 = vadd.f32 %v1281_v45, %v1161_v48  ;;  %1556 = vadd.xlane.f32.xlu0 %v1555_v46  ;;  %650 = vadd.xlane.f32.xlu1 %v649_v53  ;;  %v1737_v34 = vmul.f32 %v19137_v38, %v1682_v42 }
 0x22a   :  { %v1530_v11 = vpop.xlane.xlu0 %1529  ;;  %v1834_v13 = vpop.xlane.xlu1 %1833  ;;  %v760_v45 = vmul.f32 %v744_v1, %v18996_v57  ;;  %v747_v57 = vld [vmem:[%s24842_s2 + $0xd8] sm:$0xff] }
 0x22b   :  { %v1464_v31 = vadd.f32 %v1432_v51, %v1312_v4  ;;  %v1465_v14 = vadd.f32 %v1433_v0, %v1313_v21  ;;  %v1584_v16 = vmul.f32 %v19116_v22, %v1530_v11  ;;  %v1585_v20 = vmul.f32 %v19119_v24, %v1530_v11 }
 0x22c   :  { %v1888_v43 = vmul.f32 %v19150_v54, %v1834_v13  ;;  %v1889_v47 = vmul.f32 %v19155_v55, %v1834_v13  ;;  %v762_v51 = vmul.f32 %v746_v28, %v19234_v32  ;;  %v1859_v21 = vsel %vm24896_vm3, %v1825_v30, 0.0  ;;  %v899_v30 = vld [vmem:[%s24842_s2 + $0x158] sm:$0xff] }
 0x22d   :  { %v1616_v35 = vadd.f32 %v1584_v16, %v1464_v31  ;;  %v1617_v36 = vadd.f32 %v1585_v20, %v1465_v14  ;;  %1708 = vadd.xlane.f32.xlu0 %v1707_v15  ;;  %1714 = vadd.xlane.f32.xlu1 %v1713_v17  ;;  %v1865_v0 = vsel %vm24896_vm3, %v1827_v33, 0.0  ;;  %v763_v16 = vmul.f32 %v747_v57, %v19197_v60  ;;  %v1050_v33 = vld [vmem:[%s24842_s2 + $0x1d0] sm:$0xff] }
 0x22e   :  { %v627_v48 = vpop.xlane.xlu0 %626  ;;  %v779_v49 = vpop.xlane.xlu1 %778  ;;  %v914_v20 = vmul.f32 %v898_v2, %v19234_v32  ;;  %v798_v17 = vsel %vm24896_vm3, %v762_v51, 0.0  ;;  %v915_v51 = vmul.f32 %v899_v30, %v19197_v60 }
 0x22f   :  { %v1768_v46 = vadd.f32 %v1736_v12, %v1616_v35  ;;  %v1769_v50 = vadd.f32 %v1737_v34, %v1617_v36  ;;  %v678_v53 = vmul.f32 %v19035_v9, %v627_v48  ;;  %v679_v42 = vmul.f32 %v19039_v10, %v627_v48 }
 0x230   :  { %v830_v61 = vmul.f32 %v19023_v6, %v779_v49  ;;  %v831_v4 = vmul.f32 %v19031_v8, %v779_v49  ;;  %v792_v12 = vsel %vm24896_vm3, %v760_v45, 0.0 }
 0x231   :  { %v19266_v3 = vadd.f32 %v1888_v43, %v1768_v46  ;;  %v19268_v11 = vadd.f32 %v1889_v47, %v1769_v50  ;;  %1860 = vadd.xlane.f32.xlu0 %v1859_v21  ;;  %1866 = vadd.xlane.f32.xlu1 %v1865_v0  ;;  %v1066_v46 = vmul.f32 %v1050_v33, %v19234_v32  ;;  %v1202_v21 = vld [vmem:[%s24842_s2 + $0x250] sm:$0xff]  ;;  %v1203_v33 = vld [vmem:[%s24842_s2 + $0x258] sm:$0xff] }
 0x232   :  { %v862_v13 = vadd.f32 %v830_v61, %v678_v53  ;;  %v863_v15 = vadd.f32 %v831_v4, %v679_v42  ;;  %v1083_v31 = vpop.xlane.xlu0 %1082  ;;  %v931_v14 = vpop.xlane.xlu1 %930  ;;  %v801_v42 = vsel %vm24896_vm3, %v763_v16, 0.0  ;;  %v950_v61 = vsel %vm24896_vm3, %v914_v20, 0.0  ;;  %v1051_v4 = vld [vmem:[%s24842_s2 + $0x1d8] sm:$0xff] }
 0x233   :  { %24904 = vst [vmem:[#allocation12_spill] sm:$0xff] %v19266_v3  ;;  %24905 = vst [vmem:[#allocation13_spill] sm:$0xff] %v19268_v11  ;;  %v982_v1 = vmul.f32 %v19055_v23, %v931_v14  ;;  %v983_v28 = vmul.f32 %v19059_v19, %v931_v14  ;;  %v1134_v34 = vmul.f32 %v19074_v63, %v1083_v31  ;;  %v953_v20 = vsel %vm24896_vm3, %v915_v51, 0.0 }
 0x234   :  { %v1135_v35 = vmul.f32 %v19079_v40, %v1083_v31  ;;  %v1218_v30 = vmul.f32 %v1202_v21, %v19234_v32 }
 0x235   :  { %793 = vadd.xlane.f32.xlu0 %v792_v12  ;;  %799 = vadd.xlane.f32.xlu1 %v798_v17  ;;  %v1014_v36 = vadd.f32 %v982_v1, %v862_v13  ;;  %v1015_v43 = vadd.f32 %v983_v28, %v863_v15  ;;  %v1102_v1 = vsel %vm24896_vm3, %v1066_v46, 0.0  ;;  %v1067_v17 = vmul.f32 %v1051_v4, %v19197_v60 }
 0x236   :  { %v1235_v47 = vpop.xlane.xlu0 %1234  ;;  %v1387_v48 = vpop.xlane.xlu1 %1386  ;;  %v1254_v21 = vsel %vm24896_vm3, %v1218_v30, 0.0 }
 0x237   :  { %v1286_v49 = vmul.f32 %v19096_v56, %v1235_v47  ;;  %v1287_v45 = vmul.f32 %v19099_v44, %v1235_v47  ;;  %v1166_v50 = vadd.f32 %v1134_v34, %v1014_v36  ;;  %v1167_v53 = vadd.f32 %v1135_v35, %v1015_v43  ;;  %v1354_v34 = vld [vmem:[%s24842_s2 + $0x2d0] sm:$0xff] }
 0x238   :  { %v1438_v2 = vmul.f32 %v19108_v5, %v1387_v48  ;;  %v1439_v13 = vmul.f32 %v19111_v7, %v1387_v48  ;;  %v512_v35 = vmul.f32 0.2, %v18734_v39  ;;  %v1105_v4 = vsel %vm24896_vm3, %v1067_v17, 0.0 }
 0x239   :  { %802 = vadd.xlane.f32.xlu0 %v801_v42  ;;  %951 = vadd.xlane.f32.xlu1 %v950_v61  ;;  %v1318_v0 = vadd.f32 %v1286_v49, %v1166_v50  ;;  %v1319_v57 = vadd.f32 %v1287_v45, %v1167_v53  ;;  %v1219_v50 = vmul.f32 %v1203_v33, %v19197_v60  ;;  %v1507_v33 = vld [vmem:[%s24842_s2 + $0x358] sm:$0xff] }
 0x23a   :  { %v1691_v15 = vpop.xlane.xlu0 %1690  ;;  %v1539_v31 = vpop.xlane.xlu1 %1538  ;;  %v1370_v53 = vmul.f32 %v1354_v34, %v19234_v32 }
 0x23b   :  { %v1590_v14 = vmul.f32 %v19116_v22, %v1539_v31  ;;  %v1591_v16 = vmul.f32 %v19119_v24, %v1539_v31  ;;  %v1470_v28 = vadd.f32 %v1438_v2, %v1318_v0  ;;  %v1471_v12 = vadd.f32 %v1439_v13, %v1319_v57  ;;  %v1355_v0 = vld [vmem:[%s24842_s2 + $0x2d8] sm:$0xff]  ;;  %v1506_v57 = vld [vmem:[%s24842_s2 + $0x350] sm:$0xff] }
 0x23c   :  { %v1742_v36 = vmul.f32 %v19134_v37, %v1691_v15  ;;  %v1743_v43 = vmul.f32 %v19137_v38, %v1691_v15  ;;  %v528_v2 = vsel %vm496_vm11, %v18734_v39, %v512_v35  ;;  %v1406_v17 = vsel %vm24896_vm3, %v1370_v53, 0.0 }
 0x23d   :  { %954 = vadd.xlane.f32.xlu0 %v953_v20  ;;  %1103 = vadd.xlane.f32.xlu1 %v1102_v1  ;;  %v1622_v47 = vadd.f32 %v1590_v14, %v1470_v28  ;;  %v1623_v48 = vadd.f32 %v1591_v16, %v1471_v12  ;;  %v1257_v12 = vsel %vm24896_vm3, %v1219_v50, 0.0  ;;  %v1371_v39 = vmul.f32 %v1355_v0, %v19197_v60  ;;  %v593_v0 = vld [vmem:[%s24842_s2 + $0x50] sm:$0xff] }
 0x23e   :  { %v1843_v49 = vpop.xlane.xlu0 %1842  ;;  %v776_v45 = vpop.xlane.xlu1 %775  ;;  %v1522_v30 = vmul.f32 %v1506_v57, %v19234_v32  ;;  %v560_v34 = vmul.f32 0.2, %v528_v2  ;;  %vm544_vm12 = vcmp.gt.f32.partialorder %v528_v2, 0.0 }
 0x23f   :  { %v1894_v51 = vmul.f32 %v19150_v54, %v1843_v49  ;;  %v1895_v46 = vmul.f32 %v19155_v55, %v1843_v49  ;;  %v1774_v42 = vadd.f32 %v1742_v36, %v1622_v47  ;;  %v1775_v61 = vadd.f32 %v1743_v43, %v1623_v48  ;;  %v1658_v43 = vld [vmem:[%s24842_s2 + $0x3d0] sm:$0xff] }
 0x240   :  { %v828_v16 = vmul.f32 %v19023_v6, %v776_v45  ;;  %v829_v20 = vmul.f32 %v19031_v8, %v776_v45  ;;  %v511_v49 = vmul.f32 0.2, %v18737_v41  ;;  %v1409_v50 = vsel %vm24896_vm3, %v1371_v39, 0.0 }
 0x241   :  { %1106 = vadd.xlane.f32.xlu0 %v1105_v4  ;;  %1255 = vadd.xlane.f32.xlu1 %v1254_v21  ;;  %v19329_v13 = vadd.f32 %v1894_v51, %v1774_v42  ;;  %v19331_v15 = vadd.f32 %v1895_v46, %v1775_v61  ;;  %v1523_v46 = vmul.f32 %v1507_v33, %v19197_v60  ;;  %v1558_v53 = vsel %vm24896_vm3, %v1522_v30, 0.0  ;;  %v596_v60 = vld [vmem:[%s24842_s2 + $0x68] sm:$0xff] }
 0x242   :  { %v624_v31 = vpop.xlane.xlu0 %623  ;;  %v1232_v14 = vpop.xlane.xlu1 %1231  ;;  %v1674_v42 = vmul.f32 %v1658_v43, %v19234_v32  ;;  %v19355_v61 = vsel %vm544_vm12, %v528_v2, %v560_v34  ;;  %v609_v39 = vmul.f32 %v593_v0, %v19234_v32 }
 0x243   :  { %24906 = vst [vmem:[#allocation14_spill] sm:$0xff] %v19329_v13  ;;  %24907 = vst [vmem:[#allocation15_spill] sm:$0xff] %v19331_v15  ;;  %v676_v1 = vmul.f32 %v19035_v9, %v624_v31  ;;  %v677_v28 = vmul.f32 %v19039_v10, %v624_v31  ;;  %v612_v30 = vmul.f32 %v596_v60, %v19355_v61 }
 0x245   :  { %v860_v35 = vadd.f32 %v828_v16, %v676_v1  ;;  %v861_v36 = vadd.f32 %v829_v20, %v677_v28  ;;  %1258 = vadd.xlane.f32.xlu0 %v1257_v12  ;;  %1407 = vadd.xlane.f32.xlu1 %v1406_v17  ;;  %v527_v16 = vsel %vm495_vm13, %v18737_v41, %v511_v49  ;;  %v1561_v1 = vsel %vm24896_vm3, %v1523_v46, 0.0  ;;  %v1810_v28 = vld [vmem:[%s24842_s2 + $0x450] sm:$0xff] }
 0x246   :  { %v928_v47 = vpop.xlane.xlu0 %927  ;;  %v1384_v48 = vpop.xlane.xlu1 %1383  ;;  %v1284_v12 = vmul.f32 %v19096_v56, %v1232_v14  ;;  %v1710_v17 = vsel %vm24896_vm3, %v1674_v42, 0.0  ;;  %v1285_v41 = vmul.f32 %v19099_v44, %v1232_v14  ;;  %vm543_vm14 = vcmp.gt.f32.partialorder %v527_v16, 0.0 }
 0x247   :  { %v980_v45 = vmul.f32 %v19055_v23, %v928_v47  ;;  %v981_v51 = vmul.f32 %v19059_v19, %v928_v47  ;;  %v1826_v49 = vmul.f32 %v1810_v28, %v19234_v32  ;;  %v646_v42 = vsel %vm24896_vm3, %v609_v39, 0.0 }
 0x249   :  { %v1012_v4 = vadd.f32 %v980_v45, %v860_v35  ;;  %v1013_v21 = vadd.f32 %v981_v51, %v861_v36  ;;  %1410 = vadd.xlane.f32.xlu0 %v1409_v50  ;;  %1559 = vadd.xlane.f32.xlu1 %v1558_v53  ;;  %v1357_v35 = vld [vmem:[%s24842_s2 + $0x2e8] sm:$0xff]  ;;  %v559_v36 = vmul.f32 0.2, %v527_v16  ;;  %v1436_v45 = vmul.f32 %v19108_v5, %v1384_v48 }
 0x24a   :  { %v1080_v57 = vpop.xlane.xlu0 %1079  ;;  %v1840_v31 = vpop.xlane.xlu1 %1839  ;;  %v1437_v51 = vmul.f32 %v19111_v7, %v1384_v48  ;;  %v749_v50 = vld [vmem:[%s24842_s2 + $0xe8] sm:$0xff] }
 0x24b   :  { %v1132_v20 = vmul.f32 %v19074_v63, %v1080_v57  ;;  %v1133_v2 = vmul.f32 %v19079_v40, %v1080_v57  ;;  %v1509_v48 = vld [vmem:[%s24842_s2 + $0x368] sm:$0xff]  ;;  %v19393_v57 = vsel %vm543_vm14, %v527_v16, %v559_v36  ;;  %v1893_v16 = vmul.f32 %v19155_v55, %v1840_v31 }
 0x24d   :  { %v1164_v33 = vadd.f32 %v1132_v20, %v1012_v4  ;;  %v1165_v34 = vadd.f32 %v1133_v2, %v1013_v21  ;;  %1562 = vadd.xlane.f32.xlu0 %v1561_v1  ;;  %1711 = vadd.xlane.f32.xlu1 %v1710_v17  ;;  %v655_v4 = vsel %vm24896_vm3, %v612_v30, 0.0  ;;  %v1373_v21 = vmul.f32 %v1357_v35, %v19355_v61 }
 0x24e   :  { %v1536_v43 = vpop.xlane.xlu0 %1535  ;;  %v633_v47 = vpop.xlane.xlu1 %632  ;;  %v765_v1 = vmul.f32 %v749_v50, %v19355_v61  ;;  %v1892_v30 = vmul.f32 %v19150_v54, %v1840_v31 }
 0x24f   :  { %v1316_v46 = vadd.f32 %v1284_v12, %v1164_v33  ;;  %v1317_v14 = vadd.f32 %v1285_v41, %v1165_v34  ;;  %v1588_v53 = vmul.f32 %v19116_v22, %v1536_v43  ;;  %v1589_v60 = vmul.f32 %v19119_v24, %v1536_v43  ;;  %v901_v43 = vld [vmem:[%s24842_s2 + $0x168] sm:$0xff] }
 0x250   :  { %v1862_v41 = vsel %vm24896_vm3, %v1826_v49, 0.0  ;;  %v1415_v33 = vsel %vm24896_vm3, %v1373_v21, 0.0  ;;  %v1525_v34 = vmul.f32 %v1509_v48, %v19355_v61  ;;  %v682_v49 = vmul.f32 %v19035_v9, %v633_v47  ;;  %v1053_v48 = vld [vmem:[%s24842_s2 + $0x1e8] sm:$0xff] }
 0x251   :  { %v1468_v0 = vadd.f32 %v1436_v45, %v1316_v46  ;;  %v1469_v32 = vadd.f32 %v1437_v51, %v1317_v14  ;;  %647 = vadd.xlane.f32.xlu0 %v646_v42  ;;  %656 = vadd.xlane.f32.xlu1 %v655_v4  ;;  %v748_v45 = vld [vmem:[%s24842_s2 + $0xe0] sm:$0xff]  ;;  %v683_v51 = vmul.f32 %v19039_v10, %v633_v47  ;;  %v807_v4 = vsel %vm24896_vm3, %v765_v1, 0.0 }
 0x252   :  { %v1688_v20 = vpop.xlane.xlu0 %1687  ;;  %v1089_v2 = vpop.xlane.xlu1 %1088  ;;  %v917_v21 = vmul.f32 %v901_v43, %v19355_v61  ;;  %v1567_v47 = vsel %vm24896_vm3, %v1525_v34, 0.0  ;;  %v1205_v43 = vld [vmem:[%s24842_s2 + $0x268] sm:$0xff] }
 0x253   :  { %v1620_v28 = vadd.f32 %v1588_v53, %v1468_v0  ;;  %v1621_v12 = vadd.f32 %v1589_v60, %v1469_v32  ;;  %v1740_v17 = vmul.f32 %v19134_v37, %v1688_v20  ;;  %v1741_v39 = vmul.f32 %v19137_v38, %v1688_v20  ;;  %v900_v20 = vld [vmem:[%s24842_s2 + $0x160] sm:$0xff] }
 0x254   :  { %v764_v0 = vmul.f32 %v748_v45, %v19393_v57  ;;  %v1138_v34 = vmul.f32 %v19074_v63, %v1089_v2  ;;  %v1052_v45 = vld [vmem:[%s24842_s2 + $0x1e0] sm:$0xff] }
 0x255   :  { %v1772_v35 = vadd.f32 %v1740_v17, %v1620_v28  ;;  %v1773_v36 = vadd.f32 %v1741_v39, %v1621_v12  ;;  %1863 = vadd.xlane.f32.xlu0 %v1862_v41  ;;  %1416 = vadd.xlane.f32.xlu1 %v1415_v33  ;;  %v959_v39 = vsel %vm24896_vm3, %v917_v21, 0.0  ;;  %v1069_v41 = vmul.f32 %v1053_v48, %v19355_v61 }
 0x256   :  { %v785_v46 = vpop.xlane.xlu0 %784  ;;  %v1241_v14 = vpop.xlane.xlu1 %1240  ;;  %v916_v33 = vmul.f32 %v900_v20, %v19393_v57 }
 0x257   :  { %v19411_v50 = vadd.f32 %v1892_v30, %v1772_v35  ;;  %v19413_v31 = vadd.f32 %v1893_v16, %v1773_v36  ;;  %v834_v53 = vmul.f32 %v19023_v6, %v785_v46  ;;  %v835_v42 = vmul.f32 %v19031_v8, %v785_v46 }
 0x258   :  { %v804_v30 = vsel %vm24896_vm3, %v764_v0, 0.0  ;;  %v1139_v16 = vmul.f32 %v19079_v40, %v1089_v2  ;;  %v1290_v2 = vmul.f32 %v19096_v56, %v1241_v14  ;;  %v1111_v21 = vsel %vm24896_vm3, %v1069_v41, 0.0 }
 0x259   :  { %24908 = vst [vmem:[#allocation16_spill] sm:$0xff] %v19411_v50  ;;  %24909 = vst [vmem:[#allocation17_spill] sm:$0xff] %v19413_v31  ;;  %v866_v32 = vadd.f32 %v834_v53, %v682_v49  ;;  %v867_v60 = vadd.f32 %v835_v42, %v683_v51  ;;  %808 = vadd.xlane.f32.xlu0 %v807_v4  ;;  %1568 = vadd.xlane.f32.xlu1 %v1567_v47  ;;  %v514_v49 = vmul.f32 0.2, %v18756_v58 }
 0x25a   :  { %v937_v28 = vpop.xlane.xlu0 %936  ;;  %v19427_v1 = vpop.xlane.xlu1 %629  ;;  %v1291_v53 = vmul.f32 %v19099_v44, %v1241_v14  ;;  %v956_v0 = vsel %vm24896_vm3, %v916_v33, 0.0  ;;  %v1661_v14 = vld [vmem:[%s24842_s2 + $0x3e8] sm:$0xff] }
 0x25b   :  { %v986_v12 = vmul.f32 %v19055_v23, %v937_v28  ;;  %v987_v17 = vmul.f32 %v19059_v19, %v937_v28 }
 0x25d   :  { %v1018_v35 = vadd.f32 %v986_v12, %v866_v32  ;;  %v1019_v36 = vadd.f32 %v987_v17, %v867_v60  ;;  %960 = vadd.xlane.f32.xlu0 %v959_v39  ;;  %805 = vadd.xlane.f32.xlu1 %v804_v30  ;;  %v1221_v32 = vmul.f32 %v1205_v43, %v19355_v61  ;;  %v1204_v39 = vld [vmem:[%s24842_s2 + $0x260] sm:$0xff] }
 0x25e   :  { %v1393_v51 = vpop.xlane.xlu0 %1392  ;;  %v19445_v46 = vpop.xlane.xlu1 %933  ;;  %v1068_v60 = vmul.f32 %v1052_v45, %v19393_v57 }
 0x25f   :  { %v1170_v42 = vadd.f32 %v1138_v34, %v1018_v35  ;;  %v1171_v4 = vadd.f32 %v1139_v16, %v1019_v36  ;;  %v1442_v20 = vmul.f32 %v19108_v5, %v1393_v51  ;;  %v1443_v28 = vmul.f32 %v19111_v7, %v1393_v51 }
 0x260   :  { %v530_v16 = vsel %vm498_vm15, %v18756_v58, %v514_v49  ;;  %v1263_v35 = vsel %vm24896_vm3, %v1221_v32, 0.0  ;;  %v1677_v36 = vmul.f32 %v1661_v14, %v19355_v61  ;;  %v1108_v51 = vsel %vm24896_vm3, %v1068_v60, 0.0  ;;  %v1356_v58 = vld [vmem:[%s24842_s2 + $0x2e0] sm:$0xff] }
 0x261   :  { %v1322_v47 = vadd.f32 %v1290_v2, %v1170_v42  ;;  %v1323_v48 = vadd.f32 %v1291_v53, %v1171_v4  ;;  %1112 = vadd.xlane.f32.xlu0 %v1111_v21  ;;  %957 = vadd.xlane.f32.xlu1 %v956_v0  ;;  %v1220_v2 = vmul.f32 %v1204_v39, %v19393_v57  ;;  %v595_v53 = vld [vmem:[%s24842_s2 + $0x60] sm:$0xff]  ;;  %v513_v49 = vmul.f32 0.2, %v18759_v62 }
 0x262   :  { %v1545_v12 = vpop.xlane.xlu0 %1544  ;;  %v19458_v17 = vpop.xlane.xlu1 %1085  ;;  %v562_v32 = vmul.f32 0.2, %v530_v16  ;;  %v1719_v60 = vsel %vm24896_vm3, %v1677_v36, 0.0  ;;  %v1372_v14 = vmul.f32 %v1356_v58, %v19393_v57  ;;  %v1812_v39 = vld [vmem:[%s24842_s2 + $0x460] sm:$0xff]  ;;  %vm546_vm1 = vcmp.gt.f32.partialorder %v530_v16, 0.0  ;;  %v598_v58 = vld [vmem:[%s24842_s2 + $0x78] sm:$0xff] }
 0x263   :  { %v1474_v30 = vadd.f32 %v1442_v20, %v1322_v47  ;;  %v1475_v41 = vadd.f32 %v1443_v28, %v1323_v48  ;;  %v1594_v33 = vmul.f32 %v19116_v22, %v1545_v12  ;;  %v1595_v34 = vmul.f32 %v19119_v24, %v1545_v12  ;;  %v1508_v12 = vld [vmem:[%s24842_s2 + $0x360] sm:$0xff] }
 0x264   :  { %v611_v47 = vmul.f32 %v595_v53, %v19393_v57  ;;  %v1260_v28 = vsel %vm24896_vm3, %v1220_v2, 0.0 }
 0x265   :  { %v1626_v43 = vadd.f32 %v1594_v33, %v1474_v30  ;;  %v1627_v45 = vadd.f32 %v1595_v34, %v1475_v41  ;;  %1264 = vadd.xlane.f32.xlu0 %v1263_v35  ;;  %1109 = vadd.xlane.f32.xlu1 %v1108_v51  ;;  %v529_v33 = vsel %vm497_vm0, %v18759_v62, %v513_v49  ;;  %v1660_v62 = vld [vmem:[%s24842_s2 + $0x3e0] sm:$0xff] }
 0x266   :  { %v1697_v42 = vpop.xlane.xlu0 %1696  ;;  %v19475_v4 = vpop.xlane.xlu1 %1541  ;;  %v652_v36 = vsel %vm24896_vm3, %v611_v47, 0.0  ;;  %v19502_v51 = vsel %vm546_vm1, %v530_v16, %v562_v32  ;;  %vm545_vm2 = vcmp.gt.f32.partialorder %v529_v33, 0.0  ;;  %v561_v49 = vmul.f32 0.2, %v529_v33 }
 0x267   :  { %v1746_v21 = vmul.f32 %v19134_v37, %v1697_v42  ;;  %v1747_v0 = vmul.f32 %v19137_v38, %v1697_v42  ;;  %v1412_v42 = vsel %vm24896_vm3, %v1372_v14, 0.0  ;;  %v681_v32 = vmul.f32 %v19039_v10, %v19427_v1 }
 0x269   :  { %v1778_v48 = vadd.f32 %v1746_v21, %v1626_v43  ;;  %v1779_v20 = vadd.f32 %v1747_v0, %v1627_v45  ;;  %1720 = vadd.xlane.f32.xlu0 %v1719_v60  ;;  %1261 = vadd.xlane.f32.xlu1 %v1260_v28  ;;  %v1524_v43 = vmul.f32 %v1508_v12, %v19393_v57 }
 0x26a   :  { %v1849_v30 = vpop.xlane.xlu0 %1848  ;;  %v19494_v41 = vpop.xlane.xlu1 %1693  ;;  %v1828_v45 = vmul.f32 %v1812_v39, %v19393_v57  ;;  %v680_v0 = vmul.f32 %v19035_v9, %v19427_v1  ;;  %v1676_v12 = vmul.f32 %v1660_v62, %v19393_v57  ;;  %v614_v1 = vmul.f32 %v598_v58, %v19502_v51 }
 0x26b   :  { %v1898_v34 = vmul.f32 %v19150_v54, %v1849_v30  ;;  %v1899_v35 = vmul.f32 %v19155_v55, %v1849_v30  ;;  %v1564_v28 = vsel %vm24896_vm3, %v1524_v43, 0.0  ;;  %v984_v39 = vmul.f32 %v19055_v23, %v19445_v46  ;;  %v1207_v43 = vld [vmem:[%s24842_s2 + $0x278] sm:$0xff] }
 0x26c   :  { %v1868_v14 = vsel %vm24896_vm3, %v1828_v45, 0.0  ;;  %v985_v30 = vmul.f32 %v19059_v19, %v19445_v46  ;;  %v19544_v57 = vsel %vm545_vm2, %v529_v33, %v561_v49  ;;  %v1136_v58 = vmul.f32 %v19074_v63, %v19458_v17 }
 0x26d   :  { %v19504_v2 = vadd.f32 %v1898_v34, %v1778_v48  ;;  %v19506_v53 = vadd.f32 %v1899_v35, %v1779_v20  ;;  %653 = vadd.xlane.f32.xlu0 %v652_v36  ;;  %1413 = vadd.xlane.f32.xlu1 %v1412_v42  ;;  %v751_v48 = vld [vmem:[%s24842_s2 + $0xf8] sm:$0xff]  ;;  %v661_v33 = vsel %vm24896_vm3, %v614_v1, 0.0 }
 0x26e   :  { %v782_v16 = vpop.xlane.xlu0 %781  ;;  %v19515_v21 = vpop.xlane.xlu1 %1845  ;;  %v1055_v20 = vld [vmem:[%s24842_s2 + $0x1f8] sm:$0xff]  ;;  %v767_v62 = vmul.f32 %v751_v48, %v19502_v51 }
 0x26f   :  { %24910 = vst [vmem:[#allocation18_spill] sm:$0xff] %v19504_v2  ;;  %24911 = vst [vmem:[#allocation19_spill] sm:$0xff] %v19506_v53  ;;  %v832_v60 = vmul.f32 %v19023_v6, %v782_v16  ;;  %v833_v47 = vmul.f32 %v19031_v8, %v782_v16  ;;  %v903_v36 = vld [vmem:[%s24842_s2 + $0x178] sm:$0xff]  ;;  %v1071_v46 = vmul.f32 %v1055_v20, %v19502_v51 }
 0x270   :  { %v1137_v16 = vmul.f32 %v19079_v40, %v19458_v17  ;;  %v919_v49 = vmul.f32 %v903_v36, %v19502_v51  ;;  %v1359_v17 = vld [vmem:[%s24842_s2 + $0x2f8] sm:$0xff] }
 0x271   :  { %v864_v34 = vadd.f32 %v832_v60, %v680_v0  ;;  %v865_v35 = vadd.f32 %v833_v47, %v681_v32  ;;  %1565 = vadd.xlane.f32.xlu0 %v1564_v28  ;;  %1869 = vadd.xlane.f32.xlu1 %v1868_v14  ;;  %v1716_v60 = vsel %vm24896_vm3, %v1676_v12, 0.0  ;;  %v1223_v47 = vmul.f32 %v1207_v43, %v19502_v51  ;;  %v750_v12 = vld [vmem:[%s24842_s2 + $0xf0] sm:$0xff] }
 0x272   :  { %v1238_v45 = vpop.xlane.xlu0 %1237  ;;  %v791_v42 = vpop.xlane.xlu1 %790 }
 0x273   :  { %v1016_v0 = vadd.f32 %v984_v39, %v864_v34  ;;  %v1017_v32 = vadd.f32 %v985_v30, %v865_v35  ;;  %v1288_v20 = vmul.f32 %v19096_v56, %v1238_v45  ;;  %v1289_v14 = vmul.f32 %v19099_v44, %v1238_v45 }
 0x274   :  { %v813_v30 = vsel %vm24896_vm3, %v767_v62, 0.0  ;;  %v1117_v34 = vsel %vm24896_vm3, %v1071_v46, 0.0  ;;  %v1593_v62 = vmul.f32 %v19119_v24, %v19475_v4 }
 0x275   :  { %v1168_v28 = vadd.f32 %v1136_v58, %v1016_v0  ;;  %v1169_v48 = vadd.f32 %v1137_v16, %v1017_v32  ;;  %1717 = vadd.xlane.f32.xlu0 %v1716_v60  ;;  %662 = vadd.xlane.f32.xlu1 %v661_v33  ;;  %v965_v58 = vsel %vm24896_vm3, %v919_v49, 0.0  ;;  %v1269_v16 = vsel %vm24896_vm3, %v1223_v47, 0.0 }
 0x276   :  { %v1390_v1 = vpop.xlane.xlu0 %1389  ;;  %v943_v39 = vpop.xlane.xlu1 %942  ;;  %v1375_v0 = vmul.f32 %v1359_v17, %v19502_v51  ;;  %v766_v32 = vmul.f32 %v750_v12, %v19544_v57  ;;  %v1592_v60 = vmul.f32 %v19116_v22, %v19475_v4  ;;  %v1745_v49 = vmul.f32 %v19137_v38, %v19494_v41 }
 0x277   :  { %v1320_v35 = vadd.f32 %v1288_v20, %v1168_v28  ;;  %v1321_v36 = vadd.f32 %v1289_v14, %v1169_v48  ;;  %v1440_v43 = vmul.f32 %v19108_v5, %v1390_v1  ;;  %v1441_v45 = vmul.f32 %v19111_v7, %v1390_v1 }
 0x278   :  { %v1744_v28 = vmul.f32 %v19134_v37, %v19494_v41  ;;  %v838_v47 = vmul.f32 %v19023_v6, %v791_v42  ;;  %v839_v48 = vmul.f32 %v19031_v8, %v791_v42  ;;  %v1897_v41 = vmul.f32 %v19155_v55, %v19515_v21 }
 0x279   :  { %v1472_v46 = vadd.f32 %v1440_v43, %v1320_v35  ;;  %v1473_v33 = vadd.f32 %v1441_v45, %v1321_v36  ;;  %814 = vadd.xlane.f32.xlu0 %v813_v30  ;;  %1118 = vadd.xlane.f32.xlu1 %v1117_v34  ;;  %v1896_v30 = vmul.f32 %v19150_v54, %v19515_v21  ;;  %v902_v54 = vld [vmem:[%s24842_s2 + $0x170] sm:$0xff] }
 0x27a   :  { %v639_v20 = vpop.xlane.xlu0 %638  ;;  %v19582_v14 = vpop.xlane.xlu1 %787  ;;  %v990_v35 = vmul.f32 %v19055_v23, %v943_v39  ;;  %v991_v42 = vmul.f32 %v19059_v19, %v943_v39 }
 0x27b   :  { %v1624_v17 = vadd.f32 %v1592_v60, %v1472_v46  ;;  %v1625_v12 = vadd.f32 %v1593_v62, %v1473_v33  ;;  %v686_v4 = vmul.f32 %v19035_v9, %v639_v20  ;;  %v687_v1 = vmul.f32 %v19039_v10, %v639_v20  ;;  %v1511_v60 = vld [vmem:[%s24842_s2 + $0x378] sm:$0xff]  ;;  %v597_v20 = vld [vmem:[%s24842_s2 + $0x70] sm:$0xff] }
 0x27d   :  { %v1776_v34 = vadd.f32 %v1744_v28, %v1624_v17  ;;  %v1777_v36 = vadd.f32 %v1745_v49, %v1625_v12  ;;  %v870_v43 = vadd.f32 %v838_v47, %v686_v4  ;;  %v871_v45 = vadd.f32 %v839_v48, %v687_v1  ;;  %966 = vadd.xlane.f32.xlu0 %v965_v58 }
 0x27e   :  { %1270 = vadd.xlane.f32.xlu1 %v1269_v16  ;;  %v1095_v62 = vpop.xlane.xlu0 %1094  ;;  %v19595_v46 = vpop.xlane.xlu1 %1243  ;;  %v1421_v49 = vsel %vm24896_vm3, %v1375_v0, 0.0  ;;  %v1527_v16 = vmul.f32 %v1511_v60, %v19502_v51  ;;  %v810_v47 = vsel %vm24896_vm3, %v766_v32, 0.0  ;;  %v918_v48 = vmul.f32 %v902_v54, %v19544_v57  ;;  %v1054_v0 = vld [vmem:[%s24842_s2 + $0x1f0] sm:$0xff]  ;;  %v1663_v54 = vld [vmem:[%s24842_s2 + $0x3f8] sm:$0xff] }
 0x27f   :  { %v19600_v55 = vadd.f32 %v1896_v30, %v1776_v34  ;;  %v19602_v21 = vadd.f32 %v1897_v41, %v1777_v36  ;;  %v1022_v39 = vadd.f32 %v990_v35, %v870_v43  ;;  %v1023_v33 = vadd.f32 %v991_v42, %v871_v45  ;;  %v1206_v45 = vld [vmem:[%s24842_s2 + $0x270] sm:$0xff] }
 0x280   :  { %v1142_v58 = vmul.f32 %v19074_v63, %v1095_v62  ;;  %v1143_v28 = vmul.f32 %v19079_v40, %v1095_v62  ;;  %v1573_v41 = vsel %vm24896_vm3, %v1527_v16, 0.0  ;;  %v613_v35 = vmul.f32 %v597_v20, %v19544_v57  ;;  %v1358_v20 = vld [vmem:[%s24842_s2 + $0x2f0] sm:$0xff] }
 0x281   :  { %24912 = vst [vmem:[#allocation20_spill] sm:$0xff] %v19600_v55  ;;  %24913 = vst [vmem:[#allocation21_spill] sm:$0xff] %v19602_v21  ;;  %1422 = vadd.xlane.f32.xlu0 %v1421_v49  ;;  %v962_v36 = vsel %vm24896_vm3, %v918_v48, 0.0  ;;  %v1070_v43 = vmul.f32 %v1054_v0, %v19544_v57  ;;  %v1679_v48 = vmul.f32 %v1663_v54, %v19502_v51  ;;  %v1662_v54 = vld [vmem:[%s24842_s2 + $0x3f0] sm:$0xff] }
 0x282   :  { %v1174_v17 = vadd.f32 %v1142_v58, %v1022_v39  ;;  %v1175_v12 = vadd.f32 %v1143_v28, %v1023_v33  ;;  %811 = vadd.xlane.f32.xlu1 %v810_v47  ;;  %v1247_v4 = vpop.xlane.xlu0 %1246  ;;  %v19613_v1 = vpop.xlane.xlu1 %1395  ;;  %v658_v58 = vsel %vm24896_vm3, %v613_v35, 0.0  ;;  %v1222_v28 = vmul.f32 %v1206_v45, %v19544_v57 }
 0x283   :  { %v1294_v30 = vmul.f32 %v19096_v56, %v1247_v4  ;;  %v1295_v32 = vmul.f32 %v19099_v44, %v1247_v4  ;;  %v1114_v47 = vsel %vm24896_vm3, %v1070_v43, 0.0  ;;  %v1510_v4 = vld [vmem:[%s24842_s2 + $0x370] sm:$0xff]  ;;  %v1813_v43 = vld [vmem:[%s24842_s2 + $0x468] sm:$0xff] }
 0x285   :  { %v1326_v42 = vadd.f32 %v1294_v30, %v1174_v17  ;;  %v1327_v34 = vadd.f32 %v1295_v32, %v1175_v12  ;;  %1574 = vadd.xlane.f32.xlu0 %v1573_v41  ;;  %v1266_v32 = vsel %vm24896_vm3, %v1222_v28, 0.0  ;;  %v1374_v41 = vmul.f32 %v1358_v20, %v19544_v57  ;;  %v1814_v20 = vld [vmem:[%s24842_s2 + $0x470] sm:$0xff] }
 0x286   :  { %963 = vadd.xlane.f32.xlu1 %v962_v36  ;;  %v1399_v60 = vpop.xlane.xlu0 %1398  ;;  %v19627_v62 = vpop.xlane.xlu1 %1547  ;;  %v1526_v36 = vmul.f32 %v1510_v4, %v19544_v57  ;;  %v1829_v28 = vmul.f32 %v1813_v43, %v19355_v61  ;;  %v19675_v61 = vld [vmem:[%s24846_s6 + $0x10] ss:$0 sm:$0xff] }
 0x287   :  { %v1446_v39 = vmul.f32 %v19108_v5, %v1399_v60  ;;  %v1447_v33 = vmul.f32 %v19111_v7, %v1399_v60 }
 0x289   :  { %v1478_v49 = vadd.f32 %v1446_v39, %v1326_v42  ;;  %v1479_v16 = vadd.f32 %v1447_v33, %v1327_v34  ;;  %659 = vadd.xlane.f32.xlu0 %v658_v58  ;;  %v1725_v34 = vsel %vm24896_vm3, %v1679_v48, 0.0  ;;  %v1418_v58 = vsel %vm24896_vm3, %v1374_v41, 0.0 }
 0x28a   :  { %1115 = vadd.xlane.f32.xlu1 %v1114_v47  ;;  %v1551_v17 = vpop.xlane.xlu0 %1550  ;;  %v19641_v12 = vpop.xlane.xlu1 %1699  ;;  %v1570_v47 = vsel %vm24896_vm3, %v1526_v36, 0.0  ;;  %v1678_v48 = vmul.f32 %v1662_v54, %v19544_v57 }
 0x28b   :  { %v1598_v0 = vmul.f32 %v19116_v22, %v1551_v17  ;;  %v1599_v30 = vmul.f32 %v19119_v24, %v1551_v17 }
 0x28c   :  { %v1722_v43 = vsel %vm24896_vm3, %v1678_v48, 0.0 }
 0x28d   :  { %v1630_v35 = vadd.f32 %v1598_v0, %v1478_v49  ;;  %v1631_v42 = vadd.f32 %v1599_v30, %v1479_v16  ;;  %1267 = vadd.xlane.f32.xlu0 %v1266_v32  ;;  %v1815_v0 = vld [vmem:[%s24842_s2 + $0x478] sm:$0xff] }
 0x28e   :  { %1726 = vadd.xlane.f32.xlu1 %v1725_v34  ;;  %v1703_v45 = vpop.xlane.xlu0 %1702  ;;  %v19655_v60 = vpop.xlane.xlu1 %1851  ;;  %v19681_v32 = vld [vmem:[%s24846_s6 + $0x18] ss:$0 sm:$0xff] }
 0x28f   :  { %v1750_v39 = vmul.f32 %v19134_v37, %v1703_v45  ;;  %v1751_v33 = vmul.f32 %v19137_v38, %v1703_v45  ;;  %v1831_v45 = vmul.f32 %v1815_v0, %v19502_v51 }
 0x291   :  { %v1782_v49 = vadd.f32 %v1750_v39, %v1630_v35  ;;  %v1783_v16 = vadd.f32 %v1751_v33, %v1631_v42  ;;  %1419 = vadd.xlane.f32.xlu0 %v1418_v58  ;;  %v1871_v35 = vsel %vm24896_vm3, %v1829_v28, 0.0  ;;  %v1830_v42 = vmul.f32 %v1814_v20, %v19544_v57 }
 0x292   :  { %1571 = vadd.xlane.f32.xlu1 %v1570_v47  ;;  %v1855_v17 = vpop.xlane.xlu0 %1854  ;;  %v645_v4 = vpop.xlane.xlu1 %644  ;;  %v836_v33 = vmul.f32 %v19023_v6, %v19582_v14  ;;  %v837_v58 = vmul.f32 %v19031_v8, %v19582_v14  ;;  %v1877_v51 = vsel %vm24896_vm3, %v1831_v45, 0.0  ;;  %v1292_v45 = vmul.f32 %v19096_v56, %v19595_v46 }
 0x293   :  { %v1902_v30 = vmul.f32 %v19675_v61, %v1855_v17  ;;  %v1903_v41 = vmul.f32 %v19681_v32, %v1855_v17 }
 0x295   :  { %v19686_v34 = vadd.f32 %v1902_v30, %v1782_v49  ;;  %v19688_v36 = vadd.f32 %v1903_v41, %v1783_v16  ;;  %1872 = vadd.xlane.f32.xlu0 %v1871_v35  ;;  %v1874_v49 = vsel %vm24896_vm3, %v1830_v42, 0.0 }
 0x296   :  { %1723 = vadd.xlane.f32.xlu1 %v1722_v43  ;;  %v636_v54 = vpop.xlane.xlu0 %635  ;;  %v19692_v39 = vpop.xlane.xlu1 %641 }
 0x297   :  { %24914 = vst [vmem:[#allocation22_spill] sm:$0xff] %v19688_v36  ;;  %v684_v57 = vmul.f32 %v19035_v9, %v636_v54  ;;  %v685_v28 = vmul.f32 %v19039_v10, %v636_v54  ;;  %v1293_v54 = vmul.f32 %v19099_v44, %v19595_v46 }
 0x299   :  { %v868_v16 = vadd.f32 %v836_v33, %v684_v57  ;;  %v869_v47 = vadd.f32 %v837_v58, %v685_v28  ;;  %1875 = vadd.xlane.f32.xlu0 %v1874_v49  ;;  %v1444_v57 = vmul.f32 %v19108_v5, %v19613_v1  ;;  %v1445_v28 = vmul.f32 %v19111_v7, %v19613_v1 }
 0x29a   :  { %1878 = vadd.xlane.f32.xlu1 %v1877_v51  ;;  %v940_v48 = vpop.xlane.xlu0 %939  ;;  %v19702_v20 = vpop.xlane.xlu1 %945  ;;  %v690_v49 = vmul.f32 %v19035_v9, %v645_v4 }
 0x29b   :  { %v988_v17 = vmul.f32 %v19055_v23, %v940_v48  ;;  %v989_v0 = vmul.f32 %v19059_v19, %v940_v48 }
 0x29d   :  { %v1020_v14 = vadd.f32 %v988_v17, %v868_v16  ;;  %v1021_v30 = vadd.f32 %v989_v0, %v869_v47  ;;  %v691_v16 = vmul.f32 %v19039_v10, %v645_v4  ;;  %v1748_v4 = vmul.f32 %v19134_v37, %v19641_v12 }
 0x29e   :  { %v1092_v41 = vpop.xlane.xlu0 %1091  ;;  %v19706_v35 = vpop.xlane.xlu1 %1097 }
 0x29f   :  { %v1140_v42 = vmul.f32 %v19074_v63, %v1092_v41  ;;  %v1141_v43 = vmul.f32 %v19079_v40, %v1092_v41 }
 0x2a1   :  { %v1172_v33 = vadd.f32 %v1140_v42, %v1020_v14  ;;  %v1173_v58 = vadd.f32 %v1141_v43, %v1021_v30  ;;  %v1596_v14 = vmul.f32 %v19116_v22, %v19627_v62  ;;  %v1597_v30 = vmul.f32 %v19119_v24, %v19627_v62 }
 0x2a2   :  { %v797_v47 = vpop.xlane.xlu0 %796  ;;  %v19720_v51 = vpop.xlane.xlu1 %1249  ;;  %v1900_v62 = vmul.f32 %v19675_v61, %v19655_v60 }
 0x2a3   :  { %v1324_v48 = vadd.f32 %v1292_v45, %v1172_v33  ;;  %v1325_v17 = vadd.f32 %v1293_v54, %v1173_v58  ;;  %v842_v0 = vmul.f32 %v19023_v6, %v797_v47  ;;  %v843_v46 = vmul.f32 %v19031_v8, %v797_v47 }
 0x2a4   :  { %v1749_v45 = vmul.f32 %v19137_v38, %v19641_v12 }
 0x2a5   :  { %v1476_v1 = vadd.f32 %v1444_v57, %v1324_v48  ;;  %v1477_v41 = vadd.f32 %v1445_v28, %v1325_v17  ;;  %v874_v42 = vadd.f32 %v842_v0, %v690_v49  ;;  %v875_v43 = vadd.f32 %v843_v46, %v691_v16 }
 0x2a6   :  { %v949_v54 = vpop.xlane.xlu0 %948  ;;  %v19732_v33 = vpop.xlane.xlu1 %1401  ;;  %v1901_v57 = vmul.f32 %v19681_v32, %v19655_v60 }
 0x2a7   :  { %v1628_v58 = vadd.f32 %v1596_v14, %v1476_v1  ;;  %v1629_v47 = vadd.f32 %v1597_v30, %v1477_v41  ;;  %v994_v18 = vmul.f32 %v19055_v23, %v949_v54  ;;  %v995_v27 = vmul.f32 %v19059_v19, %v949_v54 }
 0x2a9   :  { %v1780_v28 = vadd.f32 %v1748_v4, %v1628_v58  ;;  %v1781_v49 = vadd.f32 %v1749_v45, %v1629_v47  ;;  %v1026_v16 = vadd.f32 %v994_v18, %v874_v42  ;;  %v1027_v48 = vadd.f32 %v995_v27, %v875_v43 }
 0x2aa   :  { %v1101_v12 = vpop.xlane.xlu0 %1100  ;;  %v19740_v17 = vpop.xlane.xlu1 %1553 }
 0x2ab   :  { %v19742_v0 = vadd.f32 %v1900_v62, %v1780_v28  ;;  %v19744_v46 = vadd.f32 %v1901_v57, %v1781_v49  ;;  %v1146_v14 = vmul.f32 %v19074_v63, %v1101_v12  ;;  %v1147_v30 = vmul.f32 %v19079_v40, %v1101_v12 }
 0x2ad   :  { %24915 = vst [vmem:[#allocation23_spill] sm:$0xff] %v19742_v0  ;;  %24916 = vst [vmem:[#allocation24_spill] sm:$0xff] %v19744_v46  ;;  %v1178_v1 = vadd.f32 %v1146_v14, %v1026_v16  ;;  %v1179_v41 = vadd.f32 %v1147_v30, %v1027_v48 }
 0x2ae   :  { %v1253_v54 = vpop.xlane.xlu0 %1252  ;;  %v19748_v52 = vpop.xlane.xlu1 %1705 }
 0x2af   :  { %v1298_v60 = vmul.f32 %v19096_v56, %v1253_v54  ;;  %v1299_v27 = vmul.f32 %v19099_v44, %v1253_v54 }
 0x2b1   :  { %v1330_v18 = vadd.f32 %v1298_v60, %v1178_v1  ;;  %v1331_v42 = vadd.f32 %v1299_v27, %v1179_v41 }
 0x2b2   :  { %v1405_v43 = vpop.xlane.xlu0 %1404  ;;  %v19752_v4 = vpop.xlane.xlu1 %1857 }
 0x2b3   :  { %v1450_v45 = vmul.f32 %v19108_v5, %v1405_v43  ;;  %v1451_v58 = vmul.f32 %v19111_v7, %v1405_v43 }
 0x2b5   :  { %v1482_v47 = vadd.f32 %v1450_v45, %v1330_v18  ;;  %v1483_v62 = vadd.f32 %v1451_v58, %v1331_v42 }
 0x2b6   :  { %v1557_v57 = vpop.xlane.xlu0 %1556  ;;  %v651_v28 = vpop.xlane.xlu1 %650 }
 0x2b7   :  { %v1602_v49 = vmul.f32 %v19116_v22, %v1557_v57  ;;  %v1603_v16 = vmul.f32 %v19119_v24, %v1557_v57  ;;  %v688_v57 = vmul.f32 %v19035_v9, %v19692_v39 }
 0x2b9   :  { %v1634_v48 = vadd.f32 %v1602_v49, %v1482_v47  ;;  %v1635_v12 = vadd.f32 %v1603_v16, %v1483_v62  ;;  %v689_v49 = vmul.f32 %v19039_v10, %v19692_v39  ;;  %v694_v39 = vmul.f32 %v19035_v9, %v651_v28 }
 0x2ba   :  { %v1709_v14 = vpop.xlane.xlu0 %1708  ;;  %v19758_v30 = vpop.xlane.xlu1 %1714 }
 0x2bb   :  { %v1754_v1 = vmul.f32 %v19134_v37, %v1709_v14  ;;  %v1755_v41 = vmul.f32 %v19137_v38, %v1709_v14  ;;  %v993_v14 = vmul.f32 %v19059_v19, %v19702_v20 }
 0x2bd   :  { %v1786_v54 = vadd.f32 %v1754_v1, %v1634_v48  ;;  %v1787_v60 = vadd.f32 %v1755_v41, %v1635_v12  ;;  %v992_v12 = vmul.f32 %v19055_v23, %v19702_v20 }
 0x2be   :  { %v1861_v27 = vpop.xlane.xlu0 %1860  ;;  %v19762_v18 = vpop.xlane.xlu1 %1866 }
 0x2bf   :  { %v1906_v42 = vmul.f32 %v19675_v61, %v1861_v27  ;;  %v1907_v43 = vmul.f32 %v19681_v32, %v1861_v27  ;;  %v695_v27 = vmul.f32 %v19039_v10, %v651_v28  ;;  %v1448_v28 = vmul.f32 %v19108_v5, %v19732_v33 }
 0x2c1   :  { %v19766_v45 = vadd.f32 %v1906_v42, %v1786_v54  ;;  %v19768_v58 = vadd.f32 %v1907_v43, %v1787_v60  ;;  %v1144_v54 = vmul.f32 %v19074_v63, %v19706_v35  ;;  %v1145_v60 = vmul.f32 %v19079_v40, %v19706_v35 }
 0x2c2   :  { %v794_v47 = vpop.xlane.xlu0 %793  ;;  %v19770_v62 = vpop.xlane.xlu1 %799 }
 0x2c3   :  { %24917 = vst [vmem:[#allocation25_spill] sm:$0xff] %v19766_v45  ;;  %24918 = vst [vmem:[#allocation26_spill] sm:$0xff] %v19768_v58  ;;  %v840_v16 = vmul.f32 %v19023_v6, %v794_v47  ;;  %v841_v48 = vmul.f32 %v19031_v8, %v794_v47 }
 0x2c5   :  { %v872_v1 = vadd.f32 %v840_v16, %v688_v57  ;;  %v873_v41 = vadd.f32 %v841_v48, %v689_v49  ;;  %v1296_v57 = vmul.f32 %v19096_v56, %v19720_v51  ;;  %v1297_v49 = vmul.f32 %v19099_v44, %v19720_v51 }
 0x2c6   :  { %v803_v42 = vpop.xlane.xlu0 %802  ;;  %v19788_v43 = vpop.xlane.xlu1 %951 }
 0x2c7   :  { %v1024_v47 = vadd.f32 %v992_v12, %v872_v1  ;;  %v1025_v26 = vadd.f32 %v993_v14, %v873_v41  ;;  %v846_v25 = vmul.f32 %v19023_v6, %v803_v42  ;;  %v847_v20 = vmul.f32 %v19031_v8, %v803_v42 }
 0x2c8   :  { %v1449_v12 = vmul.f32 %v19111_v7, %v19732_v33  ;;  %v1752_v33 = vmul.f32 %v19134_v37, %v19748_v52 }
 0x2c9   :  { %v1176_v35 = vadd.f32 %v1144_v54, %v1024_v47  ;;  %v1177_v16 = vadd.f32 %v1145_v60, %v1025_v26  ;;  %v878_v48 = vadd.f32 %v846_v25, %v694_v39  ;;  %v879_v58 = vadd.f32 %v847_v20, %v695_v27 }
 0x2ca   :  { %v955_v14 = vpop.xlane.xlu0 %954  ;;  %v19800_v1 = vpop.xlane.xlu1 %1103  ;;  %v1600_v26 = vmul.f32 %v19116_v22, %v19740_v17  ;;  %v1601_v25 = vmul.f32 %v19119_v24, %v19740_v17  ;;  %v1753_v27 = vmul.f32 %v19137_v38, %v19748_v52 }
 0x2cb   :  { %v1328_v41 = vadd.f32 %v1296_v57, %v1176_v35  ;;  %v1329_v42 = vadd.f32 %v1297_v49, %v1177_v16  ;;  %v998_v45 = vmul.f32 %v19055_v23, %v955_v14  ;;  %v999_v36 = vmul.f32 %v19059_v19, %v955_v14 }
 0x2cd   :  { %v1480_v51 = vadd.f32 %v1448_v28, %v1328_v41  ;;  %v1481_v54 = vadd.f32 %v1449_v12, %v1329_v42  ;;  %v1030_v60 = vadd.f32 %v998_v45, %v878_v48  ;;  %v1031_v39 = vadd.f32 %v999_v36, %v879_v58 }
 0x2ce   :  { %v1107_v47 = vpop.xlane.xlu0 %1106  ;;  %v1256_v20 = vpop.xlane.xlu1 %1255  ;;  %v1904_v36 = vmul.f32 %v19675_v61, %v19752_v4  ;;  %v1905_v45 = vmul.f32 %v19681_v32, %v19752_v4 }
 0x2cf   :  { %v1632_v57 = vadd.f32 %v1600_v26, %v1480_v51  ;;  %v1633_v49 = vadd.f32 %v1601_v25, %v1481_v54  ;;  %v1150_v35 = vmul.f32 %v19074_v63, %v1107_v47  ;;  %v1151_v16 = vmul.f32 %v19079_v40, %v1107_v47 }
 0x2d1   :  { %v1784_v14 = vadd.f32 %v1752_v33, %v1632_v57  ;;  %v1785_v17 = vadd.f32 %v1753_v27, %v1633_v49  ;;  %v1182_v28 = vadd.f32 %v1150_v35, %v1030_v60  ;;  %v1183_v12 = vadd.f32 %v1151_v16, %v1031_v39 }
 0x2d2   :  { %v1259_v58 = vpop.xlane.xlu0 %1258  ;;  %v1408_v52 = vpop.xlane.xlu1 %1407  ;;  %v1758_v16 = vmul.f32 %v19134_v37, %v19758_v30 }
 0x2d3   :  { %v1302_v48 = vmul.f32 %v19096_v56, %v1259_v58  ;;  %v1303_v41 = vmul.f32 %v19099_v44, %v1259_v58  ;;  %v19820_v42 = vadd.f32 %v1904_v36, %v1784_v14  ;;  %v19822_v26 = vadd.f32 %v1905_v45, %v1785_v17 }
 0x2d4   :  { %v1759_v14 = vmul.f32 %v19137_v38, %v19758_v30  ;;  %v1911_v36 = vmul.f32 %v19681_v32, %v19762_v18  ;;  %v844_v45 = vmul.f32 %v19023_v6, %v19770_v62  ;;  %v845_v58 = vmul.f32 %v19031_v8, %v19770_v62 }
 0x2d5   :  { %v1334_v25 = vadd.f32 %v1302_v48, %v1182_v28  ;;  %v1335_v51 = vadd.f32 %v1303_v41, %v1183_v12  ;;  %v1910_v12 = vmul.f32 %v19675_v61, %v19762_v18  ;;  %v997_v18 = vmul.f32 %v19059_v19, %v19788_v43 }
 0x2d6   :  { %v1411_v54 = vpop.xlane.xlu0 %1410  ;;  %v1560_v60 = vpop.xlane.xlu1 %1559 }
 0x2d7   :  { %v1454_v39 = vmul.f32 %v19108_v5, %v1411_v54  ;;  %v1455_v33 = vmul.f32 %v19111_v7, %v1411_v54 }
 0x2d9   :  { %v1486_v27 = vadd.f32 %v1454_v39, %v1334_v25  ;;  %v1487_v4 = vadd.f32 %v1455_v33, %v1335_v51  ;;  %v996_v39 = vmul.f32 %v19055_v23, %v19788_v43  ;;  %v1300_v43 = vmul.f32 %v19096_v56, %v1256_v20 }
 0x2da   :  { %v1563_v47 = vpop.xlane.xlu0 %1562  ;;  %v1712_v57 = vpop.xlane.xlu1 %1711 }
 0x2db   :  { %v1606_v49 = vmul.f32 %v19116_v22, %v1563_v47  ;;  %v1607_v35 = vmul.f32 %v19119_v24, %v1563_v47 }
 0x2dd   :  { %v1638_v17 = vadd.f32 %v1606_v49, %v1486_v27  ;;  %v1639_v28 = vadd.f32 %v1607_v35, %v1487_v4  ;;  %v1148_v35 = vmul.f32 %v19074_v63, %v19800_v1 }
 0x2de   :  { %v648_v48 = vpop.xlane.xlu0 %647  ;;  %v19840_v41 = vpop.xlane.xlu1 %656 }
 0x2df   :  { %v1790_v25 = vadd.f32 %v1758_v16, %v1638_v17  ;;  %v1791_v51 = vadd.f32 %v1759_v14, %v1639_v28  ;;  %v692_v30 = vmul.f32 %v19035_v9, %v648_v48  ;;  %v693_v54 = vmul.f32 %v19039_v10, %v648_v48 }
 0x2e0   :  { %v1149_v16 = vmul.f32 %v19079_v40, %v19800_v1  ;;  %v1301_v28 = vmul.f32 %v19099_v44, %v1256_v20  ;;  %v1453_v48 = vmul.f32 %v19111_v7, %v1408_v52  ;;  %v1605_v1 = vmul.f32 %v19119_v24, %v1560_v60 }
 0x2e1   :  { %v19848_v33 = vadd.f32 %v1910_v12, %v1790_v25  ;;  %v19850_v27 = vadd.f32 %v1911_v36, %v1791_v51  ;;  %v876_v62 = vadd.f32 %v844_v45, %v692_v30  ;;  %v877_v4 = vadd.f32 %v845_v58, %v693_v54 }
 0x2e2   :  { %v19852_v47 = vpop.xlane.xlu0 %1863  ;;  %v19854_v49 = vpop.xlane.xlu1 %1416  ;;  %v1452_v58 = vmul.f32 %v19108_v5, %v1408_v52  ;;  %v1604_v54 = vmul.f32 %v19116_v22, %v1560_v60  ;;  %v1756_v20 = vmul.f32 %v19134_v37, %v1712_v57  ;;  %v1953_v60 = vadd.f32 %v19182_v29, %v19266_v3 }
 0x2e3   :  { %v1028_v14 = vadd.f32 %v996_v39, %v876_v62  ;;  %v1029_v17 = vadd.f32 %v997_v18, %v877_v4  ;;  %v1757_v4 = vmul.f32 %v19137_v38, %v1712_v57 }
 0x2e5   :  { %v1180_v12 = vadd.f32 %v1148_v35, %v1028_v14  ;;  %v1181_v36 = vadd.f32 %v1149_v16, %v1029_v17 }
 0x2e6   :  { %v809_v45 = vpop.xlane.xlu0 %808  ;;  %v19864_v30 = vpop.xlane.xlu1 %1568 }
 0x2e7   :  { %v1332_v25 = vadd.f32 %v1300_v43, %v1180_v12  ;;  %v1333_v51 = vadd.f32 %v1301_v28, %v1181_v36 }
 0x2e9   :  { %v1484_v39 = vadd.f32 %v1452_v58, %v1332_v25  ;;  %v1485_v18 = vadd.f32 %v1453_v48, %v1333_v51  ;;  %v1974_v58 = vadd.f32 %v19184_v59, %v19268_v11  ;;  %v1954_v48 = vadd.f32 %v1953_v60, %v19411_v50 }
 0x2ea   :  { %v961_v62 = vpop.xlane.xlu0 %960  ;;  %v806_v14 = vpop.xlane.xlu1 %805  ;;  %v851_v60 = vmul.f32 %v19031_v8, %v809_v45 }
 0x2eb   :  { %v1636_v35 = vadd.f32 %v1604_v54, %v1484_v39  ;;  %v1637_v16 = vadd.f32 %v1605_v1, %v1485_v18  ;;  %v1975_v57 = vadd.f32 %v1974_v58, %v19413_v31  ;;  %v1955_v54 = vadd.f32 %v1954_v48, %v19329_v13 }
 0x2ed   :  { %v19870_v17 = vadd.f32 %v1756_v20, %v1636_v35  ;;  %v19872_v52 = vadd.f32 %v1757_v4, %v1637_v16  ;;  %v1976_v1 = vadd.f32 %v1975_v57, %v19331_v15  ;;  %v1956_v20 = vadd.f32 %v1955_v54, %v19600_v55 }
 0x2ee   :  { %v1113_v43 = vpop.xlane.xlu0 %1112  ;;  %v958_v28 = vpop.xlane.xlu1 %957  ;;  %v850_v16 = vmul.f32 %v19023_v6, %v809_v45  ;;  %v698_v54 = vmul.f32 %v19035_v9, %v19840_v41  ;;  %v1003_v45 = vmul.f32 %v19059_v19, %v961_v62 }
 0x2ef   :  { %v1977_v4 = vadd.f32 %v1976_v1, %v19602_v21  ;;  %v1957_v31 = vadd.f32 %v1956_v20, %v19504_v2  ;;  %v699_v1 = vmul.f32 %v19039_v10, %v19840_v41  ;;  %v1002_v21 = vmul.f32 %v19055_v23, %v961_v62 }
 0x2f0   :  { %v1154_v50 = vmul.f32 %v19074_v63, %v1113_v43  ;;  %v1155_v41 = vmul.f32 %v19079_v40, %v1113_v43 }
 0x2f1   :  { %v1978_v48 = vadd.f32 %v1977_v4, %v19506_v53  ;;  %v1958_v55 = vadd.f32 %v1957_v31, %v19742_v0  ;;  %v848_v4 = vmul.f32 %v19023_v6, %v806_v14  ;;  %v849_v53 = vmul.f32 %v19031_v8, %v806_v14  ;;  %v24920_v14 = vld [vmem:[#allocation22_spill] sm:$0xff] }
 0x2f2   :  { %v1265_v12 = vpop.xlane.xlu0 %1264  ;;  %v1110_v36 = vpop.xlane.xlu1 %1109  ;;  %v883_v13 = vadd.f32 %v851_v60, %v699_v1  ;;  %v1001_v60 = vmul.f32 %v19059_v19, %v958_v28 }
 0x2f3   :  { %v1979_v20 = vadd.f32 %v1978_v48, %v19744_v46  ;;  %v1306_v31 = vmul.f32 %v19096_v56, %v1265_v12  ;;  %v1307_v48 = vmul.f32 %v19099_v44, %v1265_v12  ;;  %v1959_v46 = vadd.f32 %v1958_v55, %v19686_v34 }
 0x2f4   :  { %v1035_v3 = vadd.f32 %v1003_v45, %v883_v13  ;;  %v1908_v55 = vmul.f32 %v19675_v61, %v19852_v47  ;;  %v1909_v12 = vmul.f32 %v19681_v32, %v19852_v47 }
 0x2f5   :  { %v1980_v0 = vadd.f32 %v1979_v20, %v24920_v14 }
 0x2f6   :  { %v19880_v25 = vpop.xlane.xlu0 %1720  ;;  %v19882_v51 = vpop.xlane.xlu1 %1261  ;;  %v1187_v43 = vadd.f32 %v1155_v41, %v1035_v3  ;;  %v1153_v3 = vmul.f32 %v19079_v40, %v1110_v36  ;;  %v19931_v20 = vadd.f32 %v1908_v55, %v19870_v17 }
 0x2f7   :  { %v1981_v13 = vadd.f32 %v1980_v0, %v19822_v26  ;;  %v19934_v0 = vadd.f32 %v1909_v12, %v19872_v52  ;;  %v1304_v52 = vmul.f32 %v19096_v56, %v19882_v51 }
 0x2f8   :  { %v1339_v45 = vadd.f32 %v1307_v48, %v1187_v43  ;;  %v1305_v48 = vmul.f32 %v19099_v44, %v19882_v51  ;;  %v1611_v43 = vmul.f32 %v19119_v24, %v19864_v30 }
 0x2fa   :  { %v654_v39 = vpop.xlane.xlu0 %653  ;;  %v19886_v18 = vpop.xlane.xlu1 %1413 }
 0x2fb   :  { %v696_v57 = vmul.f32 %v19035_v9, %v654_v39  ;;  %v697_v15 = vmul.f32 %v19039_v10, %v654_v39  ;;  %v882_v39 = vadd.f32 %v850_v16, %v698_v54  ;;  %v1000_v16 = vmul.f32 %v19055_v23, %v958_v28 }
 0x2fc   :  { %v1152_v28 = vmul.f32 %v19074_v63, %v1110_v36  ;;  %v24922_v36 = vld [vmem:[#allocation26_spill] sm:$0xff] }
 0x2fd   :  { %v880_v29 = vadd.f32 %v848_v4, %v696_v57  ;;  %v881_v11 = vadd.f32 %v849_v53, %v697_v15  ;;  %v1034_v62 = vadd.f32 %v1002_v21, %v882_v39  ;;  %v1960_v15 = vadd.f32 %v1959_v46, %v19820_v42  ;;  %v24921_v39 = vld [vmem:[#allocation25_spill] sm:$0xff] }
 0x2fe   :  { %v19890_v35 = vpop.xlane.xlu0 %1565  ;;  %v19894_v58 = vpop.xlane.xlu1 %1869 }
 0x2ff   :  { %24919 = vst [vmem:[#allocation27_spill] sm:$0xff] %v19894_v58  ;;  %v1186_v1 = vadd.f32 %v1154_v50, %v1034_v62  ;;  %v1032_v53 = vadd.f32 %v1000_v16, %v880_v29  ;;  %v1033_v21 = vadd.f32 %v1001_v60, %v881_v11  ;;  %v1458_v29 = vmul.f32 %v19108_v5, %v19854_v49 }
 0x300   :  { %v1459_v11 = vmul.f32 %v19111_v7, %v19854_v49  ;;  %v1961_v41 = vadd.f32 %v1960_v15, %v24921_v39  ;;  %v1982_v62 = vadd.f32 %v1981_v13, %v24922_v36 }
 0x301   :  { %v1338_v57 = vadd.f32 %v1306_v31, %v1186_v1  ;;  %v1184_v47 = vadd.f32 %v1152_v28, %v1032_v53  ;;  %v1185_v4 = vadd.f32 %v1153_v3, %v1033_v21  ;;  %v1610_v1 = vmul.f32 %v19116_v22, %v19864_v30 }
 0x302   :  { %v19910_v2 = vpop.xlane.xlu0 %1717  ;;  %v663_v59 = vpop.xlane.xlu1 %662  ;;  %v1491_v17 = vadd.f32 %v1459_v11, %v1339_v45  ;;  %v1962_v49 = vadd.f32 %v1961_v41, %v19931_v20  ;;  %v1983_v60 = vadd.f32 %v1982_v62, %v19934_v0  ;;  %v1457_v45 = vmul.f32 %v19111_v7, %v19886_v18 }
 0x303   :  { %v1490_v31 = vadd.f32 %v1458_v29, %v1338_v57  ;;  %v1336_v13 = vadd.f32 %v1304_v52, %v1184_v47  ;;  %v1337_v53 = vadd.f32 %v1305_v48, %v1185_v4  ;;  %v1456_v57 = vmul.f32 %v19108_v5, %v19886_v18 }
 0x304   :  { %v1643_v12 = vadd.f32 %v1611_v43, %v1491_v17  ;;  %v702_v28 = vmul.f32 %v19035_v9, %v663_v59  ;;  %v703_v3 = vmul.f32 %v19039_v10, %v663_v59  ;;  %v1763_v47 = vmul.f32 %v19137_v38, %v19880_v25 }
 0x305   :  { %v1642_v51 = vadd.f32 %v1610_v1, %v1490_v31  ;;  %v1488_v41 = vadd.f32 %v1456_v57, %v1336_v13  ;;  %v1489_v62 = vadd.f32 %v1457_v45, %v1337_v53  ;;  %v19973_v17 = vadd.f32 %v1962_v49, %v19848_v33 }
 0x306   :  { %v815_v54 = vpop.xlane.xlu0 %814  ;;  %v19920_v58 = vpop.xlane.xlu1 %1118  ;;  %v19976_v59 = vadd.f32 %v1983_v60, %v19850_v27  ;;  %v19980_v52 = vadd.f32 %v1763_v47, %v1643_v12  ;;  %v1608_v48 = vmul.f32 %v19116_v22, %v19890_v35 }
 0x307   :  { %v854_v21 = vmul.f32 %v19023_v6, %v815_v54  ;;  %v855_v55 = vmul.f32 %v19031_v8, %v815_v54  ;;  %v1762_v54 = vmul.f32 %v19134_v37, %v19880_v25  ;;  %v1609_v25 = vmul.f32 %v19119_v24, %v19890_v35 }
 0x308   :  { %v1158_v57 = vmul.f32 %v19074_v63, %v19920_v58  ;;  %v1159_v35 = vmul.f32 %v19079_v40, %v19920_v58 }
 0x309   :  { %v886_v18 = vadd.f32 %v854_v21, %v702_v28  ;;  %v887_v31 = vadd.f32 %v855_v55, %v703_v3  ;;  %v1641_v12 = vadd.f32 %v1609_v25, %v1489_v62  ;;  %v24923_v25 = vld [vmem:[#allocation27_spill] sm:$0xff] }
 0x30a   :  { %v967_v50 = vpop.xlane.xlu0 %966 }
 0x30b   :  { %v19940_v46 = vpop.xlane.xlu1 %1270  ;;  %v1006_v30 = vmul.f32 %v19055_v23, %v967_v50  ;;  %v1007_v29 = vmul.f32 %v19059_v19, %v967_v50  ;;  %v19978_v50 = vadd.f32 %v1762_v54, %v1642_v51  ;;  %v1640_v51 = vadd.f32 %v1608_v48, %v1488_v41 }
 0x30c   :  { %v1311_v62 = vmul.f32 %v19099_v44, %v19940_v46 }
 0x30d   :  { %v1038_v1 = vadd.f32 %v1006_v30, %v886_v18  ;;  %v1039_v43 = vadd.f32 %v1007_v29, %v887_v31 }
 0x30e   :  { %v19948_v16 = vpop.xlane.xlu0 %1422 }
 0x30f   :  { %v812_v15 = vpop.xlane.xlu1 %811 }
 0x310   :  { %v852_v53 = vmul.f32 %v19023_v6, %v812_v15  ;;  %v853_v49 = vmul.f32 %v19031_v8, %v812_v15  ;;  %v1760_v8 = vmul.f32 %v19134_v37, %v19910_v2  ;;  %v1191_v15 = vadd.f32 %v1159_v35, %v1039_v43 }
 0x312   :  { %v19966_v11 = vpop.xlane.xlu0 %1574  ;;  %v1792_v41 = vadd.f32 %v1760_v8, %v1640_v51  ;;  %v1343_v43 = vadd.f32 %v1311_v62, %v1191_v15  ;;  %v1463_v51 = vmul.f32 %v19111_v7, %v19948_v16 }
 0x313   :  { %v964_v4 = vpop.xlane.xlu1 %963  ;;  %v1615_v8 = vmul.f32 %v19119_v24, %v19966_v11 }
 0x314   :  { %v1004_v45 = vmul.f32 %v19055_v23, %v964_v4  ;;  %v1005_v28 = vmul.f32 %v19059_v19, %v964_v4  ;;  %v1310_v4 = vmul.f32 %v19096_v56, %v19940_v46 }
 0x316   :  { %v660_v13 = vpop.xlane.xlu0 %659 }
 0x317   :  { %v700_v60 = vmul.f32 %v19035_v9, %v660_v13  ;;  %v701_v21 = vmul.f32 %v19039_v10, %v660_v13  ;;  %v1116_v55 = vpop.xlane.xlu1 %1115  ;;  %v1761_v9 = vmul.f32 %v19137_v38, %v19910_v2  ;;  %v1190_v10 = vadd.f32 %v1158_v57, %v1038_v1 }
 0x318   :  { %v1156_v47 = vmul.f32 %v19074_v63, %v1116_v55  ;;  %v1157_v58 = vmul.f32 %v19079_v40, %v1116_v55  ;;  %v1912_v63 = vmul.f32 %v19675_v61, %v24923_v25  ;;  %v1913_v40 = vmul.f32 %v19681_v32, %v24923_v25 }
 0x319   :  { %v884_v6 = vadd.f32 %v852_v53, %v700_v60  ;;  %v885_v3 = vadd.f32 %v853_v49, %v701_v21  ;;  %v1793_v19 = vadd.f32 %v1761_v9, %v1641_v12  ;;  %v1342_v1 = vadd.f32 %v1310_v4, %v1190_v10 }
 0x31a   :  { %v1268_v30 = vpop.xlane.xlu0 %1267  ;;  %v20014_v55 = vadd.f32 %v1912_v63, %v1792_v41 }
 0x31b   :  { %v1036_v29 = vadd.f32 %v1004_v45, %v884_v6  ;;  %v1037_v54 = vadd.f32 %v1005_v28, %v885_v3  ;;  %v1727_v23 = vpop.xlane.xlu1 %1726  ;;  %v1308_v31 = vmul.f32 %v19096_v56, %v1268_v30  ;;  %v1309_v48 = vmul.f32 %v19099_v44, %v1268_v30 }
 0x31c   :  { %v20016_v56 = vadd.f32 %v1913_v40, %v1793_v19  ;;  %v1462_v44 = vmul.f32 %v19108_v5, %v19948_v16  ;;  %v1495_v6 = vadd.f32 %v1463_v51, %v1343_v43  ;;  %v1614_v3 = vmul.f32 %v19116_v22, %v19966_v11 }
 0x31d   :  { %v1188_v18 = vadd.f32 %v1156_v47, %v1036_v29  ;;  %v1189_v2 = vadd.f32 %v1157_v58, %v1037_v54  ;;  %v1766_v30 = vmul.f32 %v19134_v37, %v1727_v23  ;;  %v1767_v29 = vmul.f32 %v19137_v38, %v1727_v23 }
 0x31e   :  { %v1420_v13 = vpop.xlane.xlu0 %1419  ;;  %v1494_v28 = vadd.f32 %v1462_v44, %v1342_v1  ;;  %v1647_v58 = vadd.f32 %v1615_v8, %v1495_v6  ;;  %v1964_v41 = vadd.f32 %v19973_v17, %v20014_v55  ;;  %v1985_v19 = vadd.f32 %v19976_v59, %v20016_v56 }
 0x31f   :  { %v1340_v53 = vadd.f32 %v1308_v31, %v1188_v18  ;;  %v1341_v49 = vadd.f32 %v1309_v48, %v1189_v2  ;;  %v1460_v60 = vmul.f32 %v19108_v5, %v1420_v13  ;;  %v1461_v46 = vmul.f32 %v19111_v7, %v1420_v13  ;;  %v1572_v21 = vpop.xlane.xlu1 %1571 }
 0x320   :  { %v1612_v35 = vmul.f32 %v19116_v22, %v1572_v21  ;;  %v1613_v45 = vmul.f32 %v19119_v24, %v1572_v21  ;;  %v1646_v11 = vadd.f32 %v1614_v3, %v1494_v28  ;;  %v1799_v2 = vadd.f32 %v1767_v29, %v1647_v58  ;;  %v24924_v3 = vld [vmem:[#allocation12_spill] sm:$0xff] }
 0x321   :  { %v1492_v12 = vadd.f32 %v1460_v60, %v1340_v53  ;;  %v1493_v57 = vadd.f32 %v1461_v46, %v1341_v49 }
 0x322   :  { %v1873_v9 = vpop.xlane.xlu0 %1872  ;;  %v1798_v18 = vadd.f32 %v1766_v30, %v1646_v11  ;;  %v24928_v30 = vld [vmem:[#allocation16_spill] sm:$0xff] }
 0x323   :  { %v1644_v10 = vadd.f32 %v1612_v35, %v1492_v12  ;;  %v1645_v5 = vadd.f32 %v1613_v45, %v1493_v57  ;;  %v1914_v15 = vmul.f32 %v19675_v61, %v1873_v9  ;;  %v1915_v7 = vmul.f32 %v19681_v32, %v1873_v9  ;;  %v1724_v16 = vpop.xlane.xlu1 %1723  ;;  %v24925_v9 = vld [vmem:[#allocation13_spill] sm:$0xff] }
 0x324   :  { %v1764_v54 = vmul.f32 %v19134_v37, %v1724_v16  ;;  %v1765_v47 = vmul.f32 %v19137_v38, %v1724_v16 }
 0x325   :  { %v20035_v22 = vadd.f32 %v1914_v15, %v19978_v50  ;;  %v20038_v24 = vadd.f32 %v1915_v7, %v19980_v52  ;;  %v24927_v7 = vld [vmem:[#allocation11_spill] sm:$0xff] }
 0x326   :  { %v1876_v4 = vpop.xlane.xlu0 %1875  ;;  %v1796_v23 = vadd.f32 %v1764_v54, %v1644_v10  ;;  %v1797_v62 = vadd.f32 %v1765_v47, %v1645_v5  ;;  %v24926_v5 = vld [vmem:[#allocation10_spill] sm:$0xff]  ;;  %v24929_v54 = vld [vmem:[#allocation17_spill] sm:$0xff] }
 0x327   :  { %v1916_v37 = vmul.f32 %v19675_v61, %v1876_v4  ;;  %v1917_v38 = vmul.f32 %v19681_v32, %v1876_v4  ;;  %v1879_v50 = vpop.xlane.xlu1 %1878  ;;  %v1965_v48 = vadd.f32 %v1964_v41, %v20035_v22  ;;  %v1986_v17 = vadd.f32 %v1985_v19, %v20038_v24  ;;  %v24930_v4 = vld [vmem:[#allocation14_spill] sm:$0xff] }
 0x328   :  { %v1918_v52 = vmul.f32 %v19675_v61, %v1879_v50  ;;  %v1919_v31 = vmul.f32 %v19681_v32, %v1879_v50 }
 0x329   :  { %v20050_v25 = vadd.f32 %v1916_v37, %v1796_v23  ;;  %v20052_v59 = vadd.f32 %v1917_v38, %v1797_v62  ;;  %v24931_v62 = vld [vmem:[#allocation15_spill] sm:$0xff]  ;;  %v24932_v38 = vld [vmem:[#allocation20_spill] sm:$0xff] }
 0x32a   :  { %v20056_v1 = vadd.f32 %v1918_v52, %v1798_v18  ;;  %v20058_v43 = vadd.f32 %v1919_v31, %v1799_v2  ;;  %v24933_v18 = vld [vmem:[#allocation21_spill] sm:$0xff] }
 0x32b   :  { %v1966_v63 = vadd.f32 %v1965_v48, %v20050_v25  ;;  %v1987_v40 = vadd.f32 %v1986_v17, %v20052_v59 }
 0x32d   :  { %v1967_v61 = vadd.f32 %v1966_v63, %v20056_v1  ;;  %v1988_v32 = vadd.f32 %v1987_v40, %v20058_v43  ;;  %v24934_v63 = vld [vmem:[#allocation18_spill] sm:$0xff] }
 0x32f   :  { %v1968_v13 = vrot.slane %v1967_v61, 4  ;;  %v1989_v53 = vrot.slane %v1988_v32, 4 }
 0x331   :  { %v1969_v49 = vadd.f32 %v1968_v13, %v1967_v61  ;;  %v1990_v60 = vadd.f32 %v1989_v53, %v1988_v32  ;;  %v24935_v61 = vld [vmem:[#allocation19_spill] sm:$0xff]  ;;  %v24894_v13 = vmov 0.0  }
 0x332   :  { %2415 = vmatprep.mubr.f32.mxu1 %v24894_v13  ;;  %2624 = vmatprep.mubr.f32.mxu0 %v24894_v13 }
 0x333   :  { %v1970_v46 = vrot.slane %v1969_v49, 2  ;;  %v1991_v21 = vrot.slane %v1990_v60, 2 }
 0x335   :  { %v1971_v44 = vadd.f32 %v1970_v46, %v1969_v49  ;;  %v1992_v51 = vadd.f32 %v1991_v21, %v1990_v60  ;;  %v24936_v21 = vld [vmem:[#allocation23_spill] sm:$0xff] }
 0x337   :  { %v1972_v12 = vrot.slane %v1971_v44, 1  ;;  %v1993_v57 = vrot.slane %v1992_v51, 1 }
 0x339   :  { %v1973_v35 = vadd.f32 %v1972_v12, %v1971_v44  ;;  %v1994_v45 = vadd.f32 %v1993_v57, %v1992_v51  ;;  %v24937_v51 = vld [vmem:[#allocation24_spill] sm:$0xff] }
 0x33b   :  { %v20062_v28 = vmul.f32 0.0078125, %v1973_v35  ;;  %v20064_v6 = vmul.f32 0.0078125, %v1994_v45 }
 0x33d   :  { %v1998_v8 = vsub.f32 %v24924_v3, %v20062_v28  ;;  %v1999_v10 = vsub.f32 %v24925_v9, %v20064_v6  ;;  %v2000_v15 = vsub.f32 %v24926_v5, %v20062_v28  ;;  %v2001_v16 = vsub.f32 %v24927_v7, %v20064_v6 }
 0x33e   :  { %v2002_v29 = vsub.f32 %v24928_v30, %v20062_v28  ;;  %v2003_v47 = vsub.f32 %v24929_v54, %v20064_v6  ;;  %v2004_v23 = vsub.f32 %v24930_v4, %v20062_v28  ;;  %v2005_v37 = vsub.f32 %v24931_v62, %v20064_v6 }
 0x33f   :  { %v2030_v11 = vmul.f32 %v1998_v8, %v1998_v8  ;;  %v2031_v58 = vmul.f32 %v1999_v10, %v1999_v10  ;;  %v2032_v41 = vmul.f32 %v2000_v15, %v2000_v15  ;;  %v2033_v19 = vmul.f32 %v2001_v16, %v2001_v16 }
 0x340   :  { %v2006_v50 = vsub.f32 %v24932_v38, %v20062_v28  ;;  %v2007_v2 = vsub.f32 %v24933_v18, %v20064_v6  ;;  %v2034_v52 = vmul.f32 %v2002_v29, %v2002_v29  ;;  %v2035_v31 = vmul.f32 %v2003_v47, %v2003_v47 }
 0x341   :  { %v2062_v48 = vadd.f32 %v2032_v41, %v2030_v11  ;;  %v2083_v17 = vadd.f32 %v2033_v19, %v2031_v58  ;;  %v2008_v40 = vsub.f32 %v24934_v63, %v20062_v28  ;;  %v2009_v32 = vsub.f32 %v24935_v61, %v20064_v6 }
 0x342   :  { %v2036_v53 = vmul.f32 %v2004_v23, %v2004_v23  ;;  %v2037_v49 = vmul.f32 %v2005_v37, %v2005_v37  ;;  %v2010_v44 = vsub.f32 %v24936_v21, %v20062_v28  ;;  %v2011_v12 = vsub.f32 %v24937_v51, %v20064_v6 }
 0x343   :  { %v2063_v60 = vadd.f32 %v2062_v48, %v2034_v52  ;;  %v2084_v46 = vadd.f32 %v2083_v17, %v2035_v31  ;;  %v2038_v57 = vmul.f32 %v2006_v50, %v2006_v50  ;;  %v2039_v35 = vmul.f32 %v2007_v2, %v2007_v2 }
 0x344   :  { %v2012_v10 = vsub.f32 %v19686_v34, %v20062_v28  ;;  %v2013_v15 = vsub.f32 %v24920_v14, %v20064_v6  ;;  %v2040_v16 = vmul.f32 %v2008_v40, %v2008_v40  ;;  %v2041_v29 = vmul.f32 %v2009_v32, %v2009_v32 }
 0x345   :  { %v2064_v45 = vadd.f32 %v2063_v60, %v2036_v53  ;;  %v2085_v8 = vadd.f32 %v2084_v46, %v2037_v49  ;;  %v2014_v58 = vsub.f32 %v19820_v42, %v20062_v28  ;;  %v2015_v41 = vsub.f32 %v19822_v26, %v20064_v6 }
 0x346   :  { %v2042_v19 = vmul.f32 %v2010_v44, %v2010_v44  ;;  %v2043_v23 = vmul.f32 %v2011_v12, %v2011_v12  ;;  %v2016_v2 = vsub.f32 %v24921_v39, %v20062_v28  ;;  %v2017_v52 = vsub.f32 %v24922_v36, %v20064_v6 }
 0x347   :  { %v2065_v47 = vadd.f32 %v2064_v45, %v2038_v57  ;;  %v2086_v11 = vadd.f32 %v2085_v8, %v2039_v35  ;;  %v2044_v31 = vmul.f32 %v2012_v10, %v2012_v10  ;;  %v2045_v48 = vmul.f32 %v2013_v15, %v2013_v15 }
 0x348   :  { %v2018_v32 = vsub.f32 %v19931_v20, %v20062_v28  ;;  %v2019_v53 = vsub.f32 %v19934_v0, %v20064_v6  ;;  %v2046_v49 = vmul.f32 %v2014_v58, %v2014_v58  ;;  %v2047_v60 = vmul.f32 %v2015_v41, %v2015_v41 }
 0x349   :  { %v2066_v37 = vadd.f32 %v2065_v47, %v2040_v16  ;;  %v2087_v50 = vadd.f32 %v2086_v11, %v2041_v29  ;;  %v2020_v12 = vsub.f32 %v19848_v33, %v20062_v28  ;;  %v2021_v57 = vsub.f32 %v19850_v27, %v20064_v6 }
 0x34a   :  { %v2048_v35 = vmul.f32 %v2016_v2, %v2016_v2  ;;  %v2049_v45 = vmul.f32 %v2017_v52, %v2017_v52  ;;  %v2022_v15 = vsub.f32 %v20014_v55, %v20062_v28  ;;  %v2023_v16 = vsub.f32 %v20016_v56, %v20064_v6 }
 0x34b   :  { %v2067_v17 = vadd.f32 %v2066_v37, %v2042_v19  ;;  %v2088_v40 = vadd.f32 %v2087_v50, %v2043_v23  ;;  %v2050_v29 = vmul.f32 %v2018_v32, %v2018_v32  ;;  %v2051_v47 = vmul.f32 %v2019_v53, %v2019_v53 }
 0x34c   :  { %v2024_v41 = vsub.f32 %v20035_v22, %v20062_v28  ;;  %v2025_v19 = vsub.f32 %v20038_v24, %v20064_v6  ;;  %v2052_v23 = vmul.f32 %v2020_v12, %v2020_v12  ;;  %v2053_v37 = vmul.f32 %v2021_v57, %v2021_v57 }
 0x34d   :  { %v2068_v46 = vadd.f32 %v2067_v17, %v2044_v31  ;;  %v2089_v44 = vadd.f32 %v2088_v40, %v2045_v48  ;;  %v2026_v52 = vsub.f32 %v20050_v25, %v20062_v28  ;;  %v2027_v31 = vsub.f32 %v20052_v59, %v20064_v6 }
 0x34e   :  { %v2054_v48 = vmul.f32 %v2022_v15, %v2022_v15  ;;  %v2055_v17 = vmul.f32 %v2023_v16, %v2023_v16  ;;  %v2028_v53 = vsub.f32 %v20056_v1, %v20062_v28 }
 0x34f   :  { %v2069_v8 = vadd.f32 %v2068_v46, %v2046_v49  ;;  %v2090_v10 = vadd.f32 %v2089_v44, %v2047_v60  ;;  %v2029_v49 = vsub.f32 %v20058_v43, %v20064_v6  ;;  %v2056_v60 = vmul.f32 %v2024_v41, %v2024_v41 }
 0x350   :  { %v2057_v46 = vmul.f32 %v2025_v19, %v2025_v19  ;;  %v2058_v57 = vmul.f32 %v2026_v52, %v2026_v52 }
 0x351   :  { %v2070_v11 = vadd.f32 %v2069_v8, %v2048_v35  ;;  %v2091_v58 = vadd.f32 %v2090_v10, %v2049_v45  ;;  %v2059_v35 = vmul.f32 %v2027_v31, %v2027_v31  ;;  %v2060_v10 = vmul.f32 %v2028_v53, %v2028_v53 }
 0x353   :  { %v2071_v50 = vadd.f32 %v2070_v11, %v2050_v29  ;;  %v2092_v2 = vadd.f32 %v2091_v58, %v2051_v47  ;;  %v2061_v29 = vmul.f32 %v2029_v49, %v2029_v49 }
 0x355   :  { %v2072_v40 = vadd.f32 %v2071_v50, %v2052_v23  ;;  %v2093_v32 = vadd.f32 %v2092_v2, %v2053_v37 }
 0x357   :  { %v2073_v44 = vadd.f32 %v2072_v40, %v2054_v48  ;;  %v2094_v12 = vadd.f32 %v2093_v32, %v2055_v17 }
 0x359   :  { %v2074_v45 = vadd.f32 %v2073_v44, %v2056_v60  ;;  %v2095_v8 = vadd.f32 %v2094_v12, %v2057_v46  ;;  %v18392_v60 = vmov 1983009808  }
 0x35a   :  { %v2114_v46 = vunpack.c.l.s4 %v18392_v60 }
 0x35b   :  { %v2075_v15 = vadd.f32 %v2074_v45, %v2058_v57  ;;  %v2096_v16 = vadd.f32 %v2095_v8, %v2059_v35  ;;  %v24938_v57 = vld [vmem:[#allocation5_spill] sm:$0xff] }
 0x35c   :  { %v2115_v44 = vunpack.c.0.s8 %v2114_v46 }
 0x35d   :  { %v2076_v47 = vadd.f32 %v2075_v15, %v2060_v10  ;;  %v2097_v11 = vadd.f32 %v2096_v16, %v2061_v29  ;;  %v24939_v15 = vld [vmem:[#allocation6_spill] sm:$0xff] }
 0x35e   :  { %v2118_v35 = vsub.s32 %v2115_v44, %v24938_v57 }
 0x35f   :  { %v2077_v58 = vrot.slane %v2076_v47, 4  ;;  %v2098_v23 = vrot.slane %v2097_v11, 4 }
 0x361   :  { %v2078_v37 = vadd.f32 %v2077_v58, %v2076_v47  ;;  %v2099_v50 = vadd.f32 %v2098_v23, %v2097_v11  ;;  %v24940_v47 = vld [vmem:[#allocation8_spill] sm:$0xff] }
 0x363   :  { %v2079_v2 = vrot.slane %v2078_v37, 2  ;;  %v2100_v13 = vrot.slane %v2099_v50, 2 }
 0x365   :  { %v2080_v41 = vadd.f32 %v2079_v2, %v2078_v37  ;;  %v2101_v19 = vadd.f32 %v2100_v13, %v2099_v50  ;;  %v1952_v13 = vld [vmem:[%s24851_s11] sm:$0xf] }
 0x367   :  { %v2081_v48 = vrot.slane %v2080_v41, 1  ;;  %v2102_v17 = vrot.slane %v2101_v19, 1 }
 0x369   :  { %v2082_v52 = vadd.f32 %v2081_v48, %v2080_v41  ;;  %v2103_v31 = vadd.f32 %v2102_v17, %v2101_v19 }
 0x36b   :  { %v2104_v40 = vmul.f32 0.0078125, %v2082_v52  ;;  %v2105_v32 = vmul.f32 0.0078125, %v2103_v31 }
 0x36d   :  { %v2106_v53 = vadd.f32 1e-05, %v2104_v40  ;;  %v2107_v49 = vadd.f32 1e-05, %v2105_v32  ;;  %v24941_v32 = vld [vmem:[#allocation7_spill] sm:$0xff] }
 0x36f   :  { %18000 = vrsqrt.f32 %v2106_v53 }
 0x370   :  { %18002 = vrsqrt.f32 %v2107_v49  ;;  %v24942_v49 = vld [vmem:[#allocation9_spill] sm:$0xff] }
 0x379   :  { %v18001_v12 = vpop.eup %18000 }
 0x37a   :  { %v18003_v45 = vpop.eup %18002 }
 0x37b   :  { %v2112_v8 = vcombine.low %v18001_v12, %v18003_v45 }
 0x37d   :  { %v2119_v10 = vrot.slane %v2112_v8, %v2118_v35 }
 0x37f   :  { %v2121_v29 = vmul.f32 %v2119_v10, %v1952_v13 }
 0x381   :  { %v2126_v16 = vrot.slane %v2121_v29, %v24939_v15  ;;  %v2130_v11 = vrot.slane %v2121_v29, %v24940_v47 }
 0x383   :  { %v2173_v58 = vmul.f32 %v2126_v16, %v20062_v28  ;;  %v2174_v23 = vmul.f32 %v2130_v11, %v20064_v6  ;;  %v2136_v50 = vrot.slane %v2126_v16, %v24939_v15  ;;  %v2140_v2 = vrot.slane %v2130_v11, %v24939_v15 }
 0x385   :  { %v2177_v37 = vcombine.low %v2173_v58, %v2174_v23  ;;  %v2169_v48 = vmul.f32 %v2136_v50, %v20050_v25  ;;  %v2170_v17 = vmul.f32 %v2140_v2, %v20052_v59  ;;  %v2171_v31 = vmul.f32 %v2136_v50, %v20056_v1 }
 0x386   :  { %v2172_v40 = vmul.f32 %v2140_v2, %v20058_v43  ;;  %v2142_v28 = vmul.f32 %v2140_v2, %v24925_v9  ;;  %v2144_v6 = vmul.f32 %v2140_v2, %v24927_v7  ;;  %v2141_v46 = vmul.f32 %v2136_v50, %v24924_v3 }
 0x387   :  { %v2184_v41 = vrot.slane %v2177_v37, %v2118_v35  ;;  %v2143_v44 = vmul.f32 %v2136_v50, %v24926_v5  ;;  %v2146_v25 = vmul.f32 %v2140_v2, %v24929_v54  ;;  %v2148_v59 = vmul.f32 %v2140_v2, %v24931_v62 }
 0x388   :  { %v2145_v1 = vmul.f32 %v2136_v50, %v24928_v30  ;;  %v2147_v43 = vmul.f32 %v2136_v50, %v24930_v4  ;;  %v2150_v12 = vmul.f32 %v2140_v2, %v24933_v18  ;;  %v2152_v3 = vmul.f32 %v2140_v2, %v24935_v61 }
 0x389   :  { %v2185_v19 = vrot.slane %v2184_v41, 7  ;;  %v20165_v5 = vmul.f32 %v2136_v50, %v24932_v38  ;;  %v20168_v54 = vmul.f32 %v2136_v50, %v24934_v63  ;;  %v20171_v30 = vmul.f32 %v2140_v2, %v24937_v51 }
 0x38a   :  { %v20174_v4 = vmul.f32 %v2140_v2, %v24920_v14  ;;  %v20177_v62 = vmul.f32 %v2136_v50, %v24936_v21  ;;  %v20180_v57 = vmul.f32 %v2136_v50, %v19686_v34  ;;  %v20183_v18 = vmul.f32 %v2140_v2, %v19822_v26 }
 0x38b   :  { %v2187_v52 = vsub.f32 %v1952_v13, %v2185_v19  ;;  %v20186_v38 = vmul.f32 %v2140_v2, %v24922_v36  ;;  %v20191_v51 = vmul.f32 %v2136_v50, %v19820_v42  ;;  %v20194_v14 = vmul.f32 %v2136_v50, %v24921_v39 }
 0x38c   :  { %v20198_v34 = vmul.f32 %v2140_v2, %v19934_v0  ;;  %v20201_v26 = vmul.f32 %v2140_v2, %v19850_v27  ;;  %v20204_v36 = vmul.f32 %v2136_v50, %v19931_v20  ;;  %v20208_v45 = vmul.f32 %v2136_v50, %v19848_v33 }
 0x38d   :  { %v2192_v53 = vrot.slane %v2187_v52, %v24941_v32  ;;  %v2196_v60 = vrot.slane %v2187_v52, %v24942_v49  ;;  %v20211_v42 = vmul.f32 %v2140_v2, %v20016_v56  ;;  %v20214_v39 = vmul.f32 %v2140_v2, %v20038_v24 }
 0x38e   :  { %v20221_v13 = vmul.f32 %v2136_v50, %v20014_v55  ;;  %v20224_v33 = vmul.f32 %v2136_v50, %v20035_v22 }
 0x38f   :  { %v20157_v9 = vrot.slane %v2192_v53, %v24941_v32  ;;  %v20160_v7 = vrot.slane %v2196_v60, %v24941_v32 }
 0x391   :  { %v2208_v63 = vadd.f32 %v20160_v7, %v2142_v28  ;;  %v2210_v61 = vadd.f32 %v20160_v7, %v2144_v6  ;;  %v2207_v21 = vadd.f32 %v20157_v9, %v2141_v46  ;;  %v2209_v35 = vadd.f32 %v20157_v9, %v2143_v44 }
 0x392   :  { %v2212_v27 = vadd.f32 %v20160_v7, %v2146_v25  ;;  %v20218_v8 = vadd.f32 %v20157_v9, %v2169_v48  ;;  %v20227_v56 = vadd.f32 %v20160_v7, %v2170_v17  ;;  %v20230_v24 = vadd.f32 %v20157_v9, %v2171_v31 }
 0x393   :  { %vm2240_vm4 = vcmp.gt.f32.partialorder %v2208_v63, 0.0  ;;  %vm2242_vm5 = vcmp.gt.f32.partialorder %v2210_v61, 0.0  ;;  %v2272_v0 = vmul.f32 0.2, %v2208_v63  ;;  %v2274_v20 = vmul.f32 0.2, %v2210_v61 }
 0x394   :  { %vm2239_vm6 = vcmp.gt.f32.partialorder %v2207_v21, 0.0  ;;  %v20233_v29 = vadd.f32 %v20160_v7, %v2172_v40  ;;  %vm2241_vm7 = vcmp.gt.f32.partialorder %v2209_v35, 0.0  ;;  %v2271_v47 = vmul.f32 0.2, %v2207_v21 }
 0x395   :  { %v2304_v10 = vsel %vm2240_vm4, %v2208_v63, %v2272_v0  ;;  %v2306_v16 = vsel %vm2242_vm5, %v2210_v61, %v2274_v20  ;;  %v2273_v55 = vmul.f32 0.2, %v2209_v35  ;;  %v2214_v22 = vadd.f32 %v20160_v7, %v2148_v59 }
 0x396   :  { %v20235_v11 = vpack.c.bf16 %v2306_v16, %v2304_v10  ;;  %vm2244_vm8 = vcmp.gt.f32.partialorder %v2212_v27, 0.0  ;;  %v2303_v58 = vsel %vm2239_vm6, %v2207_v21, %v2271_v47  ;;  %v2276_v23 = vmul.f32 0.2, %v2212_v27 }
 0x397   :  { %v2211_v37 = vadd.f32 %v20157_v9, %v2145_v1  ;;  %v2213_v50 = vadd.f32 %v20157_v9, %v2147_v43  ;;  %v2305_v2 = vsel %vm2241_vm7, %v2209_v35, %v2273_v55  ;;  %vm2246_vm9 = vcmp.gt.f32.partialorder %v2214_v22, 0.0 }
 0x398   :  { %16141 = vmatprep.subr.bf16.mxu1 %v20235_v11  ;;  %16173 = vmatprep.subr.bf16.mxu0 %v20235_v11  ;;  %v2278_v41 = vmul.f32 0.2, %v2214_v22  ;;  %v2216_v19 = vadd.f32 %v20160_v7, %v2150_v12  ;;  %v20243_v48 = vpack.c.bf16 %v2305_v2, %v2303_v58  ;;  %v2308_v17 = vsel %vm2244_vm8, %v2212_v27, %v2276_v23 }
 0x399   :  { %vm2243_vm10 = vcmp.gt.f32.partialorder %v2211_v37, 0.0  ;;  %vm2245_vm11 = vcmp.gt.f32.partialorder %v2213_v50, 0.0  ;;  %v2275_v31 = vmul.f32 0.2, %v2211_v37  ;;  %v2277_v40 = vmul.f32 0.2, %v2213_v50 }
 0x39a   :  { %v2310_v52 = vsel %vm2246_vm9, %v2214_v22, %v2278_v41  ;;  %v2218_v28 = vadd.f32 %v20160_v7, %v2152_v3  ;;  %16143 = vmatpush1.bf16.msra.mxu1 %v20243_v48  ;;  %16175 = vmatpush1.bf16.msra.mxu0 %v20243_v48  ;;  %vm2248_vm12 = vcmp.gt.f32.partialorder %v2216_v19, 0.0  ;;  %v2280_v53 = vmul.f32 0.2, %v2216_v19 }
 0x39b   :  { %v20248_v6 = vpack.c.bf16 %v2310_v52, %v2308_v17  ;;  %v2215_v49 = vadd.f32 %v20157_v9, %v20165_v5  ;;  %v2307_v60 = vsel %vm2243_vm10, %v2211_v37, %v2275_v31  ;;  %v2309_v46 = vsel %vm2245_vm11, %v2213_v50, %v2277_v40 }
 0x39c   :  { %vm2250_vm13 = vcmp.gt.f32.partialorder %v2218_v28, 0.0  ;;  %v2282_v44 = vmul.f32 0.2, %v2218_v28  ;;  %v20254_v25 = vpack.c.bf16 %v2309_v46, %v2307_v60  ;;  %v2312_v59 = vsel %vm2248_vm12, %v2216_v19, %v2280_v53 }
 0x39d   :  { %16145 = vmatprep.subr.bf16.mxu1 %v20248_v6  ;;  %16177 = vmatprep.subr.bf16.mxu0 %v20248_v6  ;;  %v2217_v1 = vadd.f32 %v20157_v9, %v20168_v54  ;;  %vm2247_vm14 = vcmp.gt.f32.partialorder %v2215_v49, 0.0  ;;  %v2279_v12 = vmul.f32 0.2, %v2215_v49  ;;  %v2220_v3 = vadd.f32 %v20160_v7, %v20171_v30 }
 0x39e   :  { %v2314_v43 = vsel %vm2250_vm13, %v2218_v28, %v2282_v44  ;;  %v2222_v5 = vadd.f32 %v20160_v7, %v20174_v4  ;;  %16147 = vmatpush1.bf16.msra.mxu1 %v20254_v25  ;;  %16179 = vmatpush1.bf16.msra.mxu0 %v20254_v25  ;;  %v2219_v54 = vadd.f32 %v20157_v9, %v20177_v62  ;;  %v20285_v50 = vmul.f32 0.2, %v20227_v56 }
 0x39f   :  { %v20264_v63 = vpack.c.bf16 %v2314_v43, %v2312_v59  ;;  %vm2249_vm15 = vcmp.gt.f32.partialorder %v2217_v1, 0.0  ;;  %v2281_v61 = vmul.f32 0.2, %v2217_v1  ;;  %v2311_v21 = vsel %vm2247_vm14, %v2215_v49, %v2279_v12 }
 0x3a0   :  { %vm2252_vm0 = vcmp.gt.f32.partialorder %v2220_v3, 0.0  ;;  %vm2254_vm1 = vcmp.gt.f32.partialorder %v2222_v5, 0.0  ;;  %v2284_v35 = vmul.f32 0.2, %v2220_v3  ;;  %v2286_v4 = vmul.f32 0.2, %v2222_v5 }
 0x3a1   :  { %16149 = vmatprep.subr.bf16.mxu1 %v20264_v63  ;;  %16181 = vmatprep.subr.bf16.mxu0 %v20264_v63  ;;  %v2313_v30 = vsel %vm2249_vm15, %v2217_v1, %v2281_v61  ;;  %v2221_v0 = vadd.f32 %v20157_v9, %v20180_v57  ;;  %vm2251_vm2 = vcmp.gt.f32.partialorder %v2219_v54, 0.0  ;;  %v2283_v10 = vmul.f32 0.2, %v2219_v54 }
 0x3a2   :  { %v20272_v27 = vpack.c.bf16 %v2313_v30, %v2311_v21  ;;  %v2316_v20 = vsel %vm2252_vm0, %v2220_v3, %v2284_v35  ;;  %v2224_v62 = vadd.f32 %v20160_v7, %v20183_v18  ;;  %v2318_v16 = vsel %vm2254_vm1, %v2222_v5, %v2286_v4 }
 0x3a3   :  { %vm2253_vm4 = vcmp.gt.f32.partialorder %v2221_v0, 0.0  ;;  %v2285_v47 = vmul.f32 0.2, %v2221_v0  ;;  %v2226_v55 = vadd.f32 %v20160_v7, %v20186_v38  ;;  %v20280_v22 = vpack.c.bf16 %v2318_v16, %v2316_v20  ;;  %v2737_v16 = vld [vmem:[%s24847_s7 + $0x180] sm:$0xff] }
 0x3a4   :  { %16151 = vmatpush1.bf16.msra.mxu1 %v20272_v27  ;;  %16183 = vmatpush1.bf16.msra.mxu0 %v20272_v27  ;;  %v2315_v57 = vsel %vm2251_vm2, %v2219_v54, %v2283_v10  ;;  %vm2256_vm5 = vcmp.gt.f32.partialorder %v2224_v62, 0.0  ;;  %v2288_v58 = vmul.f32 0.2, %v2224_v62  ;;  %v2223_v18 = vadd.f32 %v20157_v9, %v20191_v51 }
 0x3a5   :  { %v2317_v23 = vsel %vm2253_vm4, %v2221_v0, %v2285_v47  ;;  %vm2258_vm6 = vcmp.gt.f32.partialorder %v2226_v55, 0.0  ;;  %v2290_v37 = vmul.f32 0.2, %v2226_v55  ;;  %16153 = vmatprep.subr.bf16.mxu1 %v20280_v22  ;;  %16185 = vmatprep.subr.bf16.mxu0 %v20280_v22  ;;  %v2225_v41 = vadd.f32 %v20157_v9, %v20194_v14 }
 0x3a6   :  { %v20289_v38 = vpack.c.bf16 %v2317_v23, %v2315_v57  ;;  %v2320_v2 = vsel %vm2256_vm5, %v2224_v62, %v2288_v58  ;;  %vm2268_vm7 = vcmp.gt.f32.partialorder %v20227_v56, 0.0  ;;  %vm2270_vm8 = vcmp.gt.f32.partialorder %v20233_v29, 0.0 }
 0x3a7   :  { %v2322_v19 = vsel %vm2258_vm6, %v2226_v55, %v2290_v37  ;;  %vm2255_vm9 = vcmp.gt.f32.partialorder %v2223_v18, 0.0  ;;  %v2287_v51 = vmul.f32 0.2, %v2223_v18  ;;  %v2228_v17 = vadd.f32 %v20160_v7, %v20198_v34  ;;  %v2529_v55 = vld [vmem:[%s24847_s7 + $0x88] sm:$0xff] }
 0x3a8   :  { %16155 = vmatpush1.bf16.msra.mxu1 %v20289_v38  ;;  %16187 = vmatpush1.bf16.msra.mxu0 %v20289_v38  ;;  %v20299_v52 = vpack.c.bf16 %v2322_v19, %v2320_v2  ;;  %vm2257_vm10 = vcmp.gt.f32.partialorder %v2225_v41, 0.0  ;;  %v2289_v31 = vmul.f32 0.2, %v2225_v41  ;;  %v2230_v14 = vadd.f32 %v20160_v7, %v20201_v26  ;;  %v2739_v2 = vld [vmem:[%s24847_s7 + $0x190] sm:$0xff]  ;;  %v2512_v19 = vld [vmem:[%s24847_s7] sm:$0xff] }
 0x3a9   :  { %v2319_v40 = vsel %vm2255_vm9, %v2223_v18, %v2287_v51  ;;  %vm2260_vm11 = vcmp.gt.f32.partialorder %v2228_v17, 0.0  ;;  %v2292_v28 = vmul.f32 0.2, %v2228_v17  ;;  %v2227_v53 = vadd.f32 %v20157_v9, %v20204_v36  ;;  %v2721_v18 = vld [vmem:[%s24847_s7 + $0x100] sm:$0xff]  ;;  %v2513_v51 = vld [vmem:[%s24847_s7 + $0x8] sm:$0xff] }
 0x3aa   :  { %vm2267_vm12 = vcmp.gt.f32.partialorder %v20218_v8, 0.0  ;;  %vm2269_vm13 = vcmp.gt.f32.partialorder %v20230_v24, 0.0  ;;  %16157 = vmatprep.subr.bf16.mxu1 %v20299_v52  ;;  %16189 = vmatprep.subr.bf16.mxu0 %v20299_v52  ;;  %v2321_v34 = vsel %vm2257_vm10, %v2225_v41, %v2289_v31  ;;  %vm2262_vm14 = vcmp.gt.f32.partialorder %v2230_v14, 0.0  ;;  %v2740_v41 = vld [vmem:[%s24847_s7 + $0x198] sm:$0xff]  ;;  %v2544_v31 = vld [vmem:[%s24843_s3 + $0x80] sm:$0xff] }
 0x3ab   :  { %v2294_v49 = vmul.f32 0.2, %v2230_v14  ;;  %v2229_v26 = vadd.f32 %v20157_v9, %v20208_v45  ;;  %v20311_v60 = vpack.c.bf16 %v2321_v34, %v2319_v40  ;;  %v2324_v46 = vsel %vm2260_vm11, %v2228_v17, %v2292_v28  ;;  %v2335_v17 = vld [vmem:[%s24843_s3] sm:$0xff]  ;;  %v2723_v28 = vld [vmem:[%s24847_s7 + $0x110] sm:$0xff] }
 0x3ac   :  { %vm2259_vm15 = vcmp.gt.f32.partialorder %v2227_v53, 0.0  ;;  %v2291_v44 = vmul.f32 0.2, %v2227_v53  ;;  %v2232_v1 = vadd.f32 %v20160_v7, %v20211_v42  ;;  %v2302_v43 = vmul.f32 0.2, %v20233_v29  ;;  %v2741_v34 = vld [vmem:[%s24847_s7 + $0x1a0] sm:$0xff] }
 0x3ad   :  { %v2326_v36 = vsel %vm2262_vm14, %v2230_v14, %v2294_v49  ;;  %vm2261_vm0 = vcmp.gt.f32.partialorder %v2229_v26, 0.0  ;;  %v2293_v59 = vmul.f32 0.2, %v2229_v26  ;;  %16159 = vmatpush1.bf16.msra.mxu1 %v20311_v60  ;;  %16191 = vmatpush1.bf16.msra.mxu0 %v20311_v60  ;;  %v2234_v3 = vadd.f32 %v20160_v7, %v20214_v39  ;;  %v2742_v49 = vld [vmem:[%s24847_s7 + $0x1a8] sm:$0xff] }
 0x3ae   :  { %v20318_v12 = vpack.c.bf16 %v2326_v36, %v2324_v46  ;;  %v2323_v45 = vsel %vm2259_vm15, %v2227_v53, %v2291_v44  ;;  %vm2264_vm1 = vcmp.gt.f32.partialorder %v2232_v1, 0.0  ;;  %v2296_v61 = vmul.f32 0.2, %v2232_v1  ;;  %v2724_v53 = vld [vmem:[%s24847_s7 + $0x118] sm:$0xff]  ;;  %v2530_v46 = vld [vmem:[%s24847_s7 + $0x90] sm:$0xff] }
 0x3af   :  { %v2325_v5 = vsel %vm2261_vm0, %v2229_v26, %v2293_v59  ;;  %v2231_v54 = vadd.f32 %v20157_v9, %v20221_v13  ;;  %vm2266_vm2 = vcmp.gt.f32.partialorder %v2234_v3, 0.0  ;;  %v2298_v21 = vmul.f32 0.2, %v2234_v3  ;;  %v2531_v44 = vld [vmem:[%s24847_s7 + $0x98] sm:$0xff]  ;;  %v2336_v59 = vld [vmem:[%s24843_s3 + $0x8] sm:$0xff] }
 0x3b0   :  { %16161 = vmatprep.subr.bf16.mxu1 %v20318_v12  ;;  %16193 = vmatprep.subr.bf16.mxu0 %v20318_v12  ;;  %v20326_v42 = vpack.c.bf16 %v2325_v5, %v2323_v45  ;;  %v2233_v35 = vadd.f32 %v20157_v9, %v20224_v33  ;;  %v2299_v30 = vmul.f32 0.2, %v20218_v8  ;;  %v2328_v7 = vsel %vm2264_vm1, %v2232_v1, %v2296_v61  ;;  %v2545_v1 = vld [vmem:[%s24843_s3 + $0x88] sm:$0xff]  ;;  %v2743_v61 = vld [vmem:[%s24847_s7 + $0x1b0] sm:$0xff] }
 0x3b1   :  { %vm2263_vm4 = vcmp.gt.f32.partialorder %v2231_v54, 0.0  ;;  %v2295_v39 = vmul.f32 0.2, %v2231_v54  ;;  %v2301_v4 = vmul.f32 0.2, %v20230_v24  ;;  %v2330_v13 = vsel %vm2266_vm2, %v2234_v3, %v2298_v21  ;;  %v2725_v3 = vld [vmem:[%s24847_s7 + $0x120] sm:$0xff] }
 0x3b2   :  { %16163 = vmatpush1.bf16.msra.mxu1 %v20326_v42  ;;  %16195 = vmatpush1.bf16.msra.mxu0 %v20326_v42  ;;  %vm2265_vm5 = vcmp.gt.f32.partialorder %v2233_v35, 0.0  ;;  %v2297_v0 = vmul.f32 0.2, %v2233_v35  ;;  %v2332_v20 = vsel %vm2268_vm7, %v20227_v56, %v20285_v50  ;;  %v2334_v9 = vsel %vm2270_vm8, %v20233_v29, %v2302_v43  ;;  %v2738_v56 = vld [vmem:[%s24847_s7 + $0x188] sm:$0xff]  ;;  %v2528_v29 = vld [vmem:[%s24847_s7 + $0x80] sm:$0xff] }
 0x3b3   :  { %v20341_v33 = vpack.c.bf16 %v2330_v13, %v2328_v7  ;;  %v2327_v10 = vsel %vm2263_vm4, %v2231_v54, %v2295_v39  ;;  %v2331_v57 = vsel %vm2267_vm12, %v20218_v8, %v2299_v30  ;;  %v2333_v58 = vsel %vm2269_vm13, %v20230_v24, %v2301_v4  ;;  %v2722_v8 = vld [vmem:[%s24847_s7 + $0x108] sm:$0xff]  ;;  %v2744_v54 = vld [vmem:[%s24847_s7 + $0x1b8] sm:$0xff]  ;;  %v2337_v7 = vld [vmem:[%s24843_s3 + $0x10] sm:$0xff] }
 0x3b4   :  { %v2329_v62 = vsel %vm2265_vm5, %v2233_v35, %v2297_v0  ;;  %v20365_v23 = vpack.c.bf16 %v2334_v9, %v2332_v20  ;;  %v16204_v37 = vpack.c.bf16 %v2738_v56, %v2737_v16  ;;  %v16236_v24 = vpack.c.bf16 %v2529_v55, %v2528_v29  ;;  %v2726_v5 = vld [vmem:[%s24847_s7 + $0x128] sm:$0xff]  ;;  %v2514_v35 = vld [vmem:[%s24847_s7 + $0x10] sm:$0xff]  ;;  %v2515_v30 = vld [vmem:[%s24847_s7 + $0x18] sm:$0xff] }
 0x3b5   :  { %16165 = vmatprep.subr.bf16.mxu1 %v20341_v33  ;;  %16197 = vmatprep.subr.bf16.mxu0 %v20341_v33  ;;  %v20348_v47 = vpack.c.bf16 %v2329_v62, %v2327_v10  ;;  %v20377_v50 = vpack.c.bf16 %v2333_v58, %v2331_v57  ;;  %v16206_v14 = vpack.c.bf16 %v2722_v8, %v2721_v18  ;;  %v24943_v36 = vmov 0.0   ;;  %v2546_v39 = vld [vmem:[%s24843_s3 + $0x90] sm:$0xff]  ;;  %v2728_v20 = vld [vmem:[%s24847_s7 + $0x138] sm:$0xff]  ;;  %v2745_v9 = vld [vmem:[%s24847_s7 + $0x1c0] sm:$0xff] }
 0x3b6   :  { %v16208_v40 = vpack.c.bf16 %v2740_v41, %v2739_v2  ;;  %v16238_v26 = vpack.c.bf16 %v2513_v51, %v2512_v19  ;;  %v16210_v43 = vpack.c.bf16 %v2724_v53, %v2723_v28  ;;  %v16212_v45 = vpack.c.bf16 %v2742_v49, %v2741_v34  ;;  %v2727_v0 = vld [vmem:[%s24847_s7 + $0x130] sm:$0xff]  ;;  %v2746_v10 = vld [vmem:[%s24847_s7 + $0x1c8] sm:$0xff]  ;;  %v2532_v16 = vld [vmem:[%s24847_s7 + $0xa0] sm:$0xff] }
 0x3b7   :  { %16167 = vmatpush1.bf16.msra.mxu1 %v20348_v47  ;;  %16199 = vmatpush1.bf16.msra.mxu0 %v20348_v47  ;;  %v16240_v21 = vpack.c.bf16 %v2531_v44, %v2530_v46  ;;  %v16214_v4 = vpack.c.bf16 %v2726_v5, %v2725_v3  ;;  %v16216_v13 = vpack.c.bf16 %v2744_v54, %v2743_v61  ;;  %v2533_v56 = vld [vmem:[%s24847_s7 + $0xa8] sm:$0xff]  ;;  %v2338_v29 = vld [vmem:[%s24843_s3 + $0x18] sm:$0xff]  ;;  %v2747_v8 = vld [vmem:[%s24847_s7 + $0x1d0] sm:$0xff] }
 0x3b8   :  { %16169 = vmatprep.subr.bf16.mxu1 %v20365_v23  ;;  %16201 = vmatprep.subr.bf16.mxu0 %v20365_v23  ;;  %v16242_v62 = vpack.c.bf16 %v2515_v30, %v2514_v35  ;;  %v2547_v55 = vld [vmem:[%s24843_s3 + $0x98] sm:$0xff]  ;;  %v16218_v57 = vpack.c.bf16 %v2728_v20, %v2727_v0  ;;  %v16220_v58 = vpack.c.bf16 %v2746_v10, %v2745_v9  ;;  %v2730_v18 = vld [vmem:[%s24847_s7 + $0x148] sm:$0xff]  ;;  %v2516_v41 = vld [vmem:[%s24847_s7 + $0x20] sm:$0xff] }
 0x3b9   :  { %v16244_v2 = vpack.c.bf16 %v2533_v56, %v2532_v16  ;;  %v2517_v19 = vld [vmem:[%s24847_s7 + $0x28] sm:$0xff]  ;;  %v2339_v51 = vld [vmem:[%s24843_s3 + $0x20] sm:$0xff]  ;;  %v2732_v28 = vld [vmem:[%s24847_s7 + $0x158] sm:$0xff] }
 0x3ba   :  { %v2749_v53 = vld [vmem:[%s24847_s7 + $0x1e0] sm:$0xff]  ;;  %v2750_v34 = vld [vmem:[%s24847_s7 + $0x1e8] sm:$0xff]  ;;  %v16246_v49 = vpack.c.bf16 %v2517_v19, %v2516_v41  ;;  %v2535_v46 = vld [vmem:[%s24847_s7 + $0xb8] sm:$0xff] }
 0x3bb   :  { %16171 = vmatpush1.bf16.msra.mxu1 %v20377_v50  ;;  %16203 = vmatpush1.bf16.msra.mxu0 %v20377_v50  ;;  %v2340_v44 = vld [vmem:[%s24843_s3 + $0x28] sm:$0xff]  ;;  %v2751_v5 = vld [vmem:[%s24847_s7 + $0x1f0] sm:$0xff]  ;;  %v2752_v61 = vld [vmem:[%s24847_s7 + $0x1f8] sm:$0xff] }
 0x3bc   :  { %16205 = vmatprep.subr.bf16.mxu1 %v16204_v37  ;;  %16237 = vmatprep.subr.bf16.mxu0 %v16236_v24  ;;  %v2729_v37 = vld [vmem:[%s24847_s7 + $0x140] sm:$0xff]  ;;  %v2748_v24 = vld [vmem:[%s24847_s7 + $0x1d8] sm:$0xff]  ;;  %v2734_v3 = vld [vmem:[%s24847_s7 + $0x168] sm:$0xff] }
 0x3bd   :  { %v2519_v35 = vld [vmem:[%s24847_s7 + $0x38] sm:$0xff]  ;;  %v2341_v30 = vld [vmem:[%s24843_s3 + $0x30] sm:$0xff]  ;;  %v2536_v9 = vld [vmem:[%s24847_s7 + $0xc0] sm:$0xff] }
 0x3be   :  { %2416 = vmatmul.mubr.f32.vlgmr.msra.gmra.mrb[0].mxu1 %v2335_v17  ;;  %2625 = vmatmul.mubr.f32.vlgmr.msra.gmra.mrb[16].mxu0 %v2544_v31  ;;  %v2548_v17 = vld [vmem:[%s24843_s3 + $0xa0] sm:$0xff]  ;;  %v16222_v31 = vpack.c.bf16 %v2730_v18, %v2729_v37  ;;  %v2736_v0 = vld [vmem:[%s24847_s7 + $0x178] sm:$0xff]  ;;  %v2537_v10 = vld [vmem:[%s24847_s7 + $0xc8] sm:$0xff] }
 0x3bf   :  { %16207 = vmatpush3.bf16.msra.mxu1 %v16206_v14  ;;  %2421 = vmatprep.mubr.f32.mxu1 %v24943_v36  ;;  %v16224_v14 = vpack.c.bf16 %v2748_v24, %v2747_v8  ;;  %v2551_v16 = vld [vmem:[%s24843_s3 + $0xb8] sm:$0xff]  ;;  %v2343_v18 = vld [vmem:[%s24843_s3 + $0x40] sm:$0xff]  ;;  %v2522_v41 = vld [vmem:[%s24847_s7 + $0x50] sm:$0xff] }
 0x3c0   :  { %2630 = vmatprep.mubr.f32.mxu0 %v24943_v36  ;;  %16209 = vmatprep.subr.bf16.mxu1 %v16208_v40  ;;  %v2731_v40 = vld [vmem:[%s24847_s7 + $0x150] sm:$0xff]  ;;  %v2539_v37 = vld [vmem:[%s24847_s7 + $0xd8] sm:$0xff]  ;;  %v2552_v8 = vld [vmem:[%s24843_s3 + $0xc0] sm:$0xff] }
 0x3c1   :  { %16239 = vmatpush3.bf16.msra.mxu0 %v16238_v26  ;;  %v2534_v26 = vld [vmem:[%s24847_s7 + $0xb0] sm:$0xff]  ;;  %v2523_v19 = vld [vmem:[%s24847_s7 + $0x58] sm:$0xff] }
 0x3c2   :  { %2422 = vmatmul.mubr.f32.gmra.mrb[2].mxu1 %v2336_v59  ;;  %2631 = vmatmul.mubr.f32.gmra.mrb[18].mxu0 %v2545_v1  ;;  %v2549_v59 = vld [vmem:[%s24843_s3 + $0xa8] sm:$0xff]  ;;  %v16226_v1 = vpack.c.bf16 %v2732_v28, %v2731_v40  ;;  %v16248_v54 = vpack.c.bf16 %v2535_v46, %v2534_v26  ;;  %v16258_v40 = vpack.c.bf16 %v2523_v19, %v2522_v41  ;;  %v2543_v26 = vld [vmem:[%s24847_s7 + $0xf8] sm:$0xff]  ;;  %v2345_v46 = vld [vmem:[%s24843_s3 + $0x50] sm:$0xff] }
 0x3c3   :  { %16211 = vmatpush3.bf16.msra.mxu1 %v16210_v43  ;;  %2427 = vmatprep.mubr.f32.mxu1 %v24943_v36  ;;  %v16228_v43 = vpack.c.bf16 %v2750_v34, %v2749_v53  ;;  %v2524_v53 = vld [vmem:[%s24847_s7 + $0x60] sm:$0xff]  ;;  %v2525_v34 = vld [vmem:[%s24847_s7 + $0x68] sm:$0xff] }
 0x3c4   :  { %2636 = vmatprep.mubr.f32.mxu0 %v24943_v36  ;;  %16213 = vmatprep.subr.bf16.mxu1 %v16212_v45  ;;  %v2733_v45 = vld [vmem:[%s24847_s7 + $0x160] sm:$0xff] }
 0x3c5   :  { %16241 = vmatprep.subr.bf16.mxu0 %v16240_v21  ;;  %v2518_v21 = vld [vmem:[%s24847_s7 + $0x30] sm:$0xff] }
 0x3c6   :  { %2428 = vmatmul.mubr.f32.gmra.mrb[4].mxu1 %v2337_v7  ;;  %2637 = vmatmul.mubr.f32.gmra.mrb[20].mxu0 %v2546_v39  ;;  %v2550_v7 = vld [vmem:[%s24843_s3 + $0xb0] sm:$0xff]  ;;  %v16230_v39 = vpack.c.bf16 %v2734_v3, %v2733_v45  ;;  %v16250_v20 = vpack.c.bf16 %v2519_v35, %v2518_v21  ;;  %v2555_v45 = vld [vmem:[%s24843_s3 + $0xd8] sm:$0xff]  ;;  %v2347_v3 = vld [vmem:[%s24843_s3 + $0x60] sm:$0xff] }
 0x3c7   :  { %16215 = vmatpush3.bf16.msra.mxu1 %v16214_v4  ;;  %2433 = vmatprep.mubr.f32.mxu1 %v24943_v36  ;;  %v16232_v4 = vpack.c.bf16 %v2752_v61, %v2751_v5  ;;  %v2556_v5 = vld [vmem:[%s24843_s3 + $0xe0] sm:$0xff]  ;;  %v2348_v61 = vld [vmem:[%s24843_s3 + $0x68] sm:$0xff]  ;;  %v2349_v21 = vld [vmem:[%s24843_s3 + $0x70] sm:$0xff] }
 0x3c8   :  { %2642 = vmatprep.mubr.f32.mxu0 %v24943_v36  ;;  %16217 = vmatprep.subr.bf16.mxu1 %v16216_v13  ;;  %v2735_v13 = vld [vmem:[%s24847_s7 + $0x170] sm:$0xff] }
 0x3c9   :  { %16243 = vmatpush3.bf16.msra.mxu0 %v16242_v62  ;;  %v2342_v62 = vld [vmem:[%s24843_s3 + $0x38] sm:$0xff]  ;;  %v16234_v56 = vpack.c.bf16 %v2736_v0, %v2735_v13  ;;  %v2558_v35 = vld [vmem:[%s24843_s3 + $0xf0] sm:$0xff] }
 0x3ca   :  { %2434 = vmatmul.mubr.f32.gmra.mrb[6].mxu1 %v2338_v29  ;;  %2643 = vmatmul.mubr.f32.gmra.mrb[22].mxu0 %v2547_v55  ;;  %v16252_v29 = vpack.c.bf16 %v2537_v10, %v2536_v9  ;;  %v2520_v55 = vld [vmem:[%s24847_s7 + $0x40] sm:$0xff] }
 0x3cb   :  { %16219 = vmatpush3.bf16.msra.mxu1 %v16218_v57  ;;  %2439 = vmatprep.mubr.f32.mxu1 %v24943_v36  ;;  %v2521_v57 = vld [vmem:[%s24847_s7 + $0x48] sm:$0xff] }
 0x3cc   :  { %2648 = vmatprep.mubr.f32.mxu0 %v24943_v36  ;;  %16221 = vmatprep.subr.bf16.mxu1 %v16220_v58  ;;  %v2538_v58 = vld [vmem:[%s24847_s7 + $0xd0] sm:$0xff]  ;;  %v16254_v24 = vpack.c.bf16 %v2521_v57, %v2520_v55 }
 0x3cd   :  { %16245 = vmatprep.subr.bf16.mxu0 %v16244_v2  ;;  %v16256_v2 = vpack.c.bf16 %v2539_v37, %v2538_v58 }
 0x3ce   :  { %2440 = vmatmul.mubr.f32.gmra.mrb[8].mxu1 %v2339_v51  ;;  %2649 = vmatmul.mubr.f32.gmra.mrb[24].mxu0 %v2548_v17  ;;  %v2540_v51 = vld [vmem:[%s24847_s7 + $0xe0] sm:$0xff]  ;;  %v2541_v17 = vld [vmem:[%s24847_s7 + $0xe8] sm:$0xff] }
 0x3cf   :  { %16223 = vmatpush3.bf16.msra.mxu1 %v16222_v31  ;;  %2445 = vmatprep.mubr.f32.mxu1 %v24943_v36  ;;  %v2344_v31 = vld [vmem:[%s24843_s3 + $0x48] sm:$0xff]  ;;  %v16260_v28 = vpack.c.bf16 %v2541_v17, %v2540_v51 }
 0x3d0   :  { %2654 = vmatprep.mubr.f32.mxu0 %v24943_v36  ;;  %16225 = vmatprep.subr.bf16.mxu1 %v16224_v14  ;;  %v2553_v14 = vld [vmem:[%s24843_s3 + $0xc8] sm:$0xff] }
 0x3d1   :  { %16247 = vmatpush3.bf16.msra.mxu0 %v16246_v49  ;;  %v2542_v49 = vld [vmem:[%s24847_s7 + $0xf0] sm:$0xff] }
 0x3d2   :  { %2446 = vmatmul.mubr.f32.gmra.mrb[10].mxu1 %v2340_v44  ;;  %2655 = vmatmul.mubr.f32.gmra.mrb[26].mxu0 %v2549_v59  ;;  %v2554_v44 = vld [vmem:[%s24843_s3 + $0xd0] sm:$0xff]  ;;  %v16262_v59 = vpack.c.bf16 %v2525_v34, %v2524_v53 }
 0x3d3   :  { %16227 = vmatpush3.bf16.msra.mxu1 %v16226_v1  ;;  %2451 = vmatprep.mubr.f32.mxu1 %v24943_v36  ;;  %v16264_v1 = vpack.c.bf16 %v2543_v26, %v2542_v49 }
 0x3d4   :  { %2660 = vmatprep.mubr.f32.mxu0 %v24943_v36  ;;  %16229 = vmatprep.subr.bf16.mxu1 %v16228_v43  ;;  %v2346_v43 = vld [vmem:[%s24843_s3 + $0x58] sm:$0xff] }
 0x3d5   :  { %16249 = vmatprep.subr.bf16.mxu0 %v16248_v54  ;;  %v2557_v54 = vld [vmem:[%s24843_s3 + $0xe8] sm:$0xff] }
 0x3d6   :  { %2452 = vmatmul.mubr.f32.gmra.mrb[12].mxu1 %v2341_v30  ;;  %2661 = vmatmul.mubr.f32.gmra.mrb[28].mxu0 %v2550_v7  ;;  %v2350_v30 = vld [vmem:[%s24843_s3 + $0x78] sm:$0xff] }
 0x3d7   :  { %16231 = vmatpush3.bf16.msra.mxu1 %v16230_v39  ;;  %2457 = vmatprep.mubr.f32.mxu1 %v24943_v36  ;;  %v2559_v7 = vld [vmem:[%s24843_s3 + $0xf8] sm:$0xff]  ;;  %v2526_v39 = vld [vmem:[%s24847_s7 + $0x70] sm:$0xff] }
 0x3d8   :  { %2666 = vmatprep.mubr.f32.mxu0 %v24943_v36  ;;  %16233 = vmatprep.subr.bf16.mxu1 %v16232_v4  ;;  %v2527_v4 = vld [vmem:[%s24847_s7 + $0x78] sm:$0xff] }
 0x3d9   :  { %16251 = vmatpush3.bf16.msra.mxu0 %v16250_v20  ;;  %v16266_v13 = vpack.c.bf16 %v2527_v4, %v2526_v39 }
 0x3da   :  { %2458 = vmatmul.mubr.f32.gmra.mrb[14].mxu1 %v2342_v62  ;;  %2667 = vmatmul.mubr.f32.gmra.mrb[30].mxu0 %v2551_v16 }
 0x3db   :  { %16235 = vmatpush3.bf16.msra.mxu1 %v16234_v56  ;;  %2463 = vmatprep.mubr.f32.mxu1 %v24943_v36 }
 0x3dc   :  { %16269 = vmatprep.subr.bf16.mxu1 %v20235_v11  ;;  %2672 = vmatprep.mubr.f32.mxu0 %v24943_v36 }
 0x3dd   :  { %16253 = vmatprep.subr.bf16.mxu0 %v16252_v29 }
 0x3de   :  { %2464 = vmatmul.mubr.f32.gmra.mrb[16].mxu1 %v2343_v18  ;;  %2673 = vmatmul.mubr.f32.gmra.mrb[32].mxu0 %v2552_v8 }
 0x3df   :  { %2469 = vmatprep.mubr.f32.mxu1 %v24943_v36  ;;  %2678 = vmatprep.mubr.f32.mxu0 %v24943_v36 }
 0x3e0   :  { %16255 = vmatpush3.bf16.msra.mxu0 %v16254_v24 }
 0x3e1   :  { %16257 = vmatprep.subr.bf16.mxu0 %v16256_v2 }
 0x3e2   :  { %2470 = vmatmul.mubr.f32.gmra.mrb[18].mxu1 %v2344_v31  ;;  %2679 = vmatmul.mubr.f32.gmra.mrb[34].mxu0 %v2553_v14 }
 0x3e3   :  { %2475 = vmatprep.mubr.f32.mxu1 %v24943_v36  ;;  %2684 = vmatprep.mubr.f32.mxu0 %v24943_v36 }
 0x3e4   :  { %16259 = vmatpush3.bf16.msra.mxu0 %v16258_v40 }
 0x3e5   :  { %16261 = vmatprep.subr.bf16.mxu0 %v16260_v28 }
 0x3e6   :  { %2476 = vmatmul.mubr.f32.gmra.mrb[20].mxu1 %v2345_v46  ;;  %2685 = vmatmul.mubr.f32.gmra.mrb[36].mxu0 %v2554_v44 }
 0x3e7   :  { %2481 = vmatprep.mubr.f32.mxu1 %v24943_v36  ;;  %2690 = vmatprep.mubr.f32.mxu0 %v24943_v36 }
 0x3e8   :  { %16263 = vmatpush3.bf16.msra.mxu0 %v16262_v59 }
 0x3e9   :  { %16265 = vmatprep.subr.bf16.mxu0 %v16264_v1 }
 0x3ea   :  { %2482 = vmatmul.mubr.f32.gmra.mrb[22].mxu1 %v2346_v43  ;;  %2691 = vmatmul.mubr.f32.gmra.mrb[38].mxu0 %v2555_v45 }
 0x3eb   :  { %2487 = vmatprep.mubr.f32.mxu1 %v24943_v36  ;;  %2696 = vmatprep.mubr.f32.mxu0 %v24943_v36 }
 0x3ec   :  { %16267 = vmatpush3.bf16.msra.mxu0 %v16266_v13 }
 0x3ee   :  { %2488 = vmatmul.mubr.f32.gmra.mrb[24].mxu1 %v2347_v3  ;;  %2697 = vmatmul.mubr.f32.gmra.mrb[40].mxu0 %v2556_v5 }
 0x3ef   :  { %2493 = vmatprep.mubr.f32.mxu1 %v24943_v36  ;;  %2702 = vmatprep.mubr.f32.mxu0 %v24943_v36 }
 0x3f2   :  { %2494 = vmatmul.mubr.f32.gmra.mrb[26].mxu1 %v2348_v61  ;;  %2703 = vmatmul.mubr.f32.gmra.mrb[42].mxu0 %v2557_v54 }
 0x3f3   :  { %2499 = vmatprep.mubr.f32.mxu1 %v24943_v36  ;;  %2708 = vmatprep.mubr.f32.mxu0 %v24943_v36 }
 0x3f6   :  { %2500 = vmatmul.mubr.f32.gmra.mrb[28].mxu1 %v2349_v21  ;;  %2709 = vmatmul.mubr.f32.gmra.mrb[44].mxu0 %v2558_v35 }
 0x3f7   :  { %2505 = vmatprep.mubr.f32.mxu1 %v24943_v36  ;;  %2714 = vmatprep.mubr.f32.mxu0 %v24943_v36 }
 0x3fa   :  { %2506 = vmatmul.mubr.f32.gmra.mrb[30].mxu1 %v2350_v30  ;;  %2715 = vmatmul.mubr.f32.gmra.mrb[46].mxu0 %v2559_v7 }
 0x491   :  { %v2417_v0 = vpop.f32.mrb[0].mxu1  ;;  %v2626_v20 = vpop.f32.mrb[16].mxu0 }
 0x492   :  { %v2419_v9 = vpop.f32.mrb[1].mxu1  ;;  %v2628_v10 = vpop.f32.mrb[17].mxu0 }
 0x493   :  { %2817 = vmatprep.mubr.f32.mxu1 %v2628_v10  ;;  %2962 = vmatprep.mubr.f32.mxu0 %v2419_v9 }
 0x494   :  { %2818 = vmatmul.mubr.f32.vlgmr.msra.gmra.mrb[32].mxu1 %v2626_v20  ;;  %2963 = vmatmul.mubr.f32.vlgmr.msra.gmra.mrb[48].mxu0 %v2417_v0 }
 0x495   :  { %16271 = vmatpush1.bf16.msra.mxu1 %v20243_v48  ;;  %v2423_v62 = vpop.f32.mrb[2].mxu1  ;;  %v2632_v16 = vpop.f32.mrb[18].mxu0 }
 0x496   :  { %16273 = vmatprep.subr.bf16.mxu1 %v20248_v6  ;;  %v2425_v56 = vpop.f32.mrb[3].mxu1  ;;  %v2634_v29 = vpop.f32.mrb[19].mxu0 }
 0x497   :  { %2822 = vmatprep.mubr.f32.mxu1 %v2634_v29  ;;  %2967 = vmatprep.mubr.f32.mxu0 %v2425_v56 }
 0x498   :  { %2823 = vmatmul.mubr.f32.gmra.mrb[34].mxu1 %v2632_v16  ;;  %2968 = vmatmul.mubr.f32.gmra.mrb[50].mxu0 %v2423_v62 }
 0x499   :  { %16275 = vmatpush1.bf16.msra.mxu1 %v20254_v25  ;;  %v2429_v55 = vpop.f32.mrb[4].mxu1  ;;  %v2638_v57 = vpop.f32.mrb[20].mxu0 }
 0x49a   :  { %16277 = vmatprep.subr.bf16.mxu1 %v20264_v63  ;;  %v2431_v58 = vpop.f32.mrb[5].mxu1  ;;  %v2640_v37 = vpop.f32.mrb[21].mxu0 }
 0x49b   :  { %2827 = vmatprep.mubr.f32.mxu1 %v2640_v37  ;;  %2972 = vmatprep.mubr.f32.mxu0 %v2431_v58 }
 0x49c   :  { %2828 = vmatmul.mubr.f32.gmra.mrb[36].mxu1 %v2638_v57  ;;  %2973 = vmatmul.mubr.f32.gmra.mrb[52].mxu0 %v2429_v55 }
 0x49d   :  { %16279 = vmatpush1.bf16.msra.mxu1 %v20272_v27  ;;  %v2435_v18 = vpop.f32.mrb[6].mxu1  ;;  %v2644_v8 = vpop.f32.mrb[22].mxu0 }
 0x49e   :  { %16281 = vmatprep.subr.bf16.mxu1 %v20280_v22  ;;  %v2437_v24 = vpop.f32.mrb[7].mxu1  ;;  %v2646_v2 = vpop.f32.mrb[23].mxu0 }
 0x49f   :  { %2832 = vmatprep.mubr.f32.mxu1 %v2646_v2  ;;  %2977 = vmatprep.mubr.f32.mxu0 %v2437_v24 }
 0x4a0   :  { %2833 = vmatmul.mubr.f32.gmra.mrb[38].mxu1 %v2644_v8  ;;  %2978 = vmatmul.mubr.f32.gmra.mrb[54].mxu0 %v2435_v18 }
 0x4a1   :  { %16283 = vmatpush1.bf16.msra.mxu1 %v20289_v38  ;;  %v2441_v41 = vpop.f32.mrb[8].mxu1  ;;  %v2650_v19 = vpop.f32.mrb[24].mxu0 }
 0x4a2   :  { %16285 = vmatprep.subr.bf16.mxu1 %v20299_v52  ;;  %v2443_v51 = vpop.f32.mrb[9].mxu1  ;;  %v2652_v17 = vpop.f32.mrb[25].mxu0 }
 0x4a3   :  { %2837 = vmatprep.mubr.f32.mxu1 %v2652_v17  ;;  %2982 = vmatprep.mubr.f32.mxu0 %v2443_v51  ;;  %v3043_v17 = vld [vmem:[%s24843_s3 + $0x100] sm:$0xff] }
 0x4a4   :  { %2838 = vmatmul.mubr.f32.gmra.mrb[40].mxu1 %v2650_v19  ;;  %2983 = vmatmul.mubr.f32.gmra.mrb[56].mxu0 %v2441_v41 }
 0x4a5   :  { %16287 = vmatpush1.bf16.msra.mxu1 %v20311_v60  ;;  %v2447_v31 = vpop.f32.mrb[10].mxu1  ;;  %v2656_v14 = vpop.f32.mrb[26].mxu0 }
 0x4a6   :  { %16289 = vmatprep.subr.bf16.mxu1 %v20318_v12  ;;  %v2449_v40 = vpop.f32.mrb[11].mxu1  ;;  %v2658_v28 = vpop.f32.mrb[27].mxu0 }
 0x4a7   :  { %2842 = vmatprep.mubr.f32.mxu1 %v2658_v28  ;;  %2987 = vmatprep.mubr.f32.mxu0 %v2449_v40  ;;  %v3046_v40 = vld [vmem:[%s24843_s3 + $0x118] sm:$0xff]  ;;  %v3047_v28 = vld [vmem:[%s24843_s3 + $0x120] sm:$0xff] }
 0x4a8   :  { %2843 = vmatmul.mubr.f32.gmra.mrb[42].mxu1 %v2656_v14  ;;  %2988 = vmatmul.mubr.f32.gmra.mrb[58].mxu0 %v2447_v31  ;;  %v3044_v31 = vld [vmem:[%s24843_s3 + $0x108] sm:$0xff]  ;;  %v3045_v14 = vld [vmem:[%s24843_s3 + $0x110] sm:$0xff] }
 0x4a9   :  { %16291 = vmatpush1.bf16.msra.mxu1 %v20326_v42  ;;  %v2453_v53 = vpop.f32.mrb[12].mxu1  ;;  %v2662_v34 = vpop.f32.mrb[28].mxu0 }
 0x4aa   :  { %16293 = vmatprep.subr.bf16.mxu1 %v20341_v33  ;;  %v2455_v49 = vpop.f32.mrb[13].mxu1  ;;  %v2664_v26 = vpop.f32.mrb[29].mxu0 }
 0x4ab   :  { %2847 = vmatprep.mubr.f32.mxu1 %v2664_v26  ;;  %2992 = vmatprep.mubr.f32.mxu0 %v2455_v49  ;;  %v3050_v49 = vld [vmem:[%s24843_s3 + $0x138] sm:$0xff]  ;;  %v3051_v26 = vld [vmem:[%s24843_s3 + $0x140] sm:$0xff] }
 0x4ac   :  { %2848 = vmatmul.mubr.f32.gmra.mrb[44].mxu1 %v2662_v34  ;;  %2993 = vmatmul.mubr.f32.gmra.mrb[60].mxu0 %v2453_v53  ;;  %v3048_v53 = vld [vmem:[%s24843_s3 + $0x128] sm:$0xff]  ;;  %v3049_v34 = vld [vmem:[%s24843_s3 + $0x130] sm:$0xff] }
 0x4ad   :  { %16295 = vmatpush1.bf16.msra.mxu1 %v20348_v47  ;;  %v2459_v46 = vpop.f32.mrb[14].mxu1  ;;  %v2668_v44 = vpop.f32.mrb[30].mxu0 }
 0x4ae   :  { %16297 = vmatprep.subr.bf16.mxu1 %v20365_v23  ;;  %v2461_v59 = vpop.f32.mrb[15].mxu1  ;;  %v2670_v1 = vpop.f32.mrb[31].mxu0 }
 0x4af   :  { %2852 = vmatprep.mubr.f32.mxu1 %v2670_v1  ;;  %2997 = vmatprep.mubr.f32.mxu0 %v2461_v59  ;;  %v3054_v59 = vld [vmem:[%s24843_s3 + $0x158] sm:$0xff]  ;;  %v3055_v1 = vld [vmem:[%s24843_s3 + $0x160] sm:$0xff] }
 0x4b0   :  { %2853 = vmatmul.mubr.f32.gmra.mrb[46].mxu1 %v2668_v44  ;;  %2998 = vmatmul.mubr.f32.gmra.mrb[62].mxu0 %v2459_v46  ;;  %v3052_v46 = vld [vmem:[%s24843_s3 + $0x148] sm:$0xff]  ;;  %v3053_v44 = vld [vmem:[%s24843_s3 + $0x150] sm:$0xff] }
 0x4b1   :  { %16299 = vmatpush1.bf16.msra.mxu1 %v20377_v50  ;;  %v2465_v43 = vpop.f32.mrb[16].mxu1  ;;  %v2674_v45 = vpop.f32.mrb[32].mxu0 }
 0x4b2   :  { %16333 = vmatprep.subr.bf16.mxu1 %v20235_v11  ;;  %v2467_v3 = vpop.f32.mrb[17].mxu1  ;;  %v2676_v5 = vpop.f32.mrb[33].mxu0 }
 0x4b3   :  { %2857 = vmatprep.mubr.f32.mxu1 %v2676_v5  ;;  %3002 = vmatprep.mubr.f32.mxu0 %v2467_v3  ;;  %v3236_v3 = vld [vmem:[%s24847_s7 + $0x280] sm:$0xff]  ;;  %v3237_v5 = vld [vmem:[%s24847_s7 + $0x288] sm:$0xff] }
 0x4b4   :  { %2858 = vmatmul.mubr.f32.gmra.mrb[48].mxu1 %v2674_v45  ;;  %3003 = vmatmul.mubr.f32.gmra.mrb[64].mxu0 %v2465_v43  ;;  %v3056_v43 = vld [vmem:[%s24843_s3 + $0x168] sm:$0xff]  ;;  %v3057_v45 = vld [vmem:[%s24843_s3 + $0x170] sm:$0xff] }
 0x4b5   :  { %v2471_v61 = vpop.f32.mrb[18].mxu1  ;;  %v2680_v54 = vpop.f32.mrb[34].mxu0 }
 0x4b6   :  { %v2473_v21 = vpop.f32.mrb[19].mxu1  ;;  %v2682_v35 = vpop.f32.mrb[35].mxu0 }
 0x4b7   :  { %2862 = vmatprep.mubr.f32.mxu1 %v2682_v35  ;;  %3007 = vmatprep.mubr.f32.mxu0 %v2473_v21  ;;  %v3221_v21 = vld [vmem:[%s24847_s7 + $0x208] sm:$0xff]  ;;  %v3058_v35 = vld [vmem:[%s24843_s3 + $0x178] sm:$0xff] }
 0x4b8   :  { %2863 = vmatmul.mubr.f32.gmra.mrb[50].mxu1 %v2680_v54  ;;  %3008 = vmatmul.mubr.f32.gmra.mrb[66].mxu0 %v2471_v61  ;;  %v16300_v61 = vpack.c.bf16 %v3237_v5, %v3236_v3  ;;  %v3220_v54 = vld [vmem:[%s24847_s7 + $0x200] sm:$0xff]  ;;  %v3233_v5 = vld [vmem:[%s24847_s7 + $0x268] sm:$0xff] }
 0x4b9   :  { %v2477_v30 = vpop.f32.mrb[20].mxu1  ;;  %v2686_v7 = vpop.f32.mrb[36].mxu0  ;;  %v3232_v3 = vld [vmem:[%s24847_s7 + $0x260] sm:$0xff] }
 0x4ba   :  { %v2479_v39 = vpop.f32.mrb[21].mxu1  ;;  %v2688_v4 = vpop.f32.mrb[37].mxu0  ;;  %16301 = vmatprep.subr.bf16.mxu0 %v16300_v61  ;;  %v3418_v61 = vld [vmem:[%s24843_s3 + $0x1a8] sm:$0xff] }
 0x4bb   :  { %2867 = vmatprep.mubr.f32.mxu1 %v2688_v4  ;;  %3012 = vmatprep.mubr.f32.mxu0 %v2479_v39  ;;  %v3239_v39 = vld [vmem:[%s24847_s7 + $0x298] sm:$0xff] }
 0x4bc   :  { %2868 = vmatmul.mubr.f32.gmra.mrb[52].mxu1 %v2686_v7  ;;  %3013 = vmatmul.mubr.f32.gmra.mrb[68].mxu0 %v2477_v30  ;;  %v16302_v30 = vpack.c.bf16 %v3221_v21, %v3220_v54  ;;  %v3238_v7 = vld [vmem:[%s24847_s7 + $0x290] sm:$0xff]  ;;  %v16326_v54 = vpack.c.bf16 %v3233_v5, %v3232_v3 }
 0x4bd   :  { %v2483_v13 = vpop.f32.mrb[22].mxu1  ;;  %v2692_v0 = vpop.f32.mrb[38].mxu0  ;;  %v16304_v4 = vpack.c.bf16 %v3239_v39, %v3238_v7  ;;  %v3250_v21 = vld [vmem:[%s24847_s7 + $0x2f0] sm:$0xff]  ;;  %v3235_v39 = vld [vmem:[%s24847_s7 + $0x278] sm:$0xff] }
 0x4be   :  { %v2485_v20 = vpop.f32.mrb[23].mxu1  ;;  %v2694_v9 = vpop.f32.mrb[39].mxu0  ;;  %16303 = vmatpush3.bf16.msra.mxu0 %v16302_v30  ;;  %v3234_v7 = vld [vmem:[%s24847_s7 + $0x270] sm:$0xff] }
 0x4bf   :  { %2872 = vmatprep.mubr.f32.mxu1 %v2694_v9  ;;  %3017 = vmatprep.mubr.f32.mxu0 %v2485_v20  ;;  %v3413_v20 = vld [vmem:[%s24843_s3 + $0x180] sm:$0xff] }
 0x4c0   :  { %2873 = vmatmul.mubr.f32.gmra.mrb[54].mxu1 %v2692_v0  ;;  %3018 = vmatmul.mubr.f32.gmra.mrb[70].mxu0 %v2483_v13  ;;  %v3222_v13 = vld [vmem:[%s24847_s7 + $0x210] sm:$0xff]  ;;  %v3223_v0 = vld [vmem:[%s24847_s7 + $0x218] sm:$0xff] }
 0x4c1   :  { %v2489_v10 = vpop.f32.mrb[24].mxu1  ;;  %v2698_v62 = vpop.f32.mrb[40].mxu0  ;;  %v16306_v9 = vpack.c.bf16 %v3223_v0, %v3222_v13  ;;  %16305 = vmatprep.subr.bf16.mxu0 %v16304_v4  ;;  %v3419_v4 = vld [vmem:[%s24843_s3 + $0x1b0] sm:$0xff]  ;;  %v16330_v13 = vpack.c.bf16 %v3235_v39, %v3234_v7  ;;  %v3420_v0 = vld [vmem:[%s24843_s3 + $0x1b8] sm:$0xff] }
 0x4c2   :  { %v2491_v16 = vpop.f32.mrb[25].mxu1  ;;  %v2700_v56 = vpop.f32.mrb[41].mxu0 }
 0x4c3   :  { %2877 = vmatprep.mubr.f32.mxu1 %v2700_v56  ;;  %3022 = vmatprep.mubr.f32.mxu0 %v2491_v16  ;;  %v3224_v56 = vld [vmem:[%s24847_s7 + $0x220] sm:$0xff] }
 0x4c4   :  { %2878 = vmatmul.mubr.f32.gmra.mrb[56].mxu1 %v2698_v62  ;;  %3023 = vmatmul.mubr.f32.gmra.mrb[72].mxu0 %v2489_v10  ;;  %v3240_v10 = vld [vmem:[%s24847_s7 + $0x2a0] sm:$0xff]  ;;  %v3241_v62 = vld [vmem:[%s24847_s7 + $0x2a8] sm:$0xff] }
 0x4c5   :  { %v2495_v29 = vpop.f32.mrb[26].mxu1  ;;  %v2704_v55 = vpop.f32.mrb[42].mxu0  ;;  %16307 = vmatpush3.bf16.msra.mxu0 %v16306_v9  ;;  %v16308_v16 = vpack.c.bf16 %v3241_v62, %v3240_v10  ;;  %v3422_v9 = vld [vmem:[%s24843_s3 + $0x1c8] sm:$0xff]  ;;  %v3423_v10 = vld [vmem:[%s24843_s3 + $0x1d0] sm:$0xff]  ;;  %v3424_v62 = vld [vmem:[%s24843_s3 + $0x1d8] sm:$0xff] }
 0x4c6   :  { %v2497_v57 = vpop.f32.mrb[27].mxu1  ;;  %v2706_v58 = vpop.f32.mrb[43].mxu0 }
 0x4c7   :  { %2882 = vmatprep.mubr.f32.mxu1 %v2706_v58  ;;  %3027 = vmatprep.mubr.f32.mxu0 %v2497_v57  ;;  %v3242_v58 = vld [vmem:[%s24847_s7 + $0x2b0] sm:$0xff] }
 0x4c8   :  { %2883 = vmatmul.mubr.f32.gmra.mrb[58].mxu1 %v2704_v55  ;;  %3028 = vmatmul.mubr.f32.gmra.mrb[74].mxu0 %v2495_v29  ;;  %v3225_v29 = vld [vmem:[%s24847_s7 + $0x228] sm:$0xff] }
 0x4c9   :  { %v2501_v37 = vpop.f32.mrb[28].mxu1  ;;  %v2710_v18 = vpop.f32.mrb[44].mxu0  ;;  %v3414_v55 = vld [vmem:[%s24843_s3 + $0x188] sm:$0xff]  ;;  %v16310_v57 = vpack.c.bf16 %v3225_v29, %v3224_v56  ;;  %16309 = vmatprep.subr.bf16.mxu0 %v16308_v16  ;;  %v3425_v16 = vld [vmem:[%s24843_s3 + $0x1e0] sm:$0xff]  ;;  %v3427_v29 = vld [vmem:[%s24843_s3 + $0x1f0] sm:$0xff] }
 0x4ca   :  { %v2503_v8 = vpop.f32.mrb[29].mxu1  ;;  %v2712_v24 = vpop.f32.mrb[45].mxu0  ;;  %v3426_v56 = vld [vmem:[%s24843_s3 + $0x1e8] sm:$0xff] }
 0x4cb   :  { %2887 = vmatprep.mubr.f32.mxu1 %v2712_v24  ;;  %3032 = vmatprep.mubr.f32.mxu0 %v2503_v8  ;;  %v3226_v8 = vld [vmem:[%s24847_s7 + $0x230] sm:$0xff]  ;;  %v3227_v24 = vld [vmem:[%s24847_s7 + $0x238] sm:$0xff] }
 0x4cc   :  { %2888 = vmatmul.mubr.f32.gmra.mrb[60].mxu1 %v2710_v18  ;;  %3033 = vmatmul.mubr.f32.gmra.mrb[76].mxu0 %v2501_v37  ;;  %v3243_v37 = vld [vmem:[%s24847_s7 + $0x2b8] sm:$0xff] }
 0x4cd   :  { %v2507_v2 = vpop.f32.mrb[30].mxu1  ;;  %v2716_v41 = vpop.f32.mrb[46].mxu0  ;;  %16311 = vmatpush3.bf16.msra.mxu0 %v16310_v57  ;;  %v16312_v18 = vpack.c.bf16 %v3243_v37, %v3242_v58  ;;  %v3607_v57 = vld [vmem:[%s24847_s7 + $0x388] sm:$0xff]  ;;  %v3428_v37 = vld [vmem:[%s24843_s3 + $0x1f8] sm:$0xff] }
 0x4ce   :  { %v2509_v19 = vpop.f32.mrb[31].mxu1  ;;  %v2718_v51 = vpop.f32.mrb[47].mxu0 }
 0x4cf   :  { %2892 = vmatprep.mubr.f32.mxu1 %v2718_v51  ;;  %3037 = vmatprep.mubr.f32.mxu0 %v2509_v19  ;;  %v3244_v19 = vld [vmem:[%s24847_s7 + $0x2c0] sm:$0xff]  ;;  %v3245_v51 = vld [vmem:[%s24847_s7 + $0x2c8] sm:$0xff] }
 0x4d0   :  { %2893 = vmatmul.mubr.f32.gmra.mrb[62].mxu1 %v2716_v41  ;;  %3038 = vmatmul.mubr.f32.gmra.mrb[78].mxu0 %v2507_v2  ;;  %v3415_v2 = vld [vmem:[%s24843_s3 + $0x190] sm:$0xff]  ;;  %v16314_v41 = vpack.c.bf16 %v3227_v24, %v3226_v8  ;;  %v3784_v8 = vld [vmem:[%s24843_s3 + $0x208] sm:$0xff] }
 0x4d1   :  { %3123 = vmatprep.mubr.f32.mxu1 %v24943_v36  ;;  %16313 = vmatprep.subr.bf16.mxu0 %v16312_v18  ;;  %v3783_v18 = vld [vmem:[%s24843_s3 + $0x200] sm:$0xff]  ;;  %v3785_v24 = vld [vmem:[%s24843_s3 + $0x210] sm:$0xff] }
 0x4d2   :  { %16315 = vmatpush3.bf16.msra.mxu0 %v16314_v41  ;;  %v3787_v41 = vld [vmem:[%s24843_s3 + $0x220] sm:$0xff] }
 0x4d4   :  { %3124 = vmatmul.mubr.f32.vlgmr.msra.gmra.mrb[64].mxu1 %v3043_v17  ;;  %v16316_v17 = vpack.c.bf16 %v3245_v51, %v3244_v19  ;;  %v3788_v19 = vld [vmem:[%s24843_s3 + $0x228] sm:$0xff] }
 0x4d5   :  { %16335 = vmatpush1.bf16.msra.mxu1 %v20243_v48  ;;  %3129 = vmatprep.mubr.f32.mxu1 %v24943_v36 }
 0x4d6   :  { %16337 = vmatprep.subr.bf16.mxu1 %v20248_v6  ;;  %16317 = vmatprep.subr.bf16.mxu0 %v16316_v17 }
 0x4d8   :  { %3130 = vmatmul.mubr.f32.gmra.mrb[66].mxu1 %v3044_v31  ;;  %v3228_v31 = vld [vmem:[%s24847_s7 + $0x240] sm:$0xff] }
 0x4d9   :  { %16339 = vmatpush1.bf16.msra.mxu1 %v20254_v25  ;;  %3135 = vmatprep.mubr.f32.mxu1 %v24943_v36 }
 0x4da   :  { %16341 = vmatprep.subr.bf16.mxu1 %v20264_v63 }
 0x4dc   :  { %3136 = vmatmul.mubr.f32.gmra.mrb[68].mxu1 %v3045_v14  ;;  %v3229_v14 = vld [vmem:[%s24847_s7 + $0x248] sm:$0xff] }
 0x4dd   :  { %16343 = vmatpush1.bf16.msra.mxu1 %v20272_v27  ;;  %3141 = vmatprep.mubr.f32.mxu1 %v24943_v36 }
 0x4de   :  { %16345 = vmatprep.subr.bf16.mxu1 %v20280_v22 }
 0x4e0   :  { %3142 = vmatmul.mubr.f32.gmra.mrb[70].mxu1 %v3046_v40  ;;  %v3416_v40 = vld [vmem:[%s24843_s3 + $0x198] sm:$0xff] }
 0x4e1   :  { %16347 = vmatpush1.bf16.msra.mxu1 %v20289_v38  ;;  %3147 = vmatprep.mubr.f32.mxu1 %v24943_v36 }
 0x4e2   :  { %16349 = vmatprep.subr.bf16.mxu1 %v20299_v52 }
 0x4e4   :  { %3148 = vmatmul.mubr.f32.gmra.mrb[72].mxu1 %v3047_v28  ;;  %v16318_v28 = vpack.c.bf16 %v3229_v14, %v3228_v31 }
 0x4e5   :  { %16351 = vmatpush1.bf16.msra.mxu1 %v20311_v60  ;;  %3153 = vmatprep.mubr.f32.mxu1 %v24943_v36 }
 0x4e6   :  { %16353 = vmatprep.subr.bf16.mxu1 %v20318_v12  ;;  %16319 = vmatpush3.bf16.msra.mxu0 %v16318_v28 }
 0x4e8   :  { %3154 = vmatmul.mubr.f32.gmra.mrb[74].mxu1 %v3048_v53  ;;  %v3246_v53 = vld [vmem:[%s24847_s7 + $0x2d0] sm:$0xff] }
 0x4e9   :  { %16355 = vmatpush1.bf16.msra.mxu1 %v20326_v42  ;;  %3159 = vmatprep.mubr.f32.mxu1 %v24943_v36 }
 0x4ea   :  { %16357 = vmatprep.subr.bf16.mxu1 %v20341_v33 }
 0x4ec   :  { %3160 = vmatmul.mubr.f32.gmra.mrb[76].mxu1 %v3049_v34  ;;  %v3247_v34 = vld [vmem:[%s24847_s7 + $0x2d8] sm:$0xff] }
 0x4ed   :  { %16359 = vmatpush1.bf16.msra.mxu1 %v20348_v47  ;;  %3165 = vmatprep.mubr.f32.mxu1 %v24943_v36 }
 0x4ee   :  { %16361 = vmatprep.subr.bf16.mxu1 %v20365_v23 }
 0x4f0   :  { %3166 = vmatmul.mubr.f32.gmra.mrb[78].mxu1 %v3050_v49  ;;  %v16320_v49 = vpack.c.bf16 %v3247_v34, %v3246_v53  ;;  %v3789_v53 = vld [vmem:[%s24843_s3 + $0x230] sm:$0xff] }
 0x4f1   :  { %16363 = vmatpush1.bf16.msra.mxu1 %v20377_v50  ;;  %3171 = vmatprep.mubr.f32.mxu1 %v24943_v36 }
 0x4f2   :  { %16397 = vmatprep.subr.bf16.mxu1 %v20235_v11  ;;  %16321 = vmatprep.subr.bf16.mxu0 %v16320_v49 }
 0x4f4   :  { %3172 = vmatmul.mubr.f32.gmra.mrb[80].mxu1 %v3051_v26  ;;  %v3230_v26 = vld [vmem:[%s24847_s7 + $0x250] sm:$0xff] }
 0x4f5   :  { %3177 = vmatprep.mubr.f32.mxu1 %v24943_v36 }
 0x4f8   :  { %3178 = vmatmul.mubr.f32.gmra.mrb[82].mxu1 %v3052_v46  ;;  %v3231_v46 = vld [vmem:[%s24847_s7 + $0x258] sm:$0xff] }
 0x4f9   :  { %3183 = vmatprep.mubr.f32.mxu1 %v24943_v36 }
 0x4fc   :  { %3184 = vmatmul.mubr.f32.gmra.mrb[84].mxu1 %v3053_v44  ;;  %v3417_v44 = vld [vmem:[%s24843_s3 + $0x1a0] sm:$0xff] }
 0x4fd   :  { %3189 = vmatprep.mubr.f32.mxu1 %v24943_v36 }
 0x500   :  { %3190 = vmatmul.mubr.f32.gmra.mrb[86].mxu1 %v3054_v59  ;;  %v16322_v59 = vpack.c.bf16 %v3231_v46, %v3230_v26 }
 0x501   :  { %3195 = vmatprep.mubr.f32.mxu1 %v24943_v36 }
 0x502   :  { %16323 = vmatpush3.bf16.msra.mxu0 %v16322_v59 }
 0x504   :  { %3196 = vmatmul.mubr.f32.gmra.mrb[88].mxu1 %v3055_v1  ;;  %v3248_v1 = vld [vmem:[%s24847_s7 + $0x2e0] sm:$0xff] }
 0x505   :  { %3201 = vmatprep.mubr.f32.mxu1 %v24943_v36 }
 0x508   :  { %3202 = vmatmul.mubr.f32.gmra.mrb[90].mxu1 %v3056_v43  ;;  %v3249_v43 = vld [vmem:[%s24847_s7 + $0x2e8] sm:$0xff] }
 0x509   :  { %3207 = vmatprep.mubr.f32.mxu1 %v24943_v36 }
 0x50c   :  { %3208 = vmatmul.mubr.f32.gmra.mrb[92].mxu1 %v3057_v45  ;;  %v16324_v45 = vpack.c.bf16 %v3249_v43, %v3248_v1  ;;  %v3790_v43 = vld [vmem:[%s24843_s3 + $0x238] sm:$0xff] }
 0x50d   :  { %3213 = vmatprep.mubr.f32.mxu1 %v24943_v36 }
 0x50e   :  { %16325 = vmatprep.subr.bf16.mxu0 %v16324_v45 }
 0x50f   :  { %16327 = vmatpush3.bf16.msra.mxu0 %v16326_v54 }
 0x510   :  { %3214 = vmatmul.mubr.f32.gmra.mrb[94].mxu1 %v3058_v35  ;;  %v3251_v35 = vld [vmem:[%s24847_s7 + $0x2f8] sm:$0xff] }
 0x511   :  { %3493 = vmatprep.mubr.f32.mxu1 %v24943_v36  ;;  %v16328_v30 = vpack.c.bf16 %v3251_v35, %v3250_v21 }
 0x513   :  { %16329 = vmatprep.subr.bf16.mxu0 %v16328_v30  ;;  %v3791_v30 = vld [vmem:[%s24843_s3 + $0x240] sm:$0xff] }
 0x514   :  { %3494 = vmatmul.mubr.f32.vlgmr.msra.gmra.mrb[96].mxu1 %v3413_v20  ;;  %16331 = vmatpush3.bf16.msra.mxu0 %v16330_v13  ;;  %v3421_v20 = vld [vmem:[%s24843_s3 + $0x1c0] sm:$0xff] }
 0x515   :  { %16399 = vmatpush1.bf16.msra.mxu1 %v20243_v48  ;;  %3499 = vmatprep.mubr.f32.mxu1 %v24943_v36 }
 0x516   :  { %16401 = vmatprep.subr.bf16.mxu1 %v20248_v6 }
 0x518   :  { %3500 = vmatmul.mubr.f32.gmra.mrb[98].mxu1 %v3414_v55  ;;  %v3606_v55 = vld [vmem:[%s24847_s7 + $0x380] sm:$0xff] }
 0x519   :  { %16403 = vmatpush1.bf16.msra.mxu1 %v20254_v25  ;;  %3505 = vmatprep.mubr.f32.mxu1 %v24943_v36  ;;  %v16364_v58 = vpack.c.bf16 %v3607_v57, %v3606_v55 }
 0x51a   :  { %16405 = vmatprep.subr.bf16.mxu1 %v20264_v63 }
 0x51b   :  { %16365 = vmatprep.subr.bf16.mxu0 %v16364_v58 }
 0x51c   :  { %3506 = vmatmul.mubr.f32.gmra.mrb[100].mxu1 %v3415_v2  ;;  %v3786_v2 = vld [vmem:[%s24843_s3 + $0x218] sm:$0xff] }
 0x51d   :  { %16407 = vmatpush1.bf16.msra.mxu1 %v20272_v27  ;;  %3511 = vmatprep.mubr.f32.mxu1 %v24943_v36 }
 0x51e   :  { %16409 = vmatprep.subr.bf16.mxu1 %v20280_v22 }
 0x520   :  { %3512 = vmatmul.mubr.f32.gmra.mrb[102].mxu1 %v3416_v40 }
 0x521   :  { %16411 = vmatpush1.bf16.msra.mxu1 %v20289_v38  ;;  %3517 = vmatprep.mubr.f32.mxu1 %v24943_v36 }
 0x522   :  { %16413 = vmatprep.subr.bf16.mxu1 %v20299_v52 }
 0x524   :  { %3518 = vmatmul.mubr.f32.gmra.mrb[104].mxu1 %v3417_v44 }
 0x525   :  { %16415 = vmatpush1.bf16.msra.mxu1 %v20311_v60  ;;  %3523 = vmatprep.mubr.f32.mxu1 %v24943_v36 }
 0x526   :  { %16417 = vmatprep.subr.bf16.mxu1 %v20318_v12 }
 0x528   :  { %3524 = vmatmul.mubr.f32.gmra.mrb[106].mxu1 %v3418_v61 }
 0x529   :  { %16419 = vmatpush1.bf16.msra.mxu1 %v20326_v42  ;;  %3529 = vmatprep.mubr.f32.mxu1 %v24943_v36 }
 0x52a   :  { %16421 = vmatprep.subr.bf16.mxu1 %v20341_v33 }
 0x52c   :  { %3530 = vmatmul.mubr.f32.gmra.mrb[108].mxu1 %v3419_v4 }
 0x52d   :  { %16423 = vmatpush1.bf16.msra.mxu1 %v20348_v47  ;;  %3535 = vmatprep.mubr.f32.mxu1 %v24943_v36 }
 0x52e   :  { %16425 = vmatprep.subr.bf16.mxu1 %v20365_v23 }
 0x530   :  { %3536 = vmatmul.mubr.f32.gmra.mrb[110].mxu1 %v3420_v0 }
 0x531   :  { %16427 = vmatpush1.bf16.msra.mxu1 %v20377_v50  ;;  %3541 = vmatprep.mubr.f32.mxu1 %v24943_v36 }
 0x532   :  { %16461 = vmatprep.subr.bf16.mxu1 %v20235_v11 }
 0x534   :  { %3542 = vmatmul.mubr.f32.gmra.mrb[112].mxu1 %v3421_v20 }
 0x535   :  { %3547 = vmatprep.mubr.f32.mxu1 %v24943_v36 }
 0x538   :  { %3548 = vmatmul.mubr.f32.gmra.mrb[114].mxu1 %v3422_v9 }
 0x539   :  { %3553 = vmatprep.mubr.f32.mxu1 %v24943_v36 }
 0x53c   :  { %3554 = vmatmul.mubr.f32.gmra.mrb[116].mxu1 %v3423_v10  ;;  %v3792_v10 = vld [vmem:[%s24843_s3 + $0x248] sm:$0xff] }
 0x53d   :  { %3559 = vmatprep.mubr.f32.mxu1 %v24943_v36 }
 0x540   :  { %3560 = vmatmul.mubr.f32.gmra.mrb[118].mxu1 %v3424_v62 }
 0x541   :  { %3565 = vmatprep.mubr.f32.mxu1 %v24943_v36 }
 0x544   :  { %3566 = vmatmul.mubr.f32.gmra.mrb[120].mxu1 %v3425_v16 }
 0x545   :  { %3571 = vmatprep.mubr.f32.mxu1 %v24943_v36 }
 0x548   :  { %3572 = vmatmul.mubr.f32.gmra.mrb[122].mxu1 %v3426_v56 }
 0x549   :  { %3577 = vmatprep.mubr.f32.mxu1 %v24943_v36 }
 0x54c   :  { %3578 = vmatmul.mubr.f32.gmra.mrb[124].mxu1 %v3427_v29 }
 0x54d   :  { %3583 = vmatprep.mubr.f32.mxu1 %v24943_v36 }
 0x550   :  { %3584 = vmatmul.mubr.f32.gmra.mrb[126].mxu1 %v3428_v37  ;;  %v3793_v37 = vld [vmem:[%s24843_s3 + $0x250] sm:$0xff] }
 0x551   :  { %3863 = vmatprep.mubr.f32.mxu1 %v24943_v36 }
 0x554   :  { %3864 = vmatmul.mubr.f32.vlgmr.msra.gmra.mrb[128].mxu1 %v3783_v18 }
 0x555   :  { %16463 = vmatpush1.bf16.msra.mxu1 %v20243_v48  ;;  %3869 = vmatprep.mubr.f32.mxu1 %v24943_v36 }
 0x556   :  { %16465 = vmatprep.subr.bf16.mxu1 %v20248_v6 }
 0x558   :  { %3870 = vmatmul.mubr.f32.gmra.mrb[130].mxu1 %v3784_v8 }
 0x559   :  { %16467 = vmatpush1.bf16.msra.mxu1 %v20254_v25  ;;  %3875 = vmatprep.mubr.f32.mxu1 %v24943_v36 }
 0x55a   :  { %16469 = vmatprep.subr.bf16.mxu1 %v20264_v63 }
 0x55c   :  { %3876 = vmatmul.mubr.f32.gmra.mrb[132].mxu1 %v3785_v24 }
 0x55d   :  { %16471 = vmatpush1.bf16.msra.mxu1 %v20272_v27  ;;  %3881 = vmatprep.mubr.f32.mxu1 %v24943_v36 }
 0x55e   :  { %16473 = vmatprep.subr.bf16.mxu1 %v20280_v22 }
 0x560   :  { %3882 = vmatmul.mubr.f32.gmra.mrb[134].mxu1 %v3786_v2 }
 0x561   :  { %16475 = vmatpush1.bf16.msra.mxu1 %v20289_v38  ;;  %3887 = vmatprep.mubr.f32.mxu1 %v24943_v36 }
 0x562   :  { %16477 = vmatprep.subr.bf16.mxu1 %v20299_v52 }
 0x564   :  { %3888 = vmatmul.mubr.f32.gmra.mrb[136].mxu1 %v3787_v41 }
 0x565   :  { %16479 = vmatpush1.bf16.msra.mxu1 %v20311_v60  ;;  %3893 = vmatprep.mubr.f32.mxu1 %v24943_v36 }
 0x566   :  { %16481 = vmatprep.subr.bf16.mxu1 %v20318_v12 }
 0x567   :  { %v12460_v51 = vpop.f32.mrb[32].mxu1  ;;  %v12540_v17 = vpop.f32.mrb[48].mxu0 }
 0x568   :  { %v12461_v31 = vpop.f32.mrb[33].mxu1  ;;  %v12541_v14 = vpop.f32.mrb[49].mxu0  ;;  %3894 = vmatmul.mubr.f32.gmra.mrb[138].mxu1 %v3788_v19 }
 0x569   :  { %v12462_v40 = vadd.f32 %v12461_v31, %v12460_v51  ;;  %v12542_v28 = vadd.f32 %v12541_v14, %v12540_v17  ;;  %16483 = vmatpush1.bf16.msra.mxu1 %v20326_v42  ;;  %3899 = vmatprep.mubr.f32.mxu1 %v24943_v36  ;;  %v3794_v17 = vld [vmem:[%s24843_s3 + $0x258] sm:$0xff] }
 0x56a   :  { %16485 = vmatprep.subr.bf16.mxu1 %v20341_v33 }
 0x56b   :  { %v21000_v34 = vadd.f32 %v12542_v28, %v12462_v40  ;;  %v12463_v49 = vpop.f32.mrb[34].mxu1  ;;  %v12543_v26 = vpop.f32.mrb[50].mxu0 }
 0x56c   :  { %v12464_v46 = vpop.f32.mrb[35].mxu1  ;;  %v12544_v44 = vpop.f32.mrb[51].mxu0  ;;  %3900 = vmatmul.mubr.f32.gmra.mrb[140].mxu1 %v3789_v53 }
 0x56d   :  { %v12465_v59 = vadd.f32 %v12464_v46, %v12463_v49  ;;  %v12545_v1 = vadd.f32 %v12544_v44, %v12543_v26  ;;  %16487 = vmatpush1.bf16.msra.mxu1 %v20348_v47  ;;  %3905 = vmatprep.mubr.f32.mxu1 %v24943_v36  ;;  %v3795_v46 = vld [vmem:[%s24843_s3 + $0x260] sm:$0xff] }
 0x56e   :  { %16489 = vmatprep.subr.bf16.mxu1 %v20365_v23 }
 0x56f   :  { %v21008_v45 = vadd.f32 %v12545_v1, %v12465_v59  ;;  %v12466_v3 = vpop.f32.mrb[36].mxu1  ;;  %v12546_v5 = vpop.f32.mrb[52].mxu0 }
 0x570   :  { %v12467_v61 = vpop.f32.mrb[37].mxu1  ;;  %v12547_v54 = vpop.f32.mrb[53].mxu0  ;;  %3906 = vmatmul.mubr.f32.gmra.mrb[142].mxu1 %v3790_v43 }
 0x571   :  { %v12468_v21 = vadd.f32 %v12467_v61, %v12466_v3  ;;  %v12548_v35 = vadd.f32 %v12547_v54, %v12546_v5  ;;  %16491 = vmatpush1.bf16.msra.mxu1 %v20377_v50  ;;  %3911 = vmatprep.mubr.f32.mxu1 %v24943_v36  ;;  %v3796_v54 = vld [vmem:[%s24843_s3 + $0x268] sm:$0xff] }
 0x572   :  { %16525 = vmatprep.subr.bf16.mxu1 %v20235_v11 }
 0x573   :  { %v21016_v7 = vadd.f32 %v12548_v35, %v12468_v21  ;;  %v12469_v39 = vpop.f32.mrb[38].mxu1  ;;  %v12549_v4 = vpop.f32.mrb[54].mxu0 }
 0x574   :  { %v12470_v13 = vpop.f32.mrb[39].mxu1  ;;  %v12550_v0 = vpop.f32.mrb[55].mxu0  ;;  %3912 = vmatmul.mubr.f32.gmra.mrb[144].mxu1 %v3791_v30 }
 0x575   :  { %v12471_v20 = vadd.f32 %v12470_v13, %v12469_v39  ;;  %v12551_v9 = vadd.f32 %v12550_v0, %v12549_v4  ;;  %3917 = vmatprep.mubr.f32.mxu1 %v24943_v36 }
 0x577   :  { %v21022_v62 = vadd.f32 %v12551_v9, %v12471_v20  ;;  %v12472_v16 = vpop.f32.mrb[40].mxu1  ;;  %v12552_v56 = vpop.f32.mrb[56].mxu0  ;;  %v3797_v20 = vld [vmem:[%s24843_s3 + $0x270] sm:$0xff] }
 0x578   :  { %v12473_v29 = vpop.f32.mrb[41].mxu1  ;;  %v12553_v55 = vpop.f32.mrb[57].mxu0  ;;  %3918 = vmatmul.mubr.f32.gmra.mrb[146].mxu1 %v3792_v10 }
 0x579   :  { %v12474_v57 = vadd.f32 %v12473_v29, %v12472_v16  ;;  %v12554_v58 = vadd.f32 %v12553_v55, %v12552_v56  ;;  %3923 = vmatprep.mubr.f32.mxu1 %v24943_v36 }
 0x57b   :  { %v21028_v18 = vadd.f32 %v12554_v58, %v12474_v57  ;;  %v12475_v8 = vpop.f32.mrb[42].mxu1  ;;  %v12555_v24 = vpop.f32.mrb[58].mxu0  ;;  %v3798_v58 = vld [vmem:[%s24843_s3 + $0x278] sm:$0xff] }
 0x57c   :  { %v12476_v2 = vpop.f32.mrb[43].mxu1  ;;  %v12556_v41 = vpop.f32.mrb[59].mxu0  ;;  %3924 = vmatmul.mubr.f32.gmra.mrb[148].mxu1 %v3793_v37 }
 0x57d   :  { %v12477_v19 = vadd.f32 %v12476_v2, %v12475_v8  ;;  %v12557_v51 = vadd.f32 %v12556_v41, %v12555_v24  ;;  %3929 = vmatprep.mubr.f32.mxu1 %v24943_v36 }
 0x57f   :  { %v21034_v31 = vadd.f32 %v12557_v51, %v12477_v19  ;;  %v12478_v14 = vpop.f32.mrb[44].mxu1  ;;  %v12558_v40 = vpop.f32.mrb[60].mxu0 }
 0x580   :  { %v12479_v28 = vpop.f32.mrb[45].mxu1  ;;  %v12559_v53 = vpop.f32.mrb[61].mxu0  ;;  %3930 = vmatmul.mubr.f32.gmra.mrb[150].mxu1 %v3794_v17  ;;  %v4153_v17 = vld [vmem:[%s24843_s3 + $0x280] sm:$0xff] }
 0x581   :  { %v12480_v49 = vadd.f32 %v12479_v28, %v12478_v14  ;;  %v12560_v26 = vadd.f32 %v12559_v53, %v12558_v40  ;;  %3935 = vmatprep.mubr.f32.mxu1 %v24943_v36 }
 0x583   :  { %v21040_v44 = vadd.f32 %v12560_v26, %v12480_v49  ;;  %v12481_v59 = vpop.f32.mrb[46].mxu1  ;;  %v12561_v1 = vpop.f32.mrb[62].mxu0 }
 0x584   :  { %v12482_v43 = vpop.f32.mrb[47].mxu1  ;;  %v12562_v3 = vpop.f32.mrb[63].mxu0  ;;  %3936 = vmatmul.mubr.f32.gmra.mrb[152].mxu1 %v3795_v46 }
 0x585   :  { %v12483_v5 = vadd.f32 %v12482_v43, %v12481_v59  ;;  %v12563_v61 = vadd.f32 %v12562_v3, %v12561_v1  ;;  %3941 = vmatprep.mubr.f32.mxu1 %v24943_v36  ;;  %v4154_v59 = vld [vmem:[%s24843_s3 + $0x288] sm:$0xff] }
 0x587   :  { %v21046_v21 = vadd.f32 %v12563_v61, %v12483_v5  ;;  %v12484_v35 = vpop.f32.mrb[48].mxu1  ;;  %v12564_v30 = vpop.f32.mrb[64].mxu0 }
 0x588   :  { %v12485_v39 = vpop.f32.mrb[49].mxu1  ;;  %v12565_v4 = vpop.f32.mrb[65].mxu0  ;;  %3942 = vmatmul.mubr.f32.gmra.mrb[154].mxu1 %v3796_v54 }
 0x589   :  { %v12486_v13 = vadd.f32 %v12485_v39, %v12484_v35  ;;  %v12566_v0 = vadd.f32 %v12565_v4, %v12564_v30  ;;  %3947 = vmatprep.mubr.f32.mxu1 %v24943_v36  ;;  %v4155_v30 = vld [vmem:[%s24843_s3 + $0x290] sm:$0xff] }
 0x58b   :  { %v21052_v9 = vadd.f32 %v12566_v0, %v12486_v13  ;;  %v12487_v10 = vpop.f32.mrb[50].mxu1  ;;  %v12567_v16 = vpop.f32.mrb[66].mxu0 }
 0x58c   :  { %v12488_v56 = vpop.f32.mrb[51].mxu1  ;;  %v12568_v29 = vpop.f32.mrb[67].mxu0  ;;  %3948 = vmatmul.mubr.f32.gmra.mrb[156].mxu1 %v3797_v20 }
 0x58d   :  { %v12489_v55 = vadd.f32 %v12488_v56, %v12487_v10  ;;  %v12569_v57 = vadd.f32 %v12568_v29, %v12567_v16  ;;  %3953 = vmatprep.mubr.f32.mxu1 %v24943_v36  ;;  %v4156_v56 = vld [vmem:[%s24843_s3 + $0x298] sm:$0xff] }
 0x58f   :  { %v21058_v37 = vadd.f32 %v12569_v57, %v12489_v55  ;;  %v12490_v8 = vpop.f32.mrb[52].mxu1  ;;  %v12570_v24 = vpop.f32.mrb[68].mxu0 }
 0x590   :  { %v12491_v2 = vpop.f32.mrb[53].mxu1  ;;  %v12571_v41 = vpop.f32.mrb[69].mxu0  ;;  %3954 = vmatmul.mubr.f32.gmra.mrb[158].mxu1 %v3798_v58 }
 0x591   :  { %v12492_v19 = vadd.f32 %v12491_v2, %v12490_v8  ;;  %v12572_v51 = vadd.f32 %v12571_v41, %v12570_v24  ;;  %4233 = vmatprep.mubr.f32.mxu1 %v24943_v36  ;;  %v4157_v41 = vld [vmem:[%s24843_s3 + $0x2a0] sm:$0xff] }
 0x593   :  { %v21064_v14 = vadd.f32 %v12572_v51, %v12492_v19  ;;  %v12493_v40 = vpop.f32.mrb[54].mxu1  ;;  %v12573_v28 = vpop.f32.mrb[70].mxu0 }
 0x594   :  { %v12494_v53 = vpop.f32.mrb[55].mxu1  ;;  %v12574_v49 = vpop.f32.mrb[71].mxu0  ;;  %4234 = vmatmul.mubr.f32.vlgmr.msra.gmra.mrb[160].mxu1 %v4153_v17 }
 0x595   :  { %v12495_v26 = vadd.f32 %v12494_v53, %v12493_v40  ;;  %v12575_v46 = vadd.f32 %v12574_v49, %v12573_v28  ;;  %16527 = vmatpush1.bf16.msra.mxu1 %v20243_v48  ;;  %4239 = vmatprep.mubr.f32.mxu1 %v24943_v36  ;;  %v3590_v53 = vld [vmem:[%s24847_s7 + $0x300] sm:$0xff]  ;;  %v3591_v49 = vld [vmem:[%s24847_s7 + $0x308] sm:$0xff] }
 0x596   :  { %16529 = vmatprep.subr.bf16.mxu1 %v20248_v6 }
 0x597   :  { %v21072_v1 = vadd.f32 %v12575_v46, %v12495_v26  ;;  %v12496_v43 = vpop.f32.mrb[56].mxu1  ;;  %v12576_v3 = vpop.f32.mrb[72].mxu0 }
 0x598   :  { %v12497_v5 = vpop.f32.mrb[57].mxu1  ;;  %v12577_v61 = vpop.f32.mrb[73].mxu0  ;;  %4240 = vmatmul.mubr.f32.gmra.mrb[162].mxu1 %v4154_v59  ;;  %v4158_v59 = vld [vmem:[%s24843_s3 + $0x2a8] sm:$0xff] }
 0x599   :  { %v12498_v54 = vadd.f32 %v12497_v5, %v12496_v43  ;;  %v12578_v35 = vadd.f32 %v12577_v61, %v12576_v3  ;;  %16531 = vmatpush1.bf16.msra.mxu1 %v20254_v25  ;;  %4245 = vmatprep.mubr.f32.mxu1 %v24943_v36  ;;  %v3608_v43 = vld [vmem:[%s24847_s7 + $0x390] sm:$0xff]  ;;  %v3609_v3 = vld [vmem:[%s24847_s7 + $0x398] sm:$0xff] }
 0x59a   :  { %16533 = vmatprep.subr.bf16.mxu1 %v20264_v63 }
 0x59b   :  { %v21080_v39 = vadd.f32 %v12578_v35, %v12498_v54  ;;  %v12499_v4 = vpop.f32.mrb[58].mxu1  ;;  %v12579_v13 = vpop.f32.mrb[74].mxu0  ;;  %v16366_v54 = vpack.c.bf16 %v3591_v49, %v3590_v53  ;;  %v3596_v53 = vld [vmem:[%s24847_s7 + $0x330] sm:$0xff]  ;;  %v3597_v49 = vld [vmem:[%s24847_s7 + $0x338] sm:$0xff] }
 0x59c   :  { %v12500_v0 = vpop.f32.mrb[59].mxu1  ;;  %v12580_v20 = vpop.f32.mrb[75].mxu0  ;;  %4246 = vmatmul.mubr.f32.gmra.mrb[164].mxu1 %v4155_v30  ;;  %v16368_v30 = vpack.c.bf16 %v3609_v3, %v3608_v43  ;;  %v16378_v3 = vpack.c.bf16 %v3597_v49, %v3596_v53  ;;  %v4164_v53 = vld [vmem:[%s24843_s3 + $0x2d8] sm:$0xff]  ;;  %v3620_v49 = vld [vmem:[%s24847_s7 + $0x3f0] sm:$0xff] }
 0x59d   :  { %v12501_v10 = vadd.f32 %v12500_v0, %v12499_v4  ;;  %v12581_v16 = vadd.f32 %v12580_v20, %v12579_v13  ;;  %16535 = vmatpush1.bf16.msra.mxu1 %v20272_v27  ;;  %4251 = vmatprep.mubr.f32.mxu1 %v24943_v36  ;;  %v3592_v4 = vld [vmem:[%s24847_s7 + $0x310] sm:$0xff]  ;;  %v3593_v13 = vld [vmem:[%s24847_s7 + $0x318] sm:$0xff]  ;;  %v3610_v20 = vld [vmem:[%s24847_s7 + $0x3a0] sm:$0xff] }
 0x59e   :  { %16537 = vmatprep.subr.bf16.mxu1 %v20280_v22  ;;  %v4159_v0 = vld [vmem:[%s24843_s3 + $0x2b0] sm:$0xff] }
 0x59f   :  { %v21088_v29 = vadd.f32 %v12581_v16, %v12501_v10  ;;  %v12502_v55 = vpop.f32.mrb[60].mxu1  ;;  %v12582_v57 = vpop.f32.mrb[76].mxu0  ;;  %v3611_v10 = vld [vmem:[%s24847_s7 + $0x3a8] sm:$0xff] }
 0x5a0   :  { %v12503_v58 = vpop.f32.mrb[61].mxu1  ;;  %v12583_v8 = vpop.f32.mrb[77].mxu0  ;;  %4252 = vmatmul.mubr.f32.gmra.mrb[166].mxu1 %v4156_v56  ;;  %v16370_v56 = vpack.c.bf16 %v3593_v13, %v3592_v4  ;;  %v4162_v4 = vld [vmem:[%s24843_s3 + $0x2c8] sm:$0xff]  ;;  %v3616_v13 = vld [vmem:[%s24847_s7 + $0x3d0] sm:$0xff] }
 0x5a1   :  { %v12504_v24 = vadd.f32 %v12503_v58, %v12502_v55  ;;  %v12584_v2 = vadd.f32 %v12583_v8, %v12582_v57  ;;  %16539 = vmatpush1.bf16.msra.mxu1 %v20289_v38  ;;  %4257 = vmatprep.mubr.f32.mxu1 %v24943_v36  ;;  %v16372_v57 = vpack.c.bf16 %v3611_v10, %v3610_v20  ;;  %v3594_v58 = vld [vmem:[%s24847_s7 + $0x320] sm:$0xff]  ;;  %v3595_v8 = vld [vmem:[%s24847_s7 + $0x328] sm:$0xff] }
 0x5a2   :  { %16541 = vmatprep.subr.bf16.mxu1 %v20299_v52 }
 0x5a3   :  { %v21096_v19 = vadd.f32 %v12584_v2, %v12504_v24  ;;  %v12505_v51 = vpop.f32.mrb[62].mxu1  ;;  %v12585_v17 = vpop.f32.mrb[78].mxu0  ;;  %v4160_v24 = vld [vmem:[%s24843_s3 + $0x2b8] sm:$0xff]  ;;  %v3612_v2 = vld [vmem:[%s24847_s7 + $0x3b0] sm:$0xff] }
 0x5a4   :  { %v12506_v40 = vpop.f32.mrb[63].mxu1  ;;  %v12586_v28 = vpop.f32.mrb[79].mxu0  ;;  %4258 = vmatmul.mubr.f32.gmra.mrb[168].mxu1 %v4157_v41  ;;  %v3613_v41 = vld [vmem:[%s24847_s7 + $0x3b8] sm:$0xff] }
 0x5a5   :  { %v12507_v26 = vadd.f32 %v12506_v40, %v12505_v51  ;;  %v12587_v46 = vadd.f32 %v12586_v28, %v12585_v17  ;;  %16543 = vmatpush1.bf16.msra.mxu1 %v20311_v60  ;;  %4263 = vmatprep.mubr.f32.mxu1 %v24943_v36  ;;  %v16374_v17 = vpack.c.bf16 %v3595_v8, %v3594_v58  ;;  %v4163_v58 = vld [vmem:[%s24843_s3 + $0x2d0] sm:$0xff]  ;;  %v3618_v8 = vld [vmem:[%s24847_s7 + $0x3e0] sm:$0xff] }
 0x5a6   :  { %16545 = vmatprep.subr.bf16.mxu1 %v20318_v12  ;;  %v16376_v28 = vpack.c.bf16 %v3613_v41, %v3612_v2 }
 0x5a7   :  { %v21116_v5 = vadd.f32 %v12587_v46, %v12507_v26  ;;  %v3125_v61 = vpop.f32.mrb[64].mxu1  ;;  %v4161_v26 = vld [vmem:[%s24843_s3 + $0x2c0] sm:$0xff] }
 0x5a8   :  { %v3127_v35 = vpop.f32.mrb[65].mxu1  ;;  %4264 = vmatmul.mubr.f32.gmra.mrb[170].mxu1 %v4158_v59  ;;  %v3614_v46 = vld [vmem:[%s24847_s7 + $0x3c0] sm:$0xff]  ;;  %v3615_v59 = vld [vmem:[%s24847_s7 + $0x3c8] sm:$0xff] }
 0x5a9   :  { %16547 = vmatpush1.bf16.msra.mxu1 %v20326_v42  ;;  %3316 = vmatprep.mubr.f32.mxu0 %v3127_v35  ;;  %v3598_v35 = vld [vmem:[%s24847_s7 + $0x340] sm:$0xff] }
 0x5aa   :  { %16549 = vmatprep.subr.bf16.mxu1 %v20341_v33  ;;  %3317 = vmatmul.mubr.f32.vlgmr.msra.gmra.mrb[80].mxu0 %v3125_v61 }
 0x5ab   :  { %v3131_v16 = vpop.f32.mrb[66].mxu1  ;;  %4269 = vmatprep.mubr.f32.mxu1 %v24943_v36  ;;  %16367 = vmatpush3.bf16.msra.mxu0 %v16366_v54  ;;  %v16380_v54 = vpack.c.bf16 %v3615_v59, %v3614_v46 }
 0x5ac   :  { %v3133_v55 = vpop.f32.mrb[67].mxu1  ;;  %4270 = vmatmul.mubr.f32.gmra.mrb[172].mxu1 %v4159_v0  ;;  %16369 = vmatprep.subr.bf16.mxu0 %v16368_v30  ;;  %v3599_v30 = vld [vmem:[%s24847_s7 + $0x348] sm:$0xff]  ;;  %v3617_v0 = vld [vmem:[%s24847_s7 + $0x3d8] sm:$0xff] }
 0x5ad   :  { %16551 = vmatpush1.bf16.msra.mxu1 %v20348_v47  ;;  %3321 = vmatprep.mubr.f32.mxu0 %v3133_v55  ;;  %v16382_v10 = vpack.c.bf16 %v3599_v30, %v3598_v35  ;;  %v3600_v55 = vld [vmem:[%s24847_s7 + $0x350] sm:$0xff]  ;;  %v4165_v35 = vld [vmem:[%s24843_s3 + $0x2e0] sm:$0xff] }
 0x5ae   :  { %16553 = vmatprep.subr.bf16.mxu1 %v20365_v23  ;;  %3322 = vmatmul.mubr.f32.gmra.mrb[82].mxu0 %v3131_v16  ;;  %v3976_v30 = vld [vmem:[%s24847_s7 + $0x480] sm:$0xff] }
 0x5af   :  { %v3137_v51 = vpop.f32.mrb[68].mxu1  ;;  %4275 = vmatprep.mubr.f32.mxu1 %v24943_v36  ;;  %16371 = vmatpush3.bf16.msra.mxu0 %v16370_v56  ;;  %v16384_v56 = vpack.c.bf16 %v3617_v0, %v3616_v13 }
 0x5b0   :  { %v3139_v40 = vpop.f32.mrb[69].mxu1  ;;  %4276 = vmatmul.mubr.f32.gmra.mrb[174].mxu1 %v4160_v24  ;;  %16373 = vmatprep.subr.bf16.mxu0 %v16372_v57  ;;  %v3601_v57 = vld [vmem:[%s24847_s7 + $0x358] sm:$0xff]  ;;  %v3619_v24 = vld [vmem:[%s24847_s7 + $0x3e8] sm:$0xff] }
 0x5b1   :  { %16555 = vmatpush1.bf16.msra.mxu1 %v20377_v50  ;;  %3326 = vmatprep.mubr.f32.mxu0 %v3139_v40  ;;  %v16386_v41 = vpack.c.bf16 %v3601_v57, %v3600_v55  ;;  %v3602_v40 = vld [vmem:[%s24847_s7 + $0x360] sm:$0xff]  ;;  %v4167_v57 = vld [vmem:[%s24843_s3 + $0x2f0] sm:$0xff] }
 0x5b2   :  { %16589 = vmatprep.subr.bf16.mxu1 %v20235_v11  ;;  %3327 = vmatmul.mubr.f32.gmra.mrb[84].mxu0 %v3137_v51 }
 0x5b3   :  { %v3143_v43 = vpop.f32.mrb[70].mxu1  ;;  %4281 = vmatprep.mubr.f32.mxu1 %v24943_v36  ;;  %16375 = vmatpush3.bf16.msra.mxu0 %v16374_v17  ;;  %v16388_v17 = vpack.c.bf16 %v3619_v24, %v3618_v8  ;;  %v4168_v24 = vld [vmem:[%s24843_s3 + $0x2f8] sm:$0xff] }
 0x5b4   :  { %v3145_v61 = vpop.f32.mrb[71].mxu1  ;;  %4282 = vmatmul.mubr.f32.gmra.mrb[176].mxu1 %v4161_v26  ;;  %16377 = vmatprep.subr.bf16.mxu0 %v16376_v28  ;;  %v3603_v28 = vld [vmem:[%s24847_s7 + $0x368] sm:$0xff]  ;;  %v3621_v26 = vld [vmem:[%s24847_s7 + $0x3f8] sm:$0xff] }
 0x5b5   :  { %3331 = vmatprep.mubr.f32.mxu0 %v3145_v61  ;;  %4287 = vmatprep.mubr.f32.mxu1 %v24943_v36  ;;  %v16390_v59 = vpack.c.bf16 %v3603_v28, %v3602_v40  ;;  %v3604_v61 = vld [vmem:[%s24847_s7 + $0x370] sm:$0xff]  ;;  %v4524_v28 = vld [vmem:[%s24843_s3 + $0x308] sm:$0xff] }
 0x5b6   :  { %3332 = vmatmul.mubr.f32.gmra.mrb[86].mxu0 %v3143_v43 }
 0x5b7   :  { %v3149_v20 = vpop.f32.mrb[72].mxu1  ;;  %16379 = vmatpush3.bf16.msra.mxu0 %v16378_v3  ;;  %v16392_v3 = vpack.c.bf16 %v3621_v26, %v3620_v49  ;;  %v4525_v26 = vld [vmem:[%s24843_s3 + $0x310] sm:$0xff] }
 0x5b8   :  { %v3151_v16 = vpop.f32.mrb[73].mxu1  ;;  %4288 = vmatmul.mubr.f32.gmra.mrb[178].mxu1 %v4162_v4  ;;  %16381 = vmatprep.subr.bf16.mxu0 %v16380_v54  ;;  %v3605_v54 = vld [vmem:[%s24847_s7 + $0x378] sm:$0xff]  ;;  %v3977_v4 = vld [vmem:[%s24847_s7 + $0x488] sm:$0xff] }
 0x5b9   :  { %3336 = vmatprep.mubr.f32.mxu0 %v3151_v16  ;;  %4293 = vmatprep.mubr.f32.mxu1 %v24943_v36  ;;  %v16394_v0 = vpack.c.bf16 %v3605_v54, %v3604_v61  ;;  %v4166_v16 = vld [vmem:[%s24843_s3 + $0x2e8] sm:$0xff]  ;;  %v4527_v54 = vld [vmem:[%s24843_s3 + $0x320] sm:$0xff] }
 0x5ba   :  { %3337 = vmatmul.mubr.f32.gmra.mrb[88].mxu0 %v3149_v20 }
 0x5bb   :  { %v3155_v2 = vpop.f32.mrb[74].mxu1  ;;  %16383 = vmatpush3.bf16.msra.mxu0 %v16382_v10  ;;  %v16428_v10 = vpack.c.bf16 %v3977_v4, %v3976_v30  ;;  %v3960_v4 = vld [vmem:[%s24847_s7 + $0x400] sm:$0xff] }
 0x5bc   :  { %v3157_v51 = vpop.f32.mrb[75].mxu1  ;;  %4294 = vmatmul.mubr.f32.gmra.mrb[180].mxu1 %v4163_v58  ;;  %16385 = vmatprep.subr.bf16.mxu0 %v16384_v56 }
 0x5bd   :  { %3341 = vmatprep.mubr.f32.mxu0 %v3157_v51  ;;  %4299 = vmatprep.mubr.f32.mxu1 %v24943_v36  ;;  %v4523_v51 = vld [vmem:[%s24843_s3 + $0x300] sm:$0xff] }
 0x5be   :  { %3342 = vmatmul.mubr.f32.gmra.mrb[90].mxu0 %v3155_v2 }
 0x5bf   :  { %v3161_v46 = vpop.f32.mrb[76].mxu1  ;;  %16387 = vmatpush3.bf16.msra.mxu0 %v16386_v41 }
 0x5c0   :  { %v3163_v43 = vpop.f32.mrb[77].mxu1  ;;  %4300 = vmatmul.mubr.f32.gmra.mrb[182].mxu1 %v4164_v53  ;;  %16389 = vmatprep.subr.bf16.mxu0 %v16388_v17 }
 0x5c1   :  { %3346 = vmatprep.mubr.f32.mxu0 %v3163_v43  ;;  %4305 = vmatprep.mubr.f32.mxu1 %v24943_v36  ;;  %v4526_v43 = vld [vmem:[%s24843_s3 + $0x318] sm:$0xff] }
 0x5c2   :  { %3347 = vmatmul.mubr.f32.gmra.mrb[92].mxu0 %v3161_v46 }
 0x5c3   :  { %v3167_v13 = vpop.f32.mrb[78].mxu1  ;;  %16391 = vmatpush3.bf16.msra.mxu0 %v16390_v59 }
 0x5c4   :  { %v3169_v20 = vpop.f32.mrb[79].mxu1  ;;  %4306 = vmatmul.mubr.f32.gmra.mrb[184].mxu1 %v4165_v35  ;;  %16393 = vmatprep.subr.bf16.mxu0 %v16392_v3 }
 0x5c5   :  { %3351 = vmatprep.mubr.f32.mxu0 %v3169_v20  ;;  %4311 = vmatprep.mubr.f32.mxu1 %v24943_v36  ;;  %v3978_v20 = vld [vmem:[%s24847_s7 + $0x490] sm:$0xff] }
 0x5c6   :  { %3352 = vmatmul.mubr.f32.gmra.mrb[94].mxu0 %v3167_v13  ;;  %v3961_v13 = vld [vmem:[%s24847_s7 + $0x408] sm:$0xff] }
 0x5c7   :  { %v3173_v56 = vpop.f32.mrb[80].mxu1  ;;  %16395 = vmatpush3.bf16.msra.mxu0 %v16394_v0  ;;  %v4528_v0 = vld [vmem:[%s24843_s3 + $0x328] sm:$0xff] }
 0x5c8   :  { %v3175_v55 = vpop.f32.mrb[81].mxu1  ;;  %4312 = vmatmul.mubr.f32.gmra.mrb[186].mxu1 %v4166_v16  ;;  %16429 = vmatprep.subr.bf16.mxu0 %v16428_v10  ;;  %v3979_v10 = vld [vmem:[%s24847_s7 + $0x498] sm:$0xff] }
 0x5c9   :  { %3356 = vmatprep.mubr.f32.mxu0 %v3175_v55  ;;  %4317 = vmatprep.mubr.f32.mxu1 %v24943_v36 }
 0x5ca   :  { %3357 = vmatmul.mubr.f32.gmra.mrb[96].mxu0 %v3173_v56  ;;  %v16430_v56 = vpack.c.bf16 %v3961_v13, %v3960_v4  ;;  %v4531_v4 = vld [vmem:[%s24843_s3 + $0x340] sm:$0xff] }
 0x5cb   :  { %v3179_v58 = vpop.f32.mrb[82].mxu1  ;;  %v3984_v13 = vld [vmem:[%s24847_s7 + $0x4c0] sm:$0xff] }
 0x5cc   :  { %v3181_v8 = vpop.f32.mrb[83].mxu1  ;;  %4318 = vmatmul.mubr.f32.gmra.mrb[188].mxu1 %v4167_v57  ;;  %v16432_v57 = vpack.c.bf16 %v3979_v10, %v3978_v20 }
 0x5cd   :  { %3361 = vmatprep.mubr.f32.mxu0 %v3181_v8  ;;  %4323 = vmatprep.mubr.f32.mxu1 %v24943_v36  ;;  %v3963_v8 = vld [vmem:[%s24847_s7 + $0x418] sm:$0xff] }
 0x5ce   :  { %3362 = vmatmul.mubr.f32.gmra.mrb[98].mxu0 %v3179_v58  ;;  %v3962_v58 = vld [vmem:[%s24847_s7 + $0x410] sm:$0xff] }
 0x5cf   :  { %v3185_v2 = vpop.f32.mrb[84].mxu1 }
 0x5d0   :  { %v3187_v41 = vpop.f32.mrb[85].mxu1  ;;  %4324 = vmatmul.mubr.f32.gmra.mrb[190].mxu1 %v4168_v24  ;;  %v4529_v24 = vld [vmem:[%s24843_s3 + $0x330] sm:$0xff] }
 0x5d1   :  { %3366 = vmatprep.mubr.f32.mxu0 %v3187_v41  ;;  %4603 = vmatprep.mubr.f32.mxu1 %v24943_v36  ;;  %v3981_v41 = vld [vmem:[%s24847_s7 + $0x4a8] sm:$0xff] }
 0x5d2   :  { %3367 = vmatmul.mubr.f32.gmra.mrb[100].mxu0 %v3185_v2  ;;  %v3980_v2 = vld [vmem:[%s24847_s7 + $0x4a0] sm:$0xff] }
 0x5d3   :  { %v3191_v17 = vpop.f32.mrb[86].mxu1 }
 0x5d4   :  { %v3193_v40 = vpop.f32.mrb[87].mxu1  ;;  %4604 = vmatmul.mubr.f32.vlgmr.msra.gmra.mrb[192].mxu1 %v4523_v51 }
 0x5d5   :  { %16591 = vmatpush1.bf16.msra.mxu1 %v20243_v48  ;;  %3371 = vmatprep.mubr.f32.mxu0 %v3193_v40 }
 0x5d6   :  { %16593 = vmatprep.subr.bf16.mxu1 %v20248_v6  ;;  %3372 = vmatmul.mubr.f32.gmra.mrb[102].mxu0 %v3191_v17  ;;  %v16434_v17 = vpack.c.bf16 %v3963_v8, %v3962_v58  ;;  %v3986_v58 = vld [vmem:[%s24847_s7 + $0x4d0] sm:$0xff]  ;;  %v3987_v8 = vld [vmem:[%s24847_s7 + $0x4d8] sm:$0xff] }
 0x5d7   :  { %v3197_v53 = vpop.f32.mrb[88].mxu1  ;;  %4609 = vmatprep.mubr.f32.mxu1 %v24943_v36 }
 0x5d8   :  { %v3199_v49 = vpop.f32.mrb[89].mxu1  ;;  %4610 = vmatmul.mubr.f32.gmra.mrb[194].mxu1 %v4524_v28  ;;  %v16436_v28 = vpack.c.bf16 %v3981_v41, %v3980_v2 }
 0x5d9   :  { %16595 = vmatpush1.bf16.msra.mxu1 %v20254_v25  ;;  %3376 = vmatprep.mubr.f32.mxu0 %v3199_v49  ;;  %v3965_v49 = vld [vmem:[%s24847_s7 + $0x428] sm:$0xff] }
 0x5da   :  { %16597 = vmatprep.subr.bf16.mxu1 %v20264_v63  ;;  %3377 = vmatmul.mubr.f32.gmra.mrb[104].mxu0 %v3197_v53  ;;  %v3964_v53 = vld [vmem:[%s24847_s7 + $0x420] sm:$0xff] }
 0x5db   :  { %v3203_v46 = vpop.f32.mrb[90].mxu1  ;;  %4615 = vmatprep.mubr.f32.mxu1 %v24943_v36 }
 0x5dc   :  { %v3205_v59 = vpop.f32.mrb[91].mxu1  ;;  %4616 = vmatmul.mubr.f32.gmra.mrb[196].mxu1 %v4525_v26  ;;  %v4530_v26 = vld [vmem:[%s24843_s3 + $0x338] sm:$0xff] }
 0x5dd   :  { %16599 = vmatpush1.bf16.msra.mxu1 %v20272_v27  ;;  %3381 = vmatprep.mubr.f32.mxu0 %v3205_v59  ;;  %v3983_v59 = vld [vmem:[%s24847_s7 + $0x4b8] sm:$0xff] }
 0x5de   :  { %16601 = vmatprep.subr.bf16.mxu1 %v20280_v22  ;;  %3382 = vmatmul.mubr.f32.gmra.mrb[106].mxu0 %v3203_v46  ;;  %v3982_v46 = vld [vmem:[%s24847_s7 + $0x4b0] sm:$0xff] }
 0x5df   :  { %v3209_v3 = vpop.f32.mrb[92].mxu1  ;;  %4621 = vmatprep.mubr.f32.mxu1 %v24943_v36 }
 0x5e0   :  { %v3211_v61 = vpop.f32.mrb[93].mxu1  ;;  %4622 = vmatmul.mubr.f32.gmra.mrb[198].mxu1 %v4526_v43 }
 0x5e1   :  { %16603 = vmatpush1.bf16.msra.mxu1 %v20289_v38  ;;  %3386 = vmatprep.mubr.f32.mxu0 %v3211_v61 }
 0x5e2   :  { %16605 = vmatprep.subr.bf16.mxu1 %v20299_v52  ;;  %3387 = vmatmul.mubr.f32.gmra.mrb[108].mxu0 %v3209_v3  ;;  %v16438_v3 = vpack.c.bf16 %v3965_v49, %v3964_v53  ;;  %v3988_v53 = vld [vmem:[%s24847_s7 + $0x4e0] sm:$0xff]  ;;  %v3989_v49 = vld [vmem:[%s24847_s7 + $0x4e8] sm:$0xff] }
 0x5e3   :  { %v3215_v35 = vpop.f32.mrb[94].mxu1  ;;  %4627 = vmatprep.mubr.f32.mxu1 %v24943_v36 }
 0x5e4   :  { %v3217_v30 = vpop.f32.mrb[95].mxu1  ;;  %4628 = vmatmul.mubr.f32.gmra.mrb[200].mxu1 %v4527_v54  ;;  %v16440_v54 = vpack.c.bf16 %v3983_v59, %v3982_v46 }
 0x5e5   :  { %16607 = vmatpush1.bf16.msra.mxu1 %v20311_v60  ;;  %3391 = vmatprep.mubr.f32.mxu0 %v3217_v30  ;;  %v3967_v30 = vld [vmem:[%s24847_s7 + $0x438] sm:$0xff] }
 0x5e6   :  { %16609 = vmatprep.subr.bf16.mxu1 %v20318_v12  ;;  %3392 = vmatmul.mubr.f32.gmra.mrb[110].mxu0 %v3215_v35  ;;  %v3966_v35 = vld [vmem:[%s24847_s7 + $0x430] sm:$0xff] }
 0x5e7   :  { %v3495_v16 = vpop.f32.mrb[96].mxu1  ;;  %4633 = vmatprep.mubr.f32.mxu1 %v24943_v36  ;;  %v16442_v10 = vpack.c.bf16 %v3967_v30, %v3966_v35  ;;  %v3990_v35 = vld [vmem:[%s24847_s7 + $0x4f0] sm:$0xff]  ;;  %v3991_v30 = vld [vmem:[%s24847_s7 + $0x4f8] sm:$0xff] }
 0x5e8   :  { %v3497_v55 = vpop.f32.mrb[97].mxu1  ;;  %4634 = vmatmul.mubr.f32.gmra.mrb[202].mxu1 %v4528_v0  ;;  %v3985_v0 = vld [vmem:[%s24847_s7 + $0x4c8] sm:$0xff] }
 0x5e9   :  { %16611 = vmatpush1.bf16.msra.mxu1 %v20326_v42  ;;  %3686 = vmatprep.mubr.f32.mxu0 %v3497_v55  ;;  %v3968_v55 = vld [vmem:[%s24847_s7 + $0x440] sm:$0xff] }
 0x5ea   :  { %16613 = vmatprep.subr.bf16.mxu1 %v20341_v33  ;;  %3687 = vmatmul.mubr.f32.vlgmr.msra.gmra.mrb[112].mxu0 %v3495_v16 }
 0x5eb   :  { %v3501_v51 = vpop.f32.mrb[98].mxu1  ;;  %4639 = vmatprep.mubr.f32.mxu1 %v24943_v36  ;;  %16431 = vmatpush3.bf16.msra.mxu0 %v16430_v56  ;;  %v16444_v56 = vpack.c.bf16 %v3985_v0, %v3984_v13 }
 0x5ec   :  { %v3503_v40 = vpop.f32.mrb[99].mxu1  ;;  %4640 = vmatmul.mubr.f32.gmra.mrb[204].mxu1 %v4529_v24  ;;  %16433 = vmatprep.subr.bf16.mxu0 %v16432_v57  ;;  %v3969_v57 = vld [vmem:[%s24847_s7 + $0x448] sm:$0xff] }
 0x5ed   :  { %16615 = vmatpush1.bf16.msra.mxu1 %v20348_v47  ;;  %3691 = vmatprep.mubr.f32.mxu0 %v3503_v40  ;;  %v16446_v2 = vpack.c.bf16 %v3969_v57, %v3968_v55  ;;  %v3971_v40 = vld [vmem:[%s24847_s7 + $0x458] sm:$0xff]  ;;  %v4346_v55 = vld [vmem:[%s24847_s7 + $0x580] sm:$0xff]  ;;  %v4347_v57 = vld [vmem:[%s24847_s7 + $0x588] sm:$0xff] }
 0x5ee   :  { %16617 = vmatprep.subr.bf16.mxu1 %v20365_v23  ;;  %3692 = vmatmul.mubr.f32.gmra.mrb[114].mxu0 %v3501_v51  ;;  %v16448_v51 = vpack.c.bf16 %v3987_v8, %v3986_v58 }
 0x5ef   :  { %v3507_v43 = vpop.f32.mrb[100].mxu1  ;;  %4645 = vmatprep.mubr.f32.mxu1 %v24943_v36  ;;  %16435 = vmatpush3.bf16.msra.mxu0 %v16434_v17  ;;  %v3970_v17 = vld [vmem:[%s24847_s7 + $0x450] sm:$0xff] }
 0x5f0   :  { %v3509_v61 = vpop.f32.mrb[101].mxu1  ;;  %4646 = vmatmul.mubr.f32.gmra.mrb[206].mxu1 %v4530_v26  ;;  %16437 = vmatprep.subr.bf16.mxu0 %v16436_v28  ;;  %v4533_v28 = vld [vmem:[%s24843_s3 + $0x350] sm:$0xff]  ;;  %v16450_v46 = vpack.c.bf16 %v3971_v40, %v3970_v17 }
 0x5f1   :  { %16619 = vmatpush1.bf16.msra.mxu1 %v20377_v50  ;;  %3696 = vmatprep.mubr.f32.mxu0 %v3509_v61  ;;  %v3973_v61 = vld [vmem:[%s24847_s7 + $0x468] sm:$0xff]  ;;  %v4537_v17 = vld [vmem:[%s24843_s3 + $0x370] sm:$0xff] }
 0x5f2   :  { %16653 = vmatprep.subr.bf16.mxu1 %v20235_v11  ;;  %3697 = vmatmul.mubr.f32.gmra.mrb[116].mxu0 %v3507_v43  ;;  %v4532_v11 = vld [vmem:[%s24843_s3 + $0x348] sm:$0xff]  ;;  %v16452_v43 = vpack.c.bf16 %v3989_v49, %v3988_v53  ;;  %v4538_v53 = vld [vmem:[%s24843_s3 + $0x378] sm:$0xff] }
 0x5f3   :  { %v3513_v20 = vpop.f32.mrb[102].mxu1  ;;  %4651 = vmatprep.mubr.f32.mxu1 %v24943_v36  ;;  %16439 = vmatpush3.bf16.msra.mxu0 %v16438_v3  ;;  %v3972_v3 = vld [vmem:[%s24847_s7 + $0x460] sm:$0xff] }
 0x5f4   :  { %v3515_v16 = vpop.f32.mrb[103].mxu1  ;;  %4652 = vmatmul.mubr.f32.gmra.mrb[208].mxu1 %v4531_v4  ;;  %16441 = vmatprep.subr.bf16.mxu0 %v16440_v54  ;;  %v4534_v54 = vld [vmem:[%s24843_s3 + $0x358] sm:$0xff]  ;;  %v16454_v13 = vpack.c.bf16 %v3973_v61, %v3972_v3  ;;  %v4894_v3 = vld [vmem:[%s24843_s3 + $0x388] sm:$0xff] }
 0x5f5   :  { %3701 = vmatprep.mubr.f32.mxu0 %v3515_v16  ;;  %4657 = vmatprep.mubr.f32.mxu1 %v24943_v36  ;;  %v3975_v16 = vld [vmem:[%s24847_s7 + $0x478] sm:$0xff] }
 0x5f6   :  { %3702 = vmatmul.mubr.f32.gmra.mrb[118].mxu0 %v3513_v20  ;;  %v16456_v20 = vpack.c.bf16 %v3991_v30, %v3990_v35 }
 0x5f7   :  { %v3519_v24 = vpop.f32.mrb[104].mxu1  ;;  %16443 = vmatpush3.bf16.msra.mxu0 %v16442_v10  ;;  %v3974_v10 = vld [vmem:[%s24847_s7 + $0x470] sm:$0xff] }
 0x5f8   :  { %v3521_v41 = vpop.f32.mrb[105].mxu1  ;;  %4658 = vmatmul.mubr.f32.gmra.mrb[210].mxu1 %v4532_v11  ;;  %16445 = vmatprep.subr.bf16.mxu0 %v16444_v56  ;;  %v4535_v56 = vld [vmem:[%s24843_s3 + $0x360] sm:$0xff]  ;;  %v16458_v58 = vpack.c.bf16 %v3975_v16, %v3974_v10 }
 0x5f9   :  { %3706 = vmatprep.mubr.f32.mxu0 %v3521_v41  ;;  %4663 = vmatprep.mubr.f32.mxu1 %v24943_v36 }
 0x5fa   :  { %3707 = vmatmul.mubr.f32.gmra.mrb[120].mxu0 %v3519_v24  ;;  %v16492_v24 = vpack.c.bf16 %v4347_v57, %v4346_v55  ;;  %v4332_v55 = vld [vmem:[%s24847_s7 + $0x510] sm:$0xff]  ;;  %v4333_v57 = vld [vmem:[%s24847_s7 + $0x518] sm:$0xff] }
 0x5fb   :  { %v3525_v26 = vpop.f32.mrb[106].mxu1  ;;  %16447 = vmatpush3.bf16.msra.mxu0 %v16446_v2  ;;  %v4536_v2 = vld [vmem:[%s24843_s3 + $0x368] sm:$0xff] }
 0x5fc   :  { %v3527_v59 = vpop.f32.mrb[107].mxu1  ;;  %4664 = vmatmul.mubr.f32.gmra.mrb[212].mxu1 %v4533_v28  ;;  %16449 = vmatprep.subr.bf16.mxu0 %v16448_v51 }
 0x5fd   :  { %3711 = vmatprep.mubr.f32.mxu0 %v3527_v59  ;;  %4669 = vmatprep.mubr.f32.mxu1 %v24943_v36 }
 0x5fe   :  { %3712 = vmatmul.mubr.f32.gmra.mrb[122].mxu0 %v3525_v26 }
 0x5ff   :  { %v3531_v4 = vpop.f32.mrb[108].mxu1  ;;  %16451 = vmatpush3.bf16.msra.mxu0 %v16450_v46  ;;  %v4893_v46 = vld [vmem:[%s24843_s3 + $0x380] sm:$0xff] }
 0x600   :  { %v3533_v0 = vpop.f32.mrb[109].mxu1  ;;  %4670 = vmatmul.mubr.f32.gmra.mrb[214].mxu1 %v4534_v54  ;;  %16453 = vmatprep.subr.bf16.mxu0 %v16452_v43 }
 0x601   :  { %3716 = vmatprep.mubr.f32.mxu0 %v3533_v0  ;;  %4675 = vmatprep.mubr.f32.mxu1 %v24943_v36  ;;  %v4348_v0 = vld [vmem:[%s24847_s7 + $0x590] sm:$0xff] }
 0x602   :  { %3717 = vmatmul.mubr.f32.gmra.mrb[124].mxu0 %v3531_v4 }
 0x603   :  { %v3537_v11 = vpop.f32.mrb[110].mxu1  ;;  %16455 = vmatpush3.bf16.msra.mxu0 %v16454_v13  ;;  %v4330_v13 = vld [vmem:[%s24847_s7 + $0x500] sm:$0xff] }
 0x604   :  { %v3539_v8 = vpop.f32.mrb[111].mxu1  ;;  %4676 = vmatmul.mubr.f32.gmra.mrb[216].mxu1 %v4535_v56  ;;  %16457 = vmatprep.subr.bf16.mxu0 %v16456_v20  ;;  %v4349_v20 = vld [vmem:[%s24847_s7 + $0x598] sm:$0xff] }
 0x605   :  { %3721 = vmatprep.mubr.f32.mxu0 %v3539_v8  ;;  %4681 = vmatprep.mubr.f32.mxu1 %v24943_v36  ;;  %v16496_v56 = vpack.c.bf16 %v4349_v20, %v4348_v0  ;;  %v4358_v0 = vld [vmem:[%s24847_s7 + $0x5e0] sm:$0xff]  ;;  %v4359_v20 = vld [vmem:[%s24847_s7 + $0x5e8] sm:$0xff] }
 0x606   :  { %3722 = vmatmul.mubr.f32.gmra.mrb[126].mxu0 %v3537_v11  ;;  %v4350_v11 = vld [vmem:[%s24847_s7 + $0x5a0] sm:$0xff] }
 0x607   :  { %v3543_v41 = vpop.f32.mrb[112].mxu1  ;;  %16459 = vmatpush3.bf16.msra.mxu0 %v16458_v58  ;;  %v4351_v58 = vld [vmem:[%s24847_s7 + $0x5a8] sm:$0xff] }
 0x608   :  { %v3545_v51 = vpop.f32.mrb[113].mxu1  ;;  %4682 = vmatmul.mubr.f32.gmra.mrb[218].mxu1 %v4536_v2  ;;  %16493 = vmatprep.subr.bf16.mxu0 %v16492_v24  ;;  %v16500_v2 = vpack.c.bf16 %v4351_v58, %v4350_v11  ;;  %v4360_v11 = vld [vmem:[%s24847_s7 + $0x5f0] sm:$0xff]  ;;  %v4361_v58 = vld [vmem:[%s24847_s7 + $0x5f8] sm:$0xff] }
 0x609   :  { %3726 = vmatprep.mubr.f32.mxu0 %v3545_v51  ;;  %4687 = vmatprep.mubr.f32.mxu1 %v24943_v36  ;;  %v4335_v51 = vld [vmem:[%s24847_s7 + $0x528] sm:$0xff] }
 0x60a   :  { %3727 = vmatmul.mubr.f32.gmra.mrb[128].mxu0 %v3543_v41  ;;  %v4334_v41 = vld [vmem:[%s24847_s7 + $0x520] sm:$0xff] }
 0x60b   :  { %v3549_v40 = vpop.f32.mrb[114].mxu1 }
 0x60c   :  { %v3551_v28 = vpop.f32.mrb[115].mxu1  ;;  %4688 = vmatmul.mubr.f32.gmra.mrb[220].mxu1 %v4537_v17  ;;  %v4352_v17 = vld [vmem:[%s24847_s7 + $0x5b0] sm:$0xff] }
 0x60d   :  { %3731 = vmatprep.mubr.f32.mxu0 %v3551_v28  ;;  %4693 = vmatprep.mubr.f32.mxu1 %v24943_v36 }
 0x60e   :  { %3732 = vmatmul.mubr.f32.gmra.mrb[130].mxu0 %v3549_v40  ;;  %v4353_v40 = vld [vmem:[%s24847_s7 + $0x5b8] sm:$0xff] }
 0x60f   :  { %v3555_v49 = vpop.f32.mrb[116].mxu1 }
 0x610   :  { %v3557_v26 = vpop.f32.mrb[117].mxu1  ;;  %4694 = vmatmul.mubr.f32.gmra.mrb[222].mxu1 %v4538_v53 }
 0x611   :  { %3736 = vmatprep.mubr.f32.mxu0 %v3557_v26  ;;  %4973 = vmatprep.mubr.f32.mxu1 %v24943_v36  ;;  %v4336_v26 = vld [vmem:[%s24847_s7 + $0x530] sm:$0xff] }
 0x612   :  { %3737 = vmatmul.mubr.f32.gmra.mrb[132].mxu0 %v3555_v49  ;;  %v16504_v49 = vpack.c.bf16 %v4353_v40, %v4352_v17  ;;  %v4716_v17 = vld [vmem:[%s24847_s7 + $0x680] sm:$0xff]  ;;  %v4717_v40 = vld [vmem:[%s24847_s7 + $0x688] sm:$0xff] }
 0x613   :  { %v3561_v59 = vpop.f32.mrb[118].mxu1 }
 0x614   :  { %v3563_v43 = vpop.f32.mrb[119].mxu1  ;;  %4974 = vmatmul.mubr.f32.vlgmr.msra.gmra.mrb[224].mxu1 %v4893_v46  ;;  %v4337_v46 = vld [vmem:[%s24847_s7 + $0x538] sm:$0xff] }
 0x615   :  { %16655 = vmatpush1.bf16.msra.mxu1 %v20243_v48  ;;  %3741 = vmatprep.mubr.f32.mxu0 %v3563_v43  ;;  %v4895_v48 = vld [vmem:[%s24843_s3 + $0x390] sm:$0xff]  ;;  %v4355_v43 = vld [vmem:[%s24847_s7 + $0x5c8] sm:$0xff] }
 0x616   :  { %16657 = vmatprep.subr.bf16.mxu1 %v20248_v6  ;;  %3742 = vmatmul.mubr.f32.gmra.mrb[134].mxu0 %v3561_v59  ;;  %v4354_v59 = vld [vmem:[%s24847_s7 + $0x5c0] sm:$0xff] }
 0x617   :  { %v3567_v61 = vpop.f32.mrb[120].mxu1  ;;  %4979 = vmatprep.mubr.f32.mxu1 %v24943_v36 }
 0x618   :  { %v3569_v54 = vpop.f32.mrb[121].mxu1  ;;  %4980 = vmatmul.mubr.f32.gmra.mrb[226].mxu1 %v4894_v3 }
 0x619   :  { %16659 = vmatpush1.bf16.msra.mxu1 %v20254_v25  ;;  %3746 = vmatprep.mubr.f32.mxu0 %v3569_v54  ;;  %v4896_v25 = vld [vmem:[%s24843_s3 + $0x398] sm:$0xff]  ;;  %v16508_v54 = vpack.c.bf16 %v4355_v43, %v4354_v59  ;;  %v4907_v59 = vld [vmem:[%s24843_s3 + $0x3f0] sm:$0xff] }
 0x61a   :  { %16661 = vmatprep.subr.bf16.mxu1 %v20264_v63  ;;  %3747 = vmatmul.mubr.f32.gmra.mrb[136].mxu0 %v3567_v61  ;;  %v16506_v61 = vpack.c.bf16 %v4337_v46, %v4336_v26  ;;  %v4906_v26 = vld [vmem:[%s24843_s3 + $0x3e8] sm:$0xff] }
 0x61b   :  { %v3573_v35 = vpop.f32.mrb[122].mxu1  ;;  %4985 = vmatprep.mubr.f32.mxu1 %v24943_v36 }
 0x61c   :  { %v3575_v6 = vpop.f32.mrb[123].mxu1  ;;  %4986 = vmatmul.mubr.f32.gmra.mrb[228].mxu1 %v4895_v48  ;;  %v4338_v48 = vld [vmem:[%s24847_s7 + $0x540] sm:$0xff] }
 0x61d   :  { %16663 = vmatpush1.bf16.msra.mxu1 %v20272_v27  ;;  %3751 = vmatprep.mubr.f32.mxu0 %v3575_v6  ;;  %v4897_v27 = vld [vmem:[%s24843_s3 + $0x3a0] sm:$0xff]  ;;  %v4902_v6 = vld [vmem:[%s24843_s3 + $0x3c8] sm:$0xff] }
 0x61e   :  { %16665 = vmatprep.subr.bf16.mxu1 %v20280_v22  ;;  %3752 = vmatmul.mubr.f32.gmra.mrb[138].mxu0 %v3573_v35  ;;  %v4339_v35 = vld [vmem:[%s24847_s7 + $0x548] sm:$0xff] }
 0x61f   :  { %v3579_v30 = vpop.f32.mrb[124].mxu1  ;;  %4991 = vmatprep.mubr.f32.mxu1 %v24943_v36 }
 0x620   :  { %v3581_v63 = vpop.f32.mrb[125].mxu1  ;;  %4992 = vmatmul.mubr.f32.gmra.mrb[230].mxu1 %v4896_v25  ;;  %v4356_v25 = vld [vmem:[%s24847_s7 + $0x5d0] sm:$0xff] }
 0x621   :  { %16667 = vmatpush1.bf16.msra.mxu1 %v20289_v38  ;;  %3756 = vmatprep.mubr.f32.mxu0 %v3581_v63  ;;  %v4331_v38 = vld [vmem:[%s24847_s7 + $0x508] sm:$0xff] }
 0x622   :  { %16669 = vmatprep.subr.bf16.mxu1 %v20299_v52  ;;  %3757 = vmatmul.mubr.f32.gmra.mrb[140].mxu0 %v3579_v30  ;;  %v4898_v52 = vld [vmem:[%s24843_s3 + $0x3a8] sm:$0xff]  ;;  %v4357_v30 = vld [vmem:[%s24847_s7 + $0x5d8] sm:$0xff] }
 0x623   :  { %v3585_v4 = vpop.f32.mrb[126].mxu1  ;;  %4997 = vmatprep.mubr.f32.mxu1 %v24943_v36 }
 0x624   :  { %v3587_v22 = vpop.f32.mrb[127].mxu1  ;;  %4998 = vmatmul.mubr.f32.gmra.mrb[232].mxu1 %v4897_v27  ;;  %v16510_v27 = vpack.c.bf16 %v4339_v35, %v4338_v48  ;;  %v5263_v48 = vld [vmem:[%s24843_s3 + $0x400] sm:$0xff] }
 0x625   :  { %16671 = vmatpush1.bf16.msra.mxu1 %v20311_v60  ;;  %3761 = vmatprep.mubr.f32.mxu0 %v3587_v22  ;;  %v16494_v60 = vpack.c.bf16 %v4331_v38, %v4330_v13  ;;  %v16512_v22 = vpack.c.bf16 %v4357_v30, %v4356_v25  ;;  %v4340_v13 = vld [vmem:[%s24847_s7 + $0x550] sm:$0xff]  ;;  %v4341_v38 = vld [vmem:[%s24847_s7 + $0x558] sm:$0xff]  ;;  %v5264_v25 = vld [vmem:[%s24843_s3 + $0x408] sm:$0xff] }
 0x626   :  { %16673 = vmatprep.subr.bf16.mxu1 %v20318_v12  ;;  %3762 = vmatmul.mubr.f32.gmra.mrb[142].mxu0 %v3585_v4  ;;  %v4899_v12 = vld [vmem:[%s24843_s3 + $0x3b0] sm:$0xff] }
 0x627   :  { %v3865_v10 = vpop.f32.mrb[128].mxu1  ;;  %5003 = vmatprep.mubr.f32.mxu1 %v24943_v36 }
 0x628   :  { %v3867_v16 = vpop.f32.mrb[129].mxu1  ;;  %5004 = vmatmul.mubr.f32.gmra.mrb[234].mxu1 %v4898_v52  ;;  %v4903_v52 = vld [vmem:[%s24843_s3 + $0x3d0] sm:$0xff] }
 0x629   :  { %16675 = vmatpush1.bf16.msra.mxu1 %v20326_v42  ;;  %4056 = vmatprep.mubr.f32.mxu0 %v3867_v16  ;;  %v16498_v42 = vpack.c.bf16 %v4333_v57, %v4332_v55  ;;  %v4342_v55 = vld [vmem:[%s24847_s7 + $0x560] sm:$0xff]  ;;  %v4343_v57 = vld [vmem:[%s24847_s7 + $0x568] sm:$0xff] }
 0x62a   :  { %16677 = vmatprep.subr.bf16.mxu1 %v20341_v33  ;;  %4057 = vmatmul.mubr.f32.vlgmr.msra.gmra.mrb[144].mxu0 %v3865_v10  ;;  %v4900_v33 = vld [vmem:[%s24843_s3 + $0x3b8] sm:$0xff] }
 0x62b   :  { %v3871_v8 = vpop.f32.mrb[130].mxu1  ;;  %5009 = vmatprep.mubr.f32.mxu1 %v24943_v36  ;;  %16495 = vmatpush3.bf16.msra.mxu0 %v16494_v60  ;;  %v16514_v60 = vpack.c.bf16 %v4341_v38, %v4340_v13  ;;  %v5266_v13 = vld [vmem:[%s24843_s3 + $0x418] sm:$0xff] }
 0x62c   :  { %v3873_v24 = vpop.f32.mrb[131].mxu1  ;;  %5010 = vmatmul.mubr.f32.gmra.mrb[236].mxu1 %v4899_v12  ;;  %16497 = vmatprep.subr.bf16.mxu0 %v16496_v56  ;;  %v16516_v56 = vpack.c.bf16 %v4359_v20, %v4358_v0  ;;  %v4904_v12 = vld [vmem:[%s24843_s3 + $0x3d8] sm:$0xff]  ;;  %v5267_v0 = vld [vmem:[%s24843_s3 + $0x420] sm:$0xff] }
 0x62d   :  { %16679 = vmatpush1.bf16.msra.mxu1 %v20348_v47  ;;  %4061 = vmatprep.mubr.f32.mxu0 %v3873_v24  ;;  %v16502_v47 = vpack.c.bf16 %v4335_v51, %v4334_v41  ;;  %v4344_v41 = vld [vmem:[%s24847_s7 + $0x570] sm:$0xff]  ;;  %v4345_v51 = vld [vmem:[%s24847_s7 + $0x578] sm:$0xff] }
 0x62e   :  { %16681 = vmatprep.subr.bf16.mxu1 %v20365_v23  ;;  %4062 = vmatmul.mubr.f32.gmra.mrb[146].mxu0 %v3871_v8  ;;  %v4901_v23 = vld [vmem:[%s24843_s3 + $0x3c0] sm:$0xff] }
 0x62f   :  { %v3877_v28 = vpop.f32.mrb[132].mxu1  ;;  %5015 = vmatprep.mubr.f32.mxu1 %v24943_v36  ;;  %16499 = vmatpush3.bf16.msra.mxu0 %v16498_v42  ;;  %v16518_v42 = vpack.c.bf16 %v4343_v57, %v4342_v55  ;;  %v4718_v55 = vld [vmem:[%s24847_s7 + $0x690] sm:$0xff]  ;;  %v4719_v57 = vld [vmem:[%s24847_s7 + $0x698] sm:$0xff] }
 0x630   :  { %v3879_v53 = vpop.f32.mrb[133].mxu1  ;;  %5016 = vmatmul.mubr.f32.gmra.mrb[238].mxu1 %v4900_v33  ;;  %16501 = vmatprep.subr.bf16.mxu0 %v16500_v2  ;;  %v16520_v2 = vpack.c.bf16 %v4361_v58, %v4360_v11  ;;  %v4905_v33 = vld [vmem:[%s24843_s3 + $0x3e0] sm:$0xff] }
 0x631   :  { %16683 = vmatpush1.bf16.msra.mxu1 %v20377_v50  ;;  %4066 = vmatprep.mubr.f32.mxu0 %v3879_v53 }
 0x632   :  { %4067 = vmatmul.mubr.f32.gmra.mrb[148].mxu0 %v3877_v28  ;;  %5021 = vmatprep.mubr.f32.mxu1 %v24943_v36 }
 0x633   :  { %v3883_v3 = vpop.f32.mrb[134].mxu1  ;;  %16503 = vmatpush3.bf16.msra.mxu0 %v16502_v47  ;;  %v16522_v47 = vpack.c.bf16 %v4345_v51, %v4344_v41  ;;  %v4720_v41 = vld [vmem:[%s24847_s7 + $0x6a0] sm:$0xff]  ;;  %v4721_v51 = vld [vmem:[%s24847_s7 + $0x6a8] sm:$0xff] }
 0x634   :  { %v3885_v50 = vpop.f32.mrb[135].mxu1  ;;  %5022 = vmatmul.mubr.f32.gmra.mrb[240].mxu1 %v4901_v23  ;;  %16505 = vmatprep.subr.bf16.mxu0 %v16504_v49  ;;  %v16556_v49 = vpack.c.bf16 %v4717_v40, %v4716_v17 }
 0x635   :  { %4071 = vmatprep.mubr.f32.mxu0 %v3885_v50  ;;  %5027 = vmatprep.mubr.f32.mxu1 %v24943_v36 }
 0x636   :  { %4072 = vmatmul.mubr.f32.gmra.mrb[150].mxu0 %v3883_v3 }
 0x637   :  { %v3889_v63 = vpop.f32.mrb[136].mxu1  ;;  %16507 = vmatpush3.bf16.msra.mxu0 %v16506_v61  ;;  %v4908_v61 = vld [vmem:[%s24843_s3 + $0x3f8] sm:$0xff] }
 0x638   :  { %v3891_v4 = vpop.f32.mrb[137].mxu1  ;;  %5028 = vmatmul.mubr.f32.gmra.mrb[242].mxu1 %v4902_v6  ;;  %16509 = vmatprep.subr.bf16.mxu0 %v16508_v54 }
 0x639   :  { %4076 = vmatprep.mubr.f32.mxu0 %v3891_v4  ;;  %5033 = vmatprep.mubr.f32.mxu1 %v24943_v36 }
 0x63a   :  { %4077 = vmatmul.mubr.f32.gmra.mrb[152].mxu0 %v3889_v63 }
 0x63b   :  { %v3895_v10 = vpop.f32.mrb[138].mxu1  ;;  %16511 = vmatpush3.bf16.msra.mxu0 %v16510_v27  ;;  %v5265_v27 = vld [vmem:[%s24843_s3 + $0x410] sm:$0xff] }
 0x63c   :  { %v3897_v16 = vpop.f32.mrb[139].mxu1  ;;  %5034 = vmatmul.mubr.f32.gmra.mrb[244].mxu1 %v4903_v52  ;;  %16513 = vmatprep.subr.bf16.mxu0 %v16512_v22 }
 0x63d   :  { %4081 = vmatprep.mubr.f32.mxu0 %v3897_v16  ;;  %5039 = vmatprep.mubr.f32.mxu1 %v24943_v36  ;;  %v4701_v16 = vld [vmem:[%s24847_s7 + $0x608] sm:$0xff] }
 0x63e   :  { %4082 = vmatmul.mubr.f32.gmra.mrb[154].mxu0 %v3895_v10 }
 0x63f   :  { %v3901_v8 = vpop.f32.mrb[140].mxu1  ;;  %16515 = vmatpush3.bf16.msra.mxu0 %v16514_v60  ;;  %v4700_v60 = vld [vmem:[%s24847_s7 + $0x600] sm:$0xff] }
 0x640   :  { %v3903_v24 = vpop.f32.mrb[141].mxu1  ;;  %5040 = vmatmul.mubr.f32.gmra.mrb[246].mxu1 %v4904_v12  ;;  %16517 = vmatprep.subr.bf16.mxu0 %v16516_v56  ;;  %v5268_v56 = vld [vmem:[%s24843_s3 + $0x428] sm:$0xff]  ;;  %v16558_v11 = vpack.c.bf16 %v4701_v16, %v4700_v60  ;;  %v4710_v60 = vld [vmem:[%s24847_s7 + $0x650] sm:$0xff]  ;;  %v4711_v16 = vld [vmem:[%s24847_s7 + $0x658] sm:$0xff] }
 0x641   :  { %4086 = vmatprep.mubr.f32.mxu0 %v3903_v24  ;;  %5045 = vmatprep.mubr.f32.mxu1 %v24943_v36  ;;  %v4703_v24 = vld [vmem:[%s24847_s7 + $0x618] sm:$0xff] }
 0x642   :  { %4087 = vmatmul.mubr.f32.gmra.mrb[156].mxu0 %v3901_v8  ;;  %v16560_v8 = vpack.c.bf16 %v4719_v57, %v4718_v55  ;;  %v4728_v55 = vld [vmem:[%s24847_s7 + $0x6e0] sm:$0xff]  ;;  %v4729_v57 = vld [vmem:[%s24847_s7 + $0x6e8] sm:$0xff] }
 0x643   :  { %v3907_v28 = vpop.f32.mrb[142].mxu1  ;;  %16519 = vmatpush3.bf16.msra.mxu0 %v16518_v42  ;;  %v4702_v42 = vld [vmem:[%s24847_s7 + $0x610] sm:$0xff] }
 0x644   :  { %v3909_v53 = vpop.f32.mrb[143].mxu1  ;;  %5046 = vmatmul.mubr.f32.gmra.mrb[248].mxu1 %v4905_v33  ;;  %16521 = vmatprep.subr.bf16.mxu0 %v16520_v2  ;;  %v5269_v2 = vld [vmem:[%s24843_s3 + $0x430] sm:$0xff]  ;;  %v16562_v17 = vpack.c.bf16 %v4703_v24, %v4702_v42  ;;  %v4712_v42 = vld [vmem:[%s24847_s7 + $0x660] sm:$0xff]  ;;  %v4713_v24 = vld [vmem:[%s24847_s7 + $0x668] sm:$0xff] }
 0x645   :  { %4091 = vmatprep.mubr.f32.mxu0 %v3909_v53  ;;  %5051 = vmatprep.mubr.f32.mxu1 %v24943_v36  ;;  %v4705_v53 = vld [vmem:[%s24847_s7 + $0x628] sm:$0xff] }
 0x646   :  { %4092 = vmatmul.mubr.f32.gmra.mrb[158].mxu0 %v3907_v28  ;;  %v16564_v28 = vpack.c.bf16 %v4721_v51, %v4720_v41  ;;  %v5274_v41 = vld [vmem:[%s24843_s3 + $0x458] sm:$0xff]  ;;  %v4730_v51 = vld [vmem:[%s24847_s7 + $0x6f0] sm:$0xff] }
 0x647   :  { %v3913_v46 = vpop.f32.mrb[144].mxu1  ;;  %16523 = vmatpush3.bf16.msra.mxu0 %v16522_v47  ;;  %v4704_v47 = vld [vmem:[%s24847_s7 + $0x620] sm:$0xff] }
 0x648   :  { %v3915_v23 = vpop.f32.mrb[145].mxu1  ;;  %5052 = vmatmul.mubr.f32.gmra.mrb[250].mxu1 %v4906_v26  ;;  %16557 = vmatprep.subr.bf16.mxu0 %v16556_v49  ;;  %v5270_v49 = vld [vmem:[%s24843_s3 + $0x438] sm:$0xff]  ;;  %v4722_v26 = vld [vmem:[%s24847_s7 + $0x6b0] sm:$0xff] }
 0x649   :  { %4096 = vmatprep.mubr.f32.mxu0 %v3915_v23  ;;  %5057 = vmatprep.mubr.f32.mxu1 %v24943_v36 }
 0x64a   :  { %4097 = vmatmul.mubr.f32.gmra.mrb[160].mxu0 %v3913_v46  ;;  %v4723_v46 = vld [vmem:[%s24847_s7 + $0x6b8] sm:$0xff] }
 0x64b   :  { %v3919_v43 = vpop.f32.mrb[146].mxu1 }
 0x64c   :  { %v3921_v3 = vpop.f32.mrb[147].mxu1  ;;  %5058 = vmatmul.mubr.f32.gmra.mrb[252].mxu1 %v4907_v59  ;;  %v16566_v59 = vpack.c.bf16 %v4705_v53, %v4704_v47  ;;  %v16582_v47 = vpack.c.bf16 %v4713_v24, %v4712_v42 }
 0x64d   :  { %4101 = vmatprep.mubr.f32.mxu0 %v3921_v3  ;;  %5063 = vmatprep.mubr.f32.mxu1 %v24943_v36  ;;  %v16568_v3 = vpack.c.bf16 %v4723_v46, %v4722_v26  ;;  %v4714_v26 = vld [vmem:[%s24847_s7 + $0x670] sm:$0xff]  ;;  %v4715_v46 = vld [vmem:[%s24847_s7 + $0x678] sm:$0xff] }
 0x64e   :  { %4102 = vmatmul.mubr.f32.gmra.mrb[162].mxu0 %v3919_v43 }
 0x64f   :  { %v3925_v50 = vpop.f32.mrb[148].mxu1 }
 0x650   :  { %v3927_v54 = vpop.f32.mrb[149].mxu1  ;;  %5064 = vmatmul.mubr.f32.gmra.mrb[254].mxu1 %v4908_v61  ;;  %v4706_v61 = vld [vmem:[%s24847_s7 + $0x630] sm:$0xff] }
 0x651   :  { %4106 = vmatprep.mubr.f32.mxu0 %v3927_v54  ;;  %5343 = vmatprep.mubr.f32.mxu1 %v24943_v36  ;;  %v5271_v54 = vld [vmem:[%s24843_s3 + $0x440] sm:$0xff] }
 0x652   :  { %4107 = vmatmul.mubr.f32.gmra.mrb[164].mxu0 %v3925_v50  ;;  %v4707_v50 = vld [vmem:[%s24847_s7 + $0x638] sm:$0xff] }
 0x653   :  { %v3931_v35 = vpop.f32.mrb[150].mxu1 }
 0x654   :  { %v3933_v6 = vpop.f32.mrb[151].mxu1  ;;  %5344 = vmatmul.mubr.f32.vlgmr.msra.gmra.mrb[0].mxu1 %v5263_v48  ;;  %v4724_v48 = vld [vmem:[%s24847_s7 + $0x6c0] sm:$0xff] }
 0x655   :  { %4111 = vmatprep.mubr.f32.mxu0 %v3933_v6  ;;  %5349 = vmatprep.mubr.f32.mxu1 %v24943_v36 }
 0x656   :  { %4112 = vmatmul.mubr.f32.gmra.mrb[166].mxu0 %v3931_v35  ;;  %v4725_v35 = vld [vmem:[%s24847_s7 + $0x6c8] sm:$0xff] }
 0x657   :  { %v3937_v30 = vpop.f32.mrb[152].mxu1 }
 0x658   :  { %v3939_v63 = vpop.f32.mrb[153].mxu1  ;;  %5350 = vmatmul.mubr.f32.gmra.mrb[2].mxu1 %v5264_v25  ;;  %v16570_v25 = vpack.c.bf16 %v4707_v50, %v4706_v61  ;;  %v5087_v61 = vld [vmem:[%s24847_s7 + $0x788] sm:$0xff] }
 0x659   :  { %4116 = vmatprep.mubr.f32.mxu0 %v3939_v63  ;;  %5355 = vmatprep.mubr.f32.mxu1 %v24943_v36  ;;  %v16572_v63 = vpack.c.bf16 %v4725_v35, %v4724_v48  ;;  %v16586_v48 = vpack.c.bf16 %v4715_v46, %v4714_v26 }
 0x65a   :  { %4117 = vmatmul.mubr.f32.gmra.mrb[168].mxu0 %v3937_v30 }
 0x65b   :  { %v3943_v4 = vpop.f32.mrb[154].mxu1 }
 0x65c   :  { %v3945_v22 = vpop.f32.mrb[155].mxu1  ;;  %5356 = vmatmul.mubr.f32.gmra.mrb[4].mxu1 %v5265_v27  ;;  %v4708_v27 = vld [vmem:[%s24847_s7 + $0x640] sm:$0xff] }
 0x65d   :  { %4121 = vmatprep.mubr.f32.mxu0 %v3945_v22  ;;  %5361 = vmatprep.mubr.f32.mxu1 %v24943_v36  ;;  %v5272_v22 = vld [vmem:[%s24843_s3 + $0x448] sm:$0xff] }
 0x65e   :  { %4122 = vmatmul.mubr.f32.gmra.mrb[170].mxu0 %v3943_v4  ;;  %v4709_v4 = vld [vmem:[%s24847_s7 + $0x648] sm:$0xff] }
 0x65f   :  { %v3949_v38 = vpop.f32.mrb[156].mxu1 }
 0x660   :  { %v3951_v52 = vpop.f32.mrb[157].mxu1  ;;  %5362 = vmatmul.mubr.f32.gmra.mrb[6].mxu1 %v5266_v13  ;;  %v4726_v13 = vld [vmem:[%s24847_s7 + $0x6d0] sm:$0xff] }
 0x661   :  { %4126 = vmatprep.mubr.f32.mxu0 %v3951_v52  ;;  %5367 = vmatprep.mubr.f32.mxu1 %v24943_v36 }
 0x662   :  { %4127 = vmatmul.mubr.f32.gmra.mrb[172].mxu0 %v3949_v38  ;;  %v4727_v38 = vld [vmem:[%s24847_s7 + $0x6d8] sm:$0xff] }
 0x663   :  { %v3955_v20 = vpop.f32.mrb[158].mxu1 }
 0x664   :  { %v3957_v10 = vpop.f32.mrb[159].mxu1  ;;  %5368 = vmatmul.mubr.f32.gmra.mrb[8].mxu1 %v5267_v0  ;;  %v16574_v0 = vpack.c.bf16 %v4709_v4, %v4708_v27 }
 0x665   :  { %4131 = vmatprep.mubr.f32.mxu0 %v3957_v10  ;;  %5373 = vmatprep.mubr.f32.mxu1 %v24943_v36  ;;  %v16576_v10 = vpack.c.bf16 %v4727_v38, %v4726_v13 }
 0x666   :  { %4132 = vmatmul.mubr.f32.gmra.mrb[174].mxu0 %v3955_v20 }
 0x667   :  { %v4235_v12 = vpop.f32.mrb[160].mxu1 }
 0x668   :  { %v4237_v58 = vpop.f32.mrb[161].mxu1  ;;  %5374 = vmatmul.mubr.f32.gmra.mrb[10].mxu1 %v5268_v56  ;;  %v5273_v56 = vld [vmem:[%s24843_s3 + $0x450] sm:$0xff] }
 0x669   :  { %4426 = vmatprep.mubr.f32.mxu0 %v4237_v58  ;;  %5379 = vmatprep.mubr.f32.mxu1 %v24943_v36 }
 0x66a   :  { %4427 = vmatmul.mubr.f32.vlgmr.msra.gmra.mrb[176].mxu0 %v4235_v12 }
 0x66b   :  { %v4241_v33 = vpop.f32.mrb[162].mxu1  ;;  %16559 = vmatpush3.bf16.msra.mxu0 %v16558_v11  ;;  %v16578_v11 = vpack.c.bf16 %v4711_v16, %v4710_v60 }
 0x66c   :  { %v4243_v40 = vpop.f32.mrb[163].mxu1  ;;  %5380 = vmatmul.mubr.f32.gmra.mrb[12].mxu1 %v5269_v2  ;;  %16561 = vmatprep.subr.bf16.mxu0 %v16560_v8  ;;  %v16580_v8 = vpack.c.bf16 %v4729_v57, %v4728_v55 }
 0x66d   :  { %4431 = vmatprep.mubr.f32.mxu0 %v4243_v40  ;;  %5385 = vmatprep.mubr.f32.mxu1 %v24943_v36 }
 0x66e   :  { %4432 = vmatmul.mubr.f32.gmra.mrb[178].mxu0 %v4241_v33  ;;  %v4731_v33 = vld [vmem:[%s24847_s7 + $0x6f8] sm:$0xff] }
 0x66f   :  { %v4247_v23 = vpop.f32.mrb[164].mxu1  ;;  %16563 = vmatpush3.bf16.msra.mxu0 %v16562_v17 }
 0x670   :  { %v4249_v43 = vpop.f32.mrb[165].mxu1  ;;  %5386 = vmatmul.mubr.f32.gmra.mrb[14].mxu1 %v5270_v49  ;;  %16565 = vmatprep.subr.bf16.mxu0 %v16564_v28  ;;  %v16584_v49 = vpack.c.bf16 %v4731_v33, %v4730_v51 }
 0x671   :  { %4436 = vmatprep.mubr.f32.mxu0 %v4249_v43  ;;  %5391 = vmatprep.mubr.f32.mxu1 %v24943_v36  ;;  %v5275_v43 = vld [vmem:[%s24843_s3 + $0x460] sm:$0xff] }
 0x672   :  { %4437 = vmatmul.mubr.f32.gmra.mrb[180].mxu0 %v4247_v23 }
 0x673   :  { %v4253_v6 = vpop.f32.mrb[166].mxu1  ;;  %16567 = vmatpush3.bf16.msra.mxu0 %v16566_v59 }
 0x674   :  { %v4255_v30 = vpop.f32.mrb[167].mxu1  ;;  %5392 = vmatmul.mubr.f32.gmra.mrb[16].mxu1 %v5271_v54  ;;  %16569 = vmatprep.subr.bf16.mxu0 %v16568_v3  ;;  %v5086_v3 = vld [vmem:[%s24847_s7 + $0x780] sm:$0xff] }
 0x675   :  { %4441 = vmatprep.mubr.f32.mxu0 %v4255_v30  ;;  %5397 = vmatprep.mubr.f32.mxu1 %v24943_v36 }
 0x676   :  { %4442 = vmatmul.mubr.f32.gmra.mrb[182].mxu0 %v4253_v6  ;;  %v16620_v6 = vpack.c.bf16 %v5087_v61, %v5086_v3 }
 0x677   :  { %v4259_v52 = vpop.f32.mrb[168].mxu1  ;;  %16571 = vmatpush3.bf16.msra.mxu0 %v16570_v25 }
 0x678   :  { %v4261_v20 = vpop.f32.mrb[169].mxu1  ;;  %5398 = vmatmul.mubr.f32.gmra.mrb[18].mxu1 %v5272_v22  ;;  %16573 = vmatprep.subr.bf16.mxu0 %v16572_v63  ;;  %v5276_v63 = vld [vmem:[%s24843_s3 + $0x468] sm:$0xff] }
 0x679   :  { %4446 = vmatprep.mubr.f32.mxu0 %v4261_v20  ;;  %5403 = vmatprep.mubr.f32.mxu1 %v24943_v36 }
 0x67a   :  { %4447 = vmatmul.mubr.f32.gmra.mrb[184].mxu0 %v4259_v52  ;;  %v5277_v52 = vld [vmem:[%s24843_s3 + $0x470] sm:$0xff] }
 0x67b   :  { %v4265_v12 = vpop.f32.mrb[170].mxu1  ;;  %16575 = vmatpush3.bf16.msra.mxu0 %v16574_v0 }
 0x67c   :  { %v4267_v58 = vpop.f32.mrb[171].mxu1  ;;  %5404 = vmatmul.mubr.f32.gmra.mrb[20].mxu1 %v5273_v56  ;;  %16577 = vmatprep.subr.bf16.mxu0 %v16576_v10 }
 0x67d   :  { %v12620_v2 = vpop.f32.mrb[80].mxu0  ;;  %4451 = vmatprep.mubr.f32.mxu0 %v4267_v58  ;;  %5409 = vmatprep.mubr.f32.mxu1 %v24943_v36 }
 0x67e   :  { %v12621_v17 = vpop.f32.mrb[81].mxu0  ;;  %4452 = vmatmul.mubr.f32.gmra.mrb[186].mxu0 %v4265_v12 }
 0x67f   :  { %v12622_v40 = vadd.f32 %v12621_v17, %v12620_v2  ;;  %v4271_v28 = vpop.f32.mrb[172].mxu1  ;;  %16579 = vmatpush3.bf16.msra.mxu0 %v16578_v11 }
 0x680   :  { %v4273_v53 = vpop.f32.mrb[173].mxu1  ;;  %5410 = vmatmul.mubr.f32.gmra.mrb[22].mxu1 %v5274_v41  ;;  %16581 = vmatprep.subr.bf16.mxu0 %v16580_v8 }
 0x681   :  { %v21738_v23 = vadd.f32 %v12622_v40, %v21000_v34  ;;  %v12623_v59 = vpop.f32.mrb[82].mxu0  ;;  %4456 = vmatprep.mubr.f32.mxu0 %v4273_v53  ;;  %5415 = vmatprep.mubr.f32.mxu1 %v24943_v36 }
 0x682   :  { %v12624_v50 = vpop.f32.mrb[83].mxu0  ;;  %4457 = vmatmul.mubr.f32.gmra.mrb[188].mxu0 %v4271_v28 }
 0x683   :  { %v12625_v34 = vadd.f32 %v12624_v50, %v12623_v59  ;;  %v4277_v54 = vpop.f32.mrb[174].mxu1  ;;  %16583 = vmatpush3.bf16.msra.mxu0 %v16582_v47 }
 0x684   :  { %v4279_v35 = vpop.f32.mrb[175].mxu1  ;;  %5416 = vmatmul.mubr.f32.gmra.mrb[24].mxu1 %v5275_v43  ;;  %16585 = vmatprep.subr.bf16.mxu0 %v16584_v49 }
 0x685   :  { %v21751_v25 = vadd.f32 %v12625_v34, %v21008_v45  ;;  %v12626_v30 = vpop.f32.mrb[84].mxu0  ;;  %4461 = vmatprep.mubr.f32.mxu0 %v4279_v35  ;;  %5421 = vmatprep.mubr.f32.mxu1 %v24943_v36 }
 0x686   :  { %v12627_v27 = vpop.f32.mrb[85].mxu0  ;;  %4462 = vmatmul.mubr.f32.gmra.mrb[190].mxu0 %v4277_v54 }
 0x687   :  { %v12628_v4 = vadd.f32 %v12627_v27, %v12626_v30  ;;  %v4283_v22 = vpop.f32.mrb[176].mxu1  ;;  %16587 = vmatpush3.bf16.msra.mxu0 %v16586_v48  ;;  %v5071_v30 = vld [vmem:[%s24847_s7 + $0x708] sm:$0xff]  ;;  %v5088_v27 = vld [vmem:[%s24847_s7 + $0x790] sm:$0xff] }
 0x688   :  { %v4285_v13 = vpop.f32.mrb[177].mxu1  ;;  %5422 = vmatmul.mubr.f32.gmra.mrb[26].mxu1 %v5276_v63  ;;  %16621 = vmatprep.subr.bf16.mxu0 %v16620_v6 }
 0x689   :  { %v21758_v38 = vadd.f32 %v12628_v4, %v21016_v7  ;;  %v12629_v45 = vpop.f32.mrb[86].mxu0  ;;  %4466 = vmatprep.mubr.f32.mxu0 %v4285_v13  ;;  %5427 = vmatprep.mubr.f32.mxu1 %v24943_v36  ;;  %v5278_v7 = vld [vmem:[%s24843_s3 + $0x478] sm:$0xff] }
 0x68a   :  { %v12630_v0 = vpop.f32.mrb[87].mxu0  ;;  %4467 = vmatmul.mubr.f32.gmra.mrb[192].mxu0 %v4283_v22  ;;  %v5089_v4 = vld [vmem:[%s24847_s7 + $0x798] sm:$0xff] }
 0x68b   :  { %v12631_v20 = vadd.f32 %v12630_v0, %v12629_v45  ;;  %v4289_v10 = vpop.f32.mrb[178].mxu1 }
 0x68c   :  { %v4291_v60 = vpop.f32.mrb[179].mxu1  ;;  %5428 = vmatmul.mubr.f32.gmra.mrb[28].mxu1 %v5277_v52 }
 0x68d   :  { %v21765_v16 = vadd.f32 %v12631_v20, %v21022_v62  ;;  %v12632_v56 = vpop.f32.mrb[88].mxu0  ;;  %4471 = vmatprep.mubr.f32.mxu0 %v4291_v60  ;;  %5433 = vmatprep.mubr.f32.mxu1 %v24943_v36  ;;  %v18074_v62 = vld [vmem:[%s24843_s3] sm:$0xff]  ;;  %v16624_v20 = vpack.c.bf16 %v5089_v4, %v5088_v27  ;;  %v5097_v27 = vld [vmem:[%s24847_s7 + $0x7d8] sm:$0xff] }
 0x68e   :  { %v12633_v55 = vpop.f32.mrb[89].mxu0  ;;  %4472 = vmatmul.mubr.f32.gmra.mrb[194].mxu0 %v4289_v10  ;;  %v5073_v10 = vld [vmem:[%s24847_s7 + $0x718] sm:$0xff] }
 0x68f   :  { %v12634_v57 = vadd.f32 %v12633_v55, %v12632_v56  ;;  %v4295_v12 = vpop.f32.mrb[180].mxu1  ;;  %v5091_v55 = vld [vmem:[%s24847_s7 + $0x7a8] sm:$0xff] }
 0x690   :  { %v4297_v11 = vpop.f32.mrb[181].mxu1  ;;  %5434 = vmatmul.mubr.f32.gmra.mrb[30].mxu1 %v5278_v7  ;;  %v5090_v7 = vld [vmem:[%s24847_s7 + $0x7a0] sm:$0xff] }
 0x691   :  { %v21772_v58 = vadd.f32 %v12634_v57, %v21028_v18  ;;  %v12635_v8 = vpop.f32.mrb[90].mxu0  ;;  %4476 = vmatprep.mubr.f32.mxu0 %v4297_v11  ;;  %14292 = vmatprep.mubr.f32.mxu1 %v18074_v62 }
 0x692   :  { %v12636_v36 = vpop.f32.mrb[91].mxu0  ;;  %4477 = vmatmul.mubr.f32.gmra.mrb[196].mxu0 %v4295_v12 }
 0x693   :  { %v12637_v42 = vadd.f32 %v12636_v36, %v12635_v8  ;;  %v4301_v24 = vpop.f32.mrb[182].mxu1  ;;  %v5074_v36 = vld [vmem:[%s24847_s7 + $0x720] sm:$0xff] }
 0x694   :  { %v4303_v2 = vpop.f32.mrb[183].mxu1 }
 0x695   :  { %v21778_v41 = vadd.f32 %v12637_v42, %v21034_v31  ;;  %v12638_v51 = vpop.f32.mrb[92].mxu0  ;;  %4481 = vmatprep.mubr.f32.mxu0 %v4303_v2  ;;  %v5075_v42 = vld [vmem:[%s24847_s7 + $0x728] sm:$0xff] }
 0x696   :  { %v12639_v33 = vpop.f32.mrb[93].mxu0  ;;  %4482 = vmatmul.mubr.f32.gmra.mrb[198].mxu0 %v4301_v24 }
 0x697   :  { %v12640_v18 = vadd.f32 %v12639_v33, %v12638_v51  ;;  %v4307_v17 = vpop.f32.mrb[184].mxu1  ;;  %v5092_v51 = vld [vmem:[%s24847_s7 + $0x7b0] sm:$0xff]  ;;  %v5093_v33 = vld [vmem:[%s24847_s7 + $0x7b8] sm:$0xff] }
 0x698   :  { %v4309_v40 = vpop.f32.mrb[185].mxu1 }
 0x699   :  { %v21781_v28 = vadd.f32 %v12640_v18, %v21040_v44  ;;  %v12641_v47 = vpop.f32.mrb[94].mxu0  ;;  %4486 = vmatprep.mubr.f32.mxu0 %v4309_v40 }
 0x69a   :  { %v12642_v53 = vpop.f32.mrb[95].mxu0  ;;  %4487 = vmatmul.mubr.f32.gmra.mrb[200].mxu0 %v4307_v17 }
 0x69b   :  { %v12643_v49 = vadd.f32 %v12642_v53, %v12641_v47  ;;  %v4313_v26 = vpop.f32.mrb[186].mxu1  ;;  %v16630_v47 = vpack.c.bf16 %v5075_v42, %v5074_v36 }
 0x69c   :  { %v4315_v46 = vpop.f32.mrb[187].mxu1 }
 0x69d   :  { %v21784_v31 = vadd.f32 %v12643_v49, %v21046_v21  ;;  %v12644_v59 = vpop.f32.mrb[96].mxu0  ;;  %4491 = vmatprep.mubr.f32.mxu0 %v4315_v46  ;;  %v5070_v21 = vld [vmem:[%s24847_s7 + $0x700] sm:$0xff]  ;;  %v5076_v49 = vld [vmem:[%s24847_s7 + $0x730] sm:$0xff] }
 0x69e   :  { %v12645_v43 = vpop.f32.mrb[97].mxu0  ;;  %4492 = vmatmul.mubr.f32.gmra.mrb[202].mxu0 %v4313_v26  ;;  %v16622_v52 = vpack.c.bf16 %v5071_v30, %v5070_v21  ;;  %v5077_v26 = vld [vmem:[%s24847_s7 + $0x738] sm:$0xff] }
 0x69f   :  { %v12646_v3 = vadd.f32 %v12645_v43, %v12644_v59  ;;  %v4319_v61 = vpop.f32.mrb[188].mxu1  ;;  %v5094_v43 = vld [vmem:[%s24847_s7 + $0x7c0] sm:$0xff] }
 0x6a0   :  { %v4321_v50 = vpop.f32.mrb[189].mxu1 }
 0x6a1   :  { %v21787_v44 = vadd.f32 %v12646_v3, %v21052_v9  ;;  %v12647_v34 = vpop.f32.mrb[98].mxu0  ;;  %4496 = vmatprep.mubr.f32.mxu0 %v4321_v50  ;;  %v5095_v3 = vld [vmem:[%s24847_s7 + $0x7c8] sm:$0xff] }
 0x6a2   :  { %v12648_v54 = vpop.f32.mrb[99].mxu0  ;;  %4497 = vmatmul.mubr.f32.gmra.mrb[204].mxu0 %v4319_v61 }
 0x6a3   :  { %v12649_v48 = vadd.f32 %v12648_v54, %v12647_v34  ;;  %v4325_v35 = vpop.f32.mrb[190].mxu1  ;;  %v16634_v54 = vpack.c.bf16 %v5077_v26, %v5076_v49 }
 0x6a4   :  { %v4327_v6 = vpop.f32.mrb[191].mxu1 }
 0x6a5   :  { %v21796_v63 = vadd.f32 %v12649_v48, %v21058_v37  ;;  %v12650_v9 = vpop.f32.mrb[100].mxu0  ;;  %4501 = vmatprep.mubr.f32.mxu0 %v4327_v6  ;;  %v5072_v37 = vld [vmem:[%s24847_s7 + $0x710] sm:$0xff]  ;;  %v5079_v6 = vld [vmem:[%s24847_s7 + $0x748] sm:$0xff] }
 0x6a6   :  { %v12651_v22 = vpop.f32.mrb[101].mxu0  ;;  %4502 = vmatmul.mubr.f32.gmra.mrb[206].mxu0 %v4325_v35  ;;  %v16626_v8 = vpack.c.bf16 %v5073_v10, %v5072_v37  ;;  %v5078_v35 = vld [vmem:[%s24847_s7 + $0x740] sm:$0xff] }
 0x6a7   :  { %v12652_v13 = vadd.f32 %v12651_v22, %v12650_v9  ;;  %v4605_v45 = vpop.f32.mrb[192].mxu1  ;;  %v5096_v9 = vld [vmem:[%s24847_s7 + $0x7d0] sm:$0xff] }
 0x6a8   :  { %v4607_v0 = vpop.f32.mrb[193].mxu1 }
 0x6a9   :  { %v21811_v60 = vadd.f32 %v12652_v13, %v21064_v14  ;;  %v12653_v56 = vpop.f32.mrb[102].mxu0  ;;  %4796 = vmatprep.mubr.f32.mxu0 %v4607_v0  ;;  %v16628_v14 = vpack.c.bf16 %v5091_v55, %v5090_v7  ;;  %v5080_v0 = vld [vmem:[%s24847_s7 + $0x750] sm:$0xff]  ;;  %v5099_v7 = vld [vmem:[%s24847_s7 + $0x7e8] sm:$0xff] }
 0x6aa   :  { %v12654_v57 = vpop.f32.mrb[103].mxu0  ;;  %4797 = vmatmul.mubr.f32.vlgmr.msra.gmra.mrb[208].mxu0 %v4605_v45  ;;  %v16638_v45 = vpack.c.bf16 %v5079_v6, %v5078_v35 }
 0x6ab   :  { %v12655_v12 = vadd.f32 %v12654_v57, %v12653_v56  ;;  %v4611_v11 = vpop.f32.mrb[194].mxu1  ;;  %16623 = vmatpush3.bf16.msra.mxu0 %v16622_v52  ;;  %v5098_v56 = vld [vmem:[%s24847_s7 + $0x7e0] sm:$0xff] }
 0x6ac   :  { %v4613_v62 = vpop.f32.mrb[195].mxu1  ;;  %16625 = vmatprep.subr.bf16.mxu0 %v16624_v20  ;;  %v5081_v20 = vld [vmem:[%s24847_s7 + $0x758] sm:$0xff] }
 0x6ad   :  { %v21826_v24 = vadd.f32 %v12655_v12, %v21072_v1  ;;  %v12656_v2 = vpop.f32.mrb[104].mxu0  ;;  %4801 = vmatprep.mubr.f32.mxu0 %v4613_v62  ;;  %v16632_v1 = vpack.c.bf16 %v5093_v33, %v5092_v51  ;;  %v5082_v62 = vld [vmem:[%s24847_s7 + $0x760] sm:$0xff]  ;;  %v5101_v51 = vld [vmem:[%s24847_s7 + $0x7f8] sm:$0xff] }
 0x6ae   :  { %v12657_v18 = vpop.f32.mrb[105].mxu0  ;;  %4802 = vmatmul.mubr.f32.gmra.mrb[210].mxu0 %v4611_v11  ;;  %v16642_v11 = vpack.c.bf16 %v5081_v20, %v5080_v0 }
 0x6af   :  { %v12658_v17 = vadd.f32 %v12657_v18, %v12656_v2  ;;  %v4617_v40 = vpop.f32.mrb[196].mxu1  ;;  %16627 = vmatpush3.bf16.msra.mxu0 %v16626_v8  ;;  %v5100_v2 = vld [vmem:[%s24847_s7 + $0x7f0] sm:$0xff] }
 0x6b0   :  { %v4619_v53 = vpop.f32.mrb[197].mxu1  ;;  %16629 = vmatprep.subr.bf16.mxu0 %v16628_v14  ;;  %v5083_v14 = vld [vmem:[%s24847_s7 + $0x768] sm:$0xff] }
 0x6b1   :  { %v21841_v46 = vadd.f32 %v12658_v17, %v21080_v39  ;;  %v12659_v59 = vpop.f32.mrb[106].mxu0  ;;  %4806 = vmatprep.mubr.f32.mxu0 %v4619_v53  ;;  %v16636_v39 = vpack.c.bf16 %v5095_v3, %v5094_v43  ;;  %v5084_v53 = vld [vmem:[%s24847_s7 + $0x770] sm:$0xff]  ;;  %v5457_v43 = vld [vmem:[%s24847_s7 + $0x888] sm:$0xff] }
 0x6b2   :  { %v12660_v61 = vpop.f32.mrb[107].mxu0  ;;  %4807 = vmatmul.mubr.f32.gmra.mrb[212].mxu0 %v4617_v40  ;;  %v16646_v40 = vpack.c.bf16 %v5083_v14, %v5082_v62 }
 0x6b3   :  { %v12661_v50 = vadd.f32 %v12660_v61, %v12659_v59  ;;  %v4623_v34 = vpop.f32.mrb[198].mxu1  ;;  %16631 = vmatpush3.bf16.msra.mxu0 %v16630_v47  ;;  %v5456_v59 = vld [vmem:[%s24847_s7 + $0x880] sm:$0xff] }
 0x6b4   :  { %v4625_v48 = vpop.f32.mrb[199].mxu1  ;;  %16633 = vmatprep.subr.bf16.mxu0 %v16632_v1  ;;  %v5085_v1 = vld [vmem:[%s24847_s7 + $0x778] sm:$0xff] }
 0x6b5   :  { %v21856_v21 = vadd.f32 %v12661_v50, %v21088_v29  ;;  %v12662_v30 = vpop.f32.mrb[108].mxu0  ;;  %4811 = vmatprep.mubr.f32.mxu0 %v4625_v48  ;;  %v16640_v29 = vpack.c.bf16 %v5097_v27, %v5096_v9 }
 0x6b6   :  { %v12663_v4 = vpop.f32.mrb[109].mxu0  ;;  %4812 = vmatmul.mubr.f32.gmra.mrb[214].mxu0 %v4623_v34  ;;  %v16650_v34 = vpack.c.bf16 %v5085_v1, %v5084_v53 }
 0x6b7   :  { %v12664_v22 = vadd.f32 %v12663_v4, %v12662_v30  ;;  %v4629_v13 = vpop.f32.mrb[200].mxu1  ;;  %16635 = vmatpush3.bf16.msra.mxu0 %v16634_v54 }
 0x6b8   :  { %v4631_v52 = vpop.f32.mrb[201].mxu1  ;;  %16637 = vmatprep.subr.bf16.mxu0 %v16636_v39 }
 0x6b9   :  { %v21871_v37 = vadd.f32 %v12664_v22, %v21096_v19  ;;  %v12665_v10 = vpop.f32.mrb[110].mxu0  ;;  %4816 = vmatprep.mubr.f32.mxu0 %v4631_v52  ;;  %v16644_v19 = vpack.c.bf16 %v5099_v7, %v5098_v56 }
 0x6ba   :  { %v12666_v55 = vpop.f32.mrb[111].mxu0  ;;  %4817 = vmatmul.mubr.f32.gmra.mrb[216].mxu0 %v4629_v13 }
 0x6bb   :  { %v12667_v57 = vadd.f32 %v12666_v55, %v12665_v10  ;;  %v4635_v12 = vpop.f32.mrb[202].mxu1  ;;  %16639 = vmatpush3.bf16.msra.mxu0 %v16638_v45 }
 0x6bc   :  { %v4637_v8 = vpop.f32.mrb[203].mxu1  ;;  %16641 = vmatprep.subr.bf16.mxu0 %v16640_v29 }
 0x6bd   :  { %v21886_v36 = vadd.f32 %v12667_v57, %v21116_v5  ;;  %v12700_v42 = vpop.f32.mrb[112].mxu0  ;;  %4821 = vmatprep.mubr.f32.mxu0 %v4637_v8  ;;  %v16648_v5 = vpack.c.bf16 %v5101_v51, %v5100_v2 }
 0x6be   :  { %v12701_v33 = vpop.f32.mrb[113].mxu0  ;;  %4822 = vmatmul.mubr.f32.gmra.mrb[218].mxu0 %v4635_v12 }
 0x6bf   :  { %v12702_v18 = vadd.f32 %v12701_v33, %v12700_v42  ;;  %v4641_v17 = vpop.f32.mrb[204].mxu1  ;;  %16643 = vmatpush3.bf16.msra.mxu0 %v16642_v11 }
 0x6c0   :  { %v4643_v47 = vpop.f32.mrb[205].mxu1  ;;  %16645 = vmatprep.subr.bf16.mxu0 %v16644_v19 }
 0x6c1   :  { %v21901_v49 = vadd.f32 %v12702_v18, %v21738_v23  ;;  %v12703_v26 = vpop.f32.mrb[114].mxu0  ;;  %4826 = vmatprep.mubr.f32.mxu0 %v4643_v47  ;;  %v16684_v23 = vpack.c.bf16 %v5457_v43, %v5456_v59 }
 0x6c2   :  { %v12704_v3 = vpop.f32.mrb[115].mxu0  ;;  %4827 = vmatmul.mubr.f32.gmra.mrb[220].mxu0 %v4641_v17 }
 0x6c3   :  { %v12705_v61 = vadd.f32 %v12704_v3, %v12703_v26  ;;  %v4647_v50 = vpop.f32.mrb[206].mxu1  ;;  %16647 = vmatpush3.bf16.msra.mxu0 %v16646_v40 }
 0x6c4   :  { %v4649_v54 = vpop.f32.mrb[207].mxu1  ;;  %16649 = vmatprep.subr.bf16.mxu0 %v16648_v5 }
 0x6c5   :  { %v21910_v48 = vadd.f32 %v12705_v61, %v21751_v25  ;;  %v12706_v39 = vpop.f32.mrb[116].mxu0  ;;  %4831 = vmatprep.mubr.f32.mxu0 %v4649_v54  ;;  %v5458_v54 = vld [vmem:[%s24847_s7 + $0x890] sm:$0xff] }
 0x6c6   :  { %v12707_v35 = vpop.f32.mrb[117].mxu0  ;;  %4832 = vmatmul.mubr.f32.gmra.mrb[222].mxu0 %v4647_v50  ;;  %v5441_v50 = vld [vmem:[%s24847_s7 + $0x808] sm:$0xff] }
 0x6c7   :  { %v12708_v6 = vadd.f32 %v12707_v35, %v12706_v39  ;;  %v4653_v30 = vpop.f32.mrb[208].mxu1  ;;  %16651 = vmatpush3.bf16.msra.mxu0 %v16650_v34 }
 0x6c8   :  { %v4655_v9 = vpop.f32.mrb[209].mxu1  ;;  %16685 = vmatprep.subr.bf16.mxu0 %v16684_v23  ;;  %v5459_v23 = vld [vmem:[%s24847_s7 + $0x898] sm:$0xff] }
 0x6c9   :  { %v21913_v27 = vadd.f32 %v12708_v6, %v21758_v38  ;;  %v12709_v4 = vpop.f32.mrb[118].mxu0  ;;  %4836 = vmatprep.mubr.f32.mxu0 %v4655_v9 }
 0x6ca   :  { %v12710_v22 = vpop.f32.mrb[119].mxu0  ;;  %4837 = vmatmul.mubr.f32.gmra.mrb[224].mxu0 %v4653_v30 }
 0x6cb   :  { %v12711_v13 = vadd.f32 %v12710_v22, %v12709_v4  ;;  %v4659_v45 = vpop.f32.mrb[210].mxu1  ;;  %v16688_v4 = vpack.c.bf16 %v5459_v23, %v5458_v54  ;;  %v5443_v22 = vld [vmem:[%s24847_s7 + $0x818] sm:$0xff] }
 0x6cc   :  { %v4661_v25 = vpop.f32.mrb[211].mxu1  ;;  %v5467_v54 = vld [vmem:[%s24847_s7 + $0x8d8] sm:$0xff] }
 0x6cd   :  { %v21916_v52 = vadd.f32 %v12711_v13, %v21765_v16  ;;  %v12712_v29 = vpop.f32.mrb[120].mxu0  ;;  %4841 = vmatprep.mubr.f32.mxu0 %v4661_v25  ;;  %v5460_v25 = vld [vmem:[%s24847_s7 + $0x8a0] sm:$0xff] }
 0x6ce   :  { %v12713_v0 = vpop.f32.mrb[121].mxu0  ;;  %4842 = vmatmul.mubr.f32.gmra.mrb[226].mxu0 %v4659_v45 }
 0x6cf   :  { %v12714_v20 = vadd.f32 %v12713_v0, %v12712_v29  ;;  %v4665_v10 = vpop.f32.mrb[212].mxu1  ;;  %v5461_v29 = vld [vmem:[%s24847_s7 + $0x8a8] sm:$0xff] }
 0x6d0   :  { %v4667_v56 = vpop.f32.mrb[213].mxu1 }
 0x6d1   :  { %v21919_v38 = vadd.f32 %v12714_v20, %v21772_v58  ;;  %v12715_v7 = vpop.f32.mrb[122].mxu0  ;;  %4846 = vmatprep.mubr.f32.mxu0 %v4667_v56 }
 0x6d2   :  { %v12716_v55 = vpop.f32.mrb[123].mxu0  ;;  %4847 = vmatmul.mubr.f32.gmra.mrb[228].mxu0 %v4665_v10 }
 0x6d3   :  { %v12717_v57 = vadd.f32 %v12716_v55, %v12715_v7  ;;  %v4671_v12 = vpop.f32.mrb[214].mxu1  ;;  %v5444_v55 = vld [vmem:[%s24847_s7 + $0x820] sm:$0xff] }
 0x6d4   :  { %v4673_v11 = vpop.f32.mrb[215].mxu1 }
 0x6d5   :  { %v21922_v16 = vadd.f32 %v12717_v57, %v21778_v41  ;;  %v12718_v8 = vpop.f32.mrb[124].mxu0  ;;  %4851 = vmatprep.mubr.f32.mxu0 %v4673_v11  ;;  %v5445_v57 = vld [vmem:[%s24847_s7 + $0x828] sm:$0xff] }
 0x6d6   :  { %v12719_v19 = vpop.f32.mrb[125].mxu0  ;;  %4852 = vmatmul.mubr.f32.gmra.mrb[230].mxu0 %v4671_v12 }
 0x6d7   :  { %v12720_v62 = vadd.f32 %v12719_v19, %v12718_v8  ;;  %v4677_v14 = vpop.f32.mrb[216].mxu1  ;;  %v5462_v8 = vld [vmem:[%s24847_s7 + $0x8b0] sm:$0xff]  ;;  %v5463_v19 = vld [vmem:[%s24847_s7 + $0x8b8] sm:$0xff] }
 0x6d8   :  { %v4679_v42 = vpop.f32.mrb[217].mxu1 }
 0x6d9   :  { %v21925_v58 = vadd.f32 %v12720_v62, %v21781_v28  ;;  %v12721_v2 = vpop.f32.mrb[126].mxu0  ;;  %4856 = vmatprep.mubr.f32.mxu0 %v4679_v42 }
 0x6da   :  { %v12722_v51 = vpop.f32.mrb[127].mxu0  ;;  %4857 = vmatmul.mubr.f32.gmra.mrb[232].mxu0 %v4677_v14 }
 0x6db   :  { %v12723_v33 = vadd.f32 %v12722_v51, %v12721_v2  ;;  %v4683_v18 = vpop.f32.mrb[218].mxu1  ;;  %v16694_v2 = vpack.c.bf16 %v5445_v57, %v5444_v55 }
 0x6dc   :  { %v4685_v17 = vpop.f32.mrb[219].mxu1 }
 0x6dd   :  { %v21928_v41 = vadd.f32 %v12723_v33, %v21784_v31  ;;  %v12724_v40 = vpop.f32.mrb[128].mxu0  ;;  %4861 = vmatprep.mubr.f32.mxu0 %v4685_v17  ;;  %v5440_v31 = vld [vmem:[%s24847_s7 + $0x800] sm:$0xff]  ;;  %v5446_v33 = vld [vmem:[%s24847_s7 + $0x830] sm:$0xff] }
 0x6de   :  { %v12725_v47 = vpop.f32.mrb[129].mxu0  ;;  %4862 = vmatmul.mubr.f32.gmra.mrb[234].mxu0 %v4683_v18  ;;  %v16686_v30 = vpack.c.bf16 %v5441_v50, %v5440_v31  ;;  %v5447_v18 = vld [vmem:[%s24847_s7 + $0x838] sm:$0xff] }
 0x6df   :  { %v12726_v5 = vadd.f32 %v12725_v47, %v12724_v40  ;;  %v4689_v53 = vpop.f32.mrb[220].mxu1  ;;  %v5464_v47 = vld [vmem:[%s24847_s7 + $0x8c0] sm:$0xff] }
 0x6e0   :  { %v4691_v1 = vpop.f32.mrb[221].mxu1 }
 0x6e1   :  { %v21931_v28 = vadd.f32 %v12726_v5, %v21787_v44  ;;  %v12727_v26 = vpop.f32.mrb[130].mxu0  ;;  %4866 = vmatprep.mubr.f32.mxu0 %v4691_v1  ;;  %v5465_v5 = vld [vmem:[%s24847_s7 + $0x8c8] sm:$0xff] }
 0x6e2   :  { %v12728_v59 = vpop.f32.mrb[131].mxu0  ;;  %4867 = vmatmul.mubr.f32.gmra.mrb[236].mxu0 %v4689_v53 }
 0x6e3   :  { %v12729_v43 = vadd.f32 %v12728_v59, %v12727_v26  ;;  %v4695_v3 = vpop.f32.mrb[222].mxu1  ;;  %v16698_v59 = vpack.c.bf16 %v5447_v18, %v5446_v33 }
 0x6e4   :  { %v4697_v61 = vpop.f32.mrb[223].mxu1 }
 0x6e5   :  { %v21940_v34 = vadd.f32 %v12729_v43, %v21796_v63  ;;  %v12730_v44 = vpop.f32.mrb[132].mxu0  ;;  %4871 = vmatprep.mubr.f32.mxu0 %v4697_v61  ;;  %v5442_v63 = vld [vmem:[%s24847_s7 + $0x810] sm:$0xff]  ;;  %v5449_v61 = vld [vmem:[%s24847_s7 + $0x848] sm:$0xff] }
 0x6e6   :  { %v12731_v39 = vpop.f32.mrb[133].mxu0  ;;  %4872 = vmatmul.mubr.f32.gmra.mrb[238].mxu0 %v4695_v3  ;;  %v16690_v56 = vpack.c.bf16 %v5443_v22, %v5442_v63  ;;  %v5448_v3 = vld [vmem:[%s24847_s7 + $0x840] sm:$0xff] }
 0x6e7   :  { %v12732_v35 = vadd.f32 %v12731_v39, %v12730_v44  ;;  %v4975_v6 = vpop.f32.mrb[224].mxu1  ;;  %v5466_v44 = vld [vmem:[%s24847_s7 + $0x8d0] sm:$0xff] }
 0x6e8   :  { %v4977_v9 = vpop.f32.mrb[225].mxu1 }
 0x6e9   :  { %v21955_v13 = vadd.f32 %v12732_v35, %v21811_v60  ;;  %v12733_v45 = vpop.f32.mrb[134].mxu0  ;;  %5166 = vmatprep.mubr.f32.mxu0 %v4977_v9  ;;  %v16692_v60 = vpack.c.bf16 %v5461_v29, %v5460_v25  ;;  %v5450_v9 = vld [vmem:[%s24847_s7 + $0x850] sm:$0xff]  ;;  %v5469_v25 = vld [vmem:[%s24847_s7 + $0x8e8] sm:$0xff] }
 0x6ea   :  { %v12734_v0 = vpop.f32.mrb[135].mxu0  ;;  %5167 = vmatmul.mubr.f32.vlgmr.msra.gmra.mrb[240].mxu0 %v4975_v6  ;;  %v16702_v6 = vpack.c.bf16 %v5449_v61, %v5448_v3 }
 0x6eb   :  { %v12735_v20 = vadd.f32 %v12734_v0, %v12733_v45  ;;  %v4981_v10 = vpop.f32.mrb[226].mxu1  ;;  %16687 = vmatpush3.bf16.msra.mxu0 %v16686_v30  ;;  %v5468_v45 = vld [vmem:[%s24847_s7 + $0x8e0] sm:$0xff] }
 0x6ec   :  { %v4983_v7 = vpop.f32.mrb[227].mxu1  ;;  %16689 = vmatprep.subr.bf16.mxu0 %v16688_v4  ;;  %v5451_v4 = vld [vmem:[%s24847_s7 + $0x858] sm:$0xff] }
 0x6ed   :  { %v21970_v12 = vadd.f32 %v12735_v20, %v21826_v24  ;;  %v12736_v11 = vpop.f32.mrb[136].mxu0  ;;  %5171 = vmatprep.mubr.f32.mxu0 %v4983_v7  ;;  %v16696_v24 = vpack.c.bf16 %v5463_v19, %v5462_v8  ;;  %v5452_v7 = vld [vmem:[%s24847_s7 + $0x860] sm:$0xff]  ;;  %v5471_v8 = vld [vmem:[%s24847_s7 + $0x8f8] sm:$0xff] }
 0x6ee   :  { %v12737_v62 = vpop.f32.mrb[137].mxu0  ;;  %5172 = vmatmul.mubr.f32.gmra.mrb[242].mxu0 %v4981_v10  ;;  %v16706_v10 = vpack.c.bf16 %v5451_v4, %v5450_v9 }
 0x6ef   :  { %v12738_v14 = vadd.f32 %v12737_v62, %v12736_v11  ;;  %v4987_v42 = vpop.f32.mrb[228].mxu1  ;;  %16691 = vmatpush3.bf16.msra.mxu0 %v16690_v56  ;;  %v5470_v11 = vld [vmem:[%s24847_s7 + $0x8f0] sm:$0xff] }
 0x6f0   :  { %v4989_v51 = vpop.f32.mrb[229].mxu1  ;;  %16693 = vmatprep.subr.bf16.mxu0 %v16692_v60  ;;  %v5453_v60 = vld [vmem:[%s24847_s7 + $0x868] sm:$0xff] }
 0x6f1   :  { %v21985_v17 = vadd.f32 %v12738_v14, %v21841_v46  ;;  %v12739_v40 = vpop.f32.mrb[138].mxu0  ;;  %5176 = vmatprep.mubr.f32.mxu0 %v4989_v51  ;;  %v16700_v46 = vpack.c.bf16 %v5465_v5, %v5464_v47  ;;  %v5454_v51 = vld [vmem:[%s24847_s7 + $0x870] sm:$0xff] }
 0x6f2   :  { %v12740_v53 = vpop.f32.mrb[139].mxu0  ;;  %5177 = vmatmul.mubr.f32.gmra.mrb[244].mxu0 %v4987_v42  ;;  %v16710_v42 = vpack.c.bf16 %v5453_v60, %v5452_v7 }
 0x6f3   :  { %v12741_v1 = vadd.f32 %v12740_v53, %v12739_v40  ;;  %v4993_v26 = vpop.f32.mrb[230].mxu1  ;;  %16695 = vmatpush3.bf16.msra.mxu0 %v16694_v2 }
 0x6f4   :  { %v4995_v43 = vpop.f32.mrb[231].mxu1  ;;  %16697 = vmatprep.subr.bf16.mxu0 %v16696_v24  ;;  %v5455_v24 = vld [vmem:[%s24847_s7 + $0x878] sm:$0xff] }
 0x6f5   :  { %v22000_v31 = vadd.f32 %v12741_v1, %v21856_v21  ;;  %v12742_v50 = vpop.f32.mrb[140].mxu0  ;;  %5181 = vmatprep.mubr.f32.mxu0 %v4995_v43  ;;  %v16704_v21 = vpack.c.bf16 %v5467_v54, %v5466_v44  ;;  %v16714_v53 = vpack.c.bf16 %v5455_v24, %v5454_v51 }
 0x6f6   :  { %v12743_v23 = vpop.f32.mrb[141].mxu0  ;;  %5182 = vmatmul.mubr.f32.gmra.mrb[246].mxu0 %v4993_v26 }
 0x6f7   :  { %v12744_v39 = vadd.f32 %v12743_v23, %v12742_v50  ;;  %v4999_v35 = vpop.f32.mrb[232].mxu1  ;;  %16699 = vmatpush3.bf16.msra.mxu0 %v16698_v59 }
 0x6f8   :  { %v5001_v30 = vpop.f32.mrb[233].mxu1  ;;  %16701 = vmatprep.subr.bf16.mxu0 %v16700_v46 }
 0x6f9   :  { %v22015_v63 = vadd.f32 %v12744_v39, %v21871_v37  ;;  %v12745_v22 = vpop.f32.mrb[142].mxu0  ;;  %5186 = vmatprep.mubr.f32.mxu0 %v5001_v30  ;;  %v16708_v37 = vpack.c.bf16 %v5469_v25, %v5468_v45 }
 0x6fa   :  { %v12746_v29 = vpop.f32.mrb[143].mxu0  ;;  %5187 = vmatmul.mubr.f32.gmra.mrb[248].mxu0 %v4999_v35 }
 0x6fb   :  { %v12747_v0 = vadd.f32 %v12746_v29, %v12745_v22  ;;  %v5005_v20 = vpop.f32.mrb[234].mxu1  ;;  %16703 = vmatpush3.bf16.msra.mxu0 %v16702_v6 }
 0x6fc   :  { %v5007_v56 = vpop.f32.mrb[235].mxu1  ;;  %16705 = vmatprep.subr.bf16.mxu0 %v16704_v21 }
 0x6fd   :  { %v22030_v55 = vadd.f32 %v12747_v0, %v21886_v36  ;;  %v12780_v57 = vpop.f32.mrb[144].mxu0  ;;  %5191 = vmatprep.mubr.f32.mxu0 %v5007_v56  ;;  %v16712_v36 = vpack.c.bf16 %v5471_v8, %v5470_v11 }
 0x6fe   :  { %v12781_v19 = vpop.f32.mrb[145].mxu0  ;;  %5192 = vmatmul.mubr.f32.gmra.mrb[250].mxu0 %v5005_v20 }
 0x6ff   :  { %v12782_v62 = vadd.f32 %v12781_v19, %v12780_v57  ;;  %v5011_v14 = vpop.f32.mrb[236].mxu1  ;;  %16707 = vmatpush3.bf16.msra.mxu0 %v16706_v10 }
 0x700   :  { %v5013_v2 = vpop.f32.mrb[237].mxu1  ;;  %16709 = vmatprep.subr.bf16.mxu0 %v16708_v37 }
 0x701   :  { %v22045_v33 = vadd.f32 %v12782_v62, %v21901_v49  ;;  %v12783_v18 = vpop.f32.mrb[146].mxu0  ;;  %5196 = vmatprep.mubr.f32.mxu0 %v5013_v2 }
 0x702   :  { %v12784_v40 = vpop.f32.mrb[147].mxu0  ;;  %5197 = vmatmul.mubr.f32.gmra.mrb[252].mxu0 %v5011_v14 }
 0x703   :  { %v12785_v47 = vadd.f32 %v12784_v40, %v12783_v18  ;;  %v5017_v5 = vpop.f32.mrb[238].mxu1  ;;  %16711 = vmatpush3.bf16.msra.mxu0 %v16710_v42 }
 0x704   :  { %v5019_v1 = vpop.f32.mrb[239].mxu1  ;;  %16713 = vmatprep.subr.bf16.mxu0 %v16712_v36 }
 0x705   :  { %v22048_v26 = vadd.f32 %v12785_v47, %v21910_v48  ;;  %v12786_v59 = vpop.f32.mrb[148].mxu0  ;;  %5201 = vmatprep.mubr.f32.mxu0 %v5019_v1 }
 0x706   :  { %v12787_v43 = vpop.f32.mrb[149].mxu0  ;;  %5202 = vmatmul.mubr.f32.gmra.mrb[254].mxu0 %v5017_v5 }
 0x707   :  { %v12788_v46 = vadd.f32 %v12787_v43, %v12786_v59  ;;  %v5023_v49 = vpop.f32.mrb[240].mxu1  ;;  %16715 = vmatpush3.bf16.msra.mxu0 %v16714_v53 }
 0x708   :  { %v5025_v3 = vpop.f32.mrb[241].mxu1 }
 0x709   :  { %v22051_v61 = vadd.f32 %v12788_v46, %v21913_v27  ;;  %v12789_v50 = vpop.f32.mrb[150].mxu0  ;;  %5206 = vmatprep.mubr.f32.mxu0 %v5025_v3 }
 0x70a   :  { %v12790_v44 = vpop.f32.mrb[151].mxu0  ;;  %5207 = vmatmul.mubr.f32.gmra.mrb[0].mxu0 %v5023_v49 }
 0x70b   :  { %v12791_v54 = vadd.f32 %v12790_v44, %v12789_v50  ;;  %v5029_v23 = vpop.f32.mrb[242].mxu1 }
 0x70c   :  { %v5031_v39 = vpop.f32.mrb[243].mxu1 }
 0x70d   :  { %v22054_v48 = vadd.f32 %v12791_v54, %v21916_v52  ;;  %v12792_v35 = vpop.f32.mrb[152].mxu0  ;;  %5211 = vmatprep.mubr.f32.mxu0 %v5031_v39 }
 0x70e   :  { %v12793_v6 = vpop.f32.mrb[153].mxu0  ;;  %5212 = vmatmul.mubr.f32.gmra.mrb[2].mxu0 %v5029_v23 }
 0x70f   :  { %v12794_v30 = vadd.f32 %v12793_v6, %v12792_v35  ;;  %v5035_v21 = vpop.f32.mrb[244].mxu1 }
 0x710   :  { %v5037_v9 = vpop.f32.mrb[245].mxu1 }
 0x711   :  { %v22057_v27 = vadd.f32 %v12794_v30, %v21919_v38  ;;  %v12795_v4 = vpop.f32.mrb[154].mxu0  ;;  %5216 = vmatprep.mubr.f32.mxu0 %v5037_v9 }
 0x712   :  { %v12796_v22 = vpop.f32.mrb[155].mxu0  ;;  %5217 = vmatmul.mubr.f32.gmra.mrb[4].mxu0 %v5035_v21 }
 0x713   :  { %v12797_v45 = vadd.f32 %v12796_v22, %v12795_v4  ;;  %v5041_v25 = vpop.f32.mrb[246].mxu1 }
 0x714   :  { %v5043_v29 = vpop.f32.mrb[247].mxu1 }
 0x715   :  { %v22060_v52 = vadd.f32 %v12797_v45, %v21922_v16  ;;  %v12798_v0 = vpop.f32.mrb[156].mxu0  ;;  %5221 = vmatprep.mubr.f32.mxu0 %v5043_v29 }
 0x716   :  { %v12799_v20 = vpop.f32.mrb[157].mxu0  ;;  %5222 = vmatmul.mubr.f32.gmra.mrb[6].mxu0 %v5041_v25 }
 0x717   :  { %v12800_v10 = vadd.f32 %v12799_v20, %v12798_v0  ;;  %v5047_v56 = vpop.f32.mrb[248].mxu1 }
 0x718   :  { %v5049_v37 = vpop.f32.mrb[249].mxu1 }
 0x719   :  { %v22063_v38 = vadd.f32 %v12800_v10, %v21925_v58  ;;  %v12801_v7 = vpop.f32.mrb[158].mxu0  ;;  %5226 = vmatprep.mubr.f32.mxu0 %v5049_v37 }
 0x71a   :  { %v12802_v60 = vpop.f32.mrb[159].mxu0  ;;  %5227 = vmatmul.mubr.f32.gmra.mrb[8].mxu0 %v5047_v56 }
 0x71b   :  { %v12803_v57 = vadd.f32 %v12802_v60, %v12801_v7  ;;  %v5053_v11 = vpop.f32.mrb[250].mxu1 }
 0x71c   :  { %v5055_v8 = vpop.f32.mrb[251].mxu1 }
 0x71d   :  { %v22066_v16 = vadd.f32 %v12803_v57, %v21928_v41  ;;  %v12804_v19 = vpop.f32.mrb[160].mxu0  ;;  %5231 = vmatprep.mubr.f32.mxu0 %v5055_v8 }
 0x71e   :  { %v12805_v62 = vpop.f32.mrb[161].mxu0  ;;  %5232 = vmatmul.mubr.f32.gmra.mrb[10].mxu0 %v5053_v11 }
 0x71f   :  { %v12806_v14 = vadd.f32 %v12805_v62, %v12804_v19  ;;  %v5059_v42 = vpop.f32.mrb[252].mxu1 }
 0x720   :  { %v5061_v2 = vpop.f32.mrb[253].mxu1 }
 0x721   :  { %v22069_v58 = vadd.f32 %v12806_v14, %v21931_v28  ;;  %v12807_v36 = vpop.f32.mrb[162].mxu0  ;;  %5236 = vmatprep.mubr.f32.mxu0 %v5061_v2 }
 0x722   :  { %v12808_v51 = vpop.f32.mrb[163].mxu0  ;;  %5237 = vmatmul.mubr.f32.gmra.mrb[12].mxu0 %v5059_v42 }
 0x723   :  { %v12809_v24 = vadd.f32 %v12808_v51, %v12807_v36  ;;  %v5065_v18 = vpop.f32.mrb[254].mxu1 }
 0x724   :  { %v5067_v40 = vpop.f32.mrb[255].mxu1 }
 0x725   :  { %v22072_v41 = vadd.f32 %v12809_v24, %v21940_v34  ;;  %v12810_v47 = vpop.f32.mrb[164].mxu0  ;;  %5241 = vmatprep.mubr.f32.mxu0 %v5067_v40 }
 0x726   :  { %v12811_v5 = vpop.f32.mrb[165].mxu0  ;;  %5242 = vmatmul.mubr.f32.gmra.mrb[14].mxu0 %v5065_v18 }
 0x727   :  { %v12812_v53 = vadd.f32 %v12811_v5, %v12810_v47  ;;  %v5345_v1 = vpop.f32.mrb[0].mxu1 }
 0x728   :  { %v5347_v59 = vpop.f32.mrb[1].mxu1 }
 0x729   :  { %v22075_v28 = vadd.f32 %v12812_v53, %v21955_v13  ;;  %v12813_v43 = vpop.f32.mrb[166].mxu0  ;;  %5536 = vmatprep.mubr.f32.mxu0 %v5347_v59 }
 0x72a   :  { %v12814_v46 = vpop.f32.mrb[167].mxu0  ;;  %5537 = vmatmul.mubr.f32.vlgmr.msra.gmra.mrb[16].mxu0 %v5345_v1 }
 0x72b   :  { %v12815_v49 = vadd.f32 %v12814_v46, %v12813_v43  ;;  %v5351_v3 = vpop.f32.mrb[2].mxu1 }
 0x72c   :  { %v5353_v50 = vpop.f32.mrb[3].mxu1 }
 0x72d   :  { %v22078_v34 = vadd.f32 %v12815_v49, %v21970_v12  ;;  %v12816_v44 = vpop.f32.mrb[168].mxu0  ;;  %5541 = vmatprep.mubr.f32.mxu0 %v5353_v50 }
 0x72e   :  { %v12817_v54 = vpop.f32.mrb[169].mxu0  ;;  %5542 = vmatmul.mubr.f32.gmra.mrb[18].mxu0 %v5351_v3 }
 0x72f   :  { %v12818_v23 = vadd.f32 %v12817_v54, %v12816_v44  ;;  %v5357_v39 = vpop.f32.mrb[4].mxu1 }
 0x730   :  { %v5359_v35 = vpop.f32.mrb[5].mxu1 }
 0x731   :  { %v22081_v13 = vadd.f32 %v12818_v23, %v21985_v17  ;;  %v12819_v6 = vpop.f32.mrb[170].mxu0  ;;  %5546 = vmatprep.mubr.f32.mxu0 %v5359_v35 }
 0x732   :  { %v12820_v30 = vpop.f32.mrb[171].mxu0  ;;  %5547 = vmatmul.mubr.f32.gmra.mrb[20].mxu0 %v5357_v39 }
 0x733   :  { %v12821_v21 = vadd.f32 %v12820_v30, %v12819_v6  ;;  %v5363_v9 = vpop.f32.mrb[6].mxu1 }
 0x734   :  { %v5365_v4 = vpop.f32.mrb[7].mxu1 }
 0x735   :  { %v22084_v12 = vadd.f32 %v12821_v21, %v22000_v31  ;;  %v12822_v22 = vpop.f32.mrb[172].mxu0  ;;  %5551 = vmatprep.mubr.f32.mxu0 %v5365_v4 }
 0x736   :  { %v12823_v45 = vpop.f32.mrb[173].mxu0  ;;  %5552 = vmatmul.mubr.f32.gmra.mrb[22].mxu0 %v5363_v9 }
 0x737   :  { %v12824_v25 = vadd.f32 %v12823_v45, %v12822_v22  ;;  %v5369_v29 = vpop.f32.mrb[8].mxu1 }
 0x738   :  { %v5371_v0 = vpop.f32.mrb[9].mxu1 }
 0x739   :  { %v22087_v17 = vadd.f32 %v12824_v25, %v22015_v63  ;;  %v12825_v20 = vpop.f32.mrb[174].mxu0  ;;  %5556 = vmatprep.mubr.f32.mxu0 %v5371_v0 }
 0x73a   :  { %v12826_v10 = vpop.f32.mrb[175].mxu0  ;;  %5557 = vmatmul.mubr.f32.gmra.mrb[24].mxu0 %v5369_v29 }
 0x73b   :  { %v12827_v56 = vadd.f32 %v12826_v10, %v12825_v20  ;;  %v5375_v37 = vpop.f32.mrb[10].mxu1 }
 0x73c   :  { %v5377_v7 = vpop.f32.mrb[11].mxu1 }
 0x73d   :  { %v22090_v31 = vadd.f32 %v12827_v56, %v22030_v55  ;;  %v12860_v60 = vpop.f32.mrb[176].mxu0  ;;  %5561 = vmatprep.mubr.f32.mxu0 %v5377_v7 }
 0x73e   :  { %v12861_v57 = vpop.f32.mrb[177].mxu0  ;;  %5562 = vmatmul.mubr.f32.gmra.mrb[26].mxu0 %v5375_v37 }
 0x73f   :  { %v12862_v11 = vadd.f32 %v12861_v57, %v12860_v60  ;;  %v5381_v8 = vpop.f32.mrb[12].mxu1 }
 0x740   :  { %v5383_v19 = vpop.f32.mrb[13].mxu1 }
 0x741   :  { %v22093_v63 = vadd.f32 %v12862_v11, %v22045_v33  ;;  %v12863_v62 = vpop.f32.mrb[178].mxu0  ;;  %5566 = vmatprep.mubr.f32.mxu0 %v5383_v19 }
 0x742   :  { %v12864_v14 = vpop.f32.mrb[179].mxu0  ;;  %5567 = vmatmul.mubr.f32.gmra.mrb[28].mxu0 %v5381_v8 }
 0x743   :  { %v12865_v42 = vadd.f32 %v12864_v14, %v12863_v62  ;;  %v5387_v2 = vpop.f32.mrb[14].mxu1 }
 0x744   :  { %v5389_v36 = vpop.f32.mrb[15].mxu1 }
 0x745   :  { %v22096_v55 = vadd.f32 %v12865_v42, %v22048_v26  ;;  %v12866_v51 = vpop.f32.mrb[180].mxu0  ;;  %5571 = vmatprep.mubr.f32.mxu0 %v5389_v36 }
 0x746   :  { %v12867_v24 = vpop.f32.mrb[181].mxu0  ;;  %5572 = vmatmul.mubr.f32.gmra.mrb[30].mxu0 %v5387_v2 }
 0x747   :  { %v12868_v18 = vadd.f32 %v12867_v24, %v12866_v51  ;;  %v5393_v40 = vpop.f32.mrb[16].mxu1 }
 0x748   :  { %v5395_v47 = vpop.f32.mrb[17].mxu1 }
 0x749   :  { %v22099_v33 = vadd.f32 %v12868_v18, %v22051_v61  ;;  %v12869_v5 = vpop.f32.mrb[182].mxu0  ;;  %5576 = vmatprep.mubr.f32.mxu0 %v5395_v47 }
 0x74a   :  { %v12870_v53 = vpop.f32.mrb[183].mxu0  ;;  %5577 = vmatmul.mubr.f32.gmra.mrb[32].mxu0 %v5393_v40 }
 0x74b   :  { %v12871_v1 = vadd.f32 %v12870_v53, %v12869_v5  ;;  %v5399_v59 = vpop.f32.mrb[18].mxu1 }
 0x74c   :  { %v5401_v43 = vpop.f32.mrb[19].mxu1 }
 0x74d   :  { %v22102_v26 = vadd.f32 %v12871_v1, %v22054_v48  ;;  %v12872_v46 = vpop.f32.mrb[184].mxu0  ;;  %5581 = vmatprep.mubr.f32.mxu0 %v5401_v43 }
 0x74e   :  { %v12873_v49 = vpop.f32.mrb[185].mxu0  ;;  %5582 = vmatmul.mubr.f32.gmra.mrb[34].mxu0 %v5399_v59 }
 0x74f   :  { %v12874_v3 = vadd.f32 %v12873_v49, %v12872_v46  ;;  %v5405_v50 = vpop.f32.mrb[20].mxu1 }
 0x750   :  { %v5407_v44 = vpop.f32.mrb[21].mxu1 }
 0x751   :  { %v22105_v61 = vadd.f32 %v12874_v3, %v22057_v27  ;;  %v12875_v54 = vpop.f32.mrb[186].mxu0  ;;  %5586 = vmatprep.mubr.f32.mxu0 %v5407_v44 }
 0x752   :  { %v12876_v23 = vpop.f32.mrb[187].mxu0  ;;  %5587 = vmatmul.mubr.f32.gmra.mrb[36].mxu0 %v5405_v50 }
 0x753   :  { %v12877_v39 = vadd.f32 %v12876_v23, %v12875_v54  ;;  %v5411_v35 = vpop.f32.mrb[22].mxu1 }
 0x754   :  { %v5413_v6 = vpop.f32.mrb[23].mxu1 }
 0x755   :  { %v22108_v48 = vadd.f32 %v12877_v39, %v22060_v52  ;;  %v12878_v30 = vpop.f32.mrb[188].mxu0  ;;  %5591 = vmatprep.mubr.f32.mxu0 %v5413_v6 }
 0x756   :  { %v12879_v21 = vpop.f32.mrb[189].mxu0  ;;  %5592 = vmatmul.mubr.f32.gmra.mrb[38].mxu0 %v5411_v35 }
 0x757   :  { %v12880_v9 = vadd.f32 %v12879_v21, %v12878_v30  ;;  %v5417_v4 = vpop.f32.mrb[24].mxu1 }
 0x758   :  { %v5419_v22 = vpop.f32.mrb[25].mxu1 }
 0x759   :  { %v22111_v27 = vadd.f32 %v12880_v9, %v22063_v38  ;;  %v12881_v45 = vpop.f32.mrb[190].mxu0  ;;  %5596 = vmatprep.mubr.f32.mxu0 %v5419_v22 }
 0x75a   :  { %v12882_v25 = vpop.f32.mrb[191].mxu0  ;;  %5597 = vmatmul.mubr.f32.gmra.mrb[40].mxu0 %v5417_v4 }
 0x75b   :  { %v12883_v29 = vadd.f32 %v12882_v25, %v12881_v45  ;;  %v5423_v0 = vpop.f32.mrb[26].mxu1 }
 0x75c   :  { %v5425_v20 = vpop.f32.mrb[27].mxu1 }
 0x75d   :  { %v22114_v52 = vadd.f32 %v12883_v29, %v22066_v16  ;;  %v12884_v10 = vpop.f32.mrb[192].mxu0  ;;  %5601 = vmatprep.mubr.f32.mxu0 %v5425_v20 }
 0x75e   :  { %v12885_v56 = vpop.f32.mrb[193].mxu0  ;;  %5602 = vmatmul.mubr.f32.gmra.mrb[42].mxu0 %v5423_v0 }
 0x75f   :  { %v12886_v37 = vadd.f32 %v12885_v56, %v12884_v10  ;;  %v5429_v7 = vpop.f32.mrb[28].mxu1 }
 0x760   :  { %v5431_v60 = vpop.f32.mrb[29].mxu1 }
 0x761   :  { %v22117_v38 = vadd.f32 %v12886_v37, %v22069_v58  ;;  %v12887_v57 = vpop.f32.mrb[194].mxu0  ;;  %5606 = vmatprep.mubr.f32.mxu0 %v5431_v60  ;;  %v18075_v58 = vld [vmem:[%s24843_s3 + $0x80] sm:$0xff] }
 0x762   :  { %v12888_v11 = vpop.f32.mrb[195].mxu0  ;;  %5607 = vmatmul.mubr.f32.gmra.mrb[44].mxu0 %v5429_v7 }
 0x763   :  { %v12889_v8 = vadd.f32 %v12888_v11, %v12887_v57  ;;  %v5435_v19 = vpop.f32.mrb[30].mxu1 }
 0x764   :  { %v5437_v62 = vpop.f32.mrb[31].mxu1 }
 0x765   :  { %v22120_v16 = vadd.f32 %v12889_v8, %v22072_v41  ;;  %v12890_v14 = vpop.f32.mrb[196].mxu0  ;;  %5611 = vmatprep.mubr.f32.mxu0 %v5437_v62 }
 0x766   :  { %v12891_v42 = vpop.f32.mrb[197].mxu0  ;;  %5612 = vmatmul.mubr.f32.gmra.mrb[46].mxu0 %v5435_v19 }
 0x767   :  { %v12892_v2 = vadd.f32 %v12891_v42, %v12890_v14  ;;  %14348 = vmatprep.mubr.f32.mxu0 %v18075_v58 }
 0x769   :  { %v22126_v36 = vadd.f32 %v12892_v2, %v22075_v28  ;;  %v12893_v51 = vpop.f32.mrb[198].mxu0 }
 0x76a   :  { %v12894_v24 = vpop.f32.mrb[199].mxu0 }
 0x76b   :  { %v12895_v18 = vadd.f32 %v12894_v24, %v12893_v51 }
 0x76d   :  { %v22129_v40 = vadd.f32 %v12895_v18, %v22078_v34  ;;  %v12896_v41 = vpop.f32.mrb[200].mxu0 }
 0x76e   :  { %v12897_v47 = vpop.f32.mrb[201].mxu0 }
 0x76f   :  { %v12898_v5 = vadd.f32 %v12897_v47, %v12896_v41 }
 0x771   :  { %v22132_v53 = vadd.f32 %v12898_v5, %v22081_v13  ;;  %v12899_v1 = vpop.f32.mrb[202].mxu0 }
 0x772   :  { %v12900_v59 = vpop.f32.mrb[203].mxu0 }
 0x773   :  { %v12901_v43 = vadd.f32 %v12900_v59, %v12899_v1 }
 0x775   :  { %v22135_v46 = vadd.f32 %v12901_v43, %v22084_v12  ;;  %v12902_v28 = vpop.f32.mrb[204].mxu0 }
 0x776   :  { %v12903_v49 = vpop.f32.mrb[205].mxu0 }
 0x777   :  { %v12904_v3 = vadd.f32 %v12903_v49, %v12902_v28 }
 0x779   :  { %v22138_v50 = vadd.f32 %v12904_v3, %v22087_v17  ;;  %v12905_v34 = vpop.f32.mrb[206].mxu0 }
 0x77a   :  { %v12906_v44 = vpop.f32.mrb[207].mxu0 }
 0x77b   :  { %v12907_v54 = vadd.f32 %v12906_v44, %v12905_v34 }
 0x77d   :  { %v22141_v23 = vadd.f32 %v12907_v54, %v22090_v31  ;;  %v12940_v13 = vpop.f32.mrb[208].mxu0 }
 0x77e   :  { %v12941_v39 = vpop.f32.mrb[209].mxu0 }
 0x77f   :  { %v12942_v35 = vadd.f32 %v12941_v39, %v12940_v13 }
 0x781   :  { %v22144_v6 = vadd.f32 %v12942_v35, %v22093_v63  ;;  %v12943_v12 = vpop.f32.mrb[210].mxu0 }
 0x782   :  { %v12944_v30 = vpop.f32.mrb[211].mxu0 }
 0x783   :  { %v12945_v21 = vadd.f32 %v12944_v30, %v12943_v12 }
 0x785   :  { %v22147_v9 = vadd.f32 %v12945_v21, %v22096_v55  ;;  %v12946_v17 = vpop.f32.mrb[212].mxu0 }
 0x786   :  { %v12947_v4 = vpop.f32.mrb[213].mxu0 }
 0x787   :  { %v12948_v22 = vadd.f32 %v12947_v4, %v12946_v17 }
 0x789   :  { %v22150_v45 = vadd.f32 %v12948_v22, %v22099_v33  ;;  %v12949_v31 = vpop.f32.mrb[214].mxu0 }
 0x78a   :  { %v12950_v25 = vpop.f32.mrb[215].mxu0 }
 0x78b   :  { %v12951_v29 = vadd.f32 %v12950_v25, %v12949_v31 }
 0x78d   :  { %v22153_v0 = vadd.f32 %v12951_v29, %v22102_v26  ;;  %v12952_v63 = vpop.f32.mrb[216].mxu0 }
 0x78e   :  { %v12953_v20 = vpop.f32.mrb[217].mxu0 }
 0x78f   :  { %v12954_v10 = vadd.f32 %v12953_v20, %v12952_v63 }
 0x791   :  { %v22156_v56 = vadd.f32 %v12954_v10, %v22105_v61  ;;  %v12955_v55 = vpop.f32.mrb[218].mxu0 }
 0x792   :  { %v12956_v37 = vpop.f32.mrb[219].mxu0 }
 0x793   :  { %v12957_v7 = vadd.f32 %v12956_v37, %v12955_v55 }
 0x795   :  { %v22159_v60 = vadd.f32 %v12957_v7, %v22108_v48  ;;  %v12958_v33 = vpop.f32.mrb[220].mxu0 }
 0x796   :  { %v12959_v57 = vpop.f32.mrb[221].mxu0 }
 0x797   :  { %v12960_v11 = vadd.f32 %v12959_v57, %v12958_v33 }
 0x799   :  { %v22162_v8 = vadd.f32 %v12960_v11, %v22111_v27  ;;  %v12961_v26 = vpop.f32.mrb[222].mxu0 }
 0x79a   :  { %v12962_v19 = vpop.f32.mrb[223].mxu0 }
 0x79b   :  { %v12963_v62 = vadd.f32 %v12962_v19, %v12961_v26 }
 0x79d   :  { %v22165_v14 = vadd.f32 %v12963_v62, %v22114_v52  ;;  %v12964_v61 = vpop.f32.mrb[224].mxu0 }
 0x79e   :  { %v12965_v42 = vpop.f32.mrb[225].mxu0 }
 0x79f   :  { %v12966_v2 = vadd.f32 %v12965_v42, %v12964_v61 }
 0x7a1   :  { %v22168_v58 = vadd.f32 %v12966_v2, %v22117_v38  ;;  %v12967_v48 = vpop.f32.mrb[226].mxu0 }
 0x7a2   :  { %v12968_v51 = vpop.f32.mrb[227].mxu0 }
 0x7a3   :  { %v12969_v24 = vadd.f32 %v12968_v51, %v12967_v48 }
 0x7a5   :  { %v22171_v18 = vadd.f32 %v12969_v24, %v22120_v16  ;;  %v12970_v27 = vpop.f32.mrb[228].mxu0 }
 0x7a6   :  { %v12971_v41 = vpop.f32.mrb[229].mxu0 }
 0x7a7   :  { %v12972_v47 = vadd.f32 %v12971_v41, %v12970_v27 }
 0x7a9   :  { %v22174_v5 = vadd.f32 %v12972_v47, %v22126_v36  ;;  %v12973_v52 = vpop.f32.mrb[230].mxu0 }
 0x7aa   :  { %v12974_v1 = vpop.f32.mrb[231].mxu0 }
 0x7ab   :  { %v12975_v59 = vadd.f32 %v12974_v1, %v12973_v52 }
 0x7ad   :  { %v22177_v43 = vadd.f32 %v12975_v59, %v22129_v40  ;;  %v12976_v38 = vpop.f32.mrb[232].mxu0 }
 0x7ae   :  { %v12977_v28 = vpop.f32.mrb[233].mxu0 }
 0x7af   :  { %v12978_v49 = vadd.f32 %v12977_v28, %v12976_v38 }
 0x7b1   :  { %v22180_v3 = vadd.f32 %v12978_v49, %v22132_v53  ;;  %v12979_v16 = vpop.f32.mrb[234].mxu0 }
 0x7b2   :  { %v12980_v34 = vpop.f32.mrb[235].mxu0 }
 0x7b3   :  { %v12981_v44 = vadd.f32 %v12980_v34, %v12979_v16 }
 0x7b5   :  { %v22183_v54 = vadd.f32 %v12981_v44, %v22135_v46  ;;  %v12982_v36 = vpop.f32.mrb[236].mxu0 }
 0x7b6   :  { %v12983_v13 = vpop.f32.mrb[237].mxu0 }
 0x7b7   :  { %v12984_v39 = vadd.f32 %v12983_v13, %v12982_v36 }
 0x7b9   :  { %v22186_v35 = vadd.f32 %v12984_v39, %v22138_v50  ;;  %v12985_v40 = vpop.f32.mrb[238].mxu0 }
 0x7ba   :  { %v12986_v12 = vpop.f32.mrb[239].mxu0 }
 0x7bb   :  { %v12987_v30 = vadd.f32 %v12986_v12, %v12985_v40 }
 0x7bd   :  { %v22189_v21 = vadd.f32 %v12987_v30, %v22141_v23  ;;  %v13020_v53 = vpop.f32.mrb[240].mxu0 }
 0x7be   :  { %v13021_v17 = vpop.f32.mrb[241].mxu0 }
 0x7bf   :  { %v13022_v4 = vadd.f32 %v13021_v17, %v13020_v53 }
 0x7c1   :  { %v22192_v22 = vadd.f32 %v13022_v4, %v22144_v6  ;;  %v13023_v46 = vpop.f32.mrb[242].mxu0 }
 0x7c2   :  { %v13024_v31 = vpop.f32.mrb[243].mxu0 }
 0x7c3   :  { %v13025_v25 = vadd.f32 %v13024_v31, %v13023_v46 }
 0x7c5   :  { %v22195_v29 = vadd.f32 %v13025_v25, %v22147_v9  ;;  %v13026_v50 = vpop.f32.mrb[244].mxu0 }
 0x7c6   :  { %v13027_v63 = vpop.f32.mrb[245].mxu0 }
 0x7c7   :  { %v13028_v20 = vadd.f32 %v13027_v63, %v13026_v50 }
 0x7c9   :  { %v22198_v10 = vadd.f32 %v13028_v20, %v22150_v45  ;;  %v13029_v23 = vpop.f32.mrb[246].mxu0 }
 0x7ca   :  { %v13030_v55 = vpop.f32.mrb[247].mxu0 }
 0x7cb   :  { %v13031_v37 = vadd.f32 %v13030_v55, %v13029_v23 }
 0x7cd   :  { %v22201_v7 = vadd.f32 %v13031_v37, %v22153_v0  ;;  %v13032_v6 = vpop.f32.mrb[248].mxu0 }
 0x7ce   :  { %v13033_v33 = vpop.f32.mrb[249].mxu0 }
 0x7cf   :  { %v13034_v57 = vadd.f32 %v13033_v33, %v13032_v6 }
 0x7d1   :  { %v22204_v11 = vadd.f32 %v13034_v57, %v22156_v56  ;;  %v13035_v9 = vpop.f32.mrb[250].mxu0 }
 0x7d2   :  { %v13036_v26 = vpop.f32.mrb[251].mxu0 }
 0x7d3   :  { %v13037_v19 = vadd.f32 %v13036_v26, %v13035_v9 }
 0x7d5   :  { %v22207_v62 = vadd.f32 %v13037_v19, %v22159_v60  ;;  %v13038_v45 = vpop.f32.mrb[252].mxu0 }
 0x7d6   :  { %v13039_v61 = vpop.f32.mrb[253].mxu0 }
 0x7d7   :  { %v13040_v42 = vadd.f32 %v13039_v61, %v13038_v45 }
 0x7d9   :  { %v22210_v2 = vadd.f32 %v13040_v42, %v22162_v8  ;;  %v13041_v0 = vpop.f32.mrb[254].mxu0 }
 0x7da   :  { %v13042_v48 = vpop.f32.mrb[255].mxu0 }
 0x7db   :  { %v13043_v51 = vadd.f32 %v13042_v48, %v13041_v0 }
 0x7dd   :  { %v22213_v24 = vadd.f32 %v13043_v51, %v22165_v14  ;;  %v13044_v56 = vpop.f32.mrb[0].mxu0 }
 0x7de   :  { %v13045_v27 = vpop.f32.mrb[1].mxu0 }
 0x7df   :  { %v13046_v41 = vadd.f32 %v13045_v27, %v13044_v56 }
 0x7e1   :  { %v22216_v47 = vadd.f32 %v13046_v41, %v22168_v58  ;;  %v13047_v60 = vpop.f32.mrb[2].mxu0 }
 0x7e2   :  { %v13048_v52 = vpop.f32.mrb[3].mxu0 }
 0x7e3   :  { %v13049_v1 = vadd.f32 %v13048_v52, %v13047_v60 }
 0x7e5   :  { %v22219_v59 = vadd.f32 %v13049_v1, %v22171_v18  ;;  %v13050_v8 = vpop.f32.mrb[4].mxu0 }
 0x7e6   :  { %v13051_v38 = vpop.f32.mrb[5].mxu0 }
 0x7e7   :  { %v13052_v28 = vadd.f32 %v13051_v38, %v13050_v8 }
 0x7e9   :  { %v22222_v49 = vadd.f32 %v13052_v28, %v22174_v5  ;;  %v13053_v14 = vpop.f32.mrb[6].mxu0 }
 0x7ea   :  { %v13054_v16 = vpop.f32.mrb[7].mxu0 }
 0x7eb   :  { %v13055_v34 = vadd.f32 %v13054_v16, %v13053_v14 }
 0x7ed   :  { %v22225_v44 = vadd.f32 %v13055_v34, %v22177_v43  ;;  %v13056_v58 = vpop.f32.mrb[8].mxu0 }
 0x7ee   :  { %v13057_v36 = vpop.f32.mrb[9].mxu0 }
 0x7ef   :  { %v13058_v13 = vadd.f32 %v13057_v36, %v13056_v58 }
 0x7f1   :  { %v22228_v39 = vadd.f32 %v13058_v13, %v22180_v3  ;;  %v13059_v18 = vpop.f32.mrb[10].mxu0 }
 0x7f2   :  { %v13060_v40 = vpop.f32.mrb[11].mxu0 }
 0x7f3   :  { %v13061_v12 = vadd.f32 %v13060_v40, %v13059_v18 }
 0x7f5   :  { %v22231_v30 = vadd.f32 %v13061_v12, %v22183_v54  ;;  %v13062_v5 = vpop.f32.mrb[12].mxu0 }
 0x7f6   :  { %v13063_v53 = vpop.f32.mrb[13].mxu0 }
 0x7f7   :  { %v13064_v17 = vadd.f32 %v13063_v53, %v13062_v5 }
 0x7f9   :  { %v22234_v4 = vadd.f32 %v13064_v17, %v22186_v35  ;;  %v13065_v43 = vpop.f32.mrb[14].mxu0 }
 0x7fa   :  { %v13066_v46 = vpop.f32.mrb[15].mxu0 }
 0x7fb   :  { %v13067_v31 = vadd.f32 %v13066_v46, %v13065_v43 }
 0x7fd   :  { %v22237_v25 = vadd.f32 %v13067_v31, %v22189_v21  ;;  %v13100_v3 = vpop.f32.mrb[16].mxu0 }
 0x7fe   :  { %v13101_v50 = vpop.f32.mrb[17].mxu0 }
 0x7ff   :  { %v13102_v63 = vadd.f32 %v13101_v50, %v13100_v3 }
 0x801   :  { %v22240_v20 = vadd.f32 %v13102_v63, %v22192_v22  ;;  %v13103_v54 = vpop.f32.mrb[18].mxu0 }
 0x802   :  { %v13104_v23 = vpop.f32.mrb[19].mxu0 }
 0x803   :  { %v13105_v55 = vadd.f32 %v13104_v23, %v13103_v54 }
 0x805   :  { %v22243_v37 = vadd.f32 %v13105_v55, %v22195_v29  ;;  %v13106_v35 = vpop.f32.mrb[20].mxu0 }
 0x806   :  { %v13107_v6 = vpop.f32.mrb[21].mxu0 }
 0x807   :  { %v13108_v33 = vadd.f32 %v13107_v6, %v13106_v35  ;;  %v5634_v16 = vadd.f32 %v22243_v37, %v22240_v20 }
 0x809   :  { %v22246_v57 = vadd.f32 %v13108_v33, %v22198_v10  ;;  %v13109_v21 = vpop.f32.mrb[22].mxu0 }
 0x80a   :  { %v13110_v9 = vpop.f32.mrb[23].mxu0 }
 0x80b   :  { %v13111_v26 = vadd.f32 %v13110_v9, %v13109_v21 }
 0x80d   :  { %v22249_v19 = vadd.f32 %v13111_v26, %v22201_v7  ;;  %v13112_v22 = vpop.f32.mrb[24].mxu0 }
 0x80e   :  { %v13113_v45 = vpop.f32.mrb[25].mxu0 }
 0x80f   :  { %v13114_v61 = vadd.f32 %v13113_v45, %v13112_v22 }
 0x811   :  { %v22252_v42 = vadd.f32 %v13114_v61, %v22204_v11  ;;  %v13115_v29 = vpop.f32.mrb[26].mxu0 }
 0x812   :  { %v13116_v0 = vpop.f32.mrb[27].mxu0 }
 0x813   :  { %v13117_v48 = vadd.f32 %v13116_v0, %v13115_v29 }
 0x815   :  { %v22255_v51 = vadd.f32 %v13117_v48, %v22207_v62  ;;  %v13118_v10 = vpop.f32.mrb[28].mxu0 }
 0x816   :  { %v13119_v56 = vpop.f32.mrb[29].mxu0 }
 0x817   :  { %v13120_v27 = vadd.f32 %v13119_v56, %v13118_v10 }
 0x819   :  { %v22258_v41 = vadd.f32 %v13120_v27, %v22210_v2  ;;  %v13121_v7 = vpop.f32.mrb[30].mxu0  ;;  %v5635_v2 = vadd.f32 %v5634_v16, %v22246_v57 }
 0x81a   :  { %v13122_v60 = vpop.f32.mrb[31].mxu0 }
 0x81b   :  { %v13123_v52 = vadd.f32 %v13122_v60, %v13121_v7  ;;  %v5636_v13 = vadd.f32 %v5635_v2, %v22249_v19 }
 0x81d   :  { %v22261_v1 = vadd.f32 %v13123_v52, %v22213_v24  ;;  %v13124_v11 = vpop.f32.mrb[32].mxu0  ;;  %v5637_v40 = vadd.f32 %v5636_v13, %v22252_v42 }
 0x81e   :  { %v13125_v8 = vpop.f32.mrb[33].mxu0 }
 0x81f   :  { %v13126_v38 = vadd.f32 %v13125_v8, %v13124_v11  ;;  %v5638_v53 = vadd.f32 %v5637_v40, %v22255_v51 }
 0x821   :  { %v22264_v28 = vadd.f32 %v13126_v38, %v22216_v47  ;;  %v13127_v62 = vpop.f32.mrb[34].mxu0  ;;  %v5639_v43 = vadd.f32 %v5638_v53, %v22258_v41 }
 0x822   :  { %v13128_v14 = vpop.f32.mrb[35].mxu0 }
 0x823   :  { %v13129_v34 = vadd.f32 %v13128_v14, %v13127_v62  ;;  %v5640_v3 = vadd.f32 %v5639_v43, %v22261_v1 }
 0x825   :  { %v22270_v58 = vadd.f32 %v13129_v34, %v22219_v59  ;;  %v13130_v36 = vpop.f32.mrb[36].mxu0  ;;  %v5641_v63 = vadd.f32 %v5640_v3, %v22264_v28 }
 0x826   :  { %v13131_v24 = vpop.f32.mrb[37].mxu0 }
 0x827   :  { %v13132_v18 = vadd.f32 %v13131_v24, %v13130_v36  ;;  %v5642_v55 = vadd.f32 %v5641_v63, %v22270_v58 }
 0x829   :  { %v22275_v47 = vadd.f32 %v13132_v18, %v22222_v49  ;;  %v13133_v12 = vpop.f32.mrb[38].mxu0 }
 0x82a   :  { %v13134_v5 = vpop.f32.mrb[39].mxu0 }
 0x82b   :  { %v13135_v17 = vadd.f32 %v13134_v5, %v13133_v12  ;;  %v5643_v6 = vadd.f32 %v5642_v55, %v22275_v47 }
 0x82d   :  { %v22280_v59 = vadd.f32 %v13135_v17, %v22225_v44  ;;  %v13136_v46 = vpop.f32.mrb[40].mxu0 }
 0x82e   :  { %v13137_v31 = vpop.f32.mrb[41].mxu0 }
 0x82f   :  { %v13138_v50 = vadd.f32 %v13137_v31, %v13136_v46  ;;  %v5644_v9 = vadd.f32 %v5643_v6, %v22280_v59 }
 0x831   :  { %v22285_v49 = vadd.f32 %v13138_v50, %v22228_v39  ;;  %v13139_v54 = vpop.f32.mrb[42].mxu0 }
 0x832   :  { %v13140_v23 = vpop.f32.mrb[43].mxu0 }
 0x833   :  { %v13141_v35 = vadd.f32 %v13140_v23, %v13139_v54  ;;  %v5645_v22 = vadd.f32 %v5644_v9, %v22285_v49 }
 0x835   :  { %v22290_v44 = vadd.f32 %v13141_v35, %v22231_v30  ;;  %v13142_v33 = vpop.f32.mrb[44].mxu0 }
 0x836   :  { %v13143_v21 = vpop.f32.mrb[45].mxu0 }
 0x837   :  { %v13144_v26 = vadd.f32 %v13143_v21, %v13142_v33  ;;  %v5646_v29 = vadd.f32 %v5645_v22, %v22290_v44 }
 0x839   :  { %v22295_v39 = vadd.f32 %v13144_v26, %v22234_v4  ;;  %v13145_v45 = vpop.f32.mrb[46].mxu0 }
 0x83a   :  { %v13146_v61 = vpop.f32.mrb[47].mxu0 }
 0x83b   :  { %v13147_v0 = vadd.f32 %v13146_v61, %v13145_v45  ;;  %v5647_v48 = vadd.f32 %v5646_v29, %v22295_v39 }
 0x83d   :  { %v22300_v30 = vadd.f32 %v13147_v0, %v22237_v25 }
 0x83f   :  { %v5648_v10 = vadd.f32 %v5647_v48, %v22300_v30 }
 0x841   :  { %v5649_v56 = vrot.slane %v5648_v10, 4 }
 0x843   :  { %v5650_v27 = vadd.f32 %v5649_v56, %v5648_v10 }
 0x845   :  { %v5651_v7 = vrot.slane %v5650_v27, 2 }
 0x847   :  { %v5652_v60 = vadd.f32 %v5651_v7, %v5650_v27 }
 0x849   :  { %v5653_v52 = vrot.slane %v5652_v60, 1 }
 0x84b   :  { %v5654_v11 = vadd.f32 %v5653_v52, %v5652_v60 }
 0x84d   :  { %v5655_v4 = vmul.f32 0.0078125, %v5654_v11 }
 0x84f   :  { %v5656_v8 = vsub.f32 %v22240_v20, %v5655_v4  ;;  %v5657_v38 = vsub.f32 %v22243_v37, %v5655_v4  ;;  %v5658_v62 = vsub.f32 %v22246_v57, %v5655_v4  ;;  %v5659_v25 = vsub.f32 %v22249_v19, %v5655_v4 }
 0x850   :  { %v5660_v34 = vsub.f32 %v22252_v42, %v5655_v4  ;;  %v5661_v24 = vsub.f32 %v22255_v51, %v5655_v4  ;;  %v5662_v40 = vsub.f32 %v22258_v41, %v5655_v4  ;;  %v5663_v53 = vsub.f32 %v22261_v1, %v5655_v4 }
 0x851   :  { %v5672_v14 = vmul.f32 %v5656_v8, %v5656_v8  ;;  %v5673_v16 = vmul.f32 %v5657_v38, %v5657_v38  ;;  %v5674_v2 = vmul.f32 %v5658_v62, %v5658_v62  ;;  %v5675_v13 = vmul.f32 %v5659_v25, %v5659_v25 }
 0x852   :  { %v5676_v12 = vmul.f32 %v5660_v34, %v5660_v34  ;;  %v5677_v17 = vmul.f32 %v5661_v24, %v5661_v24  ;;  %v5664_v46 = vsub.f32 %v22264_v28, %v5655_v4  ;;  %v5678_v31 = vmul.f32 %v5662_v40, %v5662_v40 }
 0x853   :  { %v5688_v36 = vadd.f32 %v5673_v16, %v5672_v14  ;;  %v5665_v50 = vsub.f32 %v22270_v58, %v5655_v4  ;;  %v5679_v63 = vmul.f32 %v5663_v53, %v5663_v53  ;;  %v5666_v23 = vsub.f32 %v22275_v47, %v5655_v4 }
 0x854   :  { %v5680_v55 = vmul.f32 %v5664_v46, %v5664_v46  ;;  %v5667_v6 = vsub.f32 %v22280_v59, %v5655_v4  ;;  %v5668_v9 = vsub.f32 %v22285_v49, %v5655_v4  ;;  %v5669_v45 = vsub.f32 %v22290_v44, %v5655_v4 }
 0x855   :  { %v5689_v18 = vadd.f32 %v5688_v36, %v5674_v2  ;;  %v5681_v33 = vmul.f32 %v5665_v50, %v5665_v50  ;;  %v5682_v26 = vmul.f32 %v5666_v23, %v5666_v23  ;;  %v5670_v0 = vsub.f32 %v22295_v39, %v5655_v4 }
 0x856   :  { %v5683_v61 = vmul.f32 %v5667_v6, %v5667_v6  ;;  %v5684_v48 = vmul.f32 %v5668_v9, %v5668_v9  ;;  %v5671_v56 = vsub.f32 %v22300_v30, %v5655_v4  ;;  %v5685_v27 = vmul.f32 %v5669_v45, %v5669_v45 }
 0x857   :  { %v5690_v5 = vadd.f32 %v5689_v18, %v5675_v13  ;;  %v5686_v60 = vmul.f32 %v5670_v0, %v5670_v0  ;;  %v5633_v13 = vld [vmem:[%s24852_s12] sm:$0x3] }
 0x858   :  { %v5687_v11 = vmul.f32 %v5671_v56, %v5671_v56 }
 0x859   :  { %v5691_v43 = vadd.f32 %v5690_v5, %v5676_v12 }
 0x85b   :  { %v5692_v3 = vadd.f32 %v5691_v43, %v5677_v17 }
 0x85d   :  { %v5693_v54 = vadd.f32 %v5692_v3, %v5678_v31 }
 0x85f   :  { %v5694_v35 = vadd.f32 %v5693_v54, %v5679_v63 }
 0x861   :  { %v5695_v21 = vadd.f32 %v5694_v35, %v5680_v55 }
 0x863   :  { %v5696_v22 = vadd.f32 %v5695_v21, %v5681_v33 }
 0x865   :  { %v5697_v29 = vadd.f32 %v5696_v22, %v5682_v26 }
 0x867   :  { %v5698_v10 = vadd.f32 %v5697_v29, %v5683_v61 }
 0x869   :  { %v5699_v7 = vadd.f32 %v5698_v10, %v5684_v48 }
 0x86b   :  { %v5700_v52 = vadd.f32 %v5699_v7, %v5685_v27 }
 0x86d   :  { %v5701_v8 = vadd.f32 %v5700_v52, %v5686_v60 }
 0x86f   :  { %v5702_v38 = vadd.f32 %v5701_v8, %v5687_v11 }
 0x871   :  { %v5703_v62 = vrot.slane %v5702_v38, 4 }
 0x873   :  { %v5704_v14 = vadd.f32 %v5703_v62, %v5702_v38 }
 0x875   :  { %v5705_v16 = vrot.slane %v5704_v14, 2 }
 0x877   :  { %v5706_v25 = vadd.f32 %v5705_v16, %v5704_v14 }
 0x879   :  { %v5707_v34 = vrot.slane %v5706_v25, 1 }
 0x87b   :  { %v5708_v2 = vadd.f32 %v5707_v34, %v5706_v25 }
 0x87d   :  { %v5709_v36 = vmul.f32 0.0078125, %v5708_v2 }
 0x87f   :  { %v5710_v24 = vadd.f32 1e-05, %v5709_v36 }
 0x881   :  { %18004 = vrsqrt.f32 %v5710_v24 }
 0x88b   :  { %v18005_v18 = vpop.eup %18004 }
 0x88c   :  { %v5712_v40 = vmul.f32 %v18005_v18, %v5633_v13 }
 0x88e   :  { %v5733_v12 = vmul.f32 %v5712_v40, %v5655_v4  ;;  %v22323_v5 = vrot.slane %v5712_v40, %v24939_v15 }
 0x890   :  { %v5735_v53 = vrot.slane %v5733_v12, 7  ;;  %v5717_v43 = vmul.f32 %v22323_v5, %v22240_v20  ;;  %v5718_v46 = vmul.f32 %v22323_v5, %v22243_v37  ;;  %v5719_v3 = vmul.f32 %v22323_v5, %v22246_v57 }
 0x891   :  { %v5720_v63 = vmul.f32 %v22323_v5, %v22249_v19  ;;  %v5721_v54 = vmul.f32 %v22323_v5, %v22252_v42  ;;  %v5722_v20 = vmul.f32 %v22323_v5, %v22255_v51  ;;  %v5723_v37 = vmul.f32 %v22323_v5, %v22258_v41 }
 0x892   :  { %v5737_v17 = vsub.f32 %v5633_v13, %v5735_v53  ;;  %v5724_v57 = vmul.f32 %v22323_v5, %v22261_v1  ;;  %v5725_v51 = vmul.f32 %v22323_v5, %v22264_v28  ;;  %v5726_v41 = vmul.f32 %v22323_v5, %v22270_v58 }
 0x893   :  { %v5727_v33 = vmul.f32 %v22323_v5, %v22275_v47  ;;  %v5728_v22 = vmul.f32 %v22323_v5, %v22280_v59  ;;  %v5729_v25 = vmul.f32 %v22323_v5, %v22285_v49  ;;  %v5730_v34 = vmul.f32 %v22323_v5, %v22290_v44 }
 0x894   :  { %v22330_v31 = vrot.slane %v5737_v17, %v24941_v32  ;;  %v5731_v40 = vmul.f32 %v22323_v5, %v22295_v39  ;;  %v5732_v12 = vmul.f32 %v22323_v5, %v22300_v30 }
 0x896   :  { %v5742_v50 = vadd.f32 %v22330_v31, %v5717_v43  ;;  %v5743_v4 = vadd.f32 %v22330_v31, %v5718_v46  ;;  %v5744_v23 = vadd.f32 %v22330_v31, %v5719_v3  ;;  %v5745_v55 = vadd.f32 %v22330_v31, %v5720_v63 }
 0x897   :  { %v5746_v35 = vadd.f32 %v22330_v31, %v5721_v54  ;;  %v5747_v19 = vadd.f32 %v22330_v31, %v5722_v20  ;;  %v5748_v1 = vadd.f32 %v22330_v31, %v5723_v37  ;;  %v5749_v21 = vadd.f32 %v22330_v31, %v5724_v57  ;;  %v18076_v57 = vld [vmem:[%s24843_s3 + $0x88] sm:$0xff] }
 0x898   :  { %vm5758_vm6 = vcmp.gt.f32.partialorder %v5742_v50, 0.0  ;;  %vm5759_vm7 = vcmp.gt.f32.partialorder %v5743_v4, 0.0  ;;  %v5774_v42 = vmul.f32 0.2, %v5742_v50  ;;  %v5775_v6 = vmul.f32 0.2, %v5743_v4 }
 0x899   :  { %vm5760_vm8 = vcmp.gt.f32.partialorder %v5744_v23, 0.0  ;;  %vm5761_vm9 = vcmp.gt.f32.partialorder %v5745_v55, 0.0  ;;  %v5776_v28 = vmul.f32 0.2, %v5744_v23  ;;  %v5750_v61 = vadd.f32 %v22330_v31, %v5725_v51  ;;  %v18082_v51 = vld [vmem:[%s24843_s3 + $0xa0] sm:$0xff] }
 0x89a   :  { %v5790_v9 = vsel %vm5758_vm6, %v5742_v50, %v5774_v42  ;;  %v5791_v26 = vsel %vm5759_vm7, %v5743_v4, %v5775_v6  ;;  %v5777_v58 = vmul.f32 0.2, %v5745_v55  ;;  %vm5762_vm10 = vcmp.gt.f32.partialorder %v5746_v35, 0.0  ;;  %v18080_v42 = vld [vmem:[%s24843_s3 + $0x98] sm:$0xff] }
 0x89b   :  { %v22360_v45 = vpack.c.bf16 %v5791_v26, %v5790_v9  ;;  %vm5763_vm11 = vcmp.gt.f32.partialorder %v5747_v19, 0.0  ;;  %v5751_v47 = vadd.f32 %v22330_v31, %v5726_v41  ;;  %v5792_v29 = vsel %vm5760_vm8, %v5744_v23, %v5776_v28  ;;  %v18081_v6 = vld [vmem:[%s24843_s3 + $0x18] sm:$0xff]  ;;  %v18083_v41 = vld [vmem:[%s24843_s3 + $0x20] sm:$0xff]  ;;  %v18087_v9 = vld [vmem:[%s24843_s3 + $0x30] sm:$0xff] }
 0x89c   :  { %v5778_v0 = vmul.f32 0.2, %v5746_v35  ;;  %v5779_v48 = vmul.f32 0.2, %v5747_v19  ;;  %v5793_v59 = vsel %vm5761_vm9, %v5745_v55, %v5777_v58  ;;  %vm5764_vm12 = vcmp.gt.f32.partialorder %v5748_v1, 0.0  ;;  %v18077_v55 = vld [vmem:[%s24843_s3 + $0x8] sm:$0xff] }
 0x89d   :  { %16717 = vmatprep.subr.bf16.mxu1 %v22360_v45  ;;  %16749 = vmatprep.subr.bf16.mxu0 %v22360_v45  ;;  %v5780_v10 = vmul.f32 0.2, %v5748_v1  ;;  %v5781_v56 = vmul.f32 0.2, %v5749_v21  ;;  %v22368_v27 = vpack.c.bf16 %v5793_v59, %v5792_v29  ;;  %vm5765_vm13 = vcmp.gt.f32.partialorder %v5749_v21, 0.0  ;;  %v18088_v26 = vld [vmem:[%s24843_s3 + $0xb8] sm:$0xff] }
 0x89e   :  { %16719 = vmatpush3.bf16.msra.mxu1 %v22360_v45  ;;  %16751 = vmatpush3.bf16.msra.mxu0 %v22360_v45  ;;  %v5794_v7 = vsel %vm5762_vm10, %v5746_v35, %v5778_v0  ;;  %v5795_v60 = vsel %vm5763_vm11, %v5747_v19, %v5779_v48  ;;  %v5752_v52 = vadd.f32 %v22330_v31, %v5727_v33  ;;  %v5782_v14 = vmul.f32 0.2, %v5750_v61  ;;  %v18078_v35 = vld [vmem:[%s24843_s3 + $0x90] sm:$0xff]  ;;  %v18084_v33 = vld [vmem:[%s24843_s3 + $0xa8] sm:$0xff]  ;;  %v18090_v28 = vld [vmem:[%s24843_s3 + $0xc0] sm:$0xff] }
 0x89f   :  { %v5753_v11 = vadd.f32 %v22330_v31, %v5728_v22  ;;  %16721 = vmatprep.subr.bf16.mxu1 %v22368_v27  ;;  %16753 = vmatprep.subr.bf16.mxu0 %v22368_v27  ;;  %v22374_v8 = vpack.c.bf16 %v5795_v60, %v5794_v7  ;;  %v5796_v38 = vsel %vm5764_vm12, %v5748_v1, %v5780_v10  ;;  %v5783_v16 = vmul.f32 0.2, %v5751_v47  ;;  %v18079_v19 = vld [vmem:[%s24843_s3 + $0x10] sm:$0xff]  ;;  %v18085_v1 = vld [vmem:[%s24843_s3 + $0x28] sm:$0xff]  ;;  %v18089_v22 = vld [vmem:[%s24843_s3 + $0x38] sm:$0xff] }
 0x8a0   :  { %v5797_v62 = vsel %vm5765_vm13, %v5749_v21, %v5781_v56  ;;  %vm5766_vm14 = vcmp.gt.f32.partialorder %v5750_v61, 0.0  ;;  %vm5767_vm15 = vcmp.gt.f32.partialorder %v5751_v47, 0.0  ;;  %v5754_v2 = vadd.f32 %v22330_v31, %v5729_v25  ;;  %v18086_v21 = vld [vmem:[%s24843_s3 + $0xb0] sm:$0xff]  ;;  %v18092_v58 = vld [vmem:[%s24843_s3 + $0xc8] sm:$0xff]  ;;  %v18096_v48 = vld [vmem:[%s24843_s3 + $0xd8] sm:$0xff] }
 0x8a1   :  { %v5755_v36 = vadd.f32 %v22330_v31, %v5730_v34  ;;  %v22386_v24 = vpack.c.bf16 %v5797_v62, %v5796_v38  ;;  %v5798_v49 = vsel %vm5766_vm14, %v5750_v61, %v5782_v14  ;;  %v5799_v13 = vsel %vm5767_vm15, %v5751_v47, %v5783_v16  ;;  %v18091_v61 = vld [vmem:[%s24843_s3 + $0x40] sm:$0xff]  ;;  %v18093_v47 = vld [vmem:[%s24843_s3 + $0x48] sm:$0xff]  ;;  %v18094_v29 = vld [vmem:[%s24843_s3 + $0xd0] sm:$0xff] }
 0x8a2   :  { %16723 = vmatpush3.bf16.msra.mxu1 %v22368_v27  ;;  %16755 = vmatpush3.bf16.msra.mxu0 %v22368_v27  ;;  %v5784_v18 = vmul.f32 0.2, %v5752_v52  ;;  %v5785_v44 = vmul.f32 0.2, %v5753_v11  ;;  %vm5768_vm0 = vcmp.gt.f32.partialorder %v5752_v52, 0.0  ;;  %vm5769_vm1 = vcmp.gt.f32.partialorder %v5753_v11, 0.0 }
 0x8a3   :  { %16725 = vmatprep.subr.bf16.mxu1 %v22374_v8  ;;  %16757 = vmatprep.subr.bf16.mxu0 %v22374_v8  ;;  %v5756_v53 = vadd.f32 %v22330_v31, %v5731_v40  ;;  %v5757_v17 = vadd.f32 %v22330_v31, %v5732_v12  ;;  %v22398_v43 = vpack.c.bf16 %v5799_v13, %v5798_v49  ;;  %v5786_v3 = vmul.f32 0.2, %v5754_v2  ;;  %v18095_v0 = vld [vmem:[%s24843_s3 + $0x50] sm:$0xff]  ;;  %v18097_v59 = vld [vmem:[%s24843_s3 + $0x58] sm:$0xff]  ;;  %v18098_v10 = vld [vmem:[%s24843_s3 + $0xe0] sm:$0xff] }
 0x8a4   :  { %v5800_v39 = vsel %vm5768_vm0, %v5752_v52, %v5784_v18  ;;  %v5801_v46 = vsel %vm5769_vm1, %v5753_v11, %v5785_v44  ;;  %v5787_v30 = vmul.f32 0.2, %v5755_v36  ;;  %vm5770_vm2 = vcmp.gt.f32.partialorder %v5754_v2, 0.0  ;;  %v18099_v56 = vld [vmem:[%s24843_s3 + $0x60] sm:$0xff]  ;;  %v18100_v7 = vld [vmem:[%s24843_s3 + $0xe8] sm:$0xff]  ;;  %v18102_v52 = vld [vmem:[%s24843_s3 + $0xf0] sm:$0xff] }
 0x8a5   :  { %vm5771_vm4 = vcmp.gt.f32.partialorder %v5755_v36, 0.0  ;;  %v22404_v5 = vpack.c.bf16 %v5801_v46, %v5800_v39  ;;  %v5788_v50 = vmul.f32 0.2, %v5756_v53  ;;  %v5789_v31 = vmul.f32 0.2, %v5757_v17  ;;  %v18101_v60 = vld [vmem:[%s24843_s3 + $0x68] sm:$0xff] }
 0x8a6   :  { %16727 = vmatpush3.bf16.msra.mxu1 %v22374_v8  ;;  %16759 = vmatpush3.bf16.msra.mxu0 %v22374_v8  ;;  %v5802_v4 = vsel %vm5770_vm2, %v5754_v2, %v5786_v3  ;;  %v5803_v63 = vsel %vm5771_vm4, %v5755_v36, %v5787_v30  ;;  %vm5772_vm5 = vcmp.gt.f32.partialorder %v5756_v53, 0.0  ;;  %vm5773_vm6 = vcmp.gt.f32.partialorder %v5757_v17, 0.0  ;;  %v18103_v11 = vld [vmem:[%s24843_s3 + $0x70] sm:$0xff]  ;;  %v18104_v38 = vld [vmem:[%s24843_s3 + $0xf8] sm:$0xff]  ;;  %v18106_v14 = vld [vmem:[%s24843_s3 + $0x100] sm:$0xff] }
 0x8a7   :  { %16729 = vmatprep.subr.bf16.mxu1 %v22386_v24  ;;  %16761 = vmatprep.subr.bf16.mxu0 %v22386_v24  ;;  %v22410_v54 = vpack.c.bf16 %v5803_v63, %v5802_v4  ;;  %v5804_v20 = vsel %vm5772_vm5, %v5756_v53, %v5788_v50  ;;  %v5805_v37 = vsel %vm5773_vm6, %v5757_v17, %v5789_v31  ;;  %v18105_v62 = vld [vmem:[%s24843_s3 + $0x78] sm:$0xff]  ;;  %v18107_v16 = vld [vmem:[%s24843_s3 + $0x108] sm:$0xff]  ;;  %v18108_v25 = vld [vmem:[%s24843_s3 + $0x110] sm:$0xff] }
 0x8a8   :  { %v22416_v23 = vpack.c.bf16 %v5805_v37, %v5804_v20  ;;  %v18109_v34 = vld [vmem:[%s24843_s3 + $0x118] sm:$0xff]  ;;  %v18110_v2 = vld [vmem:[%s24843_s3 + $0x120] sm:$0xff]  ;;  %v18111_v36 = vld [vmem:[%s24843_s3 + $0x128] sm:$0xff] }
 0x8a9   :  { %v18112_v49 = vld [vmem:[%s24843_s3 + $0x130] sm:$0xff]  ;;  %v18113_v13 = vld [vmem:[%s24843_s3 + $0x138] sm:$0xff]  ;;  %v18114_v18 = vld [vmem:[%s24843_s3 + $0x140] sm:$0xff] }
 0x8aa   :  { %16731 = vmatpush3.bf16.msra.mxu1 %v22386_v24  ;;  %16763 = vmatpush3.bf16.msra.mxu0 %v22386_v24  ;;  %v18115_v44 = vld [vmem:[%s24843_s3 + $0x148] sm:$0xff]  ;;  %v18116_v40 = vld [vmem:[%s24843_s3 + $0x150] sm:$0xff]  ;;  %v18117_v12 = vld [vmem:[%s24843_s3 + $0x158] sm:$0xff] }
 0x8ab   :  { %16733 = vmatprep.subr.bf16.mxu1 %v22398_v43  ;;  %16765 = vmatprep.subr.bf16.mxu0 %v22398_v43  ;;  %v18118_v53 = vld [vmem:[%s24843_s3 + $0x160] sm:$0xff]  ;;  %v6113_v39 = vld [vmem:[%s24848_s8 + $0x88] sm:$0xff]  ;;  %v18120_v30 = vld [vmem:[%s24843_s3 + $0x170] sm:$0xff] }
 0x8ac   :  { %v6112_v17 = vld [vmem:[%s24848_s8 + $0x80] sm:$0xff]  ;;  %v18119_v3 = vld [vmem:[%s24843_s3 + $0x168] sm:$0xff]  ;;  %v6114_v50 = vld [vmem:[%s24848_s8 + $0x90] sm:$0xff] }
 0x8ad   :  { %v16780_v46 = vpack.c.bf16 %v6113_v39, %v6112_v17  ;;  %v6115_v31 = vld [vmem:[%s24848_s8 + $0x98] sm:$0xff]  ;;  %v18122_v20 = vld [vmem:[%s24843_s3 + $0x180] sm:$0xff]  ;;  %v18147_v39 = vld [vmem:[%s24843_s3 + $0x248] sm:$0xff] }
 0x8ae   :  { %16735 = vmatpush3.bf16.msra.mxu1 %v22398_v43  ;;  %16767 = vmatpush3.bf16.msra.mxu0 %v22398_v43  ;;  %v16784_v4 = vpack.c.bf16 %v6115_v31, %v6114_v50  ;;  %v18121_v63 = vld [vmem:[%s24843_s3 + $0x178] sm:$0xff]  ;;  %v6116_v37 = vld [vmem:[%s24848_s8 + $0xa0] sm:$0xff]  ;;  %v18151_v50 = vld [vmem:[%s24843_s3 + $0x268] sm:$0xff] }
 0x8af   :  { %16737 = vmatprep.subr.bf16.mxu1 %v22404_v5  ;;  %16769 = vmatprep.subr.bf16.mxu0 %v22404_v5  ;;  %v18146_v17 = vld [vmem:[%s24843_s3 + $0x240] sm:$0xff]  ;;  %v18152_v31 = vld [vmem:[%s24843_s3 + $0x270] sm:$0xff] }
 0x8b2   :  { %16739 = vmatpush3.bf16.msra.mxu1 %v22404_v5  ;;  %16771 = vmatpush3.bf16.msra.mxu0 %v22404_v5 }
 0x8b3   :  { %16741 = vmatprep.subr.bf16.mxu1 %v22410_v54  ;;  %16773 = vmatprep.subr.bf16.mxu0 %v22410_v54 }
 0x8b6   :  { %16743 = vmatpush3.bf16.msra.mxu1 %v22410_v54  ;;  %16775 = vmatpush3.bf16.msra.mxu0 %v22410_v54 }
 0x8b7   :  { %16745 = vmatprep.subr.bf16.mxu1 %v22416_v23  ;;  %16777 = vmatprep.subr.bf16.mxu0 %v22416_v23 }
 0x8ba   :  { %16747 = vmatpush3.bf16.msra.mxu1 %v22416_v23  ;;  %16779 = vmatpush3.bf16.msra.mxu0 %v22416_v23 }
 0x8bb   :  { %16845 = vmatprep.subr.bf16.mxu0 %v22360_v45  ;;  %16781 = vmatprep.subr.bf16.mxu1 %v16780_v46 }
 0x8bd   :  { %14349 = vmatmul.mubr.f32.vlgmr.msra.gmra.mrb[48].mxu0 %v18076_v57  ;;  %14293 = vmatmul.mubr.f32.vlgmr.msra.gmra.mrb[32].mxu1 %v18077_v55  ;;  %v6117_v57 = vld [vmem:[%s24848_s8 + $0xa8] sm:$0xff] }
 0x8be   :  { %16847 = vmatpush3.bf16.msra.mxu0 %v22360_v45  ;;  %14351 = vmatprep.mubr.f32.mxu0 %v18078_v35  ;;  %v16788_v55 = vpack.c.bf16 %v6117_v57, %v6116_v37  ;;  %v18123_v35 = vld [vmem:[%s24843_s3 + $0x188] sm:$0xff]  ;;  %v18156_v37 = vld [vmem:[%s24843_s3 + $0x290] sm:$0xff]  ;;  %v18157_v57 = vld [vmem:[%s24843_s3 + $0x298] sm:$0xff] }
 0x8bf   :  { %16849 = vmatprep.subr.bf16.mxu0 %v22368_v27  ;;  %14295 = vmatprep.mubr.f32.mxu1 %v18079_v19  ;;  %v18124_v19 = vld [vmem:[%s24843_s3 + $0x190] sm:$0xff] }
 0x8c0   :  { %16783 = vmatpush3.bf16.msra.mxu1 %v16780_v46  ;;  %v18148_v46 = vld [vmem:[%s24843_s3 + $0x250] sm:$0xff] }
 0x8c1   :  { %14352 = vmatmul.mubr.f32.gmra.mrb[50].mxu0 %v18080_v42  ;;  %14296 = vmatmul.mubr.f32.gmra.mrb[34].mxu1 %v18081_v6  ;;  %v6118_v42 = vld [vmem:[%s24848_s8 + $0xb0] sm:$0xff]  ;;  %v6119_v6 = vld [vmem:[%s24848_s8 + $0xb8] sm:$0xff] }
 0x8c2   :  { %16851 = vmatpush3.bf16.msra.mxu0 %v22368_v27  ;;  %14354 = vmatprep.mubr.f32.mxu0 %v18082_v51  ;;  %v16792_v51 = vpack.c.bf16 %v6119_v6, %v6118_v42  ;;  %v18161_v42 = vld [vmem:[%s24843_s3 + $0x2b8] sm:$0xff]  ;;  %v18162_v6 = vld [vmem:[%s24843_s3 + $0x2c0] sm:$0xff] }
 0x8c3   :  { %16853 = vmatprep.subr.bf16.mxu0 %v22374_v8  ;;  %14298 = vmatprep.mubr.f32.mxu1 %v18083_v41  ;;  %v18125_v41 = vld [vmem:[%s24843_s3 + $0x198] sm:$0xff] }
 0x8c4   :  { %16785 = vmatprep.subr.bf16.mxu1 %v16784_v4 }
 0x8c5   :  { %14355 = vmatmul.mubr.f32.gmra.mrb[52].mxu0 %v18084_v33  ;;  %14299 = vmatmul.mubr.f32.gmra.mrb[36].mxu1 %v18085_v1  ;;  %v18126_v33 = vld [vmem:[%s24843_s3 + $0x1a0] sm:$0xff] }
 0x8c6   :  { %16855 = vmatpush3.bf16.msra.mxu0 %v22374_v8  ;;  %14357 = vmatprep.mubr.f32.mxu0 %v18086_v21  ;;  %v6120_v1 = vld [vmem:[%s24848_s8 + $0xc0] sm:$0xff]  ;;  %v6121_v21 = vld [vmem:[%s24848_s8 + $0xc8] sm:$0xff] }
 0x8c7   :  { %16857 = vmatprep.subr.bf16.mxu0 %v22386_v24  ;;  %14301 = vmatprep.mubr.f32.mxu1 %v18087_v9  ;;  %v16796_v9 = vpack.c.bf16 %v6121_v21, %v6120_v1  ;;  %v18166_v1 = vld [vmem:[%s24843_s3 + $0x2e0] sm:$0xff]  ;;  %v18167_v21 = vld [vmem:[%s24843_s3 + $0x2e8] sm:$0xff] }
 0x8c8   :  { %16787 = vmatpush3.bf16.msra.mxu1 %v16784_v4  ;;  %v18153_v4 = vld [vmem:[%s24843_s3 + $0x278] sm:$0xff] }
 0x8c9   :  { %14358 = vmatmul.mubr.f32.gmra.mrb[54].mxu0 %v18088_v26  ;;  %14302 = vmatmul.mubr.f32.gmra.mrb[38].mxu1 %v18089_v22  ;;  %v18127_v26 = vld [vmem:[%s24843_s3 + $0x1a8] sm:$0xff]  ;;  %v18128_v22 = vld [vmem:[%s24843_s3 + $0x1b0] sm:$0xff] }
 0x8ca   :  { %16859 = vmatpush3.bf16.msra.mxu0 %v22386_v24  ;;  %14360 = vmatprep.mubr.f32.mxu0 %v18090_v28  ;;  %v6122_v28 = vld [vmem:[%s24848_s8 + $0xd0] sm:$0xff] }
 0x8cb   :  { %16861 = vmatprep.subr.bf16.mxu0 %v22398_v43  ;;  %14304 = vmatprep.mubr.f32.mxu1 %v18091_v61  ;;  %v6123_v61 = vld [vmem:[%s24848_s8 + $0xd8] sm:$0xff] }
 0x8cc   :  { %16789 = vmatprep.subr.bf16.mxu1 %v16788_v55 }
 0x8cd   :  { %14361 = vmatmul.mubr.f32.gmra.mrb[56].mxu0 %v18092_v58  ;;  %14305 = vmatmul.mubr.f32.gmra.mrb[40].mxu1 %v18093_v47  ;;  %v16800_v58 = vpack.c.bf16 %v6123_v61, %v6122_v28  ;;  %v18129_v47 = vld [vmem:[%s24843_s3 + $0x1b8] sm:$0xff]  ;;  %v18171_v28 = vld [vmem:[%s24843_s3 + $0x308] sm:$0xff]  ;;  %v18172_v61 = vld [vmem:[%s24843_s3 + $0x310] sm:$0xff] }
 0x8ce   :  { %16863 = vmatpush3.bf16.msra.mxu0 %v22398_v43  ;;  %14363 = vmatprep.mubr.f32.mxu0 %v18094_v29  ;;  %v18130_v29 = vld [vmem:[%s24843_s3 + $0x1c0] sm:$0xff] }
 0x8cf   :  { %16865 = vmatprep.subr.bf16.mxu0 %v22404_v5  ;;  %14307 = vmatprep.mubr.f32.mxu1 %v18095_v0  ;;  %v6124_v0 = vld [vmem:[%s24848_s8 + $0xe0] sm:$0xff] }
 0x8d0   :  { %16791 = vmatpush3.bf16.msra.mxu1 %v16788_v55  ;;  %v18158_v55 = vld [vmem:[%s24843_s3 + $0x2a0] sm:$0xff] }
 0x8d1   :  { %14364 = vmatmul.mubr.f32.gmra.mrb[58].mxu0 %v18096_v48  ;;  %14308 = vmatmul.mubr.f32.gmra.mrb[42].mxu1 %v18097_v59  ;;  %v6125_v48 = vld [vmem:[%s24848_s8 + $0xe8] sm:$0xff] }
 0x8d2   :  { %16867 = vmatpush3.bf16.msra.mxu0 %v22404_v5  ;;  %14366 = vmatprep.mubr.f32.mxu0 %v18098_v10  ;;  %v16804_v59 = vpack.c.bf16 %v6125_v48, %v6124_v0  ;;  %v18131_v10 = vld [vmem:[%s24843_s3 + $0x1c8] sm:$0xff]  ;;  %v18176_v0 = vld [vmem:[%s24843_s3 + $0x330] sm:$0xff]  ;;  %v18177_v48 = vld [vmem:[%s24843_s3 + $0x338] sm:$0xff] }
 0x8d3   :  { %16869 = vmatprep.subr.bf16.mxu0 %v22410_v54  ;;  %14310 = vmatprep.mubr.f32.mxu1 %v18099_v56  ;;  %v18132_v56 = vld [vmem:[%s24843_s3 + $0x1d0] sm:$0xff] }
 0x8d4   :  { %16793 = vmatprep.subr.bf16.mxu1 %v16792_v51 }
 0x8d5   :  { %14367 = vmatmul.mubr.f32.gmra.mrb[60].mxu0 %v18100_v7  ;;  %14311 = vmatmul.mubr.f32.gmra.mrb[44].mxu1 %v18101_v60  ;;  %v6126_v7 = vld [vmem:[%s24848_s8 + $0xf0] sm:$0xff]  ;;  %v6127_v60 = vld [vmem:[%s24848_s8 + $0xf8] sm:$0xff] }
 0x8d6   :  { %16871 = vmatpush3.bf16.msra.mxu0 %v22410_v54  ;;  %14369 = vmatprep.mubr.f32.mxu0 %v18102_v52  ;;  %v16808_v52 = vpack.c.bf16 %v6127_v60, %v6126_v7  ;;  %v18181_v7 = vld [vmem:[%s24843_s3 + $0x358] sm:$0xff]  ;;  %v18182_v60 = vld [vmem:[%s24843_s3 + $0x360] sm:$0xff] }
 0x8d7   :  { %16873 = vmatprep.subr.bf16.mxu0 %v22416_v23  ;;  %14313 = vmatprep.mubr.f32.mxu1 %v18103_v11  ;;  %v18133_v11 = vld [vmem:[%s24843_s3 + $0x1d8] sm:$0xff] }
 0x8d8   :  { %16795 = vmatpush3.bf16.msra.mxu1 %v16792_v51  ;;  %v18163_v51 = vld [vmem:[%s24843_s3 + $0x2c8] sm:$0xff] }
 0x8d9   :  { %14370 = vmatmul.mubr.f32.gmra.mrb[62].mxu0 %v18104_v38  ;;  %14314 = vmatmul.mubr.f32.gmra.mrb[46].mxu1 %v18105_v62  ;;  %v18134_v38 = vld [vmem:[%s24843_s3 + $0x1e0] sm:$0xff] }
 0x8da   :  { %16875 = vmatpush3.bf16.msra.mxu0 %v22416_v23  ;;  %14516 = vmatprep.mubr.f32.mxu0 %v18106_v14  ;;  %v5951_v62 = vld [vmem:[%s24848_s8] sm:$0xff]  ;;  %v5952_v14 = vld [vmem:[%s24848_s8 + $0x8] sm:$0xff] }
 0x8db   :  { %16909 = vmatprep.subr.bf16.mxu0 %v22360_v45  ;;  %16797 = vmatprep.subr.bf16.mxu1 %v16796_v9 }
 0x8dc   :  { %16799 = vmatpush3.bf16.msra.mxu1 %v16796_v9  ;;  %v18168_v9 = vld [vmem:[%s24843_s3 + $0x2f0] sm:$0xff] }
 0x8dd   :  { %14517 = vmatmul.mubr.f32.vlgmr.msra.gmra.mrb[64].mxu0 %v18107_v16  ;;  %16801 = vmatprep.subr.bf16.mxu1 %v16800_v58  ;;  %v22700_v16 = vpack.c.bf16 %v5952_v14, %v5951_v62  ;;  %v18186_v62 = vld [vmem:[%s24843_s3 + $0x380] sm:$0xff]  ;;  %v18187_v14 = vld [vmem:[%s24843_s3 + $0x388] sm:$0xff] }
 0x8de   :  { %16911 = vmatpush3.bf16.msra.mxu0 %v22360_v45  ;;  %14519 = vmatprep.mubr.f32.mxu0 %v18108_v25  ;;  %v18135_v25 = vld [vmem:[%s24843_s3 + $0x1e8] sm:$0xff] }
 0x8df   :  { %16913 = vmatprep.subr.bf16.mxu0 %v22368_v27 }
 0x8e0   :  { %16803 = vmatpush3.bf16.msra.mxu1 %v16800_v58  ;;  %v18173_v58 = vld [vmem:[%s24843_s3 + $0x318] sm:$0xff] }
 0x8e1   :  { %14520 = vmatmul.mubr.f32.gmra.mrb[66].mxu0 %v18109_v34  ;;  %16805 = vmatprep.subr.bf16.mxu1 %v16804_v59  ;;  %v18136_v34 = vld [vmem:[%s24843_s3 + $0x1f0] sm:$0xff] }
 0x8e2   :  { %16915 = vmatpush3.bf16.msra.mxu0 %v22368_v27  ;;  %14522 = vmatprep.mubr.f32.mxu0 %v18110_v2  ;;  %v18137_v2 = vld [vmem:[%s24843_s3 + $0x1f8] sm:$0xff] }
 0x8e3   :  { %16917 = vmatprep.subr.bf16.mxu0 %v22374_v8 }
 0x8e4   :  { %16807 = vmatpush3.bf16.msra.mxu1 %v16804_v59  ;;  %v18178_v59 = vld [vmem:[%s24843_s3 + $0x340] sm:$0xff] }
 0x8e5   :  { %14523 = vmatmul.mubr.f32.gmra.mrb[68].mxu0 %v18111_v36  ;;  %16809 = vmatprep.subr.bf16.mxu1 %v16808_v52  ;;  %v18138_v36 = vld [vmem:[%s24843_s3 + $0x200] sm:$0xff] }
 0x8e6   :  { %16919 = vmatpush3.bf16.msra.mxu0 %v22374_v8  ;;  %14525 = vmatprep.mubr.f32.mxu0 %v18112_v49  ;;  %v18139_v49 = vld [vmem:[%s24843_s3 + $0x208] sm:$0xff] }
 0x8e7   :  { %16921 = vmatprep.subr.bf16.mxu0 %v22386_v24 }
 0x8e8   :  { %16811 = vmatpush3.bf16.msra.mxu1 %v16808_v52  ;;  %v18183_v52 = vld [vmem:[%s24843_s3 + $0x368] sm:$0xff] }
 0x8e9   :  { %14526 = vmatmul.mubr.f32.gmra.mrb[70].mxu0 %v18113_v13  ;;  %16813 = vmatprep.subr.bf16.mxu1 %v22700_v16  ;;  %v18140_v13 = vld [vmem:[%s24843_s3 + $0x210] sm:$0xff] }
 0x8ea   :  { %16923 = vmatpush3.bf16.msra.mxu0 %v22386_v24  ;;  %14528 = vmatprep.mubr.f32.mxu0 %v18114_v18  ;;  %v18141_v18 = vld [vmem:[%s24843_s3 + $0x218] sm:$0xff] }
 0x8eb   :  { %16925 = vmatprep.subr.bf16.mxu0 %v22398_v43 }
 0x8ed   :  { %14529 = vmatmul.mubr.f32.gmra.mrb[72].mxu0 %v18115_v44  ;;  %v18142_v44 = vld [vmem:[%s24843_s3 + $0x220] sm:$0xff] }
 0x8ee   :  { %16927 = vmatpush3.bf16.msra.mxu0 %v22398_v43  ;;  %14531 = vmatprep.mubr.f32.mxu0 %v18116_v40  ;;  %v18143_v40 = vld [vmem:[%s24843_s3 + $0x228] sm:$0xff] }
 0x8ef   :  { %16929 = vmatprep.subr.bf16.mxu0 %v22404_v5 }
 0x8f1   :  { %14532 = vmatmul.mubr.f32.gmra.mrb[74].mxu0 %v18117_v12  ;;  %v18144_v12 = vld [vmem:[%s24843_s3 + $0x230] sm:$0xff] }
 0x8f2   :  { %16931 = vmatpush3.bf16.msra.mxu0 %v22404_v5  ;;  %14534 = vmatprep.mubr.f32.mxu0 %v18118_v53  ;;  %v18145_v53 = vld [vmem:[%s24843_s3 + $0x238] sm:$0xff] }
 0x8f3   :  { %16933 = vmatprep.subr.bf16.mxu0 %v22410_v54 }
 0x8f5   :  { %14535 = vmatmul.mubr.f32.gmra.mrb[76].mxu0 %v18119_v3  ;;  %v18149_v3 = vld [vmem:[%s24843_s3 + $0x258] sm:$0xff] }
 0x8f6   :  { %16935 = vmatpush3.bf16.msra.mxu0 %v22410_v54  ;;  %14537 = vmatprep.mubr.f32.mxu0 %v18120_v30  ;;  %v18150_v30 = vld [vmem:[%s24843_s3 + $0x260] sm:$0xff] }
 0x8f7   :  { %16937 = vmatprep.subr.bf16.mxu0 %v22416_v23 }
 0x8f9   :  { %14538 = vmatmul.mubr.f32.gmra.mrb[78].mxu0 %v18121_v63  ;;  %v18154_v63 = vld [vmem:[%s24843_s3 + $0x280] sm:$0xff] }
 0x8fa   :  { %16939 = vmatpush3.bf16.msra.mxu0 %v22416_v23  ;;  %14628 = vmatprep.mubr.f32.mxu0 %v18122_v20  ;;  %v18155_v20 = vld [vmem:[%s24843_s3 + $0x288] sm:$0xff] }
 0x8fb   :  { %16973 = vmatprep.subr.bf16.mxu0 %v22360_v45 }
 0x8fd   :  { %14629 = vmatmul.mubr.f32.vlgmr.msra.gmra.mrb[80].mxu0 %v18123_v35  ;;  %v18159_v35 = vld [vmem:[%s24843_s3 + $0x2a8] sm:$0xff] }
 0x8fe   :  { %16975 = vmatpush3.bf16.msra.mxu0 %v22360_v45  ;;  %14631 = vmatprep.mubr.f32.mxu0 %v18124_v19  ;;  %v18160_v19 = vld [vmem:[%s24843_s3 + $0x2b0] sm:$0xff] }
 0x8ff   :  { %16977 = vmatprep.subr.bf16.mxu0 %v22368_v27 }
 0x901   :  { %14632 = vmatmul.mubr.f32.gmra.mrb[82].mxu0 %v18125_v41  ;;  %v18164_v41 = vld [vmem:[%s24843_s3 + $0x2d0] sm:$0xff] }
 0x902   :  { %16979 = vmatpush3.bf16.msra.mxu0 %v22368_v27  ;;  %14634 = vmatprep.mubr.f32.mxu0 %v18126_v33  ;;  %v18165_v33 = vld [vmem:[%s24843_s3 + $0x2d8] sm:$0xff] }
 0x903   :  { %16981 = vmatprep.subr.bf16.mxu0 %v22374_v8 }
 0x905   :  { %14635 = vmatmul.mubr.f32.gmra.mrb[84].mxu0 %v18127_v26  ;;  %v18169_v26 = vld [vmem:[%s24843_s3 + $0x2f8] sm:$0xff] }
 0x906   :  { %16983 = vmatpush3.bf16.msra.mxu0 %v22374_v8  ;;  %14637 = vmatprep.mubr.f32.mxu0 %v18128_v22  ;;  %v18170_v22 = vld [vmem:[%s24843_s3 + $0x300] sm:$0xff] }
 0x907   :  { %16985 = vmatprep.subr.bf16.mxu0 %v22386_v24 }
 0x909   :  { %14638 = vmatmul.mubr.f32.gmra.mrb[86].mxu0 %v18129_v47  ;;  %v18174_v47 = vld [vmem:[%s24843_s3 + $0x320] sm:$0xff] }
 0x90a   :  { %16987 = vmatpush3.bf16.msra.mxu0 %v22386_v24  ;;  %14640 = vmatprep.mubr.f32.mxu0 %v18130_v29  ;;  %v18175_v29 = vld [vmem:[%s24843_s3 + $0x328] sm:$0xff] }
 0x90b   :  { %16989 = vmatprep.subr.bf16.mxu0 %v22398_v43 }
 0x90d   :  { %14641 = vmatmul.mubr.f32.gmra.mrb[88].mxu0 %v18131_v10  ;;  %v18179_v10 = vld [vmem:[%s24843_s3 + $0x348] sm:$0xff] }
 0x90e   :  { %16991 = vmatpush3.bf16.msra.mxu0 %v22398_v43  ;;  %14643 = vmatprep.mubr.f32.mxu0 %v18132_v56  ;;  %v18180_v56 = vld [vmem:[%s24843_s3 + $0x350] sm:$0xff] }
 0x90f   :  { %16993 = vmatprep.subr.bf16.mxu0 %v22404_v5 }
 0x911   :  { %14644 = vmatmul.mubr.f32.gmra.mrb[90].mxu0 %v18133_v11  ;;  %v18184_v11 = vld [vmem:[%s24843_s3 + $0x370] sm:$0xff] }
 0x912   :  { %16995 = vmatpush3.bf16.msra.mxu0 %v22404_v5  ;;  %14646 = vmatprep.mubr.f32.mxu0 %v18134_v38  ;;  %v18185_v38 = vld [vmem:[%s24843_s3 + $0x378] sm:$0xff] }
 0x913   :  { %16997 = vmatprep.subr.bf16.mxu0 %v22410_v54 }
 0x915   :  { %14647 = vmatmul.mubr.f32.gmra.mrb[92].mxu0 %v18135_v25  ;;  %v18188_v25 = vld [vmem:[%s24843_s3 + $0x390] sm:$0xff] }
 0x916   :  { %16999 = vmatpush3.bf16.msra.mxu0 %v22410_v54  ;;  %14649 = vmatprep.mubr.f32.mxu0 %v18136_v34  ;;  %v18189_v34 = vld [vmem:[%s24843_s3 + $0x398] sm:$0xff] }
 0x917   :  { %17001 = vmatprep.subr.bf16.mxu0 %v22416_v23 }
 0x919   :  { %14650 = vmatmul.mubr.f32.gmra.mrb[94].mxu0 %v18137_v2  ;;  %v18190_v2 = vld [vmem:[%s24843_s3 + $0x3a0] sm:$0xff] }
 0x91a   :  { %17003 = vmatpush3.bf16.msra.mxu0 %v22416_v23  ;;  %14740 = vmatprep.mubr.f32.mxu0 %v18138_v36  ;;  %v18192_v36 = vld [vmem:[%s24843_s3 + $0x3b0] sm:$0xff] }
 0x91b   :  { %17037 = vmatprep.subr.bf16.mxu0 %v22360_v45 }
 0x91d   :  { %14741 = vmatmul.mubr.f32.vlgmr.msra.gmra.mrb[96].mxu0 %v18139_v49  ;;  %v18194_v49 = vld [vmem:[%s24843_s3 + $0x3c0] sm:$0xff] }
 0x91e   :  { %17039 = vmatpush3.bf16.msra.mxu0 %v22360_v45  ;;  %14743 = vmatprep.mubr.f32.mxu0 %v18140_v13  ;;  %v5953_v13 = vld [vmem:[%s24848_s8 + $0x10] sm:$0xff] }
 0x91f   :  { %17041 = vmatprep.subr.bf16.mxu0 %v22368_v27 }
 0x921   :  { %14744 = vmatmul.mubr.f32.gmra.mrb[98].mxu0 %v18141_v18  ;;  %v18196_v18 = vld [vmem:[%s24843_s3 + $0x3d0] sm:$0xff] }
 0x922   :  { %17043 = vmatpush3.bf16.msra.mxu0 %v22368_v27  ;;  %14746 = vmatprep.mubr.f32.mxu0 %v18142_v44 }
 0x923   :  { %17045 = vmatprep.subr.bf16.mxu0 %v22374_v8 }
 0x925   :  { %14747 = vmatmul.mubr.f32.gmra.mrb[100].mxu0 %v18143_v40 }
 0x926   :  { %17047 = vmatpush3.bf16.msra.mxu0 %v22374_v8  ;;  %14749 = vmatprep.mubr.f32.mxu0 %v18144_v12 }
 0x927   :  { %17049 = vmatprep.subr.bf16.mxu0 %v22386_v24 }
 0x929   :  { %14750 = vmatmul.mubr.f32.gmra.mrb[102].mxu0 %v18145_v53 }
 0x92a   :  { %17051 = vmatpush3.bf16.msra.mxu0 %v22386_v24  ;;  %14752 = vmatprep.mubr.f32.mxu0 %v18146_v17  ;;  %v18197_v17 = vld [vmem:[%s24843_s3 + $0x3d8] sm:$0xff] }
 0x92b   :  { %17053 = vmatprep.subr.bf16.mxu0 %v22398_v43 }
 0x92d   :  { %14753 = vmatmul.mubr.f32.gmra.mrb[104].mxu0 %v18147_v39  ;;  %v5955_v39 = vld [vmem:[%s24848_s8 + $0x20] sm:$0xff] }
 0x92e   :  { %17055 = vmatpush3.bf16.msra.mxu0 %v22398_v43  ;;  %14755 = vmatprep.mubr.f32.mxu0 %v18148_v46  ;;  %v5956_v46 = vld [vmem:[%s24848_s8 + $0x28] sm:$0xff] }
 0x92f   :  { %17057 = vmatprep.subr.bf16.mxu0 %v22404_v5 }
 0x931   :  { %14756 = vmatmul.mubr.f32.gmra.mrb[106].mxu0 %v18149_v3 }
 0x932   :  { %17059 = vmatpush3.bf16.msra.mxu0 %v22404_v5  ;;  %14758 = vmatprep.mubr.f32.mxu0 %v18150_v30 }
 0x933   :  { %17061 = vmatprep.subr.bf16.mxu0 %v22410_v54 }
 0x935   :  { %14759 = vmatmul.mubr.f32.gmra.mrb[108].mxu0 %v18151_v50 }
 0x936   :  { %17063 = vmatpush3.bf16.msra.mxu0 %v22410_v54  ;;  %14761 = vmatprep.mubr.f32.mxu0 %v18152_v31  ;;  %v16820_v31 = vpack.c.bf16 %v5956_v46, %v5955_v39 }
 0x937   :  { %17065 = vmatprep.subr.bf16.mxu0 %v22416_v23 }
 0x939   :  { %14762 = vmatmul.mubr.f32.gmra.mrb[110].mxu0 %v18153_v4 }
 0x93a   :  { %17067 = vmatpush3.bf16.msra.mxu0 %v22416_v23  ;;  %14852 = vmatprep.mubr.f32.mxu0 %v18154_v63  ;;  %v18199_v63 = vld [vmem:[%s24843_s3 + $0x3e8] sm:$0xff] }
 0x93b   :  { %17101 = vmatprep.subr.bf16.mxu0 %v22360_v45 }
 0x93d   :  { %14853 = vmatmul.mubr.f32.vlgmr.msra.gmra.mrb[112].mxu0 %v18155_v20  ;;  %v5958_v20 = vld [vmem:[%s24848_s8 + $0x38] sm:$0xff] }
 0x93e   :  { %17103 = vmatpush3.bf16.msra.mxu0 %v22360_v45  ;;  %14855 = vmatprep.mubr.f32.mxu0 %v18156_v37 }
 0x93f   :  { %17105 = vmatprep.subr.bf16.mxu0 %v22368_v27 }
 0x941   :  { %14856 = vmatmul.mubr.f32.gmra.mrb[114].mxu0 %v18157_v57 }
 0x942   :  { %17107 = vmatpush3.bf16.msra.mxu0 %v22368_v27  ;;  %14858 = vmatprep.mubr.f32.mxu0 %v18158_v55  ;;  %v18200_v55 = vld [vmem:[%s24843_s3 + $0x3f0] sm:$0xff] }
 0x943   :  { %17109 = vmatprep.subr.bf16.mxu0 %v22374_v8 }
 0x945   :  { %14859 = vmatmul.mubr.f32.gmra.mrb[116].mxu0 %v18159_v35 }
 0x946   :  { %17111 = vmatpush3.bf16.msra.mxu0 %v22374_v8  ;;  %14861 = vmatprep.mubr.f32.mxu0 %v18160_v19 }
 0x947   :  { %17113 = vmatprep.subr.bf16.mxu0 %v22386_v24 }
 0x949   :  { %14862 = vmatmul.mubr.f32.gmra.mrb[118].mxu0 %v18161_v42  ;;  %v18201_v42 = vld [vmem:[%s24843_s3 + $0x3f8] sm:$0xff] }
 0x94a   :  { %17115 = vmatpush3.bf16.msra.mxu0 %v22386_v24  ;;  %14864 = vmatprep.mubr.f32.mxu0 %v18162_v6  ;;  %v5959_v6 = vld [vmem:[%s24848_s8 + $0x40] sm:$0xff] }
 0x94b   :  { %17117 = vmatprep.subr.bf16.mxu0 %v22398_v43 }
 0x94d   :  { %14865 = vmatmul.mubr.f32.gmra.mrb[120].mxu0 %v18163_v51  ;;  %v5960_v51 = vld [vmem:[%s24848_s8 + $0x48] sm:$0xff] }
 0x94e   :  { %17119 = vmatpush3.bf16.msra.mxu0 %v22398_v43  ;;  %14867 = vmatprep.mubr.f32.mxu0 %v18164_v41  ;;  %v18202_v41 = vld [vmem:[%s24843_s3 + $0x400] sm:$0xff] }
 0x94f   :  { %17121 = vmatprep.subr.bf16.mxu0 %v22404_v5 }
 0x951   :  { %14868 = vmatmul.mubr.f32.gmra.mrb[122].mxu0 %v18165_v33 }
 0x952   :  { %17123 = vmatpush3.bf16.msra.mxu0 %v22404_v5  ;;  %14870 = vmatprep.mubr.f32.mxu0 %v18166_v1 }
 0x953   :  { %17125 = vmatprep.subr.bf16.mxu0 %v22410_v54 }
 0x955   :  { %14871 = vmatmul.mubr.f32.gmra.mrb[124].mxu0 %v18167_v21 }
 0x956   :  { %17127 = vmatpush3.bf16.msra.mxu0 %v22410_v54  ;;  %14873 = vmatprep.mubr.f32.mxu0 %v18168_v9 }
 0x957   :  { %17129 = vmatprep.subr.bf16.mxu0 %v22416_v23 }
 0x959   :  { %14874 = vmatmul.mubr.f32.gmra.mrb[126].mxu0 %v18169_v26  ;;  %v18203_v26 = vld [vmem:[%s24843_s3 + $0x408] sm:$0xff] }
 0x95a   :  { %17131 = vmatpush3.bf16.msra.mxu0 %v22416_v23  ;;  %14964 = vmatprep.mubr.f32.mxu0 %v18170_v22  ;;  %v5961_v22 = vld [vmem:[%s24848_s8 + $0x50] sm:$0xff] }
 0x95b   :  { %17165 = vmatprep.subr.bf16.mxu0 %v22360_v45 }
 0x95d   :  { %14965 = vmatmul.mubr.f32.vlgmr.msra.gmra.mrb[128].mxu0 %v18171_v28  ;;  %v5962_v28 = vld [vmem:[%s24848_s8 + $0x58] sm:$0xff] }
 0x95e   :  { %17167 = vmatpush3.bf16.msra.mxu0 %v22360_v45  ;;  %14967 = vmatprep.mubr.f32.mxu0 %v18172_v61  ;;  %v18204_v61 = vld [vmem:[%s24843_s3 + $0x410] sm:$0xff] }
 0x95f   :  { %17169 = vmatprep.subr.bf16.mxu0 %v22368_v27 }
 0x961   :  { %14968 = vmatmul.mubr.f32.gmra.mrb[130].mxu0 %v18173_v58 }
 0x962   :  { %17171 = vmatpush3.bf16.msra.mxu0 %v22368_v27  ;;  %14970 = vmatprep.mubr.f32.mxu0 %v18174_v47 }
 0x963   :  { %17173 = vmatprep.subr.bf16.mxu0 %v22374_v8 }
 0x965   :  { %14971 = vmatmul.mubr.f32.gmra.mrb[132].mxu0 %v18175_v29 }
 0x966   :  { %17175 = vmatpush3.bf16.msra.mxu0 %v22374_v8  ;;  %14973 = vmatprep.mubr.f32.mxu0 %v18176_v0  ;;  %v16832_v0 = vpack.c.bf16 %v5962_v28, %v5961_v22  ;;  %v6571_v22 = vld [vmem:[%s24848_s8 + $0x140] sm:$0xff] }
 0x967   :  { %17177 = vmatprep.subr.bf16.mxu0 %v22386_v24 }
 0x969   :  { %14974 = vmatmul.mubr.f32.gmra.mrb[134].mxu0 %v18177_v48 }
 0x96a   :  { %17179 = vmatpush3.bf16.msra.mxu0 %v22386_v24  ;;  %14976 = vmatprep.mubr.f32.mxu0 %v18178_v59  ;;  %v18205_v59 = vld [vmem:[%s24843_s3 + $0x418] sm:$0xff] }
 0x96b   :  { %17181 = vmatprep.subr.bf16.mxu0 %v22398_v43 }
 0x96d   :  { %14977 = vmatmul.mubr.f32.gmra.mrb[136].mxu0 %v18179_v10  ;;  %v5963_v10 = vld [vmem:[%s24848_s8 + $0x60] sm:$0xff] }
 0x96e   :  { %17183 = vmatpush3.bf16.msra.mxu0 %v22398_v43  ;;  %14979 = vmatprep.mubr.f32.mxu0 %v18180_v56  ;;  %v5964_v56 = vld [vmem:[%s24848_s8 + $0x68] sm:$0xff] }
 0x96f   :  { %17185 = vmatprep.subr.bf16.mxu0 %v22404_v5 }
 0x971   :  { %14980 = vmatmul.mubr.f32.gmra.mrb[138].mxu0 %v18181_v7  ;;  %v18206_v7 = vld [vmem:[%s24843_s3 + $0x420] sm:$0xff] }
 0x972   :  { %17187 = vmatpush3.bf16.msra.mxu0 %v22404_v5  ;;  %14982 = vmatprep.mubr.f32.mxu0 %v18182_v60 }
 0x973   :  { %17189 = vmatprep.subr.bf16.mxu0 %v22410_v54 }
 0x975   :  { %14983 = vmatmul.mubr.f32.gmra.mrb[140].mxu0 %v18183_v52 }
 0x976   :  { %17191 = vmatpush3.bf16.msra.mxu0 %v22410_v54  ;;  %14985 = vmatprep.mubr.f32.mxu0 %v18184_v11 }
 0x977   :  { %17193 = vmatprep.subr.bf16.mxu0 %v22416_v23 }
 0x979   :  { %14986 = vmatmul.mubr.f32.gmra.mrb[142].mxu0 %v18185_v38  ;;  %v16836_v38 = vpack.c.bf16 %v5964_v56, %v5963_v10  ;;  %v6575_v10 = vld [vmem:[%s24848_s8 + $0x160] sm:$0xff]  ;;  %v6576_v56 = vld [vmem:[%s24848_s8 + $0x168] sm:$0xff] }
 0x97a   :  { %17195 = vmatpush3.bf16.msra.mxu0 %v22416_v23  ;;  %15076 = vmatprep.mubr.f32.mxu0 %v18186_v62 }
 0x97b   :  { %17229 = vmatprep.subr.bf16.mxu0 %v22360_v45 }
 0x97d   :  { %15077 = vmatmul.mubr.f32.vlgmr.msra.gmra.mrb[144].mxu0 %v18187_v14  ;;  %v18207_v14 = vld [vmem:[%s24843_s3 + $0x428] sm:$0xff] }
 0x97e   :  { %17231 = vmatpush3.bf16.msra.mxu0 %v22360_v45  ;;  %15079 = vmatprep.mubr.f32.mxu0 %v18188_v25  ;;  %v18191_v45 = vld [vmem:[%s24843_s3 + $0x3a8] sm:$0xff]  ;;  %v5965_v25 = vld [vmem:[%s24848_s8 + $0x70] sm:$0xff] }
 0x97f   :  { %17233 = vmatprep.subr.bf16.mxu0 %v22368_v27 }
 0x981   :  { %15080 = vmatmul.mubr.f32.gmra.mrb[146].mxu0 %v18189_v34  ;;  %v5966_v34 = vld [vmem:[%s24848_s8 + $0x78] sm:$0xff] }
 0x982   :  { %17235 = vmatpush3.bf16.msra.mxu0 %v22368_v27  ;;  %15082 = vmatprep.mubr.f32.mxu0 %v18190_v2  ;;  %v18193_v27 = vld [vmem:[%s24843_s3 + $0x3b8] sm:$0xff]  ;;  %v18208_v2 = vld [vmem:[%s24843_s3 + $0x430] sm:$0xff] }
 0x983   :  { %17237 = vmatprep.subr.bf16.mxu0 %v22374_v8 }
 0x985   :  { %15083 = vmatmul.mubr.f32.gmra.mrb[148].mxu0 %v18191_v45 }
 0x986   :  { %17239 = vmatpush3.bf16.msra.mxu0 %v22374_v8  ;;  %15085 = vmatprep.mubr.f32.mxu0 %v18192_v36  ;;  %v18195_v8 = vld [vmem:[%s24843_s3 + $0x3c8] sm:$0xff] }
 0x987   :  { %17241 = vmatprep.subr.bf16.mxu0 %v22386_v24 }
 0x989   :  { %15086 = vmatmul.mubr.f32.gmra.mrb[150].mxu0 %v18193_v27 }
 0x98a   :  { %17243 = vmatpush3.bf16.msra.mxu0 %v22386_v24  ;;  %15088 = vmatprep.mubr.f32.mxu0 %v18194_v49  ;;  %v5954_v24 = vld [vmem:[%s24848_s8 + $0x18] sm:$0xff]  ;;  %v16840_v49 = vpack.c.bf16 %v5966_v34, %v5965_v25  ;;  %v6886_v25 = vld [vmem:[%s24848_s8 + $0x188] sm:$0xff] }
 0x98b   :  { %17245 = vmatprep.subr.bf16.mxu0 %v22398_v43 }
 0x98d   :  { %15089 = vmatmul.mubr.f32.gmra.mrb[152].mxu0 %v18195_v8 }
 0x98e   :  { %17247 = vmatpush3.bf16.msra.mxu0 %v22398_v43  ;;  %15091 = vmatprep.mubr.f32.mxu0 %v18196_v18  ;;  %v16816_v43 = vpack.c.bf16 %v5954_v24, %v5953_v13  ;;  %v18209_v13 = vld [vmem:[%s24843_s3 + $0x438] sm:$0xff]  ;;  %v6563_v24 = vld [vmem:[%s24848_s8 + $0x100] sm:$0xff]  ;;  %v6564_v18 = vld [vmem:[%s24848_s8 + $0x108] sm:$0xff] }
 0x98f   :  { %17249 = vmatprep.subr.bf16.mxu0 %v22404_v5  ;;  %v16876_v39 = vpack.c.bf16 %v6564_v18, %v6563_v24  ;;  %v6890_v24 = vld [vmem:[%s24848_s8 + $0x1a8] sm:$0xff] }
 0x990   :  { %v14350_v44 = vpop.f32.mrb[48].mxu0  ;;  %v22957_v40 = vpop.f32.mrb[32].mxu1 }
 0x991   :  { %v6033_v12 = vpop.f32.mrb[49].mxu0  ;;  %v22959_v53 = vpop.f32.mrb[33].mxu1  ;;  %15092 = vmatmul.mubr.f32.gmra.mrb[154].mxu0 %v18197_v17 }
 0x992   :  { %14404 = vmatprep.mubr.f32.mxu1 %v6033_v12  ;;  %17251 = vmatpush3.bf16.msra.mxu0 %v22404_v5  ;;  %v18198_v5 = vld [vmem:[%s24843_s3 + $0x3e0] sm:$0xff] }
 0x993   :  { %14405 = vmatmul.mubr.f32.vlgmr.msra.gmra.mrb[48].mxu1 %v14350_v44  ;;  %17253 = vmatprep.subr.bf16.mxu0 %v22410_v54  ;;  %v18210_v44 = vld [vmem:[%s24843_s3 + $0x440] sm:$0xff] }
 0x994   :  { %v14353_v3 = vpop.f32.mrb[50].mxu0  ;;  %16815 = vmatpush3.bf16.msra.mxu1 %v22700_v16  ;;  %v22973_v30 = vpop.f32.mrb[34].mxu1  ;;  %15094 = vmatprep.mubr.f32.mxu0 %v18198_v5  ;;  %v5957_v16 = vld [vmem:[%s24848_s8 + $0x30] sm:$0xff] }
 0x995   :  { %v6043_v50 = vpop.f32.mrb[51].mxu0  ;;  %16817 = vmatprep.subr.bf16.mxu1 %v16816_v43  ;;  %v22978_v4 = vpop.f32.mrb[35].mxu1  ;;  %15095 = vmatmul.mubr.f32.gmra.mrb[156].mxu0 %v18199_v63  ;;  %v16824_v35 = vpack.c.bf16 %v5958_v20, %v5957_v16  ;;  %v6565_v5 = vld [vmem:[%s24848_s8 + $0x110] sm:$0xff] }
 0x996   :  { %14407 = vmatprep.mubr.f32.mxu1 %v6043_v50  ;;  %17255 = vmatpush3.bf16.msra.mxu0 %v22410_v54  ;;  %v6566_v50 = vld [vmem:[%s24848_s8 + $0x118] sm:$0xff] }
 0x997   :  { %14408 = vmatmul.mubr.f32.gmra.mrb[50].mxu1 %v14353_v3  ;;  %17257 = vmatprep.subr.bf16.mxu0 %v22416_v23  ;;  %v18211_v3 = vld [vmem:[%s24843_s3 + $0x448] sm:$0xff]  ;;  %v16880_v16 = vpack.c.bf16 %v6566_v50, %v6565_v5  ;;  %v6893_v5 = vld [vmem:[%s24848_s8 + $0x1c0] sm:$0xff] }
 0x998   :  { %v14356_v37 = vpop.f32.mrb[52].mxu0  ;;  %16819 = vmatpush3.bf16.msra.mxu1 %v16816_v43  ;;  %v22991_v57 = vpop.f32.mrb[36].mxu1  ;;  %15097 = vmatprep.mubr.f32.mxu0 %v18200_v55  ;;  %v6567_v55 = vld [vmem:[%s24848_s8 + $0x120] sm:$0xff]  ;;  %v6894_v50 = vld [vmem:[%s24848_s8 + $0x1c8] sm:$0xff] }
 0x999   :  { %v6053_v54 = vpop.f32.mrb[53].mxu0  ;;  %16821 = vmatprep.subr.bf16.mxu1 %v16820_v31  ;;  %v22996_v19 = vpop.f32.mrb[37].mxu1  ;;  %15098 = vmatmul.mubr.f32.gmra.mrb[158].mxu0 %v18201_v42 }
 0x99a   :  { %14410 = vmatprep.mubr.f32.mxu1 %v6053_v54  ;;  %17259 = vmatpush3.bf16.msra.mxu0 %v22416_v23  ;;  %v16828_v23 = vpack.c.bf16 %v5960_v51, %v5959_v6  ;;  %v6568_v54 = vld [vmem:[%s24848_s8 + $0x128] sm:$0xff] }
 0x99b   :  { %14411 = vmatmul.mubr.f32.gmra.mrb[52].mxu1 %v14356_v37  ;;  %15188 = vmatprep.mubr.f32.mxu0 %v18202_v41  ;;  %v18213_v37 = vld [vmem:[%s24843_s3 + $0x458] sm:$0xff]  ;;  %v16884_v42 = vpack.c.bf16 %v6568_v54, %v6567_v55  ;;  %v18215_v51 = vld [vmem:[%s24843_s3 + $0x468] sm:$0xff]  ;;  %v6569_v41 = vld [vmem:[%s24848_s8 + $0x130] sm:$0xff] }
 0x99c   :  { %v14359_v33 = vpop.f32.mrb[54].mxu0  ;;  %16823 = vmatpush3.bf16.msra.mxu1 %v16820_v31  ;;  %v23011_v1 = vpop.f32.mrb[38].mxu1  ;;  %v18212_v31 = vld [vmem:[%s24843_s3 + $0x450] sm:$0xff] }
 0x99d   :  { %v6063_v21 = vpop.f32.mrb[55].mxu0  ;;  %16825 = vmatprep.subr.bf16.mxu1 %v16824_v35  ;;  %v23013_v9 = vpop.f32.mrb[39].mxu1  ;;  %15189 = vmatmul.mubr.f32.vlgmr.msra.gmra.mrb[160].mxu0 %v18203_v26  ;;  %v18217_v26 = vld [vmem:[%s24843_s3 + $0x478] sm:$0xff] }
 0x99e   :  { %14413 = vmatprep.mubr.f32.mxu1 %v6063_v21  ;;  %15191 = vmatprep.mubr.f32.mxu0 %v18204_v61 }
 0x99f   :  { %14414 = vmatmul.mubr.f32.gmra.mrb[54].mxu1 %v14359_v33 }
 0x9a0   :  { %v14362_v58 = vpop.f32.mrb[56].mxu0  ;;  %16827 = vmatpush3.bf16.msra.mxu1 %v16824_v35  ;;  %v23027_v47 = vpop.f32.mrb[40].mxu1 }
 0x9a1   :  { %v6073_v29 = vpop.f32.mrb[57].mxu0  ;;  %16829 = vmatprep.subr.bf16.mxu1 %v16828_v23  ;;  %v23029_v48 = vpop.f32.mrb[41].mxu1  ;;  %15192 = vmatmul.mubr.f32.gmra.mrb[162].mxu0 %v18205_v59 }
 0x9a2   :  { %14416 = vmatprep.mubr.f32.mxu1 %v6073_v29  ;;  %15194 = vmatprep.mubr.f32.mxu0 %v18206_v7  ;;  %v6573_v29 = vld [vmem:[%s24848_s8 + $0x150] sm:$0xff] }
 0x9a3   :  { %14417 = vmatmul.mubr.f32.gmra.mrb[56].mxu1 %v14362_v58 }
 0x9a4   :  { %v14365_v60 = vpop.f32.mrb[58].mxu0  ;;  %16831 = vmatpush3.bf16.msra.mxu1 %v16828_v23  ;;  %v23043_v52 = vpop.f32.mrb[42].mxu1 }
 0x9a5   :  { %v6083_v11 = vpop.f32.mrb[59].mxu0  ;;  %16833 = vmatprep.subr.bf16.mxu1 %v16832_v0  ;;  %v23045_v62 = vpop.f32.mrb[43].mxu1  ;;  %15195 = vmatmul.mubr.f32.gmra.mrb[164].mxu0 %v18207_v14  ;;  %v6885_v14 = vld [vmem:[%s24848_s8 + $0x180] sm:$0xff] }
 0x9a6   :  { %14419 = vmatprep.mubr.f32.mxu1 %v6083_v11  ;;  %15197 = vmatprep.mubr.f32.mxu0 %v18208_v2  ;;  %v6578_v11 = vld [vmem:[%s24848_s8 + $0x178] sm:$0xff]  ;;  %v16940_v34 = vpack.c.bf16 %v6886_v25, %v6885_v14 }
 0x9a7   :  { %14420 = vmatmul.mubr.f32.gmra.mrb[58].mxu1 %v14365_v60  ;;  %v6577_v60 = vld [vmem:[%s24848_s8 + $0x170] sm:$0xff] }
 0x9a8   :  { %v14368_v45 = vpop.f32.mrb[60].mxu0  ;;  %16835 = vmatpush3.bf16.msra.mxu1 %v16832_v0  ;;  %v23059_v36 = vpop.f32.mrb[44].mxu1  ;;  %v6574_v0 = vld [vmem:[%s24848_s8 + $0x158] sm:$0xff] }
 0x9a9   :  { %v6093_v27 = vpop.f32.mrb[61].mxu0  ;;  %16837 = vmatprep.subr.bf16.mxu1 %v16836_v38  ;;  %v23061_v8 = vpop.f32.mrb[45].mxu1  ;;  %15198 = vmatmul.mubr.f32.gmra.mrb[166].mxu0 %v18209_v13  ;;  %v6889_v13 = vld [vmem:[%s24848_s8 + $0x1a0] sm:$0xff] }
 0x9aa   :  { %14422 = vmatprep.mubr.f32.mxu1 %v6093_v27  ;;  %15200 = vmatprep.mubr.f32.mxu0 %v18210_v44  ;;  %v6888_v27 = vld [vmem:[%s24848_s8 + $0x198] sm:$0xff]  ;;  %v16948_v44 = vpack.c.bf16 %v6890_v24, %v6889_v13 }
 0x9ab   :  { %14423 = vmatmul.mubr.f32.gmra.mrb[60].mxu1 %v14368_v45  ;;  %v6887_v45 = vld [vmem:[%s24848_s8 + $0x190] sm:$0xff] }
 0x9ac   :  { %v14371_v12 = vpop.f32.mrb[62].mxu0  ;;  %16839 = vmatpush3.bf16.msra.mxu1 %v16836_v38  ;;  %v23075_v43 = vpop.f32.mrb[46].mxu1  ;;  %v16904_v38 = vpack.c.bf16 %v6578_v11, %v6577_v60 }
 0x9ad   :  { %v6103_v17 = vpop.f32.mrb[63].mxu0  ;;  %16841 = vmatprep.subr.bf16.mxu1 %v16840_v49  ;;  %v23077_v46 = vpop.f32.mrb[47].mxu1  ;;  %15201 = vmatmul.mubr.f32.gmra.mrb[168].mxu0 %v18211_v3 }
 0x9ae   :  { %14425 = vmatprep.mubr.f32.mxu1 %v6103_v17  ;;  %15203 = vmatprep.mubr.f32.mxu0 %v18212_v31  ;;  %v6892_v17 = vld [vmem:[%s24848_s8 + $0x1b8] sm:$0xff] }
 0x9af   :  { %14426 = vmatmul.mubr.f32.gmra.mrb[62].mxu1 %v14371_v12 }
 0x9b0   :  { %16843 = vmatpush3.bf16.msra.mxu1 %v16840_v49  ;;  %14460 = vmatprep.mubr.f32.mxu1 %v22959_v53  ;;  %v23092_v63 = vpop.f32.mrb[64].mxu0  ;;  %v18214_v53 = vld [vmem:[%s24843_s3 + $0x460] sm:$0xff]  ;;  %v16944_v49 = vpack.c.bf16 %v6888_v27, %v6887_v45 }
 0x9b1   :  { %16877 = vmatprep.subr.bf16.mxu1 %v16876_v39  ;;  %v23094_v20 = vpop.f32.mrb[65].mxu0  ;;  %15204 = vmatmul.mubr.f32.gmra.mrb[170].mxu0 %v18213_v37  ;;  %v6896_v37 = vld [vmem:[%s24848_s8 + $0x1d8] sm:$0xff] }
 0x9b2   :  { %15206 = vmatprep.mubr.f32.mxu0 %v18214_v53 }
 0x9b3   :  { %14461 = vmatmul.mubr.f32.vlgmr.msra.gmra.mrb[48].mxu1 %v22957_v40  ;;  %v6570_v40 = vld [vmem:[%s24848_s8 + $0x138] sm:$0xff] }
 0x9b4   :  { %16879 = vmatpush3.bf16.msra.mxu1 %v16876_v39  ;;  %14463 = vmatprep.mubr.f32.mxu1 %v22978_v4  ;;  %v23110_v35 = vpop.f32.mrb[66].mxu0  ;;  %v18216_v4 = vld [vmem:[%s24843_s3 + $0x470] sm:$0xff]  ;;  %v16888_v21 = vpack.c.bf16 %v6570_v40, %v6569_v41 }
 0x9b5   :  { %16881 = vmatprep.subr.bf16.mxu1 %v16880_v16  ;;  %v23112_v6 = vpop.f32.mrb[67].mxu0  ;;  %15207 = vmatmul.mubr.f32.gmra.mrb[172].mxu0 %v18215_v51  ;;  %v6899_v40 = vld [vmem:[%s24848_s8 + $0x1f0] sm:$0xff] }
 0x9b6   :  { %15209 = vmatprep.mubr.f32.mxu0 %v18216_v4  ;;  %v6900_v4 = vld [vmem:[%s24848_s8 + $0x1f8] sm:$0xff] }
 0x9b7   :  { %14464 = vmatmul.mubr.f32.gmra.mrb[50].mxu1 %v22973_v30  ;;  %v6572_v30 = vld [vmem:[%s24848_s8 + $0x148] sm:$0xff] }
 0x9b8   :  { %16883 = vmatpush3.bf16.msra.mxu1 %v16880_v16  ;;  %14466 = vmatprep.mubr.f32.mxu1 %v22996_v19  ;;  %v23128_v33 = vpop.f32.mrb[68].mxu0  ;;  %v18218_v19 = vld [vmem:[%s24843_s3] sm:$0xff]  ;;  %v16892_v61 = vpack.c.bf16 %v6572_v30, %v6571_v22  ;;  %v7208_v22 = vld [vmem:[%s24848_s8 + $0x208] sm:$0xff] }
 0x9b9   :  { %16885 = vmatprep.subr.bf16.mxu1 %v16884_v42  ;;  %v23130_v23 = vpop.f32.mrb[69].mxu0  ;;  %15210 = vmatmul.mubr.f32.gmra.mrb[174].mxu0 %v18217_v26  ;;  %v7207_v26 = vld [vmem:[%s24848_s8 + $0x200] sm:$0xff] }
 0x9ba   :  { %15300 = vmatprep.mubr.f32.mxu0 %v18218_v19  ;;  %v17004_v19 = vpack.c.bf16 %v7208_v22, %v7207_v26 }
 0x9bb   :  { %14467 = vmatmul.mubr.f32.gmra.mrb[52].mxu1 %v22991_v57 }
 0x9bc   :  { %16887 = vmatpush3.bf16.msra.mxu1 %v16884_v42  ;;  %14469 = vmatprep.mubr.f32.mxu1 %v23013_v9  ;;  %v23146_v28 = vpop.f32.mrb[70].mxu0  ;;  %v16896_v9 = vpack.c.bf16 %v6574_v0, %v6573_v29  ;;  %v6898_v42 = vld [vmem:[%s24848_s8 + $0x1e8] sm:$0xff] }
 0x9bd   :  { %16889 = vmatprep.subr.bf16.mxu1 %v16888_v21  ;;  %v23148_v58 = vpop.f32.mrb[71].mxu0 }
 0x9bf   :  { %14470 = vmatmul.mubr.f32.gmra.mrb[54].mxu1 %v23011_v1 }
 0x9c0   :  { %16891 = vmatpush3.bf16.msra.mxu1 %v16888_v21  ;;  %14472 = vmatprep.mubr.f32.mxu1 %v23029_v48  ;;  %v23158_v57 = vpop.f32.mrb[72].mxu0  ;;  %v16900_v48 = vpack.c.bf16 %v6576_v56, %v6575_v10  ;;  %v16968_v21 = vpack.c.bf16 %v6900_v4, %v6899_v40 }
 0x9c1   :  { %16893 = vmatprep.subr.bf16.mxu1 %v16892_v61  ;;  %v23160_v59 = vpop.f32.mrb[73].mxu0 }
 0x9c3   :  { %14473 = vmatmul.mubr.f32.gmra.mrb[56].mxu1 %v23027_v47 }
 0x9c4   :  { %16895 = vmatpush3.bf16.msra.mxu1 %v16892_v61  ;;  %14475 = vmatprep.mubr.f32.mxu1 %v23045_v62  ;;  %v23170_v1 = vpop.f32.mrb[74].mxu0  ;;  %v7209_v61 = vld [vmem:[%s24848_s8 + $0x210] sm:$0xff] }
 0x9c5   :  { %16897 = vmatprep.subr.bf16.mxu1 %v16896_v9  ;;  %v23172_v7 = vpop.f32.mrb[75].mxu0 }
 0x9c7   :  { %14476 = vmatmul.mubr.f32.gmra.mrb[58].mxu1 %v23043_v52 }
 0x9c8   :  { %16899 = vmatpush3.bf16.msra.mxu1 %v16896_v9  ;;  %14478 = vmatprep.mubr.f32.mxu1 %v23061_v8  ;;  %v23182_v47 = vpop.f32.mrb[76].mxu0  ;;  %v7211_v9 = vld [vmem:[%s24848_s8 + $0x220] sm:$0xff] }
 0x9c9   :  { %16901 = vmatprep.subr.bf16.mxu1 %v16900_v48  ;;  %v23184_v62 = vpop.f32.mrb[77].mxu0 }
 0x9cb   :  { %14479 = vmatmul.mubr.f32.gmra.mrb[60].mxu1 %v23059_v36 }
 0x9cc   :  { %16903 = vmatpush3.bf16.msra.mxu1 %v16900_v48  ;;  %14481 = vmatprep.mubr.f32.mxu1 %v23077_v46  ;;  %v23194_v52 = vpop.f32.mrb[78].mxu0  ;;  %v7213_v48 = vld [vmem:[%s24848_s8 + $0x230] sm:$0xff] }
 0x9cd   :  { %16905 = vmatprep.subr.bf16.mxu1 %v16904_v38  ;;  %v23196_v2 = vpop.f32.mrb[79].mxu0 }
 0x9cf   :  { %14482 = vmatmul.mubr.f32.gmra.mrb[62].mxu1 %v23075_v43  ;;  %v6891_v43 = vld [vmem:[%s24848_s8 + $0x1b0] sm:$0xff] }
 0x9d0   :  { %16907 = vmatpush3.bf16.msra.mxu1 %v16904_v38  ;;  %14572 = vmatprep.mubr.f32.mxu1 %v23094_v20  ;;  %v23206_v36 = vpop.f32.mrb[80].mxu0  ;;  %v16952_v46 = vpack.c.bf16 %v6892_v17, %v6891_v43  ;;  %v6895_v20 = vld [vmem:[%s24848_s8 + $0x1d0] sm:$0xff]  ;;  %v7215_v38 = vld [vmem:[%s24848_s8 + $0x240] sm:$0xff] }
 0x9d1   :  { %16941 = vmatprep.subr.bf16.mxu1 %v16940_v34  ;;  %v23208_v8 = vpop.f32.mrb[81].mxu0  ;;  %v16960_v54 = vpack.c.bf16 %v6896_v37, %v6895_v20 }
 0x9d3   :  { %14573 = vmatmul.mubr.f32.vlgmr.msra.gmra.mrb[48].mxu1 %v23092_v63  ;;  %v16956_v63 = vpack.c.bf16 %v6894_v50, %v6893_v5 }
 0x9d4   :  { %16943 = vmatpush3.bf16.msra.mxu1 %v16940_v34  ;;  %14575 = vmatprep.mubr.f32.mxu1 %v23112_v6  ;;  %v23218_v18 = vpop.f32.mrb[82].mxu0  ;;  %v7217_v34 = vld [vmem:[%s24848_s8 + $0x250] sm:$0xff] }
 0x9d5   :  { %16945 = vmatprep.subr.bf16.mxu1 %v16944_v49  ;;  %v23220_v12 = vpop.f32.mrb[83].mxu0 }
 0x9d7   :  { %14576 = vmatmul.mubr.f32.gmra.mrb[50].mxu1 %v23110_v35  ;;  %v6897_v35 = vld [vmem:[%s24848_s8 + $0x1e0] sm:$0xff] }
 0x9d8   :  { %16947 = vmatpush3.bf16.msra.mxu1 %v16944_v49  ;;  %14578 = vmatprep.mubr.f32.mxu1 %v23130_v23  ;;  %v23230_v39 = vpop.f32.mrb[84].mxu0  ;;  %v16964_v51 = vpack.c.bf16 %v6898_v42, %v6897_v35  ;;  %v7219_v49 = vld [vmem:[%s24848_s8 + $0x260] sm:$0xff] }
 0x9d9   :  { %16949 = vmatprep.subr.bf16.mxu1 %v16948_v44  ;;  %v23232_v3 = vpop.f32.mrb[85].mxu0 }
 0x9db   :  { %14579 = vmatmul.mubr.f32.gmra.mrb[52].mxu1 %v23128_v33 }
 0x9dc   :  { %16951 = vmatpush3.bf16.msra.mxu1 %v16948_v44  ;;  %14581 = vmatprep.mubr.f32.mxu1 %v23148_v58  ;;  %v23242_v31 = vpop.f32.mrb[86].mxu0  ;;  %v7210_v58 = vld [vmem:[%s24848_s8 + $0x218] sm:$0xff]  ;;  %v7221_v44 = vld [vmem:[%s24848_s8 + $0x270] sm:$0xff] }
 0x9dd   :  { %16953 = vmatprep.subr.bf16.mxu1 %v16952_v46  ;;  %v23244_v16 = vpop.f32.mrb[87].mxu0  ;;  %v17008_v0 = vpack.c.bf16 %v7210_v58, %v7209_v61 }
 0x9df   :  { %14582 = vmatmul.mubr.f32.gmra.mrb[54].mxu1 %v23146_v28 }
 0x9e0   :  { %16955 = vmatpush3.bf16.msra.mxu1 %v16952_v46  ;;  %14584 = vmatprep.mubr.f32.mxu1 %v23160_v59  ;;  %v23254_v55 = vpop.f32.mrb[88].mxu0  ;;  %v7212_v59 = vld [vmem:[%s24848_s8 + $0x228] sm:$0xff]  ;;  %v7529_v46 = vld [vmem:[%s24848_s8 + $0x280] sm:$0xff] }
 0x9e1   :  { %16957 = vmatprep.subr.bf16.mxu1 %v16956_v63  ;;  %v23256_v53 = vpop.f32.mrb[89].mxu0  ;;  %v17012_v56 = vpack.c.bf16 %v7212_v59, %v7211_v9 }
 0x9e3   :  { %14585 = vmatmul.mubr.f32.gmra.mrb[56].mxu1 %v23158_v57 }
 0x9e4   :  { %16959 = vmatpush3.bf16.msra.mxu1 %v16956_v63  ;;  %14587 = vmatprep.mubr.f32.mxu1 %v23172_v7  ;;  %v23266_v6 = vpop.f32.mrb[90].mxu0  ;;  %v7214_v7 = vld [vmem:[%s24848_s8 + $0x238] sm:$0xff]  ;;  %v7531_v63 = vld [vmem:[%s24848_s8 + $0x290] sm:$0xff] }
 0x9e5   :  { %16961 = vmatprep.subr.bf16.mxu1 %v16960_v54  ;;  %v23268_v41 = vpop.f32.mrb[91].mxu0  ;;  %v17016_v11 = vpack.c.bf16 %v7214_v7, %v7213_v48 }
 0x9e7   :  { %14588 = vmatmul.mubr.f32.gmra.mrb[58].mxu1 %v23170_v1 }
 0x9e8   :  { %16963 = vmatpush3.bf16.msra.mxu1 %v16960_v54  ;;  %14590 = vmatprep.mubr.f32.mxu1 %v23184_v62  ;;  %v23278_v33 = vpop.f32.mrb[92].mxu0  ;;  %v7216_v62 = vld [vmem:[%s24848_s8 + $0x248] sm:$0xff]  ;;  %v7533_v54 = vld [vmem:[%s24848_s8 + $0x2a0] sm:$0xff] }
 0x9e9   :  { %16965 = vmatprep.subr.bf16.mxu1 %v16964_v51  ;;  %v23280_v23 = vpop.f32.mrb[93].mxu0  ;;  %v17020_v25 = vpack.c.bf16 %v7216_v62, %v7215_v38 }
 0x9eb   :  { %14591 = vmatmul.mubr.f32.gmra.mrb[60].mxu1 %v23182_v47 }
 0x9ec   :  { %16967 = vmatpush3.bf16.msra.mxu1 %v16964_v51  ;;  %14593 = vmatprep.mubr.f32.mxu1 %v23196_v2  ;;  %v23290_v30 = vpop.f32.mrb[94].mxu0  ;;  %v7218_v2 = vld [vmem:[%s24848_s8 + $0x258] sm:$0xff]  ;;  %v7535_v51 = vld [vmem:[%s24848_s8 + $0x2b0] sm:$0xff] }
 0x9ed   :  { %16969 = vmatprep.subr.bf16.mxu1 %v16968_v21  ;;  %v23292_v28 = vpop.f32.mrb[95].mxu0  ;;  %v17024_v27 = vpack.c.bf16 %v7218_v2, %v7217_v34 }
 0x9ef   :  { %14594 = vmatmul.mubr.f32.gmra.mrb[62].mxu1 %v23194_v52 }
 0x9f0   :  { %16971 = vmatpush3.bf16.msra.mxu1 %v16968_v21  ;;  %14684 = vmatprep.mubr.f32.mxu1 %v23208_v8  ;;  %v23302_v29 = vpop.f32.mrb[96].mxu0  ;;  %v7220_v8 = vld [vmem:[%s24848_s8 + $0x268] sm:$0xff]  ;;  %v7537_v21 = vld [vmem:[%s24848_s8 + $0x2c0] sm:$0xff] }
 0x9f1   :  { %17005 = vmatprep.subr.bf16.mxu1 %v17004_v19  ;;  %v23304_v57 = vpop.f32.mrb[97].mxu0  ;;  %v17028_v24 = vpack.c.bf16 %v7220_v8, %v7219_v49 }
 0x9f3   :  { %14685 = vmatmul.mubr.f32.vlgmr.msra.gmra.mrb[48].mxu1 %v23206_v36 }
 0x9f4   :  { %17007 = vmatpush3.bf16.msra.mxu1 %v17004_v19  ;;  %14687 = vmatprep.mubr.f32.mxu1 %v23220_v12  ;;  %v23314_v10 = vpop.f32.mrb[98].mxu0  ;;  %v7222_v12 = vld [vmem:[%s24848_s8 + $0x278] sm:$0xff]  ;;  %v7539_v19 = vld [vmem:[%s24848_s8 + $0x2d0] sm:$0xff] }
 0x9f5   :  { %17009 = vmatprep.subr.bf16.mxu1 %v17008_v0  ;;  %v23316_v1 = vpop.f32.mrb[99].mxu0  ;;  %v17032_v17 = vpack.c.bf16 %v7222_v12, %v7221_v44 }
 0x9f7   :  { %14688 = vmatmul.mubr.f32.gmra.mrb[50].mxu1 %v23218_v18 }
 0x9f8   :  { %17011 = vmatpush3.bf16.msra.mxu1 %v17008_v0  ;;  %14690 = vmatprep.mubr.f32.mxu1 %v23232_v3  ;;  %v23326_v60 = vpop.f32.mrb[100].mxu0  ;;  %v7530_v3 = vld [vmem:[%s24848_s8 + $0x288] sm:$0xff]  ;;  %v7541_v0 = vld [vmem:[%s24848_s8 + $0x2e0] sm:$0xff] }
 0x9f9   :  { %17013 = vmatprep.subr.bf16.mxu1 %v17012_v56  ;;  %v23328_v47 = vpop.f32.mrb[101].mxu0  ;;  %v17068_v50 = vpack.c.bf16 %v7530_v3, %v7529_v46 }
 0x9fb   :  { %14691 = vmatmul.mubr.f32.gmra.mrb[52].mxu1 %v23230_v39 }
 0x9fc   :  { %17015 = vmatpush3.bf16.msra.mxu1 %v17012_v56  ;;  %14693 = vmatprep.mubr.f32.mxu1 %v23244_v16  ;;  %v23338_v14 = vpop.f32.mrb[102].mxu0  ;;  %v7532_v16 = vld [vmem:[%s24848_s8 + $0x298] sm:$0xff]  ;;  %v7543_v56 = vld [vmem:[%s24848_s8 + $0x2f0] sm:$0xff] }
 0x9fd   :  { %17017 = vmatprep.subr.bf16.mxu1 %v17016_v11  ;;  %v23340_v52 = vpop.f32.mrb[103].mxu0  ;;  %v17072_v37 = vpack.c.bf16 %v7532_v16, %v7531_v63 }
 0x9ff   :  { %14694 = vmatmul.mubr.f32.gmra.mrb[54].mxu1 %v23242_v31 }
 0xa00   :  { %17019 = vmatpush3.bf16.msra.mxu1 %v17016_v11  ;;  %14696 = vmatprep.mubr.f32.mxu1 %v23256_v53  ;;  %v23350_v45 = vpop.f32.mrb[104].mxu0  ;;  %v7534_v53 = vld [vmem:[%s24848_s8 + $0x2a8] sm:$0xff]  ;;  %v7851_v11 = vld [vmem:[%s24848_s8 + $0x300] sm:$0xff] }
 0xa01   :  { %17021 = vmatprep.subr.bf16.mxu1 %v17020_v25  ;;  %v23352_v36 = vpop.f32.mrb[105].mxu0  ;;  %v17076_v42 = vpack.c.bf16 %v7534_v53, %v7533_v54 }
 0xa03   :  { %14697 = vmatmul.mubr.f32.gmra.mrb[56].mxu1 %v23254_v55 }
 0xa04   :  { %17023 = vmatpush3.bf16.msra.mxu1 %v17020_v25  ;;  %14699 = vmatprep.mubr.f32.mxu1 %v23268_v41  ;;  %v23362_v13 = vpop.f32.mrb[106].mxu0  ;;  %v7536_v41 = vld [vmem:[%s24848_s8 + $0x2b8] sm:$0xff]  ;;  %v7853_v25 = vld [vmem:[%s24848_s8 + $0x310] sm:$0xff] }
 0xa05   :  { %17025 = vmatprep.subr.bf16.mxu1 %v17024_v27  ;;  %v23364_v18 = vpop.f32.mrb[107].mxu0  ;;  %v17080_v4 = vpack.c.bf16 %v7536_v41, %v7535_v51 }
 0xa07   :  { %14700 = vmatmul.mubr.f32.gmra.mrb[58].mxu1 %v23266_v6 }
 0xa08   :  { %17027 = vmatpush3.bf16.msra.mxu1 %v17024_v27  ;;  %14702 = vmatprep.mubr.f32.mxu1 %v23280_v23  ;;  %v23374_v43 = vpop.f32.mrb[108].mxu0  ;;  %v7538_v23 = vld [vmem:[%s24848_s8 + $0x2c8] sm:$0xff]  ;;  %v7855_v27 = vld [vmem:[%s24848_s8 + $0x320] sm:$0xff] }
 0xa09   :  { %17029 = vmatprep.subr.bf16.mxu1 %v17028_v24  ;;  %v23376_v39 = vpop.f32.mrb[109].mxu0  ;;  %v17084_v22 = vpack.c.bf16 %v7538_v23, %v7537_v21 }
 0xa0b   :  { %14703 = vmatmul.mubr.f32.gmra.mrb[60].mxu1 %v23278_v33 }
 0xa0c   :  { %17031 = vmatpush3.bf16.msra.mxu1 %v17028_v24  ;;  %14705 = vmatprep.mubr.f32.mxu1 %v23292_v28  ;;  %v23386_v5 = vpop.f32.mrb[110].mxu0  ;;  %v7540_v28 = vld [vmem:[%s24848_s8 + $0x2d8] sm:$0xff]  ;;  %v7857_v24 = vld [vmem:[%s24848_s8 + $0x330] sm:$0xff] }
 0xa0d   :  { %17033 = vmatprep.subr.bf16.mxu1 %v17032_v17  ;;  %v23388_v31 = vpop.f32.mrb[111].mxu0  ;;  %v17088_v58 = vpack.c.bf16 %v7540_v28, %v7539_v19 }
 0xa0f   :  { %14706 = vmatmul.mubr.f32.gmra.mrb[62].mxu1 %v23290_v30 }
 0xa10   :  { %17035 = vmatpush3.bf16.msra.mxu1 %v17032_v17  ;;  %14796 = vmatprep.mubr.f32.mxu1 %v23304_v57  ;;  %v23398_v20 = vpop.f32.mrb[112].mxu0  ;;  %v7542_v57 = vld [vmem:[%s24848_s8 + $0x2e8] sm:$0xff]  ;;  %v7859_v17 = vld [vmem:[%s24848_s8 + $0x340] sm:$0xff] }
 0xa11   :  { %17069 = vmatprep.subr.bf16.mxu1 %v17068_v50  ;;  %v23400_v55 = vpop.f32.mrb[113].mxu0  ;;  %v17092_v59 = vpack.c.bf16 %v7542_v57, %v7541_v0 }
 0xa13   :  { %14797 = vmatmul.mubr.f32.vlgmr.msra.gmra.mrb[48].mxu1 %v23302_v29 }
 0xa14   :  { %17071 = vmatpush3.bf16.msra.mxu1 %v17068_v50  ;;  %14799 = vmatprep.mubr.f32.mxu1 %v23316_v1  ;;  %v23410_v35 = vpop.f32.mrb[114].mxu0  ;;  %v7544_v1 = vld [vmem:[%s24848_s8 + $0x2f8] sm:$0xff]  ;;  %v7861_v50 = vld [vmem:[%s24848_s8 + $0x350] sm:$0xff] }
 0xa15   :  { %17073 = vmatprep.subr.bf16.mxu1 %v17072_v37  ;;  %v23412_v6 = vpop.f32.mrb[115].mxu0  ;;  %v17096_v7 = vpack.c.bf16 %v7544_v1, %v7543_v56 }
 0xa17   :  { %14800 = vmatmul.mubr.f32.gmra.mrb[50].mxu1 %v23314_v10 }
 0xa18   :  { %17075 = vmatpush3.bf16.msra.mxu1 %v17072_v37  ;;  %14802 = vmatprep.mubr.f32.mxu1 %v23328_v47  ;;  %v23422_v40 = vpop.f32.mrb[116].mxu0  ;;  %v7852_v47 = vld [vmem:[%s24848_s8 + $0x308] sm:$0xff]  ;;  %v7863_v37 = vld [vmem:[%s24848_s8 + $0x360] sm:$0xff] }
 0xa19   :  { %17077 = vmatprep.subr.bf16.mxu1 %v17076_v42  ;;  %v23424_v33 = vpop.f32.mrb[117].mxu0  ;;  %v17132_v62 = vpack.c.bf16 %v7852_v47, %v7851_v11 }
 0xa1b   :  { %14803 = vmatmul.mubr.f32.gmra.mrb[52].mxu1 %v23326_v60 }
 0xa1c   :  { %17079 = vmatpush3.bf16.msra.mxu1 %v17076_v42  ;;  %14805 = vmatprep.mubr.f32.mxu1 %v23340_v52  ;;  %v23434_v26 = vpop.f32.mrb[118].mxu0  ;;  %v7854_v52 = vld [vmem:[%s24848_s8 + $0x318] sm:$0xff]  ;;  %v7865_v42 = vld [vmem:[%s24848_s8 + $0x370] sm:$0xff] }
 0xa1d   :  { %17081 = vmatprep.subr.bf16.mxu1 %v17080_v4  ;;  %v23436_v30 = vpop.f32.mrb[119].mxu0  ;;  %v17136_v2 = vpack.c.bf16 %v7854_v52, %v7853_v25 }
 0xa1f   :  { %14806 = vmatmul.mubr.f32.gmra.mrb[54].mxu1 %v23338_v14 }
 0xa20   :  { %17083 = vmatpush3.bf16.msra.mxu1 %v17080_v4  ;;  %14808 = vmatprep.mubr.f32.mxu1 %v23352_v36  ;;  %v23446_v61 = vpop.f32.mrb[120].mxu0  ;;  %v7856_v36 = vld [vmem:[%s24848_s8 + $0x328] sm:$0xff]  ;;  %v8173_v4 = vld [vmem:[%s24848_s8 + $0x380] sm:$0xff] }
 0xa21   :  { %17085 = vmatprep.subr.bf16.mxu1 %v17084_v22  ;;  %v23448_v29 = vpop.f32.mrb[121].mxu0  ;;  %v17140_v8 = vpack.c.bf16 %v7856_v36, %v7855_v27 }
 0xa23   :  { %14809 = vmatmul.mubr.f32.gmra.mrb[56].mxu1 %v23350_v45 }
 0xa24   :  { %17087 = vmatpush3.bf16.msra.mxu1 %v17084_v22  ;;  %14811 = vmatprep.mubr.f32.mxu1 %v23364_v18  ;;  %v23458_v9 = vpop.f32.mrb[122].mxu0  ;;  %v7858_v18 = vld [vmem:[%s24848_s8 + $0x338] sm:$0xff]  ;;  %v8175_v22 = vld [vmem:[%s24848_s8 + $0x390] sm:$0xff] }
 0xa25   :  { %17089 = vmatprep.subr.bf16.mxu1 %v17088_v58  ;;  %v23460_v10 = vpop.f32.mrb[123].mxu0  ;;  %v17144_v12 = vpack.c.bf16 %v7858_v18, %v7857_v24 }
 0xa27   :  { %14812 = vmatmul.mubr.f32.gmra.mrb[58].mxu1 %v23362_v13 }
 0xa28   :  { %17091 = vmatpush3.bf16.msra.mxu1 %v17088_v58  ;;  %14814 = vmatprep.mubr.f32.mxu1 %v23376_v39  ;;  %v23470_v48 = vpop.f32.mrb[124].mxu0  ;;  %v7860_v39 = vld [vmem:[%s24848_s8 + $0x348] sm:$0xff]  ;;  %v8177_v58 = vld [vmem:[%s24848_s8 + $0x3a0] sm:$0xff] }
 0xa29   :  { %17093 = vmatprep.subr.bf16.mxu1 %v17092_v59  ;;  %v23472_v60 = vpop.f32.mrb[125].mxu0  ;;  %v17148_v3 = vpack.c.bf16 %v7860_v39, %v7859_v17 }
 0xa2b   :  { %14815 = vmatmul.mubr.f32.gmra.mrb[60].mxu1 %v23374_v43 }
 0xa2c   :  { %17095 = vmatpush3.bf16.msra.mxu1 %v17092_v59  ;;  %14817 = vmatprep.mubr.f32.mxu1 %v23388_v31  ;;  %v23482_v38 = vpop.f32.mrb[126].mxu0  ;;  %v7862_v31 = vld [vmem:[%s24848_s8 + $0x358] sm:$0xff]  ;;  %v8179_v59 = vld [vmem:[%s24848_s8 + $0x3b0] sm:$0xff] }
 0xa2d   :  { %17097 = vmatprep.subr.bf16.mxu1 %v17096_v7  ;;  %v23484_v14 = vpop.f32.mrb[127].mxu0  ;;  %v17152_v16 = vpack.c.bf16 %v7862_v31, %v7861_v50 }
 0xa2f   :  { %14818 = vmatmul.mubr.f32.gmra.mrb[62].mxu1 %v23386_v5 }
 0xa30   :  { %17099 = vmatpush3.bf16.msra.mxu1 %v17096_v7  ;;  %14908 = vmatprep.mubr.f32.mxu1 %v23400_v55  ;;  %v23494_v34 = vpop.f32.mrb[128].mxu0  ;;  %v7864_v55 = vld [vmem:[%s24848_s8 + $0x368] sm:$0xff]  ;;  %v8181_v7 = vld [vmem:[%s24848_s8 + $0x3c0] sm:$0xff] }
 0xa31   :  { %17133 = vmatprep.subr.bf16.mxu1 %v17132_v62  ;;  %v23496_v45 = vpop.f32.mrb[129].mxu0  ;;  %v17156_v53 = vpack.c.bf16 %v7864_v55, %v7863_v37 }
 0xa33   :  { %14909 = vmatmul.mubr.f32.vlgmr.msra.gmra.mrb[48].mxu1 %v23398_v20 }
 0xa34   :  { %17135 = vmatpush3.bf16.msra.mxu1 %v17132_v62  ;;  %14911 = vmatprep.mubr.f32.mxu1 %v23412_v6  ;;  %v23506_v49 = vpop.f32.mrb[130].mxu0  ;;  %v7866_v6 = vld [vmem:[%s24848_s8 + $0x378] sm:$0xff]  ;;  %v8183_v62 = vld [vmem:[%s24848_s8 + $0x3d0] sm:$0xff] }
 0xa35   :  { %17137 = vmatprep.subr.bf16.mxu1 %v17136_v2  ;;  %v23508_v13 = vpop.f32.mrb[131].mxu0  ;;  %v17160_v41 = vpack.c.bf16 %v7866_v6, %v7865_v42 }
 0xa37   :  { %14912 = vmatmul.mubr.f32.gmra.mrb[50].mxu1 %v23410_v35 }
 0xa38   :  { %17139 = vmatpush3.bf16.msra.mxu1 %v17136_v2  ;;  %14914 = vmatprep.mubr.f32.mxu1 %v23424_v33  ;;  %v23518_v44 = vpop.f32.mrb[132].mxu0  ;;  %v8174_v33 = vld [vmem:[%s24848_s8 + $0x388] sm:$0xff]  ;;  %v8185_v2 = vld [vmem:[%s24848_s8 + $0x3e0] sm:$0xff] }
 0xa39   :  { %17141 = vmatprep.subr.bf16.mxu1 %v17140_v8  ;;  %v23520_v43 = vpop.f32.mrb[133].mxu0  ;;  %v17196_v23 = vpack.c.bf16 %v8174_v33, %v8173_v4 }
 0xa3b   :  { %14915 = vmatmul.mubr.f32.gmra.mrb[52].mxu1 %v23422_v40 }
 0xa3c   :  { %17143 = vmatpush3.bf16.msra.mxu1 %v17140_v8  ;;  %14917 = vmatprep.mubr.f32.mxu1 %v23436_v30  ;;  %v23530_v46 = vpop.f32.mrb[134].mxu0  ;;  %v8176_v30 = vld [vmem:[%s24848_s8 + $0x398] sm:$0xff]  ;;  %v8187_v8 = vld [vmem:[%s24848_s8 + $0x3f0] sm:$0xff] }
 0xa3d   :  { %17145 = vmatprep.subr.bf16.mxu1 %v17144_v12  ;;  %v23532_v5 = vpop.f32.mrb[135].mxu0  ;;  %v17200_v28 = vpack.c.bf16 %v8176_v30, %v8175_v22 }
 0xa3f   :  { %14918 = vmatmul.mubr.f32.gmra.mrb[54].mxu1 %v23434_v26 }
 0xa40   :  { %17147 = vmatpush3.bf16.msra.mxu1 %v17144_v12  ;;  %14920 = vmatprep.mubr.f32.mxu1 %v23448_v29  ;;  %v23542_v63 = vpop.f32.mrb[136].mxu0  ;;  %v8178_v29 = vld [vmem:[%s24848_s8 + $0x3a8] sm:$0xff]  ;;  %v8495_v12 = vld [vmem:[%s24848_s8 + $0x400] sm:$0xff] }
 0xa41   :  { %17149 = vmatprep.subr.bf16.mxu1 %v17148_v3  ;;  %v23544_v20 = vpop.f32.mrb[137].mxu0  ;;  %v17204_v57 = vpack.c.bf16 %v8178_v29, %v8177_v58 }
 0xa43   :  { %14921 = vmatmul.mubr.f32.gmra.mrb[56].mxu1 %v23446_v61 }
 0xa44   :  { %17151 = vmatpush3.bf16.msra.mxu1 %v17148_v3  ;;  %14923 = vmatprep.mubr.f32.mxu1 %v23460_v10  ;;  %v23554_v54 = vpop.f32.mrb[138].mxu0  ;;  %v8180_v10 = vld [vmem:[%s24848_s8 + $0x3b8] sm:$0xff]  ;;  %v8497_v3 = vld [vmem:[%s24848_s8 + $0x410] sm:$0xff] }
 0xa45   :  { %17153 = vmatprep.subr.bf16.mxu1 %v17152_v16  ;;  %v23556_v35 = vpop.f32.mrb[139].mxu0  ;;  %v17208_v1 = vpack.c.bf16 %v8180_v10, %v8179_v59 }
 0xa47   :  { %14924 = vmatmul.mubr.f32.gmra.mrb[58].mxu1 %v23458_v9 }
 0xa48   :  { %17155 = vmatpush3.bf16.msra.mxu1 %v17152_v16  ;;  %14926 = vmatprep.mubr.f32.mxu1 %v23472_v60  ;;  %v23566_v51 = vpop.f32.mrb[140].mxu0  ;;  %v8182_v60 = vld [vmem:[%s24848_s8 + $0x3c8] sm:$0xff]  ;;  %v8499_v16 = vld [vmem:[%s24848_s8 + $0x420] sm:$0xff] }
 0xa49   :  { %17157 = vmatprep.subr.bf16.mxu1 %v17156_v53  ;;  %v23568_v40 = vpop.f32.mrb[141].mxu0  ;;  %v17212_v47 = vpack.c.bf16 %v8182_v60, %v8181_v7 }
 0xa4b   :  { %14927 = vmatmul.mubr.f32.gmra.mrb[60].mxu1 %v23470_v48 }
 0xa4c   :  { %17159 = vmatpush3.bf16.msra.mxu1 %v17156_v53  ;;  %14929 = vmatprep.mubr.f32.mxu1 %v23484_v14  ;;  %v23578_v21 = vpop.f32.mrb[142].mxu0  ;;  %v8184_v14 = vld [vmem:[%s24848_s8 + $0x3d8] sm:$0xff]  ;;  %v8501_v53 = vld [vmem:[%s24848_s8 + $0x430] sm:$0xff] }
 0xa4d   :  { %17161 = vmatprep.subr.bf16.mxu1 %v17160_v41  ;;  %v23580_v26 = vpop.f32.mrb[143].mxu0  ;;  %v17216_v52 = vpack.c.bf16 %v8184_v14, %v8183_v62 }
 0xa4f   :  { %14930 = vmatmul.mubr.f32.gmra.mrb[62].mxu1 %v23482_v38 }
 0xa50   :  { %17163 = vmatpush3.bf16.msra.mxu1 %v17160_v41  ;;  %15020 = vmatprep.mubr.f32.mxu1 %v23496_v45  ;;  %v23590_v19 = vpop.f32.mrb[144].mxu0  ;;  %v8186_v45 = vld [vmem:[%s24848_s8 + $0x3e8] sm:$0xff]  ;;  %v8503_v41 = vld [vmem:[%s24848_s8 + $0x440] sm:$0xff] }
 0xa51   :  { %17197 = vmatprep.subr.bf16.mxu1 %v17196_v23  ;;  %v23592_v61 = vpop.f32.mrb[145].mxu0  ;;  %v17220_v36 = vpack.c.bf16 %v8186_v45, %v8185_v2 }
 0xa53   :  { %15021 = vmatmul.mubr.f32.vlgmr.msra.gmra.mrb[48].mxu1 %v23494_v34 }
 0xa54   :  { %17199 = vmatpush3.bf16.msra.mxu1 %v17196_v23  ;;  %15023 = vmatprep.mubr.f32.mxu1 %v23508_v13  ;;  %v23602_v0 = vpop.f32.mrb[146].mxu0  ;;  %v8188_v13 = vld [vmem:[%s24848_s8 + $0x3f8] sm:$0xff]  ;;  %v8505_v23 = vld [vmem:[%s24848_s8 + $0x450] sm:$0xff] }
 0xa55   :  { %17201 = vmatprep.subr.bf16.mxu1 %v17200_v28  ;;  %v23604_v9 = vpop.f32.mrb[147].mxu0  ;;  %v17224_v18 = vpack.c.bf16 %v8188_v13, %v8187_v8 }
 0xa57   :  { %15024 = vmatmul.mubr.f32.gmra.mrb[50].mxu1 %v23506_v49 }
 0xa58   :  { %17203 = vmatpush3.bf16.msra.mxu1 %v17200_v28  ;;  %15026 = vmatprep.mubr.f32.mxu1 %v23520_v43  ;;  %v23614_v56 = vpop.f32.mrb[148].mxu0  ;;  %v8496_v43 = vld [vmem:[%s24848_s8 + $0x408] sm:$0xff]  ;;  %v8507_v28 = vld [vmem:[%s24848_s8 + $0x460] sm:$0xff] }
 0xa59   :  { %17205 = vmatprep.subr.bf16.mxu1 %v17204_v57  ;;  %v23616_v48 = vpop.f32.mrb[149].mxu0  ;;  %v17260_v39 = vpack.c.bf16 %v8496_v43, %v8495_v12 }
 0xa5b   :  { %15027 = vmatmul.mubr.f32.gmra.mrb[52].mxu1 %v23518_v44 }
 0xa5c   :  { %17207 = vmatpush3.bf16.msra.mxu1 %v17204_v57  ;;  %15029 = vmatprep.mubr.f32.mxu1 %v23532_v5  ;;  %v23626_v11 = vpop.f32.mrb[150].mxu0  ;;  %v8498_v5 = vld [vmem:[%s24848_s8 + $0x418] sm:$0xff]  ;;  %v8509_v57 = vld [vmem:[%s24848_s8 + $0x470] sm:$0xff] }
 0xa5d   :  { %17209 = vmatprep.subr.bf16.mxu1 %v17208_v1  ;;  %v23628_v38 = vpop.f32.mrb[151].mxu0  ;;  %v17264_v31 = vpack.c.bf16 %v8498_v5, %v8497_v3 }
 0xa5f   :  { %15030 = vmatmul.mubr.f32.gmra.mrb[54].mxu1 %v23530_v46 }
 0xa60   :  { %17211 = vmatpush3.bf16.msra.mxu1 %v17208_v1  ;;  %15032 = vmatprep.mubr.f32.mxu1 %v23544_v20  ;;  %v23638_v25 = vpop.f32.mrb[152].mxu0  ;;  %v8500_v20 = vld [vmem:[%s24848_s8 + $0x428] sm:$0xff] }
 0xa61   :  { %17213 = vmatprep.subr.bf16.mxu1 %v17212_v47  ;;  %v23640_v34 = vpop.f32.mrb[153].mxu0  ;;  %v17268_v55 = vpack.c.bf16 %v8500_v20, %v8499_v16 }
 0xa63   :  { %15033 = vmatmul.mubr.f32.gmra.mrb[56].mxu1 %v23542_v63 }
 0xa64   :  { %17215 = vmatpush3.bf16.msra.mxu1 %v17212_v47  ;;  %15035 = vmatprep.mubr.f32.mxu1 %v23556_v35  ;;  %v23650_v27 = vpop.f32.mrb[154].mxu0  ;;  %v8502_v35 = vld [vmem:[%s24848_s8 + $0x438] sm:$0xff] }
 0xa65   :  { %17217 = vmatprep.subr.bf16.mxu1 %v17216_v52  ;;  %v23652_v49 = vpop.f32.mrb[155].mxu0  ;;  %v17272_v6 = vpack.c.bf16 %v8502_v35, %v8501_v53 }
 0xa67   :  { %15036 = vmatmul.mubr.f32.gmra.mrb[58].mxu1 %v23554_v54 }
 0xa68   :  { %17219 = vmatpush3.bf16.msra.mxu1 %v17216_v52  ;;  %15038 = vmatprep.mubr.f32.mxu1 %v23568_v40  ;;  %v23662_v24 = vpop.f32.mrb[156].mxu0  ;;  %v8504_v40 = vld [vmem:[%s24848_s8 + $0x448] sm:$0xff] }
 0xa69   :  { %17221 = vmatprep.subr.bf16.mxu1 %v17220_v36  ;;  %v23664_v44 = vpop.f32.mrb[157].mxu0  ;;  %v17276_v33 = vpack.c.bf16 %v8504_v40, %v8503_v41 }
 0xa6b   :  { %15039 = vmatmul.mubr.f32.gmra.mrb[60].mxu1 %v23566_v51 }
 0xa6c   :  { %17223 = vmatpush3.bf16.msra.mxu1 %v17220_v36  ;;  %15041 = vmatprep.mubr.f32.mxu1 %v23580_v26  ;;  %v23674_v17 = vpop.f32.mrb[158].mxu0  ;;  %v8506_v26 = vld [vmem:[%s24848_s8 + $0x458] sm:$0xff] }
 0xa6d   :  { %17225 = vmatprep.subr.bf16.mxu1 %v17224_v18  ;;  %v23676_v46 = vpop.f32.mrb[159].mxu0  ;;  %v17280_v30 = vpack.c.bf16 %v8506_v26, %v8505_v23 }
 0xa6f   :  { %15042 = vmatmul.mubr.f32.gmra.mrb[62].mxu1 %v23578_v21 }
 0xa70   :  { %17227 = vmatpush3.bf16.msra.mxu1 %v17224_v18  ;;  %15132 = vmatprep.mubr.f32.mxu1 %v23592_v61  ;;  %v23686_v50 = vpop.f32.mrb[160].mxu0  ;;  %v8508_v61 = vld [vmem:[%s24848_s8 + $0x468] sm:$0xff] }
 0xa71   :  { %17261 = vmatprep.subr.bf16.mxu1 %v17260_v39  ;;  %v8416_v63 = vpop.f32.mrb[161].mxu0  ;;  %v17284_v29 = vpack.c.bf16 %v8508_v61, %v8507_v28 }
 0xa73   :  { %15133 = vmatmul.mubr.f32.vlgmr.msra.gmra.mrb[48].mxu1 %v23590_v19 }
 0xa74   :  { %17263 = vmatpush3.bf16.msra.mxu1 %v17260_v39  ;;  %15135 = vmatprep.mubr.f32.mxu1 %v23604_v9  ;;  %v15193_v37 = vpop.f32.mrb[162].mxu0  ;;  %v8510_v9 = vld [vmem:[%s24848_s8 + $0x478] sm:$0xff] }
 0xa75   :  { %17265 = vmatprep.subr.bf16.mxu1 %v17264_v31  ;;  %v8426_v54 = vpop.f32.mrb[163].mxu0  ;;  %v17288_v10 = vpack.c.bf16 %v8510_v9, %v8509_v57 }
 0xa77   :  { %15136 = vmatmul.mubr.f32.gmra.mrb[50].mxu1 %v23602_v0 }
 0xa78   :  { %17267 = vmatpush3.bf16.msra.mxu1 %v17264_v31  ;;  %15138 = vmatprep.mubr.f32.mxu1 %v23616_v48  ;;  %v15196_v42 = vpop.f32.mrb[164].mxu0 }
 0xa79   :  { %17269 = vmatprep.subr.bf16.mxu1 %v17268_v55  ;;  %v8436_v51 = vpop.f32.mrb[165].mxu0 }
 0xa7b   :  { %15139 = vmatmul.mubr.f32.gmra.mrb[52].mxu1 %v23614_v56 }
 0xa7c   :  { %17271 = vmatpush3.bf16.msra.mxu1 %v17268_v55  ;;  %15141 = vmatprep.mubr.f32.mxu1 %v23628_v38  ;;  %v15199_v4 = vpop.f32.mrb[166].mxu0 }
 0xa7d   :  { %17273 = vmatprep.subr.bf16.mxu1 %v17272_v6  ;;  %v8446_v21 = vpop.f32.mrb[167].mxu0 }
 0xa7f   :  { %15142 = vmatmul.mubr.f32.gmra.mrb[54].mxu1 %v23626_v11 }
 0xa80   :  { %17275 = vmatpush3.bf16.msra.mxu1 %v17272_v6  ;;  %15144 = vmatprep.mubr.f32.mxu1 %v23640_v34  ;;  %v15202_v22 = vpop.f32.mrb[168].mxu0 }
 0xa81   :  { %17277 = vmatprep.subr.bf16.mxu1 %v17276_v33  ;;  %v8456_v19 = vpop.f32.mrb[169].mxu0 }
 0xa83   :  { %15145 = vmatmul.mubr.f32.gmra.mrb[56].mxu1 %v23638_v25 }
 0xa84   :  { %17279 = vmatpush3.bf16.msra.mxu1 %v17276_v33  ;;  %15147 = vmatprep.mubr.f32.mxu1 %v23652_v49  ;;  %v15205_v58 = vpop.f32.mrb[170].mxu0 }
 0xa85   :  { %17281 = vmatprep.subr.bf16.mxu1 %v17280_v30  ;;  %v8466_v0 = vpop.f32.mrb[171].mxu0 }
 0xa87   :  { %15148 = vmatmul.mubr.f32.gmra.mrb[58].mxu1 %v23650_v27 }
 0xa88   :  { %17283 = vmatpush3.bf16.msra.mxu1 %v17280_v30  ;;  %15150 = vmatprep.mubr.f32.mxu1 %v23664_v44  ;;  %v15208_v59 = vpop.f32.mrb[172].mxu0 }
 0xa89   :  { %17285 = vmatprep.subr.bf16.mxu1 %v17284_v29  ;;  %v8476_v56 = vpop.f32.mrb[173].mxu0 }
 0xa8b   :  { %15151 = vmatmul.mubr.f32.gmra.mrb[60].mxu1 %v23662_v24 }
 0xa8c   :  { %17287 = vmatpush3.bf16.msra.mxu1 %v17284_v29  ;;  %15153 = vmatprep.mubr.f32.mxu1 %v23676_v46  ;;  %v15211_v1 = vpop.f32.mrb[174].mxu0 }
 0xa8d   :  { %17289 = vmatprep.subr.bf16.mxu1 %v17288_v10  ;;  %v8486_v48 = vpop.f32.mrb[175].mxu0 }
 0xa8f   :  { %15154 = vmatmul.mubr.f32.gmra.mrb[62].mxu1 %v23674_v17 }
 0xa90   :  { %17291 = vmatpush3.bf16.msra.mxu1 %v17288_v10  ;;  %15244 = vmatprep.mubr.f32.mxu1 %v8416_v63 }
 0xa93   :  { %15245 = vmatmul.mubr.f32.vlgmr.msra.gmra.mrb[48].mxu1 %v23686_v50 }
 0xa94   :  { %15247 = vmatprep.mubr.f32.mxu1 %v8426_v54 }
 0xa97   :  { %15248 = vmatmul.mubr.f32.gmra.mrb[50].mxu1 %v15193_v37 }
 0xa98   :  { %15250 = vmatprep.mubr.f32.mxu1 %v8436_v51 }
 0xa9b   :  { %15251 = vmatmul.mubr.f32.gmra.mrb[52].mxu1 %v15196_v42 }
 0xa9c   :  { %15253 = vmatprep.mubr.f32.mxu1 %v8446_v21 }
 0xa9f   :  { %15254 = vmatmul.mubr.f32.gmra.mrb[54].mxu1 %v15199_v4 }
 0xaa0   :  { %15256 = vmatprep.mubr.f32.mxu1 %v8456_v19 }
 0xaa3   :  { %15257 = vmatmul.mubr.f32.gmra.mrb[56].mxu1 %v15202_v22 }
 0xaa4   :  { %15259 = vmatprep.mubr.f32.mxu1 %v8466_v0 }
 0xaa7   :  { %15260 = vmatmul.mubr.f32.gmra.mrb[58].mxu1 %v15205_v58 }
 0xaa8   :  { %15262 = vmatprep.mubr.f32.mxu1 %v8476_v56 }
 0xaab   :  { %15263 = vmatmul.mubr.f32.gmra.mrb[60].mxu1 %v15208_v59 }
 0xaac   :  { %15265 = vmatprep.mubr.f32.mxu1 %v8486_v48 }
 0xaaf   :  { %15266 = vmatmul.mubr.f32.gmra.mrb[62].mxu1 %v15211_v1 }
 0xb66   :  { %v23740_v7 = vpop.f32.mrb[48].mxu1 }
 0xb67   :  { %v8674_v60 = vsel %vm24896_vm3, %v23740_v7, 0.0  ;;  %v23744_v11 = vpop.f32.mrb[49].mxu1 }
 0xb68   :  { %v8673_v47 = vsel %vm24896_vm3, %v23744_v11, 0.0 }
 0xb69   :  { %v8675_v38 = vadd.f32 %v8674_v60, %v8673_v47 }
 0xb6a   :  { %v23748_v62 = vpop.f32.mrb[50].mxu1 }
 0xb6b   :  { %v23750_v14 = vpop.f32.mrb[51].mxu1  ;;  %v8678_v34 = vsel %vm24896_vm3, %v23748_v62, 0.0 }
 0xb6c   :  { %v8676_v25 = vsel %vm24896_vm3, %v23750_v14, 0.0 }
 0xb6d   :  { %v8677_v52 = vadd.f32 %v8676_v25, %v8675_v38 }
 0xb6e   :  { %v23756_v2 = vpop.f32.mrb[52].mxu1 }
 0xb6f   :  { %v23758_v45 = vpop.f32.mrb[53].mxu1  ;;  %v8679_v27 = vadd.f32 %v8678_v34, %v8677_v52  ;;  %v8682_v8 = vsel %vm24896_vm3, %v23756_v2, 0.0 }
 0xb70   :  { %v8680_v36 = vsel %vm24896_vm3, %v23758_v45, 0.0 }
 0xb71   :  { %v8681_v49 = vadd.f32 %v8680_v36, %v8679_v27 }
 0xb72   :  { %v23764_v13 = vpop.f32.mrb[54].mxu1 }
 0xb73   :  { %v23766_v24 = vpop.f32.mrb[55].mxu1  ;;  %v8683_v18 = vadd.f32 %v8682_v8, %v8681_v49  ;;  %v8686_v43 = vsel %vm24896_vm3, %v23764_v13, 0.0 }
 0xb74   :  { %v8684_v44 = vsel %vm24896_vm3, %v23766_v24, 0.0 }
 0xb75   :  { %v8685_v12 = vadd.f32 %v8684_v44, %v8683_v18 }
 0xb76   :  { %v23772_v17 = vpop.f32.mrb[56].mxu1 }
 0xb77   :  { %v23774_v39 = vpop.f32.mrb[57].mxu1  ;;  %v8687_v46 = vadd.f32 %v8686_v43, %v8685_v12  ;;  %v8690_v50 = vsel %vm24896_vm3, %v23772_v17, 0.0 }
 0xb78   :  { %v8688_v3 = vsel %vm24896_vm3, %v23774_v39, 0.0 }
 0xb79   :  { %v8689_v5 = vadd.f32 %v8688_v3, %v8687_v46 }
 0xb7a   :  { %v23780_v31 = vpop.f32.mrb[58].mxu1 }
 0xb7b   :  { %v23782_v63 = vpop.f32.mrb[59].mxu1  ;;  %v8691_v16 = vadd.f32 %v8690_v50, %v8689_v5  ;;  %v8694_v55 = vsel %vm24896_vm3, %v23780_v31, 0.0 }
 0xb7c   :  { %v8692_v20 = vsel %vm24896_vm3, %v23782_v63, 0.0 }
 0xb7d   :  { %v8693_v37 = vadd.f32 %v8692_v20, %v8691_v16 }
 0xb7e   :  { %v23788_v54 = vpop.f32.mrb[60].mxu1 }
 0xb7f   :  { %v23790_v53 = vpop.f32.mrb[61].mxu1  ;;  %v8695_v35 = vadd.f32 %v8694_v55, %v8693_v37  ;;  %v8698_v51 = vsel %vm24896_vm3, %v23788_v54, 0.0 }
 0xb80   :  { %v8696_v42 = vsel %vm24896_vm3, %v23790_v53, 0.0 }
 0xb81   :  { %v8697_v6 = vadd.f32 %v8696_v42, %v8695_v35 }
 0xb82   :  { %v23796_v41 = vpop.f32.mrb[62].mxu1 }
 0xb83   :  { %v23798_v40 = vpop.f32.mrb[63].mxu1  ;;  %v8699_v4 = vadd.f32 %v8698_v51, %v8697_v6  ;;  %v8702_v23 = vsel %vm24896_vm3, %v23796_v41, 0.0 }
 0xb84   :  { %v8700_v33 = vsel %vm24896_vm3, %v23798_v40, 0.0 }
 0xb85   :  { %v8701_v21 = vadd.f32 %v8700_v33, %v8699_v4 }
 0xb87   :  { %v8703_v26 = vadd.f32 %v8702_v23, %v8701_v21 }
 0xb89   :  { %v8704_v22 = vrot.slane %v8703_v26, 4 }
 0xb8b   :  { %v8705_v30 = vadd.f32 %v8704_v22, %v8703_v26 }
 0xb8d   :  { %v8706_v19 = vrot.slane %v8705_v30, 2 }
 0xb8f   :  { %v8707_v28 = vadd.f32 %v8706_v19, %v8705_v30 }
 0xb91   :  { %v8708_v61 = vrot.slane %v8707_v28, 1 }
 0xb93   :  { %v8709_v58 = vadd.f32 %v8708_v61, %v8707_v28 }
 0xb95   :  { %v23804_v29 = vmul.f32 0.0078125, %v8709_v58 }
 0xb97   :  { %v8711_v0 = vsub.f32 %v23744_v11, %v23804_v29  ;;  %v8712_v57 = vsub.f32 %v23740_v7, %v23804_v29  ;;  %v8713_v9 = vsub.f32 %v23750_v14, %v23804_v29  ;;  %v8714_v59 = vsub.f32 %v23748_v62, %v23804_v29 }
 0xb98   :  { %v8715_v10 = vsub.f32 %v23758_v45, %v23804_v29  ;;  %v8716_v56 = vsub.f32 %v23756_v2, %v23804_v29  ;;  %v8717_v1 = vsub.f32 %v23766_v24, %v23804_v29  ;;  %v8718_v48 = vsub.f32 %v23764_v13, %v23804_v29 }
 0xb99   :  { %v8719_v60 = vsub.f32 %v23774_v39, %v23804_v29  ;;  %v8720_v47 = vsub.f32 %v23772_v17, %v23804_v29  ;;  %v8721_v38 = vsub.f32 %v23782_v63, %v23804_v29  ;;  %v8722_v25 = vsub.f32 %v23780_v31, %v23804_v29 }
 0xb9a   :  { %v8723_v52 = vsub.f32 %v23790_v53, %v23804_v29  ;;  %v8724_v34 = vsub.f32 %v23788_v54, %v23804_v29  ;;  %v8725_v27 = vsub.f32 %v23798_v40, %v23804_v29  ;;  %v8726_v36 = vsub.f32 %v23796_v41, %v23804_v29 }
 0xb9b   :  { %v8727_v49 = vmul.f32 %v8711_v0, %v8711_v0  ;;  %v8728_v8 = vmul.f32 %v8712_v57, %v8712_v57  ;;  %v8729_v18 = vmul.f32 %v8713_v9, %v8713_v9  ;;  %v8730_v44 = vmul.f32 %v8714_v59, %v8714_v59 }
 0xb9c   :  { %v8731_v3 = vmul.f32 %v8715_v10, %v8715_v10  ;;  %v8732_v16 = vmul.f32 %v8716_v56, %v8716_v56  ;;  %v8733_v55 = vmul.f32 %v8717_v1, %v8717_v1  ;;  %v8734_v6 = vmul.f32 %v8718_v48, %v8718_v48 }
 0xb9d   :  { %v8743_v12 = vsel %vm24896_vm3, %v8727_v49, 0.0  ;;  %v8744_v43 = vsel %vm24896_vm3, %v8728_v8, 0.0  ;;  %v8746_v5 = vsel %vm24896_vm3, %v8729_v18, 0.0  ;;  %v8748_v20 = vsel %vm24896_vm3, %v8730_v44, 0.0 }
 0xb9e   :  { %v8745_v46 = vadd.f32 %v8744_v43, %v8743_v12  ;;  %v8750_v35 = vsel %vm24896_vm3, %v8731_v3, 0.0  ;;  %v8752_v51 = vsel %vm24896_vm3, %v8732_v16, 0.0  ;;  %v8735_v33 = vmul.f32 %v8719_v60, %v8719_v60 }
 0xb9f   :  { %v8754_v21 = vsel %vm24896_vm3, %v8733_v55, 0.0  ;;  %v8736_v26 = vmul.f32 %v8720_v47, %v8720_v47  ;;  %v8756_v22 = vsel %vm24896_vm3, %v8734_v6, 0.0  ;;  %v8737_v19 = vmul.f32 %v8721_v38, %v8721_v38 }
 0xba0   :  { %v8747_v50 = vadd.f32 %v8746_v5, %v8745_v46  ;;  %v8758_v28 = vsel %vm24896_vm3, %v8735_v33, 0.0  ;;  %v8738_v58 = vmul.f32 %v8722_v25, %v8722_v25  ;;  %v8739_v9 = vmul.f32 %v8723_v52, %v8723_v52 }
 0xba1   :  { %v8760_v0 = vsel %vm24896_vm3, %v8736_v26, 0.0  ;;  %v8762_v59 = vsel %vm24896_vm3, %v8737_v19, 0.0  ;;  %v8740_v56 = vmul.f32 %v8724_v34, %v8724_v34  ;;  %v8741_v60 = vmul.f32 %v8725_v27, %v8725_v27 }
 0xba2   :  { %v8749_v37 = vadd.f32 %v8748_v20, %v8747_v50  ;;  %v8764_v1 = vsel %vm24896_vm3, %v8738_v58, 0.0  ;;  %v8766_v47 = vsel %vm24896_vm3, %v8739_v9, 0.0  ;;  %v8742_v38 = vmul.f32 %v8726_v36, %v8726_v36  ;;  %v8672_v36 = vld [vmem:[%s24853_s13] sm:$0x3] }
 0xba3   :  { %v8768_v8 = vsel %vm24896_vm3, %v8740_v56, 0.0  ;;  %v8770_v25 = vsel %vm24896_vm3, %v8741_v60, 0.0 }
 0xba4   :  { %v8751_v42 = vadd.f32 %v8750_v35, %v8749_v37  ;;  %v8772_v52 = vsel %vm24896_vm3, %v8742_v38, 0.0 }
 0xba6   :  { %v8753_v4 = vadd.f32 %v8752_v51, %v8751_v42 }
 0xba8   :  { %v8755_v23 = vadd.f32 %v8754_v21, %v8753_v4 }
 0xbaa   :  { %v8757_v30 = vadd.f32 %v8756_v22, %v8755_v23 }
 0xbac   :  { %v8759_v61 = vadd.f32 %v8758_v28, %v8757_v30 }
 0xbae   :  { %v8761_v57 = vadd.f32 %v8760_v0, %v8759_v61 }
 0xbb0   :  { %v8763_v10 = vadd.f32 %v8762_v59, %v8761_v57 }
 0xbb2   :  { %v8765_v48 = vadd.f32 %v8764_v1, %v8763_v10 }
 0xbb4   :  { %v8767_v49 = vadd.f32 %v8766_v47, %v8765_v48 }
 0xbb6   :  { %v8769_v18 = vadd.f32 %v8768_v8, %v8767_v49 }
 0xbb8   :  { %v8771_v44 = vadd.f32 %v8770_v25, %v8769_v18 }
 0xbba   :  { %v8773_v12 = vadd.f32 %v8772_v52, %v8771_v44 }
 0xbbc   :  { %v8774_v43 = vrot.slane %v8773_v12, 4 }
 0xbbe   :  { %v8775_v46 = vadd.f32 %v8774_v43, %v8773_v12 }
 0xbc0   :  { %v8776_v34 = vrot.slane %v8775_v46, 2 }
 0xbc2   :  { %v8777_v3 = vadd.f32 %v8776_v34, %v8775_v46 }
 0xbc4   :  { %v8778_v5 = vrot.slane %v8777_v3, 1 }
 0xbc6   :  { %v8779_v50 = vadd.f32 %v8778_v5, %v8777_v3 }
 0xbc8   :  { %v8780_v27 = vmul.f32 0.0078125, %v8779_v50 }
 0xbca   :  { %v8781_v16 = vadd.f32 1e-05, %v8780_v27 }
 0xbcc   :  { %18006 = vrsqrt.f32 %v8781_v16 }
 0xbd6   :  { %v18007_v20 = vpop.eup %18006 }
 0xbd7   :  { %v8783_v37 = vmul.f32 %v18007_v20, %v8672_v36 }
 0xbd9   :  { %v8787_v55 = vrot.slane %v8783_v37, %v24939_v15  ;;  %v8804_v35 = vmul.f32 %v8783_v37, %v23804_v29 }
 0xbdb   :  { %v8788_v42 = vmul.f32 %v8787_v55, %v23744_v11  ;;  %v8789_v6 = vmul.f32 %v23740_v7, %v8787_v55  ;;  %v8790_v51 = vmul.f32 %v8787_v55, %v23750_v14  ;;  %v8791_v4 = vmul.f32 %v23748_v62, %v8787_v55 }
 0xbdc   :  { %v8792_v33 = vmul.f32 %v8787_v55, %v23758_v45  ;;  %v8793_v21 = vmul.f32 %v23756_v2, %v8787_v55  ;;  %v8794_v23 = vmul.f32 %v8787_v55, %v23766_v24  ;;  %v8795_v26 = vmul.f32 %v23764_v13, %v8787_v55 }
 0xbdd   :  { %v8796_v15 = vmul.f32 %v8787_v55, %v23774_v39  ;;  %v8797_v29 = vmul.f32 %v23772_v17, %v8787_v55  ;;  %v8798_v11 = vmul.f32 %v8787_v55, %v23782_v63  ;;  %v8799_v7 = vmul.f32 %v23780_v31, %v8787_v55 }
 0xbde   :  { %v8800_v14 = vmul.f32 %v8787_v55, %v23790_v53  ;;  %v8801_v62 = vmul.f32 %v23788_v54, %v8787_v55  ;;  %v8802_v45 = vmul.f32 %v8787_v55, %v23798_v40  ;;  %v8803_v2 = vmul.f32 %v23796_v41, %v8787_v55 }
 0xbdf   :  { %v8806_v22 = vrot.slane %v8804_v35, 7 }
 0xbe1   :  { %v8808_v24 = vsub.f32 %v8672_v36, %v8806_v22  ;;  %v18224_v22 = vld [vmem:[%s24843_s3 + $0x30] sm:$0xff] }
 0xbe3   :  { %v8812_v13 = vrot.slane %v8808_v24, %v24941_v32  ;;  %v18225_v24 = vld [vmem:[%s24843_s3 + $0x38] sm:$0xff] }
 0xbe5   :  { %v8813_v30 = vadd.f32 %v8812_v13, %v8788_v42  ;;  %v8814_v39 = vadd.f32 %v8812_v13, %v8789_v6  ;;  %v8815_v19 = vadd.f32 %v8812_v13, %v8790_v51  ;;  %v8816_v17 = vadd.f32 %v8812_v13, %v8791_v4 }
 0xbe6   :  { %v8817_v28 = vadd.f32 %v8812_v13, %v8792_v33  ;;  %v8818_v63 = vadd.f32 %v8812_v13, %v8793_v21  ;;  %v8819_v61 = vadd.f32 %v8812_v13, %v8794_v23  ;;  %v8820_v31 = vadd.f32 %v8812_v13, %v8795_v26 }
 0xbe7   :  { %v8821_v58 = vadd.f32 %v8812_v13, %v8796_v15  ;;  %v8822_v53 = vadd.f32 %v8812_v13, %v8797_v29  ;;  %v8823_v0 = vadd.f32 %v8812_v13, %v8798_v11  ;;  %v8824_v54 = vadd.f32 %v8812_v13, %v8799_v7  ;;  %v18219_v7 = vld [vmem:[%s24843_s3 + $0x8] sm:$0xff] }
 0xbe8   :  { %v8825_v57 = vadd.f32 %v8812_v13, %v8800_v14  ;;  %v8826_v40 = vadd.f32 %v8812_v13, %v8801_v62  ;;  %v8827_v9 = vadd.f32 %v8812_v13, %v8802_v45  ;;  %v8828_v41 = vadd.f32 %v8812_v13, %v8803_v2  ;;  %v18220_v14 = vld [vmem:[%s24843_s3 + $0x10] sm:$0xff]  ;;  %v18221_v62 = vld [vmem:[%s24843_s3 + $0x18] sm:$0xff]  ;;  %v18222_v45 = vld [vmem:[%s24843_s3 + $0x20] sm:$0xff] }
 0xbe9   :  { %vm8829_vm7 = vcmp.gt.f32.partialorder %v8813_v30, 0.0  ;;  %vm8830_vm8 = vcmp.gt.f32.partialorder %v8814_v39, 0.0  ;;  %vm8831_vm9 = vcmp.gt.f32.partialorder %v8815_v19, 0.0  ;;  %vm8832_vm10 = vcmp.gt.f32.partialorder %v8816_v17, 0.0  ;;  %v18223_v2 = vld [vmem:[%s24843_s3 + $0x28] sm:$0xff]  ;;  %v18226_v13 = vld [vmem:[%s24843_s3 + $0x40] sm:$0xff] }
 0xbea   :  { %vm8833_vm11 = vcmp.gt.f32.partialorder %v8817_v28, 0.0  ;;  %vm8834_vm12 = vcmp.gt.f32.partialorder %v8818_v63, 0.0  ;;  %vm8835_vm13 = vcmp.gt.f32.partialorder %v8819_v61, 0.0  ;;  %vm8836_vm14 = vcmp.gt.f32.partialorder %v8820_v31, 0.0 }
 0xbeb   :  { %vm8837_vm15 = vcmp.gt.f32.partialorder %v8821_v58, 0.0  ;;  %vm8838_vm0 = vcmp.gt.f32.partialorder %v8822_v53, 0.0  ;;  %vm8839_vm1 = vcmp.gt.f32.partialorder %v8823_v0, 0.0  ;;  %vm8840_vm2 = vcmp.gt.f32.partialorder %v8824_v54, 0.0 }
 0xbec   :  { %vm8841_vm4 = vcmp.gt.f32.partialorder %v8825_v57, 0.0  ;;  %vm8842_vm5 = vcmp.gt.f32.partialorder %v8826_v40, 0.0  ;;  %vm8843_vm6 = vcmp.gt.f32.partialorder %v8827_v9, 0.0  ;;  %vm8844_vm3 = vcmp.gt.f32.partialorder %v8828_v41, 0.0 }
 0xbed   :  { %v8845_v32 = vmul.f32 0.2, %v8813_v30  ;;  %v8846_v59 = vmul.f32 0.2, %v8814_v39  ;;  %v8847_v10 = vmul.f32 0.2, %v8815_v19 }
 0xbee   :  { %v8848_v56 = vmul.f32 0.2, %v8816_v17  ;;  %v8849_v1 = vmul.f32 0.2, %v8817_v28  ;;  %v8850_v48 = vmul.f32 0.2, %v8818_v63 }
 0xbef   :  { %v8851_v60 = vmul.f32 0.2, %v8819_v61  ;;  %v8852_v47 = vmul.f32 0.2, %v8820_v31  ;;  %v8853_v49 = vmul.f32 0.2, %v8821_v58  ;;  %v8861_v38 = vsel %vm8829_vm7, %v8813_v30, %v8845_v32 }
 0xbf0   :  { %v8854_v8 = vmul.f32 0.2, %v8822_v53  ;;  %v8855_v18 = vmul.f32 0.2, %v8823_v0  ;;  %v8856_v25 = vmul.f32 0.2, %v8824_v54  ;;  %v8862_v44 = vsel %vm8830_vm8, %v8814_v39, %v8846_v59 }
 0xbf1   :  { %v8857_v52 = vmul.f32 0.2, %v8825_v57  ;;  %v8858_v12 = vmul.f32 0.2, %v8826_v40  ;;  %v8859_v43 = vmul.f32 0.2, %v8827_v9  ;;  %v23878_v46 = vpack.c.bf16 %v8862_v44, %v8861_v38 }
 0xbf2   :  { %v8860_v34 = vmul.f32 0.2, %v8828_v41  ;;  %v8863_v3 = vsel %vm8831_vm9, %v8815_v19, %v8847_v10  ;;  %v8864_v5 = vsel %vm8832_vm10, %v8816_v17, %v8848_v56  ;;  %v8865_v50 = vsel %vm8833_vm11, %v8817_v28, %v8849_v1  ;;  %v18227_v30 = vld [vmem:[%s24843_s3 + $0x48] sm:$0xff]  ;;  %v18228_v39 = vld [vmem:[%s24843_s3 + $0x50] sm:$0xff]  ;;  %v18229_v19 = vld [vmem:[%s24843_s3 + $0x58] sm:$0xff] }
 0xbf3   :  { %v8875_v27 = vsel %vm8843_vm6, %v8827_v9, %v8859_v43  ;;  %17293 = vmatprep.subr.bf16.mxu0 %v23878_v46  ;;  %v23885_v16 = vpack.c.bf16 %v8864_v5, %v8863_v3  ;;  %v8866_v36 = vsel %vm8834_vm12, %v8818_v63, %v8850_v48  ;;  %v8867_v20 = vsel %vm8835_vm13, %v8819_v61, %v8851_v60  ;;  %v18230_v17 = vld [vmem:[%s24843_s3 + $0x60] sm:$0xff]  ;;  %v18231_v28 = vld [vmem:[%s24843_s3 + $0x68] sm:$0xff]  ;;  %v18232_v63 = vld [vmem:[%s24843_s3 + $0x70] sm:$0xff] }
 0xbf4   :  { %v8876_v37 = vsel %vm8844_vm3, %v8828_v41, %v8860_v34  ;;  %17295 = vmatpush3.bf16.msra.mxu0 %v23878_v46  ;;  %v23891_v55 = vpack.c.bf16 %v8866_v36, %v8865_v50  ;;  %v8868_v35 = vsel %vm8836_vm14, %v8820_v31, %v8852_v47  ;;  %v8869_v42 = vsel %vm8837_vm15, %v8821_v58, %v8853_v49  ;;  %v18233_v61 = vld [vmem:[%s24843_s3 + $0x78] sm:$0xff]  ;;  %v18234_v31 = vld [vmem:[%s24843_s3 + $0x80] sm:$0xff]  ;;  %v18235_v58 = vld [vmem:[%s24843_s3 + $0x88] sm:$0xff] }
 0xbf5   :  { %v23895_v6 = vpack.c.bf16 %v8876_v37, %v8875_v27  ;;  %17297 = vmatprep.subr.bf16.mxu0 %v23885_v16  ;;  %v23898_v51 = vpack.c.bf16 %v8868_v35, %v8867_v20  ;;  %v8870_v4 = vsel %vm8838_vm0, %v8822_v53, %v8854_v8  ;;  %v8871_v33 = vsel %vm8839_vm1, %v8823_v0, %v8855_v18  ;;  %v18236_v53 = vld [vmem:[%s24843_s3 + $0x90] sm:$0xff]  ;;  %v18237_v0 = vld [vmem:[%s24843_s3 + $0x98] sm:$0xff]  ;;  %v18242_v41 = vld [vmem:[%s24843_s3 + $0xc0] sm:$0xff] }
 0xbf6   :  { %v23902_v21 = vpack.c.bf16 %v8870_v4, %v8869_v42  ;;  %v8872_v23 = vsel %vm8840_vm2, %v8824_v54, %v8856_v25  ;;  %v8873_v26 = vsel %vm8841_vm4, %v8825_v57, %v8857_v52  ;;  %v8874_v15 = vsel %vm8842_vm5, %v8826_v40, %v8858_v12  ;;  %v18238_v54 = vld [vmem:[%s24843_s3 + $0xa0] sm:$0xff]  ;;  %v18239_v57 = vld [vmem:[%s24843_s3 + $0xa8] sm:$0xff]  ;;  %v18240_v40 = vld [vmem:[%s24843_s3 + $0xb0] sm:$0xff] }
 0xbf7   :  { %v23907_v29 = vpack.c.bf16 %v8872_v23, %v8871_v33  ;;  %v23909_v11 = vpack.c.bf16 %v8874_v15, %v8873_v26  ;;  %v18241_v9 = vld [vmem:[%s24843_s3 + $0xb8] sm:$0xff]  ;;  %v18243_v32 = vld [vmem:[%s24843_s3 + $0xc8] sm:$0xff]  ;;  %v18244_v59 = vld [vmem:[%s24843_s3 + $0xd0] sm:$0xff]  ;;  %vm24944_vm3 = vcmask 523264  }
 0xbf8   :  { %17299 = vmatpush3.bf16.msra.mxu0 %v23885_v16  ;;  %v18245_v10 = vld [vmem:[%s24843_s3 + $0xd8] sm:$0xff]  ;;  %v18246_v56 = vld [vmem:[%s24843_s3 + $0xe0] sm:$0xff]  ;;  %v18247_v1 = vld [vmem:[%s24843_s3 + $0xe8] sm:$0xff] }
 0xbf9   :  { %17301 = vmatprep.subr.bf16.mxu0 %v23891_v55  ;;  %v18248_v48 = vld [vmem:[%s24843_s3 + $0xf0] sm:$0xff]  ;;  %v18249_v60 = vld [vmem:[%s24843_s3 + $0xf8] sm:$0xff]  ;;  %v18250_v47 = vld [vmem:[%s24843_s3 + $0x100] sm:$0xff] }
 0xbfa   :  { %v18251_v49 = vld [vmem:[%s24843_s3 + $0x108] sm:$0xff]  ;;  %v18252_v38 = vld [vmem:[%s24843_s3 + $0x110] sm:$0xff]  ;;  %v18253_v8 = vld [vmem:[%s24843_s3 + $0x118] sm:$0xff] }
 0xbfb   :  { %v18254_v18 = vld [vmem:[%s24843_s3 + $0x120] sm:$0xff]  ;;  %v18255_v25 = vld [vmem:[%s24843_s3 + $0x128] sm:$0xff]  ;;  %v18256_v44 = vld [vmem:[%s24843_s3 + $0x130] sm:$0xff] }
 0xbfc   :  { %17303 = vmatpush3.bf16.msra.mxu0 %v23891_v55  ;;  %v18257_v52 = vld [vmem:[%s24843_s3 + $0x138] sm:$0xff]  ;;  %v18258_v12 = vld [vmem:[%s24843_s3 + $0x140] sm:$0xff]  ;;  %v18259_v43 = vld [vmem:[%s24843_s3 + $0x148] sm:$0xff] }
 0xbfd   :  { %17305 = vmatprep.subr.bf16.mxu0 %v23898_v51  ;;  %v18260_v34 = vld [vmem:[%s24843_s3 + $0x150] sm:$0xff]  ;;  %v18261_v3 = vld [vmem:[%s24843_s3 + $0x158] sm:$0xff]  ;;  %v18262_v5 = vld [vmem:[%s24843_s3 + $0x160] sm:$0xff] }
 0xbfe   :  { %v18263_v50 = vld [vmem:[%s24843_s3 + $0x168] sm:$0xff]  ;;  %v18264_v27 = vld [vmem:[%s24843_s3 + $0x170] sm:$0xff]  ;;  %v18265_v36 = vld [vmem:[%s24843_s3 + $0x178] sm:$0xff] }
 0xbff   :  { %v18266_v20 = vld [vmem:[%s24843_s3 + $0x180] sm:$0xff]  ;;  %v18267_v37 = vld [vmem:[%s24843_s3 + $0x188] sm:$0xff]  ;;  %v18268_v35 = vld [vmem:[%s24843_s3 + $0x190] sm:$0xff] }
 0xc00   :  { %17307 = vmatpush3.bf16.msra.mxu0 %v23898_v51  ;;  %v18269_v42 = vld [vmem:[%s24843_s3 + $0x198] sm:$0xff]  ;;  %v18270_v4 = vld [vmem:[%s24843_s3 + $0x1a0] sm:$0xff]  ;;  %v9176_v23 = vld [vmem:[#allocation2 + $0x48] sm:$0xff] }
 0xc01   :  { %17309 = vmatprep.subr.bf16.mxu0 %v23902_v21  ;;  %v9175_v33 = vld [vmem:[#allocation2 + $0x40] sm:$0xff]  ;;  %v18271_v15 = vld [vmem:[%s24843_s3 + $0x1a8] sm:$0xff]  ;;  %vm24945_vm7 = vmmov %vm24944_vm3 }
 0xc02   :  { %v17356_v26 = vpack.c.bf16 %v9176_v23, %v9175_v33  ;;  %v18312_v33 = vld [vmem:[%s24843_s3 + $0x2f0] sm:$0xff]  ;;  %v18313_v23 = vld [vmem:[%s24843_s3 + $0x2f8] sm:$0xff]  ;;  %vm24946_vm8 = vmmov %vm24944_vm3 }
 0xc03   :  { %vm24947_vm9 = vmmov %vm24944_vm3 }
 0xc04   :  { %17311 = vmatpush3.bf16.msra.mxu0 %v23902_v21  ;;  %17357 = vmatprep.subr.bf16.mxu1 %v17356_v26  ;;  %vm24948_vm10 = vmmov %vm24944_vm3 }
 0xc05   :  { %17313 = vmatprep.subr.bf16.mxu0 %v23907_v29  ;;  %17359 = vmatpush3.bf16.msra.mxu1 %v17356_v26  ;;  %v18314_v26 = vld [vmem:[%s24843_s3 + $0x300] sm:$0xff]  ;;  %vm24949_vm11 = vmmov %vm24944_vm3 }
 0xc06   :  { %vm24950_vm12 = vmmov %vm24944_vm3 }
 0xc07   :  { %vm24951_vm13 = vmmov %vm24944_vm3 }
 0xc08   :  { %17315 = vmatpush3.bf16.msra.mxu0 %v23907_v29  ;;  %vm24952_vm14 = vmmov %vm24944_vm3 }
 0xc09   :  { %17317 = vmatprep.subr.bf16.mxu0 %v23909_v11  ;;  %vm24953_vm15 = vmmov %vm24944_vm3 }
 0xc0a   :  { %vm24954_vm0 = vmmov %vm24944_vm3 }
 0xc0b   :  { %vm24955_vm1 = vmmov %vm24954_vm0 }
 0xc0c   :  { %17319 = vmatpush3.bf16.msra.mxu0 %v23909_v11  ;;  %vm24956_vm2 = vmmov %vm24954_vm0 }
 0xc0d   :  { %17321 = vmatprep.subr.bf16.mxu0 %v23895_v6  ;;  %vm24957_vm4 = vmmov %vm24954_vm0 }
 0xc0e   :  { %vm24958_vm5 = vmmov %vm24954_vm0 }
 0xc0f   :  { %vm24959_vm6 = vmmov %vm24954_vm0 }
 0xc10   :  { %17323 = vmatpush3.bf16.msra.mxu0 %v23895_v6 }
 0xc11   :  { %17325 = vmatprep.subr.bf16.mxu0 %v23878_v46 }
 0xc13   :  { %15301 = vmatmul.mubr.f32.vlgmr.msra.gmra.mrb[176].mxu0 %v18219_v7  ;;  %v18272_v7 = vld [vmem:[%s24843_s3 + $0x1b0] sm:$0xff] }
 0xc14   :  { %17327 = vmatpush3.bf16.msra.mxu0 %v23878_v46  ;;  %15303 = vmatprep.mubr.f32.mxu0 %v18220_v14  ;;  %v9177_v14 = vld [vmem:[#allocation2 + $0x50] sm:$0xff] }
 0xc15   :  { %17329 = vmatprep.subr.bf16.mxu0 %v23885_v16 }
 0xc17   :  { %15304 = vmatmul.mubr.f32.gmra.mrb[178].mxu0 %v18221_v62  ;;  %v9178_v62 = vld [vmem:[#allocation2 + $0x58] sm:$0xff] }
 0xc18   :  { %17331 = vmatpush3.bf16.msra.mxu0 %v23885_v16  ;;  %15306 = vmatprep.mubr.f32.mxu0 %v18222_v45  ;;  %v17360_v45 = vpack.c.bf16 %v9178_v62, %v9177_v14  ;;  %v18317_v14 = vld [vmem:[%s24843_s3 + $0x318] sm:$0xff]  ;;  %v18318_v62 = vld [vmem:[%s24843_s3 + $0x320] sm:$0xff] }
 0xc19   :  { %17333 = vmatprep.subr.bf16.mxu0 %v23891_v55 }
 0xc1a   :  { %17361 = vmatprep.subr.bf16.mxu1 %v17360_v45 }
 0xc1b   :  { %15307 = vmatmul.mubr.f32.gmra.mrb[180].mxu0 %v18223_v2  ;;  %v18273_v2 = vld [vmem:[%s24843_s3 + $0x1b8] sm:$0xff]  ;;  %17363 = vmatpush3.bf16.msra.mxu1 %v17360_v45  ;;  %v18319_v45 = vld [vmem:[%s24843_s3 + $0x328] sm:$0xff] }
 0xc1c   :  { %17335 = vmatpush3.bf16.msra.mxu0 %v23891_v55  ;;  %15309 = vmatprep.mubr.f32.mxu0 %v18224_v22  ;;  %v18274_v22 = vld [vmem:[%s24843_s3 + $0x1c0] sm:$0xff] }
 0xc1d   :  { %17337 = vmatprep.subr.bf16.mxu0 %v23898_v51 }
 0xc1f   :  { %15310 = vmatmul.mubr.f32.gmra.mrb[182].mxu0 %v18225_v24  ;;  %v9179_v24 = vld [vmem:[#allocation2 + $0x60] sm:$0xff] }
 0xc20   :  { %17339 = vmatpush3.bf16.msra.mxu0 %v23898_v51  ;;  %15312 = vmatprep.mubr.f32.mxu0 %v18226_v13  ;;  %v9180_v13 = vld [vmem:[#allocation2 + $0x68] sm:$0xff] }
 0xc21   :  { %17341 = vmatprep.subr.bf16.mxu0 %v23902_v21 }
 0xc23   :  { %15313 = vmatmul.mubr.f32.gmra.mrb[184].mxu0 %v18227_v30  ;;  %v17364_v30 = vpack.c.bf16 %v9180_v13, %v9179_v24  ;;  %v18322_v24 = vld [vmem:[%s24843_s3 + $0x340] sm:$0xff]  ;;  %v18323_v13 = vld [vmem:[%s24843_s3 + $0x348] sm:$0xff] }
 0xc24   :  { %17343 = vmatpush3.bf16.msra.mxu0 %v23902_v21  ;;  %15315 = vmatprep.mubr.f32.mxu0 %v18228_v39  ;;  %v18275_v39 = vld [vmem:[%s24843_s3 + $0x1c8] sm:$0xff] }
 0xc25   :  { %17345 = vmatprep.subr.bf16.mxu0 %v23907_v29  ;;  %17365 = vmatprep.subr.bf16.mxu1 %v17364_v30 }
 0xc26   :  { %17367 = vmatpush3.bf16.msra.mxu1 %v17364_v30  ;;  %v18324_v30 = vld [vmem:[%s24843_s3 + $0x350] sm:$0xff] }
 0xc27   :  { %15316 = vmatmul.mubr.f32.gmra.mrb[186].mxu0 %v18229_v19  ;;  %v18276_v19 = vld [vmem:[%s24843_s3 + $0x1d0] sm:$0xff] }
 0xc28   :  { %17347 = vmatpush3.bf16.msra.mxu0 %v23907_v29  ;;  %15318 = vmatprep.mubr.f32.mxu0 %v18230_v17  ;;  %v9181_v17 = vld [vmem:[#allocation2 + $0x70] sm:$0xff] }
 0xc29   :  { %17349 = vmatprep.subr.bf16.mxu0 %v23909_v11 }
 0xc2b   :  { %15319 = vmatmul.mubr.f32.gmra.mrb[188].mxu0 %v18231_v28  ;;  %v9182_v28 = vld [vmem:[#allocation2 + $0x78] sm:$0xff] }
 0xc2c   :  { %17351 = vmatpush3.bf16.msra.mxu0 %v23909_v11  ;;  %15321 = vmatprep.mubr.f32.mxu0 %v18232_v63  ;;  %v17368_v63 = vpack.c.bf16 %v9182_v28, %v9181_v17  ;;  %v18326_v28 = vld [vmem:[%s24843_s3 + $0x360] sm:$0xff] }
 0xc2d   :  { %17353 = vmatprep.subr.bf16.mxu0 %v23895_v6 }
 0xc2e   :  { %17369 = vmatprep.subr.bf16.mxu1 %v17368_v63 }
 0xc2f   :  { %15322 = vmatmul.mubr.f32.gmra.mrb[190].mxu0 %v18233_v61  ;;  %v18277_v61 = vld [vmem:[%s24843_s3 + $0x1d8] sm:$0xff]  ;;  %17371 = vmatpush3.bf16.msra.mxu1 %v17368_v63 }
 0xc30   :  { %17355 = vmatpush3.bf16.msra.mxu0 %v23895_v6  ;;  %15356 = vmatprep.mubr.f32.mxu0 %v18234_v31  ;;  %v18278_v31 = vld [vmem:[%s24843_s3 + $0x1e0] sm:$0xff] }
 0xc31   :  { %17389 = vmatprep.subr.bf16.mxu0 %v23878_v46 }
 0xc33   :  { %15357 = vmatmul.mubr.f32.vlgmr.msra.gmra.mrb[192].mxu0 %v18235_v58  ;;  %v18279_v58 = vld [vmem:[%s24843_s3 + $0x1e8] sm:$0xff] }
 0xc34   :  { %17391 = vmatpush3.bf16.msra.mxu0 %v23878_v46  ;;  %15359 = vmatprep.mubr.f32.mxu0 %v18236_v53  ;;  %v18280_v53 = vld [vmem:[%s24843_s3 + $0x1f0] sm:$0xff] }
 0xc35   :  { %17393 = vmatprep.subr.bf16.mxu0 %v23885_v16 }
 0xc37   :  { %15360 = vmatmul.mubr.f32.gmra.mrb[194].mxu0 %v18237_v0  ;;  %v18281_v0 = vld [vmem:[%s24843_s3 + $0x1f8] sm:$0xff] }
 0xc38   :  { %17395 = vmatpush3.bf16.msra.mxu0 %v23885_v16  ;;  %15362 = vmatprep.mubr.f32.mxu0 %v18238_v54  ;;  %v18282_v54 = vld [vmem:[%s24843_s3 + $0x200] sm:$0xff] }
 0xc39   :  { %17397 = vmatprep.subr.bf16.mxu0 %v23891_v55 }
 0xc3b   :  { %15363 = vmatmul.mubr.f32.gmra.mrb[196].mxu0 %v18239_v57  ;;  %v18283_v57 = vld [vmem:[%s24843_s3 + $0x208] sm:$0xff] }
 0xc3c   :  { %17399 = vmatpush3.bf16.msra.mxu0 %v23891_v55  ;;  %15365 = vmatprep.mubr.f32.mxu0 %v18240_v40  ;;  %v18284_v40 = vld [vmem:[%s24843_s3 + $0x210] sm:$0xff] }
 0xc3d   :  { %17401 = vmatprep.subr.bf16.mxu0 %v23898_v51 }
 0xc3f   :  { %15366 = vmatmul.mubr.f32.gmra.mrb[198].mxu0 %v18241_v9  ;;  %v18285_v9 = vld [vmem:[%s24843_s3 + $0x218] sm:$0xff] }
 0xc40   :  { %17403 = vmatpush3.bf16.msra.mxu0 %v23898_v51  ;;  %15368 = vmatprep.mubr.f32.mxu0 %v18242_v41  ;;  %v18286_v41 = vld [vmem:[%s24843_s3 + $0x220] sm:$0xff] }
 0xc41   :  { %17405 = vmatprep.subr.bf16.mxu0 %v23902_v21 }
 0xc43   :  { %15369 = vmatmul.mubr.f32.gmra.mrb[200].mxu0 %v18243_v32  ;;  %v9022_v32 = vld [vmem:[#allocation2] sm:$0xff] }
 0xc44   :  { %17407 = vmatpush3.bf16.msra.mxu0 %v23902_v21  ;;  %15371 = vmatprep.mubr.f32.mxu0 %v18244_v59  ;;  %v9023_v59 = vld [vmem:[#allocation2 + $0x8] sm:$0xff] }
 0xc45   :  { %17409 = vmatprep.subr.bf16.mxu0 %v23907_v29 }
 0xc47   :  { %15372 = vmatmul.mubr.f32.gmra.mrb[202].mxu0 %v18245_v10  ;;  %v24197_v10 = vpack.c.bf16 %v9023_v59, %v9022_v32  ;;  %v18332_v32 = vld [vmem:[%s24843_s3 + $0x390] sm:$0xff] }
 0xc48   :  { %17411 = vmatpush3.bf16.msra.mxu0 %v23907_v29  ;;  %15374 = vmatprep.mubr.f32.mxu0 %v18246_v56  ;;  %v18287_v56 = vld [vmem:[%s24843_s3 + $0x228] sm:$0xff] }
 0xc49   :  { %17413 = vmatprep.subr.bf16.mxu0 %v23909_v11  ;;  %17373 = vmatprep.subr.bf16.mxu1 %v24197_v10 }
 0xc4b   :  { %15375 = vmatmul.mubr.f32.gmra.mrb[204].mxu0 %v18247_v1  ;;  %v18288_v1 = vld [vmem:[%s24843_s3 + $0x230] sm:$0xff] }
 0xc4c   :  { %17415 = vmatpush3.bf16.msra.mxu0 %v23909_v11  ;;  %15377 = vmatprep.mubr.f32.mxu0 %v18248_v48  ;;  %v18289_v48 = vld [vmem:[%s24843_s3 + $0x238] sm:$0xff] }
 0xc4d   :  { %17417 = vmatprep.subr.bf16.mxu0 %v23895_v6 }
 0xc4f   :  { %15378 = vmatmul.mubr.f32.gmra.mrb[206].mxu0 %v18249_v60  ;;  %v18290_v60 = vld [vmem:[%s24843_s3 + $0x240] sm:$0xff] }
 0xc50   :  { %17419 = vmatpush3.bf16.msra.mxu0 %v23895_v6  ;;  %15492 = vmatprep.mubr.f32.mxu0 %v18250_v47  ;;  %v18291_v47 = vld [vmem:[%s24843_s3 + $0x248] sm:$0xff] }
 0xc51   :  { %17437 = vmatprep.subr.bf16.mxu0 %v23878_v46 }
 0xc53   :  { %15493 = vmatmul.mubr.f32.vlgmr.msra.gmra.mrb[208].mxu0 %v18251_v49  ;;  %v18292_v49 = vld [vmem:[%s24843_s3 + $0x250] sm:$0xff] }
 0xc54   :  { %17439 = vmatpush3.bf16.msra.mxu0 %v23878_v46  ;;  %15495 = vmatprep.mubr.f32.mxu0 %v18252_v38  ;;  %v18293_v38 = vld [vmem:[%s24843_s3 + $0x258] sm:$0xff] }
 0xc55   :  { %17441 = vmatprep.subr.bf16.mxu0 %v23885_v16 }
 0xc57   :  { %15496 = vmatmul.mubr.f32.gmra.mrb[210].mxu0 %v18253_v8  ;;  %v18294_v8 = vld [vmem:[%s24843_s3 + $0x260] sm:$0xff] }
 0xc58   :  { %17443 = vmatpush3.bf16.msra.mxu0 %v23885_v16  ;;  %15498 = vmatprep.mubr.f32.mxu0 %v18254_v18  ;;  %v18295_v18 = vld [vmem:[%s24843_s3 + $0x268] sm:$0xff] }
 0xc59   :  { %17445 = vmatprep.subr.bf16.mxu0 %v23891_v55 }
 0xc5b   :  { %15499 = vmatmul.mubr.f32.gmra.mrb[212].mxu0 %v18255_v25  ;;  %v18296_v25 = vld [vmem:[%s24843_s3 + $0x270] sm:$0xff] }
 0xc5c   :  { %17447 = vmatpush3.bf16.msra.mxu0 %v23891_v55  ;;  %15501 = vmatprep.mubr.f32.mxu0 %v18256_v44  ;;  %v18297_v44 = vld [vmem:[%s24843_s3 + $0x278] sm:$0xff] }
 0xc5d   :  { %17449 = vmatprep.subr.bf16.mxu0 %v23898_v51 }
 0xc5f   :  { %15502 = vmatmul.mubr.f32.gmra.mrb[214].mxu0 %v18257_v52  ;;  %v18298_v52 = vld [vmem:[%s24843_s3 + $0x280] sm:$0xff] }
 0xc60   :  { %17451 = vmatpush3.bf16.msra.mxu0 %v23898_v51  ;;  %15504 = vmatprep.mubr.f32.mxu0 %v18258_v12  ;;  %v18299_v12 = vld [vmem:[%s24843_s3 + $0x288] sm:$0xff] }
 0xc61   :  { %17453 = vmatprep.subr.bf16.mxu0 %v23902_v21 }
 0xc63   :  { %15505 = vmatmul.mubr.f32.gmra.mrb[216].mxu0 %v18259_v43  ;;  %v18300_v43 = vld [vmem:[%s24843_s3 + $0x290] sm:$0xff] }
 0xc64   :  { %17455 = vmatpush3.bf16.msra.mxu0 %v23902_v21  ;;  %15507 = vmatprep.mubr.f32.mxu0 %v18260_v34  ;;  %v18301_v34 = vld [vmem:[%s24843_s3 + $0x298] sm:$0xff] }
 0xc65   :  { %17457 = vmatprep.subr.bf16.mxu0 %v23907_v29 }
 0xc67   :  { %15508 = vmatmul.mubr.f32.gmra.mrb[218].mxu0 %v18261_v3  ;;  %v18302_v3 = vld [vmem:[%s24843_s3 + $0x2a0] sm:$0xff] }
 0xc68   :  { %17459 = vmatpush3.bf16.msra.mxu0 %v23907_v29  ;;  %15510 = vmatprep.mubr.f32.mxu0 %v18262_v5  ;;  %v18303_v5 = vld [vmem:[%s24843_s3 + $0x2a8] sm:$0xff] }
 0xc69   :  { %17461 = vmatprep.subr.bf16.mxu0 %v23909_v11 }
 0xc6b   :  { %15511 = vmatmul.mubr.f32.gmra.mrb[220].mxu0 %v18263_v50  ;;  %v18304_v50 = vld [vmem:[%s24843_s3 + $0x2b0] sm:$0xff] }
 0xc6c   :  { %17463 = vmatpush3.bf16.msra.mxu0 %v23909_v11  ;;  %15513 = vmatprep.mubr.f32.mxu0 %v18264_v27  ;;  %v18305_v27 = vld [vmem:[%s24843_s3 + $0x2b8] sm:$0xff] }
 0xc6d   :  { %17465 = vmatprep.subr.bf16.mxu0 %v23895_v6 }
 0xc6f   :  { %15514 = vmatmul.mubr.f32.gmra.mrb[222].mxu0 %v18265_v36  ;;  %v18306_v36 = vld [vmem:[%s24843_s3 + $0x2c0] sm:$0xff] }
 0xc70   :  { %17467 = vmatpush3.bf16.msra.mxu0 %v23895_v6  ;;  %15588 = vmatprep.mubr.f32.mxu0 %v18266_v20  ;;  %v18307_v20 = vld [vmem:[%s24843_s3 + $0x2c8] sm:$0xff] }
 0xc71   :  { %17485 = vmatprep.subr.bf16.mxu0 %v23878_v46 }
 0xc73   :  { %15589 = vmatmul.mubr.f32.vlgmr.msra.gmra.mrb[224].mxu0 %v18267_v37  ;;  %v18308_v37 = vld [vmem:[%s24843_s3 + $0x2d0] sm:$0xff] }
 0xc74   :  { %17487 = vmatpush3.bf16.msra.mxu0 %v23878_v46  ;;  %15591 = vmatprep.mubr.f32.mxu0 %v18268_v35  ;;  %v18309_v35 = vld [vmem:[%s24843_s3 + $0x2d8] sm:$0xff] }
 0xc75   :  { %17489 = vmatprep.subr.bf16.mxu0 %v23885_v16 }
 0xc77   :  { %15592 = vmatmul.mubr.f32.gmra.mrb[226].mxu0 %v18269_v42  ;;  %v18310_v42 = vld [vmem:[%s24843_s3 + $0x2e0] sm:$0xff] }
 0xc78   :  { %17491 = vmatpush3.bf16.msra.mxu0 %v23885_v16  ;;  %15594 = vmatprep.mubr.f32.mxu0 %v18270_v4  ;;  %v18311_v4 = vld [vmem:[%s24843_s3 + $0x2e8] sm:$0xff] }
 0xc79   :  { %17493 = vmatprep.subr.bf16.mxu0 %v23891_v55 }
 0xc7b   :  { %15595 = vmatmul.mubr.f32.gmra.mrb[228].mxu0 %v18271_v15  ;;  %v18315_v15 = vld [vmem:[%s24843_s3 + $0x308] sm:$0xff] }
 0xc7c   :  { %17495 = vmatpush3.bf16.msra.mxu0 %v23891_v55  ;;  %15597 = vmatprep.mubr.f32.mxu0 %v18272_v7  ;;  %v18316_v7 = vld [vmem:[%s24843_s3 + $0x310] sm:$0xff] }
 0xc7d   :  { %17497 = vmatprep.subr.bf16.mxu0 %v23898_v51 }
 0xc7f   :  { %15598 = vmatmul.mubr.f32.gmra.mrb[230].mxu0 %v18273_v2  ;;  %v18320_v2 = vld [vmem:[%s24843_s3 + $0x330] sm:$0xff] }
 0xc80   :  { %17499 = vmatpush3.bf16.msra.mxu0 %v23898_v51  ;;  %15600 = vmatprep.mubr.f32.mxu0 %v18274_v22  ;;  %v18321_v22 = vld [vmem:[%s24843_s3 + $0x338] sm:$0xff] }
 0xc81   :  { %17501 = vmatprep.subr.bf16.mxu0 %v23902_v21 }
 0xc83   :  { %15601 = vmatmul.mubr.f32.gmra.mrb[232].mxu0 %v18275_v39 }
 0xc84   :  { %17503 = vmatpush3.bf16.msra.mxu0 %v23902_v21  ;;  %15603 = vmatprep.mubr.f32.mxu0 %v18276_v19  ;;  %v18325_v19 = vld [vmem:[%s24843_s3 + $0x358] sm:$0xff] }
 0xc85   :  { %17505 = vmatprep.subr.bf16.mxu0 %v23907_v29 }
 0xc87   :  { %15604 = vmatmul.mubr.f32.gmra.mrb[234].mxu0 %v18277_v61  ;;  %v18327_v61 = vld [vmem:[%s24843_s3 + $0x368] sm:$0xff] }
 0xc88   :  { %17507 = vmatpush3.bf16.msra.mxu0 %v23907_v29  ;;  %15606 = vmatprep.mubr.f32.mxu0 %v18278_v31 }
 0xc89   :  { %17509 = vmatprep.subr.bf16.mxu0 %v23909_v11 }
 0xc8b   :  { %15607 = vmatmul.mubr.f32.gmra.mrb[236].mxu0 %v18279_v58  ;;  %v18328_v58 = vld [vmem:[%s24843_s3 + $0x370] sm:$0xff] }
 0xc8c   :  { %17511 = vmatpush3.bf16.msra.mxu0 %v23909_v11  ;;  %15609 = vmatprep.mubr.f32.mxu0 %v18280_v53 }
 0xc8d   :  { %17513 = vmatprep.subr.bf16.mxu0 %v23895_v6 }
 0xc8f   :  { %15610 = vmatmul.mubr.f32.gmra.mrb[238].mxu0 %v18281_v0  ;;  %v18329_v0 = vld [vmem:[%s24843_s3 + $0x378] sm:$0xff] }
 0xc90   :  { %17515 = vmatpush3.bf16.msra.mxu0 %v23895_v6  ;;  %15684 = vmatprep.mubr.f32.mxu0 %v18282_v54 }
 0xc91   :  { %17533 = vmatprep.subr.bf16.mxu0 %v23878_v46 }
 0xc93   :  { %15685 = vmatmul.mubr.f32.vlgmr.msra.gmra.mrb[240].mxu0 %v18283_v57  ;;  %v18330_v57 = vld [vmem:[%s24843_s3 + $0x380] sm:$0xff] }
 0xc94   :  { %17535 = vmatpush3.bf16.msra.mxu0 %v23878_v46  ;;  %15687 = vmatprep.mubr.f32.mxu0 %v18284_v40 }
 0xc95   :  { %17537 = vmatprep.subr.bf16.mxu0 %v23885_v16 }
 0xc97   :  { %15688 = vmatmul.mubr.f32.gmra.mrb[242].mxu0 %v18285_v9  ;;  %v18331_v9 = vld [vmem:[%s24843_s3 + $0x388] sm:$0xff] }
 0xc98   :  { %17539 = vmatpush3.bf16.msra.mxu0 %v23885_v16  ;;  %15690 = vmatprep.mubr.f32.mxu0 %v18286_v41 }
 0xc99   :  { %17541 = vmatprep.subr.bf16.mxu0 %v23891_v55 }
 0xc9b   :  { %15691 = vmatmul.mubr.f32.gmra.mrb[244].mxu0 %v18287_v56  ;;  %v18333_v56 = vld [vmem:[%s24843_s3 + $0x398] sm:$0xff] }
 0xc9c   :  { %17543 = vmatpush3.bf16.msra.mxu0 %v23891_v55  ;;  %15693 = vmatprep.mubr.f32.mxu0 %v18288_v1 }
 0xc9d   :  { %17545 = vmatprep.subr.bf16.mxu0 %v23898_v51 }
 0xc9f   :  { %15694 = vmatmul.mubr.f32.gmra.mrb[246].mxu0 %v18289_v48 }
 0xca0   :  { %17547 = vmatpush3.bf16.msra.mxu0 %v23898_v51  ;;  %15696 = vmatprep.mubr.f32.mxu0 %v18290_v60  ;;  %v18335_v60 = vld [vmem:[%s24843_s3 + $0x3a8] sm:$0xff] }
 0xca1   :  { %17549 = vmatprep.subr.bf16.mxu0 %v23902_v21 }
 0xca3   :  { %15697 = vmatmul.mubr.f32.gmra.mrb[248].mxu0 %v18291_v47 }
 0xca4   :  { %17551 = vmatpush3.bf16.msra.mxu0 %v23902_v21  ;;  %15699 = vmatprep.mubr.f32.mxu0 %v18292_v49 }
 0xca5   :  { %17553 = vmatprep.subr.bf16.mxu0 %v23907_v29 }
 0xca7   :  { %15700 = vmatmul.mubr.f32.gmra.mrb[250].mxu0 %v18293_v38  ;;  %v18337_v38 = vld [vmem:[%s24843_s3 + $0x3b8] sm:$0xff] }
 0xca8   :  { %17555 = vmatpush3.bf16.msra.mxu0 %v23907_v29  ;;  %15702 = vmatprep.mubr.f32.mxu0 %v18294_v8 }
 0xca9   :  { %17557 = vmatprep.subr.bf16.mxu0 %v23909_v11 }
 0xcab   :  { %15703 = vmatmul.mubr.f32.gmra.mrb[252].mxu0 %v18295_v18 }
 0xcac   :  { %17559 = vmatpush3.bf16.msra.mxu0 %v23909_v11  ;;  %15705 = vmatprep.mubr.f32.mxu0 %v18296_v25  ;;  %v18339_v25 = vld [vmem:[%s24843_s3 + $0x3c8] sm:$0xff] }
 0xcad   :  { %17561 = vmatprep.subr.bf16.mxu0 %v23895_v6 }
 0xcaf   :  { %15706 = vmatmul.mubr.f32.gmra.mrb[254].mxu0 %v18297_v44 }
 0xcb0   :  { %17563 = vmatpush3.bf16.msra.mxu0 %v23895_v6  ;;  %15780 = vmatprep.mubr.f32.mxu0 %v18298_v52  ;;  %v9024_v52 = vld [vmem:[#allocation2 + $0x10] sm:$0xff] }
 0xcb1   :  { %17581 = vmatprep.subr.bf16.mxu0 %v23878_v46 }
 0xcb3   :  { %15781 = vmatmul.mubr.f32.vlgmr.msra.gmra.mrb[0].mxu0 %v18299_v12  ;;  %v9025_v12 = vld [vmem:[#allocation2 + $0x18] sm:$0xff] }
 0xcb4   :  { %17583 = vmatpush3.bf16.msra.mxu0 %v23878_v46  ;;  %15783 = vmatprep.mubr.f32.mxu0 %v18300_v43 }
 0xcb5   :  { %17585 = vmatprep.subr.bf16.mxu0 %v23885_v16 }
 0xcb7   :  { %15784 = vmatmul.mubr.f32.gmra.mrb[2].mxu0 %v18301_v34 }
 0xcb8   :  { %17587 = vmatpush3.bf16.msra.mxu0 %v23885_v16  ;;  %15786 = vmatprep.mubr.f32.mxu0 %v18302_v3  ;;  %v18341_v3 = vld [vmem:[%s24843_s3 + $0x3d8] sm:$0xff] }
 0xcb9   :  { %17589 = vmatprep.subr.bf16.mxu0 %v23891_v55 }
 0xcbb   :  { %15787 = vmatmul.mubr.f32.gmra.mrb[4].mxu0 %v18303_v5  ;;  %v17376_v5 = vpack.c.bf16 %v9025_v12, %v9024_v52 }
 0xcbc   :  { %17591 = vmatpush3.bf16.msra.mxu0 %v23891_v55  ;;  %15789 = vmatprep.mubr.f32.mxu0 %v18304_v50  ;;  %v9027_v50 = vld [vmem:[#allocation2 + $0x28] sm:$0xff] }
 0xcbd   :  { %17593 = vmatprep.subr.bf16.mxu0 %v23898_v51 }
 0xcbf   :  { %15790 = vmatmul.mubr.f32.gmra.mrb[6].mxu0 %v18305_v27 }
 0xcc0   :  { %17595 = vmatpush3.bf16.msra.mxu0 %v23898_v51  ;;  %15792 = vmatprep.mubr.f32.mxu0 %v18306_v36  ;;  %v18342_v36 = vld [vmem:[%s24843_s3 + $0x3e0] sm:$0xff] }
 0xcc1   :  { %17597 = vmatprep.subr.bf16.mxu0 %v23902_v21 }
 0xcc3   :  { %15793 = vmatmul.mubr.f32.gmra.mrb[8].mxu0 %v18307_v20 }
 0xcc4   :  { %17599 = vmatpush3.bf16.msra.mxu0 %v23902_v21  ;;  %15795 = vmatprep.mubr.f32.mxu0 %v18308_v37  ;;  %v18343_v37 = vld [vmem:[%s24843_s3 + $0x3e8] sm:$0xff] }
 0xcc5   :  { %17601 = vmatprep.subr.bf16.mxu0 %v23907_v29 }
 0xcc7   :  { %15796 = vmatmul.mubr.f32.gmra.mrb[10].mxu0 %v18309_v35  ;;  %v9028_v35 = vld [vmem:[#allocation2 + $0x30] sm:$0xff] }
 0xcc8   :  { %17603 = vmatpush3.bf16.msra.mxu0 %v23907_v29  ;;  %15798 = vmatprep.mubr.f32.mxu0 %v18310_v42  ;;  %v9029_v42 = vld [vmem:[#allocation2 + $0x38] sm:$0xff] }
 0xcc9   :  { %17605 = vmatprep.subr.bf16.mxu0 %v23909_v11 }
 0xccb   :  { %15799 = vmatmul.mubr.f32.gmra.mrb[12].mxu0 %v18311_v4 }
 0xccc   :  { %17607 = vmatpush3.bf16.msra.mxu0 %v23909_v11  ;;  %15801 = vmatprep.mubr.f32.mxu0 %v18312_v33 }
 0xccd   :  { %17609 = vmatprep.subr.bf16.mxu0 %v23895_v6 }
 0xccf   :  { %15802 = vmatmul.mubr.f32.gmra.mrb[14].mxu0 %v18313_v23  ;;  %v18345_v23 = vld [vmem:[%s24843_s3 + $0x3f8] sm:$0xff] }
 0xcd0   :  { %17611 = vmatpush3.bf16.msra.mxu0 %v23895_v6  ;;  %15876 = vmatprep.mubr.f32.mxu0 %v18314_v26  ;;  %v9714_v26 = vld [vmem:[#allocation2 + $0x80] sm:$0xff] }
 0xcd1   :  { %17629 = vmatprep.subr.bf16.mxu0 %v23878_v46 }
 0xcd3   :  { %15877 = vmatmul.mubr.f32.vlgmr.msra.gmra.mrb[16].mxu0 %v18315_v15  ;;  %v9715_v15 = vld [vmem:[#allocation2 + $0x88] sm:$0xff] }
 0xcd4   :  { %17631 = vmatpush3.bf16.msra.mxu0 %v23878_v46  ;;  %15879 = vmatprep.mubr.f32.mxu0 %v18316_v7  ;;  %v18346_v7 = vld [vmem:[%s24843_s3 + $0x400] sm:$0xff] }
 0xcd5   :  { %17633 = vmatprep.subr.bf16.mxu0 %v23885_v16 }
 0xcd7   :  { %15880 = vmatmul.mubr.f32.gmra.mrb[18].mxu0 %v18317_v14 }
 0xcd8   :  { %17635 = vmatpush3.bf16.msra.mxu0 %v23885_v16  ;;  %15882 = vmatprep.mubr.f32.mxu0 %v18318_v62 }
 0xcd9   :  { %17637 = vmatprep.subr.bf16.mxu0 %v23891_v55 }
 0xcdb   :  { %15883 = vmatmul.mubr.f32.gmra.mrb[20].mxu0 %v18319_v45  ;;  %v18347_v45 = vld [vmem:[%s24843_s3 + $0x408] sm:$0xff] }
 0xcdc   :  { %17639 = vmatpush3.bf16.msra.mxu0 %v23891_v55  ;;  %15885 = vmatprep.mubr.f32.mxu0 %v18320_v2  ;;  %v17420_v2 = vpack.c.bf16 %v9715_v15, %v9714_v26  ;;  %v10080_v15 = vld [vmem:[#allocation2 + $0xe0] sm:$0xff] }
 0xcdd   :  { %17641 = vmatprep.subr.bf16.mxu0 %v23898_v51 }
 0xcdf   :  { %15886 = vmatmul.mubr.f32.gmra.mrb[22].mxu0 %v18321_v22 }
 0xce0   :  { %17643 = vmatpush3.bf16.msra.mxu0 %v23898_v51  ;;  %15888 = vmatprep.mubr.f32.mxu0 %v18322_v24 }
 0xce1   :  { %17645 = vmatprep.subr.bf16.mxu0 %v23902_v21 }
 0xce3   :  { %15889 = vmatmul.mubr.f32.gmra.mrb[24].mxu0 %v18323_v13  ;;  %v18349_v13 = vld [vmem:[%s24843_s3 + $0x418] sm:$0xff] }
 0xce4   :  { %17647 = vmatpush3.bf16.msra.mxu0 %v23902_v21  ;;  %15891 = vmatprep.mubr.f32.mxu0 %v18324_v30  ;;  %v18350_v30 = vld [vmem:[%s24843_s3 + $0x420] sm:$0xff] }
 0xce5   :  { %17649 = vmatprep.subr.bf16.mxu0 %v23907_v29 }
 0xce6   :  { %v24352_v39 = vpop.f32.mrb[176].mxu0 }
 0xce7   :  { %15892 = vmatmul.mubr.f32.gmra.mrb[26].mxu0 %v18325_v19  ;;  %v24357_v17 = vpop.f32.mrb[177].mxu0 }
 0xce8   :  { %17651 = vmatpush3.bf16.msra.mxu0 %v23907_v29  ;;  %15894 = vmatprep.mubr.f32.mxu0 %v18326_v28 }
 0xce9   :  { %17653 = vmatprep.subr.bf16.mxu0 %v23909_v11 }
 0xcea   :  { %v24364_v63 = vpop.f32.mrb[178].mxu0 }
 0xceb   :  { %15895 = vmatmul.mubr.f32.gmra.mrb[28].mxu0 %v18327_v61  ;;  %v24369_v31 = vpop.f32.mrb[179].mxu0  ;;  %v18351_v61 = vld [vmem:[%s24843_s3 + $0x428] sm:$0xff] }
 0xcec   :  { %17655 = vmatpush3.bf16.msra.mxu0 %v23909_v11  ;;  %15897 = vmatprep.mubr.f32.mxu0 %v18328_v58  ;;  %v18352_v58 = vld [vmem:[%s24843_s3 + $0x430] sm:$0xff] }
 0xced   :  { %17657 = vmatprep.subr.bf16.mxu0 %v23895_v6 }
 0xcee   :  { %v24376_v53 = vpop.f32.mrb[180].mxu0 }
 0xcef   :  { %15898 = vmatmul.mubr.f32.gmra.mrb[30].mxu0 %v18329_v0  ;;  %v24381_v54 = vpop.f32.mrb[181].mxu0 }
 0xcf0   :  { %17659 = vmatpush3.bf16.msra.mxu0 %v23895_v6  ;;  %15972 = vmatprep.mubr.f32.mxu0 %v18330_v57 }
 0xcf1   :  { %17677 = vmatprep.subr.bf16.mxu0 %v23878_v46 }
 0xcf2   :  { %v24388_v40 = vpop.f32.mrb[182].mxu0 }
 0xcf3   :  { %15973 = vmatmul.mubr.f32.vlgmr.msra.gmra.mrb[32].mxu0 %v18331_v9  ;;  %v24393_v41 = vpop.f32.mrb[183].mxu0  ;;  %v18353_v9 = vld [vmem:[%s24843_s3 + $0x438] sm:$0xff] }
 0xcf4   :  { %17679 = vmatpush3.bf16.msra.mxu0 %v23878_v46  ;;  %15975 = vmatprep.mubr.f32.mxu0 %v18332_v32  ;;  %v18334_v46 = vld [vmem:[%s24843_s3 + $0x3a0] sm:$0xff] }
 0xcf5   :  { %17681 = vmatprep.subr.bf16.mxu0 %v23885_v16  ;;  %v18354_v32 = vld [vmem:[%s24843_s3 + $0x440] sm:$0xff] }
 0xcf6   :  { %v24400_v59 = vpop.f32.mrb[184].mxu0 }
 0xcf7   :  { %15976 = vmatmul.mubr.f32.gmra.mrb[34].mxu0 %v18333_v56  ;;  %v24405_v1 = vpop.f32.mrb[185].mxu0 }
 0xcf8   :  { %17683 = vmatpush3.bf16.msra.mxu0 %v23885_v16  ;;  %15978 = vmatprep.mubr.f32.mxu0 %v18334_v46  ;;  %v18336_v16 = vld [vmem:[%s24843_s3 + $0x3b0] sm:$0xff] }
 0xcf9   :  { %17685 = vmatprep.subr.bf16.mxu0 %v23891_v55 }
 0xcfa   :  { %v24412_v48 = vpop.f32.mrb[186].mxu0 }
 0xcfb   :  { %15979 = vmatmul.mubr.f32.gmra.mrb[36].mxu0 %v18335_v60  ;;  %v24417_v47 = vpop.f32.mrb[187].mxu0  ;;  %v18355_v60 = vld [vmem:[%s24843_s3 + $0x448] sm:$0xff] }
 0xcfc   :  { %17687 = vmatpush3.bf16.msra.mxu0 %v23891_v55  ;;  %15981 = vmatprep.mubr.f32.mxu0 %v18336_v16  ;;  %v18338_v55 = vld [vmem:[%s24843_s3 + $0x3c0] sm:$0xff]  ;;  %v18356_v16 = vld [vmem:[%s24843_s3 + $0x450] sm:$0xff] }
 0xcfd   :  { %17689 = vmatprep.subr.bf16.mxu0 %v23898_v51 }
 0xcfe   :  { %v24424_v49 = vpop.f32.mrb[188].mxu0 }
 0xcff   :  { %15982 = vmatmul.mubr.f32.gmra.mrb[38].mxu0 %v18337_v38  ;;  %v24429_v8 = vpop.f32.mrb[189].mxu0  ;;  %v9716_v38 = vld [vmem:[#allocation2 + $0x90] sm:$0xff] }
 0xd00   :  { %17691 = vmatpush3.bf16.msra.mxu0 %v23898_v51  ;;  %15984 = vmatprep.mubr.f32.mxu0 %v18338_v55  ;;  %v18340_v51 = vld [vmem:[%s24843_s3 + $0x3d0] sm:$0xff]  ;;  %v9717_v55 = vld [vmem:[#allocation2 + $0x98] sm:$0xff] }
 0xd01   :  { %17693 = vmatprep.subr.bf16.mxu0 %v23902_v21  ;;  %v17424_v52 = vpack.c.bf16 %v9717_v55, %v9716_v38  ;;  %v11890_v55 = vld [vmem:[#allocation2 + $0x220] sm:$0xff] }
 0xd02   :  { %v24436_v18 = vpop.f32.mrb[190].mxu0 }
 0xd03   :  { %15985 = vmatmul.mubr.f32.gmra.mrb[40].mxu0 %v18339_v25  ;;  %v24441_v44 = vpop.f32.mrb[191].mxu0 }
 0xd04   :  { %17695 = vmatpush3.bf16.msra.mxu0 %v23902_v21  ;;  %15987 = vmatprep.mubr.f32.mxu0 %v18340_v51  ;;  %v9026_v21 = vld [vmem:[#allocation2 + $0x20] sm:$0xff]  ;;  %v18357_v51 = vld [vmem:[%s24843_s3 + $0x458] sm:$0xff] }
 0xd05   :  { %17697 = vmatprep.subr.bf16.mxu0 %v23907_v29 }
 0xd06   :  { %v15358_v43 = vpop.f32.mrb[192].mxu0 }
 0xd07   :  { %v9096_v34 = vpop.f32.mrb[193].mxu0  ;;  %15988 = vmatmul.mubr.f32.gmra.mrb[42].mxu0 %v18341_v3  ;;  %v9719_v3 = vld [vmem:[#allocation2 + $0xa8] sm:$0xff] }
 0xd08   :  { %15396 = vmatprep.mubr.msk.f32.mxu1 %vm24944_vm3, %v9096_v34  ;;  %17699 = vmatpush3.bf16.msra.mxu0 %v23907_v29  ;;  %v17380_v29 = vpack.c.bf16 %v9027_v50, %v9026_v21  ;;  %vm24960_vm3 = vmmov %vm24954_vm0  ;;  %v9718_v34 = vld [vmem:[#allocation2 + $0xa0] sm:$0xff] }
 0xd09   :  { %15397 = vmatmul.mubr.msk.f32.vlgmr.msra.gmra.mrb[64].mxu1 %vm24945_vm7, %v15358_v43  ;;  %17701 = vmatprep.subr.bf16.mxu0 %v23909_v11  ;;  %v18358_v43 = vld [vmem:[%s24843_s3 + $0x460] sm:$0xff]  ;;  %vm24961_vm7 = vmmov %vm24954_vm0  ;;  %v17428_v21 = vpack.c.bf16 %v9719_v3, %v9718_v34  ;;  %v10441_v34 = vld [vmem:[#allocation2 + $0x118] sm:$0xff] }
 0xd0a   :  { %v15361_v27 = vpop.f32.mrb[194].mxu0  ;;  %15990 = vmatprep.mubr.f32.mxu0 %v18342_v36  ;;  %17375 = vmatpush3.bf16.msra.mxu1 %v24197_v10  ;;  %v18344_v10 = vld [vmem:[%s24843_s3 + $0x3f0] sm:$0xff]  ;;  %v9721_v36 = vld [vmem:[#allocation2 + $0xb8] sm:$0xff] }
 0xd0b   :  { %v9106_v20 = vpop.f32.mrb[195].mxu0  ;;  %15991 = vmatmul.mubr.f32.gmra.mrb[44].mxu0 %v18343_v37  ;;  %17377 = vmatprep.subr.bf16.mxu1 %v17376_v5  ;;  %v11892_v3 = vld [vmem:[#allocation2 + $0x230] sm:$0xff] }
 0xd0c   :  { %15399 = vmatprep.mubr.msk.f32.mxu1 %vm24946_vm8, %v9106_v20  ;;  %17703 = vmatpush3.bf16.msra.mxu0 %v23909_v11  ;;  %v17384_v11 = vpack.c.bf16 %v9029_v42, %v9028_v35  ;;  %vm24962_vm8 = vmmov %vm24954_vm0  ;;  %v18361_v20 = vld [vmem:[%s24843_s3 + $0x478] sm:$0xff]  ;;  %v10076_v35 = vld [vmem:[#allocation2 + $0xc0] sm:$0xff] }
 0xd0d   :  { %15400 = vmatmul.mubr.msk.f32.gmra.mrb[66].mxu1 %vm24947_vm9, %v15361_v27  ;;  %17705 = vmatprep.subr.bf16.mxu0 %v23895_v6  ;;  %v18360_v27 = vld [vmem:[%s24843_s3 + $0x470] sm:$0xff]  ;;  %vm24963_vm9 = vmmov %vm24954_vm0  ;;  %v10077_v42 = vld [vmem:[#allocation2 + $0xc8] sm:$0xff] }
 0xd0e   :  { %v15364_v4 = vpop.f32.mrb[196].mxu0  ;;  %15993 = vmatprep.mubr.f32.mxu0 %v18344_v10  ;;  %17379 = vmatpush3.bf16.msra.mxu1 %v17376_v5  ;;  %v18359_v5 = vld [vmem:[%s24843_s3 + $0x468] sm:$0xff] }
 0xd0f   :  { %v9116_v33 = vpop.f32.mrb[197].mxu0  ;;  %15994 = vmatmul.mubr.f32.gmra.mrb[46].mxu0 %v18345_v23  ;;  %17381 = vmatprep.subr.bf16.mxu1 %v17380_v29 }
 0xd10   :  { %15402 = vmatprep.mubr.msk.f32.mxu1 %vm24948_vm10, %v9116_v33  ;;  %17707 = vmatpush3.bf16.msra.mxu0 %v23895_v6  ;;  %v18348_v6 = vld [vmem:[%s24843_s3 + $0x410] sm:$0xff]  ;;  %vm24964_vm10 = vmmov %vm24954_vm0 }
 0xd11   :  { %15403 = vmatmul.mubr.msk.f32.gmra.mrb[68].mxu1 %vm24949_vm11, %v15364_v4  ;;  %16068 = vmatprep.mubr.f32.mxu0 %v18346_v7  ;;  %vm24965_vm11 = vmmov %vm24954_vm0  ;;  %v17468_v4 = vpack.c.bf16 %v10077_v42, %v10076_v35  ;;  %v10445_v35 = vld [vmem:[#allocation2 + $0x138] sm:$0xff] }
 0xd12   :  { %v15367_v14 = vpop.f32.mrb[198].mxu0  ;;  %17383 = vmatpush3.bf16.msra.mxu1 %v17380_v29 }
 0xd13   :  { %v9126_v62 = vpop.f32.mrb[199].mxu0  ;;  %16069 = vmatmul.mubr.f32.vlgmr.msra.gmra.mrb[48].mxu0 %v18347_v45  ;;  %17385 = vmatprep.subr.bf16.mxu1 %v17384_v11 }
 0xd14   :  { %15405 = vmatprep.mubr.msk.f32.mxu1 %vm24950_vm12, %v9126_v62  ;;  %16071 = vmatprep.mubr.f32.mxu0 %v18348_v6  ;;  %vm24966_vm12 = vmmov %vm24954_vm0  ;;  %v10083_v62 = vld [vmem:[#allocation2 + $0xf8] sm:$0xff] }
 0xd15   :  { %15406 = vmatmul.mubr.msk.f32.gmra.mrb[70].mxu1 %vm24951_vm13, %v15367_v14  ;;  %vm24967_vm13 = vmmov %vm24954_vm0  ;;  %v10082_v14 = vld [vmem:[#allocation2 + $0xf0] sm:$0xff] }
 0xd16   :  { %v15370_v22 = vpop.f32.mrb[200].mxu0  ;;  %17387 = vmatpush3.bf16.msra.mxu1 %v17384_v11  ;;  %v10079_v11 = vld [vmem:[#allocation2 + $0xd8] sm:$0xff] }
 0xd17   :  { %v9136_v24 = vpop.f32.mrb[201].mxu0  ;;  %16072 = vmatmul.mubr.f32.gmra.mrb[50].mxu0 %v18349_v13  ;;  %17421 = vmatprep.subr.bf16.mxu1 %v17420_v2 }
 0xd18   :  { %15408 = vmatprep.mubr.msk.f32.mxu1 %vm24952_vm14, %v9136_v24  ;;  %16074 = vmatprep.mubr.f32.mxu0 %v18350_v30  ;;  %vm24968_vm14 = vmmov %vm24954_vm0  ;;  %v10439_v24 = vld [vmem:[#allocation2 + $0x108] sm:$0xff] }
 0xd19   :  { %15409 = vmatmul.mubr.msk.f32.gmra.mrb[72].mxu1 %vm24953_vm15, %v15370_v22  ;;  %vm24969_vm15 = vmmov %vm24954_vm0  ;;  %v10438_v22 = vld [vmem:[#allocation2 + $0x100] sm:$0xff] }
 0xd1a   :  { %v15373_v19 = vpop.f32.mrb[202].mxu0 }
 0xd1b   :  { %v9146_v28 = vpop.f32.mrb[203].mxu0  ;;  %16075 = vmatmul.mubr.f32.gmra.mrb[52].mxu0 %v18351_v61 }
 0xd1c   :  { %15411 = vmatprep.mubr.msk.f32.mxu1 %vm24954_vm0, %v9146_v28  ;;  %16077 = vmatprep.mubr.f32.mxu0 %v18352_v58  ;;  %v11886_v58 = vld [vmem:[#allocation2 + $0x200] sm:$0xff] }
 0xd1d   :  { %15412 = vmatmul.mubr.msk.f32.gmra.mrb[74].mxu1 %vm24955_vm1, %v15373_v19  ;;  %vm24970_vm1 = vmmov %vm24954_vm0  ;;  %v17516_v19 = vpack.c.bf16 %v10439_v24, %v10438_v22  ;;  %v10807_v22 = vld [vmem:[#allocation2 + $0x178] sm:$0xff] }
 0xd1e   :  { %v15376_v0 = vpop.f32.mrb[204].mxu0 }
 0xd1f   :  { %v9156_v57 = vpop.f32.mrb[205].mxu0  ;;  %16078 = vmatmul.mubr.f32.gmra.mrb[54].mxu0 %v18353_v9 }
 0xd20   :  { %15414 = vmatprep.mubr.msk.f32.mxu1 %vm24956_vm2, %v9156_v57  ;;  %16080 = vmatprep.mubr.f32.mxu0 %v18354_v32  ;;  %vm24971_vm2 = vmmov %vm24954_vm0  ;;  %v11887_v57 = vld [vmem:[#allocation2 + $0x208] sm:$0xff] }
 0xd21   :  { %15415 = vmatmul.mubr.msk.f32.gmra.mrb[76].mxu1 %vm24957_vm4, %v15376_v0  ;;  %vm24972_vm4 = vmmov %vm24954_vm0  ;;  %v24608_v32 = vpack.c.bf16 %v11887_v57, %v11886_v58 }
 0xd22   :  { %v15379_v56 = vpop.f32.mrb[206].mxu0 }
 0xd23   :  { %v9166_v46 = vpop.f32.mrb[207].mxu0  ;;  %16081 = vmatmul.mubr.f32.gmra.mrb[56].mxu0 %v18355_v60  ;;  %17709 = vmatprep.subr.bf16.mxu0 %v24608_v32  ;;  %v11889_v60 = vld [vmem:[#allocation2 + $0x218] sm:$0xff] }
 0xd24   :  { %15417 = vmatprep.mubr.msk.f32.mxu1 %vm24958_vm5, %v9166_v46  ;;  %16083 = vmatprep.mubr.f32.mxu0 %v18356_v16  ;;  %vm24973_vm5 = vmmov %vm24954_vm0 }
 0xd25   :  { %15418 = vmatmul.mubr.msk.f32.gmra.mrb[78].mxu1 %vm24959_vm6, %v15379_v56  ;;  %vm24974_vm6 = vmmov %vm24954_vm0  ;;  %v11888_v56 = vld [vmem:[#allocation2 + $0x210] sm:$0xff]  ;;  %17711 = vmatpush3.bf16.msra.mxu0 %v24608_v32 }
 0xd26   :  { %15436 = vmatprep.mubr.msk.f32.mxu1 %vm24960_vm3, %v24357_v17  ;;  %v24520_v25 = vpop.f32.mrb[208].mxu0  ;;  %vm24975_vm3 = vmmov %vm24954_vm0  ;;  %v24618_v38 = vpack.c.bf16 %v11889_v60, %v11888_v56 }
 0xd27   :  { %16084 = vmatmul.mubr.f32.gmra.mrb[58].mxu0 %v18357_v51  ;;  %v9635_v12 = vpop.f32.mrb[209].mxu0  ;;  %v11891_v51 = vld [vmem:[#allocation2 + $0x228] sm:$0xff] }
 0xd28   :  { %16086 = vmatprep.mubr.f32.mxu0 %v18358_v43  ;;  %17713 = vmatprep.subr.bf16.mxu0 %v24618_v38  ;;  %v10440_v43 = vld [vmem:[#allocation2 + $0x110] sm:$0xff] }
 0xd29   :  { %15437 = vmatmul.mubr.msk.f32.vlgmr.msra.gmra.mrb[64].mxu1 %vm24961_vm7, %v24352_v39  ;;  %v9720_v39 = vld [vmem:[#allocation2 + $0xb0] sm:$0xff]  ;;  %vm24976_vm7 = vmmov %vm24954_vm0  ;;  %17715 = vmatpush3.bf16.msra.mxu0 %v24618_v38 }
 0xd2a   :  { %15439 = vmatprep.mubr.msk.f32.mxu1 %vm24962_vm8, %v24369_v31  ;;  %17423 = vmatpush3.bf16.msra.mxu1 %v17420_v2  ;;  %v24532_v17 = vpop.f32.mrb[210].mxu0  ;;  %v17432_v37 = vpack.c.bf16 %v9721_v36, %v9720_v39  ;;  %vm24977_vm8 = vmmov %vm24954_vm0  ;;  %v17480_v2 = vpack.c.bf16 %v10083_v62, %v10082_v14  ;;  %v10442_v39 = vld [vmem:[#allocation2 + $0x120] sm:$0xff]  ;;  %v10443_v36 = vld [vmem:[#allocation2 + $0x128] sm:$0xff] }
 0xd2b   :  { %16087 = vmatmul.mubr.f32.gmra.mrb[60].mxu0 %v18359_v5  ;;  %17425 = vmatprep.subr.bf16.mxu1 %v17424_v52  ;;  %v9645_v50 = vpop.f32.mrb[211].mxu0  ;;  %v11893_v5 = vld [vmem:[#allocation2 + $0x238] sm:$0xff]  ;;  %v10805_v14 = vld [vmem:[#allocation2 + $0x168] sm:$0xff] }
 0xd2c   :  { %16089 = vmatprep.mubr.f32.mxu0 %v18360_v27  ;;  %v24634_v27 = vpack.c.bf16 %v11893_v5, %v11892_v3  ;;  %v11167_v5 = vld [vmem:[#allocation2 + $0x1a8] sm:$0xff] }
 0xd2d   :  { %15440 = vmatmul.mubr.msk.f32.gmra.mrb[66].mxu1 %vm24963_vm9, %v24364_v63  ;;  %vm24978_vm9 = vmmov %vm24954_vm0 }
 0xd2e   :  { %15442 = vmatprep.mubr.msk.f32.mxu1 %vm24964_vm10, %v24381_v54  ;;  %17427 = vmatpush3.bf16.msra.mxu1 %v17424_v52  ;;  %v15500_v31 = vpop.f32.mrb[212].mxu0  ;;  %vm24979_vm10 = vmmov %vm24954_vm0 }
 0xd2f   :  { %16090 = vmatmul.mubr.f32.gmra.mrb[62].mxu0 %v18361_v20  ;;  %17429 = vmatprep.subr.bf16.mxu1 %v17428_v21  ;;  %v9655_v29 = vpop.f32.mrb[213].mxu0  ;;  %v17524_v20 = vpack.c.bf16 %v10443_v36, %v10442_v39  ;;  %v11168_v36 = vld [vmem:[#allocation2 + $0x1b0] sm:$0xff] }
 0xd31   :  { %15443 = vmatmul.mubr.msk.f32.gmra.mrb[68].mxu1 %vm24965_vm11, %v24376_v53  ;;  %vm24980_vm11 = vmmov %vm24954_vm0 }
 0xd32   :  { %15445 = vmatprep.mubr.msk.f32.mxu1 %vm24966_vm12, %v24393_v41  ;;  %17431 = vmatpush3.bf16.msra.mxu1 %v17428_v21  ;;  %v15503_v63 = vpop.f32.mrb[214].mxu0  ;;  %vm24981_vm12 = vmmov %vm24954_vm0  ;;  %v17520_v21 = vpack.c.bf16 %v10441_v34, %v10440_v43 }
 0xd33   :  { %17433 = vmatprep.subr.bf16.mxu1 %v17432_v37  ;;  %v9665_v54 = vpop.f32.mrb[215].mxu0 }
 0xd35   :  { %15446 = vmatmul.mubr.msk.f32.gmra.mrb[70].mxu1 %vm24967_vm13, %v24388_v40  ;;  %vm24982_vm13 = vmmov %vm24954_vm0 }
 0xd36   :  { %15448 = vmatprep.mubr.msk.f32.mxu1 %vm24968_vm14, %v24405_v1  ;;  %17435 = vmatpush3.bf16.msra.mxu1 %v17432_v37  ;;  %v15506_v10 = vpop.f32.mrb[216].mxu0  ;;  %vm24983_vm14 = vmmov %vm24954_vm0 }
 0xd37   :  { %v9675_v33 = vpop.f32.mrb[217].mxu0  ;;  %17469 = vmatprep.subr.bf16.mxu1 %v17468_v4 }
 0xd39   :  { %15449 = vmatmul.mubr.msk.f32.gmra.mrb[72].mxu1 %vm24969_vm15, %v24400_v59  ;;  %vm24984_vm15 = vmmov %vm24954_vm0 }
 0xd3a   :  { %15451 = vmatprep.mubr.msk.f32.mxu1 %vm24954_vm0, %v24417_v47  ;;  %v15509_v53 = vpop.f32.mrb[218].mxu0  ;;  %v10078_v47 = vld [vmem:[#allocation2 + $0xd0] sm:$0xff] }
 0xd3b   :  { %v9685_v41 = vpop.f32.mrb[219].mxu0 }
 0xd3d   :  { %15452 = vmatmul.mubr.msk.f32.gmra.mrb[74].mxu1 %vm24970_vm1, %v24412_v48  ;;  %vm24985_vm1 = vmmov %vm24954_vm0 }
 0xd3e   :  { %15454 = vmatprep.mubr.msk.f32.mxu1 %vm24971_vm2, %v24429_v8  ;;  %v15512_v40 = vpop.f32.mrb[220].mxu0  ;;  %v17472_v8 = vpack.c.bf16 %v10079_v11, %v10078_v47  ;;  %vm24986_vm2 = vmmov %vm24954_vm0 }
 0xd3f   :  { %v9695_v1 = vpop.f32.mrb[221].mxu0 }
 0xd41   :  { %15455 = vmatmul.mubr.msk.f32.gmra.mrb[76].mxu1 %vm24972_vm4, %v24424_v49  ;;  %v10081_v49 = vld [vmem:[#allocation2 + $0xe8] sm:$0xff]  ;;  %vm24987_vm4 = vmmov %vm24954_vm0 }
 0xd42   :  { %15457 = vmatprep.mubr.msk.f32.mxu1 %vm24973_vm5, %v24441_v44  ;;  %v24567_v59 = vpop.f32.mrb[222].mxu0  ;;  %v17476_v7 = vpack.c.bf16 %v10081_v49, %v10080_v15  ;;  %vm24988_vm5 = vmmov %vm24954_vm0  ;;  %v10803_v15 = vld [vmem:[#allocation2 + $0x158] sm:$0xff] }
 0xd43   :  { %v9705_v23 = vpop.f32.mrb[223].mxu0 }
 0xd45   :  { %15458 = vmatmul.mubr.msk.f32.gmra.mrb[78].mxu1 %vm24974_vm6, %v24436_v18  ;;  %vm24989_vm6 = vmmov %vm24954_vm0 }
 0xd46   :  { %15532 = vmatprep.mubr.msk.f32.mxu1 %vm24975_vm3, %v9635_v12  ;;  %v24572_v48 = vpop.f32.mrb[224].mxu0  ;;  %v24626_v12 = vpack.c.bf16 %v11891_v51, %v11890_v55  ;;  %vm24990_vm3 = vmmov %vm24954_vm0  ;;  %v11164_v51 = vld [vmem:[#allocation2 + $0x190] sm:$0xff] }
 0xd47   :  { %v24574_v26 = vpop.f32.mrb[225].mxu0 }
 0xd48   :  { %17717 = vmatprep.subr.bf16.mxu0 %v24626_v12 }
 0xd49   :  { %15533 = vmatmul.mubr.msk.f32.vlgmr.msra.gmra.mrb[64].mxu1 %vm24976_vm7, %v24520_v25  ;;  %17719 = vmatpush3.bf16.msra.mxu0 %v24626_v12  ;;  %vm24991_vm7 = vmmov %vm24954_vm0 }
 0xd4a   :  { %15535 = vmatprep.mubr.msk.f32.mxu1 %vm24977_vm8, %v9645_v50  ;;  %17471 = vmatpush3.bf16.msra.mxu1 %v17468_v4  ;;  %v24579_v44 = vpop.f32.mrb[226].mxu0  ;;  %vm24992_vm8 = vmmov %vm24954_vm0  ;;  %v10800_v4 = vld [vmem:[#allocation2 + $0x140] sm:$0xff] }
 0xd4b   :  { %17473 = vmatprep.subr.bf16.mxu1 %v17472_v8  ;;  %v24581_v18 = vpop.f32.mrb[227].mxu0  ;;  %17721 = vmatprep.subr.bf16.mxu0 %v24634_v27 }
 0xd4d   :  { %15536 = vmatmul.mubr.msk.f32.gmra.mrb[66].mxu1 %vm24978_vm9, %v24532_v17  ;;  %17723 = vmatpush3.bf16.msra.mxu0 %v24634_v27  ;;  %vm24993_vm9 = vmmov %vm24954_vm0 }
 0xd4e   :  { %15538 = vmatprep.mubr.msk.f32.mxu1 %vm24979_vm10, %v9655_v29  ;;  %17475 = vmatpush3.bf16.msra.mxu1 %v17472_v8  ;;  %v24586_v45 = vpop.f32.mrb[228].mxu0  ;;  %v10444_v29 = vld [vmem:[#allocation2 + $0x130] sm:$0xff]  ;;  %vm24994_vm10 = vmmov %vm24954_vm0 }
 0xd4f   :  { %17477 = vmatprep.subr.bf16.mxu1 %v17476_v7  ;;  %v24588_v6 = vpop.f32.mrb[229].mxu0 }
 0xd51   :  { %15539 = vmatmul.mubr.msk.f32.gmra.mrb[68].mxu1 %vm24980_vm11, %v15500_v31  ;;  %vm24995_vm11 = vmmov %vm24954_vm0 }
 0xd52   :  { %15541 = vmatprep.mubr.msk.f32.mxu1 %vm24981_vm12, %v9665_v54  ;;  %17479 = vmatpush3.bf16.msra.mxu1 %v17476_v7  ;;  %v24592_v13 = vpop.f32.mrb[230].mxu0  ;;  %vm24996_vm12 = vmmov %vm24954_vm0 }
 0xd53   :  { %17481 = vmatprep.subr.bf16.mxu1 %v17480_v2  ;;  %v24594_v30 = vpop.f32.mrb[231].mxu0 }
 0xd55   :  { %15542 = vmatmul.mubr.msk.f32.gmra.mrb[70].mxu1 %vm24982_vm13, %v15503_v63  ;;  %v17528_v63 = vpack.c.bf16 %v10445_v35, %v10444_v29  ;;  %vm24997_vm13 = vmmov %vm24954_vm0  ;;  %v11524_v35 = vld [vmem:[#allocation2 + $0x1c0] sm:$0xff] }
 0xd56   :  { %15544 = vmatprep.mubr.msk.f32.mxu1 %vm24983_vm14, %v9675_v33  ;;  %17483 = vmatpush3.bf16.msra.mxu1 %v17480_v2  ;;  %v24598_v28 = vpop.f32.mrb[232].mxu0  ;;  %vm24998_vm14 = vmmov %vm24954_vm0 }
 0xd57   :  { %v24600_v61 = vpop.f32.mrb[233].mxu0  ;;  %17517 = vmatprep.subr.bf16.mxu1 %v17516_v19 }
 0xd59   :  { %15545 = vmatmul.mubr.msk.f32.gmra.mrb[72].mxu1 %vm24984_vm15, %v15506_v10  ;;  %v10801_v10 = vld [vmem:[#allocation2 + $0x148] sm:$0xff]  ;;  %vm24999_vm15 = vmmov %vm24954_vm0 }
 0xd5a   :  { %15547 = vmatprep.mubr.msk.f32.mxu1 %vm24954_vm0, %v9685_v41  ;;  %v24604_v0 = vpop.f32.mrb[234].mxu0  ;;  %v17564_v41 = vpack.c.bf16 %v10801_v10, %v10800_v4 }
 0xd5b   :  { %v24606_v9 = vpop.f32.mrb[235].mxu0 }
 0xd5d   :  { %15548 = vmatmul.mubr.msk.f32.gmra.mrb[74].mxu1 %vm24985_vm1, %v15509_v53  ;;  %vm25000_vm1 = vmmov %vm24954_vm0 }
 0xd5e   :  { %15550 = vmatprep.mubr.msk.f32.mxu1 %vm24986_vm2, %v9695_v1  ;;  %v24613_v46 = vpop.f32.mrb[236].mxu0  ;;  %vm25001_vm2 = vmmov %vm24954_vm0 }
 0xd5f   :  { %v24616_v16 = vpop.f32.mrb[237].mxu0 }
 0xd61   :  { %15551 = vmatmul.mubr.msk.f32.gmra.mrb[76].mxu1 %vm24987_vm4, %v15512_v40  ;;  %vm25002_vm4 = vmmov %vm24954_vm0 }
 0xd62   :  { %15553 = vmatprep.mubr.msk.f32.mxu1 %vm24988_vm5, %v9705_v23  ;;  %v24623_v25 = vpop.f32.mrb[238].mxu0  ;;  %vm25003_vm5 = vmmov %vm24954_vm0 }
 0xd63   :  { %v10067_v52 = vpop.f32.mrb[239].mxu0 }
 0xd65   :  { %15554 = vmatmul.mubr.msk.f32.gmra.mrb[78].mxu1 %vm24989_vm6, %v24567_v59  ;;  %vm25004_vm6 = vmmov %vm24954_vm0 }
 0xd66   :  { %15628 = vmatprep.mubr.msk.f32.mxu1 %vm24990_vm3, %v24574_v26  ;;  %v15686_v17 = vpop.f32.mrb[240].mxu0  ;;  %v10802_v26 = vld [vmem:[#allocation2 + $0x150] sm:$0xff]  ;;  %vm25005_vm3 = vmmov %vm24954_vm0 }
 0xd67   :  { %v10359_v50 = vpop.f32.mrb[241].mxu0 }
 0xd69   :  { %15629 = vmatmul.mubr.msk.f32.vlgmr.msra.gmra.mrb[64].mxu1 %vm24991_vm7, %v24572_v48  ;;  %vm25006_vm7 = vmmov %vm24954_vm0 }
 0xd6a   :  { %15631 = vmatprep.mubr.msk.f32.mxu1 %vm24992_vm8, %v24581_v18  ;;  %17519 = vmatpush3.bf16.msra.mxu1 %v17516_v19  ;;  %v15689_v31 = vpop.f32.mrb[242].mxu0  ;;  %v10804_v18 = vld [vmem:[#allocation2 + $0x160] sm:$0xff]  ;;  %vm25007_vm8 = vmmov %vm24954_vm0 }
 0xd6b   :  { %17521 = vmatprep.subr.bf16.mxu1 %v17520_v21  ;;  %v10369_v37 = vpop.f32.mrb[243].mxu0  ;;  %v11162_v19 = vld [vmem:[#allocation2 + $0x180] sm:$0xff] }
 0xd6d   :  { %15632 = vmatmul.mubr.msk.f32.gmra.mrb[66].mxu1 %vm24993_vm9, %v24579_v44  ;;  %v17568_v44 = vpack.c.bf16 %v10803_v15, %v10802_v26  ;;  %vm25008_vm9 = vmmov %vm24954_vm0  ;;  %v11528_v15 = vld [vmem:[#allocation2 + $0x1e0] sm:$0xff] }
 0xd6e   :  { %15634 = vmatprep.mubr.msk.f32.mxu1 %vm24994_vm10, %v24588_v6  ;;  %17523 = vmatpush3.bf16.msra.mxu1 %v17520_v21  ;;  %v15692_v42 = vpop.f32.mrb[244].mxu0  ;;  %v10806_v6 = vld [vmem:[#allocation2 + $0x170] sm:$0xff]  ;;  %vm25009_vm10 = vmmov %vm24954_vm0 }
 0xd6f   :  { %17525 = vmatprep.subr.bf16.mxu1 %v17524_v20  ;;  %v10379_v54 = vpop.f32.mrb[245].mxu0 }
 0xd71   :  { %15635 = vmatmul.mubr.msk.f32.gmra.mrb[68].mxu1 %vm24995_vm11, %v24586_v45  ;;  %v17572_v45 = vpack.c.bf16 %v10805_v14, %v10804_v18  ;;  %vm25010_vm11 = vmmov %vm24954_vm0  ;;  %v11530_v14 = vld [vmem:[#allocation2 + $0x1f0] sm:$0xff] }
 0xd72   :  { %15637 = vmatprep.mubr.msk.f32.mxu1 %vm24996_vm12, %v24594_v30  ;;  %17527 = vmatpush3.bf16.msra.mxu1 %v17524_v20  ;;  %v15695_v33 = vpop.f32.mrb[246].mxu0  ;;  %vm25011_vm12 = vmmov %vm24954_vm0 }
 0xd73   :  { %17529 = vmatprep.subr.bf16.mxu1 %v17528_v63  ;;  %v10389_v53 = vpop.f32.mrb[247].mxu0 }
 0xd75   :  { %15638 = vmatmul.mubr.msk.f32.gmra.mrb[70].mxu1 %vm24997_vm13, %v24592_v13  ;;  %v17576_v13 = vpack.c.bf16 %v10807_v22, %v10806_v6  ;;  %vm25012_vm13 = vmmov %vm24954_vm0 }
 0xd76   :  { %15640 = vmatprep.mubr.msk.f32.mxu1 %vm24998_vm14, %v24600_v61  ;;  %17531 = vmatpush3.bf16.msra.mxu1 %v17528_v63  ;;  %v15698_v40 = vpop.f32.mrb[248].mxu0  ;;  %vm25013_vm14 = vmmov %vm24954_vm0 }
 0xd77   :  { %v10399_v1 = vpop.f32.mrb[249].mxu0  ;;  %17565 = vmatprep.subr.bf16.mxu1 %v17564_v41 }
 0xd79   :  { %15641 = vmatmul.mubr.msk.f32.gmra.mrb[72].mxu1 %vm24999_vm15, %v24598_v28  ;;  %v11163_v28 = vld [vmem:[#allocation2 + $0x188] sm:$0xff]  ;;  %vm25014_vm15 = vmmov %vm24954_vm0 }
 0xd7a   :  { %15643 = vmatprep.mubr.msk.f32.mxu1 %vm24954_vm0, %v24606_v9  ;;  %v15701_v59 = vpop.f32.mrb[250].mxu0 }
 0xd7b   :  { %v10409_v23 = vpop.f32.mrb[251].mxu0 }
 0xd7d   :  { %15644 = vmatmul.mubr.msk.f32.gmra.mrb[74].mxu1 %vm25000_vm1, %v24604_v0  ;;  %v17612_v0 = vpack.c.bf16 %v11163_v28, %v11162_v19  ;;  %vm25015_vm1 = vmmov %vm24954_vm0 }
 0xd7e   :  { %15646 = vmatprep.mubr.msk.f32.mxu1 %vm25001_vm2, %v24616_v16  ;;  %v15704_v47 = vpop.f32.mrb[252].mxu0  ;;  %vm25016_vm2 = vmmov %vm24954_vm0 }
 0xd7f   :  { %v10419_v11 = vpop.f32.mrb[253].mxu0 }
 0xd81   :  { %15647 = vmatmul.mubr.msk.f32.gmra.mrb[76].mxu1 %vm25002_vm4, %v24613_v46  ;;  %vm25017_vm4 = vmmov %vm24954_vm0 }
 0xd82   :  { %15649 = vmatprep.mubr.msk.f32.mxu1 %vm25003_vm5, %v10067_v52  ;;  %v15707_v48 = vpop.f32.mrb[254].mxu0  ;;  %vm25018_vm5 = vmmov %vm24954_vm0  ;;  %v11165_v52 = vld [vmem:[#allocation2 + $0x198] sm:$0xff] }
 0xd83   :  { %v10429_v8 = vpop.f32.mrb[255].mxu0  ;;  %v17616_v34 = vpack.c.bf16 %v11165_v52, %v11164_v51 }
 0xd85   :  { %15650 = vmatmul.mubr.msk.f32.gmra.mrb[78].mxu1 %vm25004_vm6, %v24623_v25  ;;  %vm25019_vm6 = vmmov %vm24954_vm0 }
 0xd86   :  { %15724 = vmatprep.mubr.msk.f32.mxu1 %vm25005_vm3, %v10359_v50  ;;  %v15782_v49 = vpop.f32.mrb[0].mxu0  ;;  %vm25020_vm3 = vmmov %vm24954_vm0 }
 0xd87   :  { %v10721_v7 = vpop.f32.mrb[1].mxu0 }
 0xd89   :  { %15725 = vmatmul.mubr.msk.f32.vlgmr.msra.gmra.mrb[64].mxu1 %vm25006_vm7, %v15686_v17  ;;  %v11166_v17 = vld [vmem:[#allocation2 + $0x1a0] sm:$0xff]  ;;  %vm25021_vm7 = vmmov %vm24954_vm0 }
 0xd8a   :  { %15727 = vmatprep.mubr.msk.f32.mxu1 %vm25007_vm8, %v10369_v37  ;;  %17567 = vmatpush3.bf16.msra.mxu1 %v17564_v41  ;;  %v15785_v62 = vpop.f32.mrb[2].mxu0  ;;  %vm25022_vm8 = vmmov %vm24954_vm0  ;;  %v17620_v50 = vpack.c.bf16 %v11167_v5, %v11166_v17 }
 0xd8b   :  { %17569 = vmatprep.subr.bf16.mxu1 %v17568_v44  ;;  %v10731_v2 = vpop.f32.mrb[3].mxu0 }
 0xd8d   :  { %15728 = vmatmul.mubr.msk.f32.gmra.mrb[66].mxu1 %vm25008_vm9, %v15689_v31  ;;  %v11169_v31 = vld [vmem:[#allocation2 + $0x1b8] sm:$0xff]  ;;  %vm25023_vm9 = vmmov %vm24954_vm0 }
 0xd8e   :  { %15730 = vmatprep.mubr.msk.f32.mxu1 %vm25009_vm10, %v10379_v54  ;;  %17571 = vmatpush3.bf16.msra.mxu1 %v17568_v44  ;;  %v15788_v24 = vpop.f32.mrb[4].mxu0  ;;  %vm25024_vm10 = vmmov %vm24954_vm0  ;;  %v17624_v37 = vpack.c.bf16 %v11169_v31, %v11168_v36 }
 0xd8f   :  { %17573 = vmatprep.subr.bf16.mxu1 %v17572_v45  ;;  %v10741_v30 = vpop.f32.mrb[5].mxu0 }
 0xd91   :  { %15731 = vmatmul.mubr.msk.f32.gmra.mrb[68].mxu1 %vm25010_vm11, %v15692_v42  ;;  %v11525_v42 = vld [vmem:[#allocation2 + $0x1c8] sm:$0xff]  ;;  %vm25025_vm11 = vmmov %vm24954_vm0 }
 0xd92   :  { %15733 = vmatprep.mubr.msk.f32.mxu1 %vm25011_vm12, %v10389_v53  ;;  %17575 = vmatpush3.bf16.msra.mxu1 %v17572_v45  ;;  %v15791_v61 = vpop.f32.mrb[6].mxu0  ;;  %vm25026_vm12 = vmmov %vm24954_vm0  ;;  %v17660_v4 = vpack.c.bf16 %v11525_v42, %v11524_v35 }
 0xd93   :  { %17577 = vmatprep.subr.bf16.mxu1 %v17576_v13  ;;  %v10751_v58 = vpop.f32.mrb[7].mxu0 }
 0xd95   :  { %15734 = vmatmul.mubr.msk.f32.gmra.mrb[70].mxu1 %vm25012_vm13, %v15695_v33  ;;  %vm25027_vm13 = vmmov %vm24954_vm0 }
 0xd96   :  { %15736 = vmatprep.mubr.msk.f32.mxu1 %vm25013_vm14, %v10399_v1  ;;  %17579 = vmatpush3.bf16.msra.mxu1 %v17576_v13  ;;  %v15794_v57 = vpop.f32.mrb[8].mxu0  ;;  %vm25028_vm14 = vmmov %vm24954_vm0 }
 0xd97   :  { %v10761_v9 = vpop.f32.mrb[9].mxu0  ;;  %17613 = vmatprep.subr.bf16.mxu1 %v17612_v0 }
 0xd99   :  { %15737 = vmatmul.mubr.msk.f32.gmra.mrb[72].mxu1 %vm25014_vm15, %v15698_v40  ;;  %vm25029_vm15 = vmmov %vm24954_vm0 }
 0xd9a   :  { %15739 = vmatprep.mubr.msk.f32.mxu1 %vm24954_vm0, %v10409_v23  ;;  %v15797_v56 = vpop.f32.mrb[10].mxu0 }
 0xd9b   :  { %v10771_v46 = vpop.f32.mrb[11].mxu0 }
 0xd9d   :  { %15740 = vmatmul.mubr.msk.f32.gmra.mrb[74].mxu1 %vm25015_vm1, %v15701_v59  ;;  %vm25030_vm1 = vmmov %vm24954_vm0 }
 0xd9e   :  { %15742 = vmatprep.mubr.msk.f32.mxu1 %vm25016_vm2, %v10419_v11  ;;  %v15800_v60 = vpop.f32.mrb[12].mxu0  ;;  %vm25031_vm2 = vmmov %vm24954_vm0  ;;  %v11527_v11 = vld [vmem:[#allocation2 + $0x1d8] sm:$0xff] }
 0xd9f   :  { %v10781_v16 = vpop.f32.mrb[13].mxu0 }
 0xda1   :  { %15743 = vmatmul.mubr.msk.f32.gmra.mrb[76].mxu1 %vm25017_vm4, %v15704_v47  ;;  %vm25032_vm4 = vmmov %vm24954_vm0  ;;  %v11526_v47 = vld [vmem:[#allocation2 + $0x1d0] sm:$0xff] }
 0xda2   :  { %15745 = vmatprep.mubr.msk.f32.mxu1 %vm25018_vm5, %v10429_v8  ;;  %v15803_v55 = vpop.f32.mrb[14].mxu0  ;;  %vm25033_vm5 = vmmov %vm24954_vm0  ;;  %v17664_v26 = vpack.c.bf16 %v11527_v11, %v11526_v47 }
 0xda3   :  { %v10791_v25 = vpop.f32.mrb[15].mxu0 }
 0xda5   :  { %15746 = vmatmul.mubr.msk.f32.gmra.mrb[78].mxu1 %vm25019_vm6, %v15707_v48  ;;  %vm25034_vm6 = vmmov %vm24954_vm0 }
 0xda6   :  { %15820 = vmatprep.mubr.msk.f32.mxu1 %vm25020_vm3, %v10721_v7  ;;  %v15878_v43 = vpop.f32.mrb[16].mxu0  ;;  %vm25035_vm3 = vmmov %vm24954_vm0 }
 0xda7   :  { %v11083_v3 = vpop.f32.mrb[17].mxu0 }
 0xda9   :  { %15821 = vmatmul.mubr.msk.f32.vlgmr.msra.gmra.mrb[64].mxu1 %vm25021_vm7, %v15782_v49  ;;  %v11529_v49 = vld [vmem:[#allocation2 + $0x1e8] sm:$0xff]  ;;  %vm25036_vm7 = vmmov %vm24954_vm0 }
 0xdaa   :  { %15823 = vmatprep.mubr.msk.f32.mxu1 %vm25022_vm8, %v10731_v2  ;;  %17615 = vmatpush3.bf16.msra.mxu1 %v17612_v0  ;;  %v15881_v21 = vpop.f32.mrb[18].mxu0  ;;  %vm25037_vm8 = vmmov %vm24954_vm0  ;;  %v17668_v18 = vpack.c.bf16 %v11529_v49, %v11528_v15 }
 0xdab   :  { %17617 = vmatprep.subr.bf16.mxu1 %v17616_v34  ;;  %v11093_v39 = vpop.f32.mrb[19].mxu0 }
 0xdad   :  { %15824 = vmatmul.mubr.msk.f32.gmra.mrb[66].mxu1 %vm25023_vm9, %v15785_v62  ;;  %v11531_v62 = vld [vmem:[#allocation2 + $0x1f8] sm:$0xff]  ;;  %vm25038_vm9 = vmmov %vm24954_vm0 }
 0xdae   :  { %15826 = vmatprep.mubr.msk.f32.mxu1 %vm25024_vm10, %v10741_v30  ;;  %17619 = vmatpush3.bf16.msra.mxu1 %v17616_v34  ;;  %v15884_v20 = vpop.f32.mrb[20].mxu0  ;;  %vm25039_vm10 = vmmov %vm24954_vm0  ;;  %v17672_v6 = vpack.c.bf16 %v11531_v62, %v11530_v14 }
 0xdaf   :  { %17621 = vmatprep.subr.bf16.mxu1 %v17620_v50  ;;  %v11103_v29 = vpop.f32.mrb[21].mxu0 }
 0xdb1   :  { %15827 = vmatmul.mubr.msk.f32.gmra.mrb[68].mxu1 %vm25025_vm11, %v15788_v24  ;;  %vm25040_vm11 = vmmov %vm24954_vm0 }
 0xdb2   :  { %15829 = vmatprep.mubr.msk.f32.mxu1 %vm25026_vm12, %v10751_v58  ;;  %17623 = vmatpush3.bf16.msra.mxu1 %v17620_v50  ;;  %v15887_v63 = vpop.f32.mrb[22].mxu0  ;;  %vm25041_vm12 = vmmov %vm24954_vm0 }
 0xdb3   :  { %17625 = vmatprep.subr.bf16.mxu1 %v17624_v37  ;;  %v11113_v54 = vpop.f32.mrb[23].mxu0 }
 0xdb5   :  { %15830 = vmatmul.mubr.msk.f32.gmra.mrb[70].mxu1 %vm25027_vm13, %v15791_v61  ;;  %vm25042_vm13 = vmmov %vm24954_vm0 }
 0xdb6   :  { %15832 = vmatprep.mubr.msk.f32.mxu1 %vm25028_vm14, %v10761_v9  ;;  %17627 = vmatpush3.bf16.msra.mxu1 %v17624_v37  ;;  %v15890_v10 = vpop.f32.mrb[24].mxu0  ;;  %vm25043_vm14 = vmmov %vm24954_vm0 }
 0xdb7   :  { %v11123_v33 = vpop.f32.mrb[25].mxu0  ;;  %17661 = vmatprep.subr.bf16.mxu1 %v17660_v4 }
 0xdb9   :  { %15833 = vmatmul.mubr.msk.f32.gmra.mrb[72].mxu1 %vm25029_vm15, %v15794_v57  ;;  %vm25044_vm15 = vmmov %vm24954_vm0 }
 0xdba   :  { %15835 = vmatprep.mubr.msk.f32.mxu1 %vm24954_vm0, %v10771_v46  ;;  %v15893_v53 = vpop.f32.mrb[26].mxu0 }
 0xdbb   :  { %v11133_v41 = vpop.f32.mrb[27].mxu0 }
 0xdbd   :  { %15836 = vmatmul.mubr.msk.f32.gmra.mrb[74].mxu1 %vm25030_vm1, %v15797_v56  ;;  %vm25045_vm1 = vmmov %vm24954_vm0 }
 0xdbe   :  { %15838 = vmatprep.mubr.msk.f32.mxu1 %vm25031_vm2, %v10781_v16  ;;  %v15896_v40 = vpop.f32.mrb[28].mxu0  ;;  %vm25046_vm2 = vmmov %vm24954_vm0 }
 0xdbf   :  { %v11143_v1 = vpop.f32.mrb[29].mxu0 }
 0xdc1   :  { %15839 = vmatmul.mubr.msk.f32.gmra.mrb[76].mxu1 %vm25032_vm4, %v15800_v60  ;;  %vm25047_vm4 = vmmov %vm24954_vm0 }
 0xdc2   :  { %15841 = vmatprep.mubr.msk.f32.mxu1 %vm25033_vm5, %v10791_v25  ;;  %v15899_v59 = vpop.f32.mrb[30].mxu0  ;;  %vm25048_vm5 = vmmov %vm24954_vm0 }
 0xdc3   :  { %v11153_v23 = vpop.f32.mrb[31].mxu0 }
 0xdc5   :  { %15842 = vmatmul.mubr.msk.f32.gmra.mrb[78].mxu1 %vm25034_vm6, %v15803_v55  ;;  %vm25049_vm6 = vmmov %vm24954_vm0 }
 0xdc6   :  { %15916 = vmatprep.mubr.msk.f32.mxu1 %vm25035_vm3, %v11083_v3  ;;  %v15974_v48 = vpop.f32.mrb[32].mxu0  ;;  %vm25050_vm3 = vmmov %vm24954_vm0 }
 0xdc7   :  { %v11445_v8 = vpop.f32.mrb[33].mxu0 }
 0xdc9   :  { %15917 = vmatmul.mubr.msk.f32.vlgmr.msra.gmra.mrb[64].mxu1 %vm25036_vm7, %v15878_v43  ;;  %vm25051_vm7 = vmmov %vm24954_vm0 }
 0xdca   :  { %15919 = vmatprep.mubr.msk.f32.mxu1 %vm25037_vm8, %v11093_v39  ;;  %v15977_v44 = vpop.f32.mrb[34].mxu0  ;;  %17663 = vmatpush3.bf16.msra.mxu1 %v17660_v4  ;;  %vm25052_vm8 = vmmov %vm24954_vm0 }
 0xdcb   :  { %v11455_v7 = vpop.f32.mrb[35].mxu0  ;;  %17665 = vmatprep.subr.bf16.mxu1 %v17664_v26 }
 0xdcd   :  { %15920 = vmatmul.mubr.msk.f32.gmra.mrb[66].mxu1 %vm25038_vm9, %v15881_v21  ;;  %vm25053_vm9 = vmmov %vm24954_vm0  ;;  %v24758_v21 = vld [vmem:[%s24850_s10] ss:$0 sm:$0xff] }
 0xdce   :  { %15922 = vmatprep.mubr.msk.f32.mxu1 %vm25039_vm10, %v11103_v29  ;;  %v15980_v45 = vpop.f32.mrb[36].mxu0  ;;  %17667 = vmatpush3.bf16.msra.mxu1 %v17664_v26  ;;  %vm25054_vm10 = vmmov %vm24954_vm0 }
 0xdcf   :  { %v11465_v2 = vpop.f32.mrb[37].mxu0  ;;  %17669 = vmatprep.subr.bf16.mxu1 %v17668_v18 }
 0xdd1   :  { %15923 = vmatmul.mubr.msk.f32.gmra.mrb[68].mxu1 %vm25040_vm11, %v15884_v20  ;;  %vm25055_vm11 = vmmov %vm24954_vm0 }
 0xdd2   :  { %15925 = vmatprep.mubr.msk.f32.mxu1 %vm25041_vm12, %v11113_v54  ;;  %v15983_v22 = vpop.f32.mrb[38].mxu0  ;;  %17671 = vmatpush3.bf16.msra.mxu1 %v17668_v18  ;;  %vm25056_vm12 = vmmov %vm24954_vm0 }
 0xdd3   :  { %v11475_v24 = vpop.f32.mrb[39].mxu0  ;;  %17673 = vmatprep.subr.bf16.mxu1 %v17672_v6 }
 0xdd5   :  { %15926 = vmatmul.mubr.msk.f32.gmra.mrb[70].mxu1 %vm25042_vm13, %v15887_v63  ;;  %vm25057_vm13 = vmmov %vm24954_vm0 }
 0xdd6   :  { %15928 = vmatprep.mubr.msk.f32.mxu1 %vm25043_vm14, %v11123_v33  ;;  %v15986_v13 = vpop.f32.mrb[40].mxu0  ;;  %17675 = vmatpush3.bf16.msra.mxu1 %v17672_v6  ;;  %vm25058_vm14 = vmmov %vm24954_vm0 }
 0xdd7   :  { %v11485_v30 = vpop.f32.mrb[41].mxu0  ;;  %17724 = vmatprep.subr.bf16.mxu1 %v24608_v32 }
 0xdd9   :  { %15929 = vmatmul.mubr.msk.f32.gmra.mrb[72].mxu1 %vm25044_vm15, %v15890_v10  ;;  %vm25059_vm15 = vmmov %vm24954_vm0 }
 0xdda   :  { %15931 = vmatprep.mubr.msk.f32.mxu1 %vm24954_vm0, %v11133_v41  ;;  %v15989_v19 = vpop.f32.mrb[42].mxu0 }
 0xddb   :  { %v11495_v28 = vpop.f32.mrb[43].mxu0 }
 0xddd   :  { %15932 = vmatmul.mubr.msk.f32.gmra.mrb[74].mxu1 %vm25045_vm1, %v15893_v53  ;;  %vm25060_vm1 = vmmov %vm24954_vm0 }
 0xdde   :  { %15934 = vmatprep.mubr.msk.f32.mxu1 %vm25046_vm2, %v11143_v1  ;;  %v15992_v61 = vpop.f32.mrb[44].mxu0  ;;  %vm25061_vm2 = vmmov %vm24954_vm0 }
 0xddf   :  { %v11505_v58 = vpop.f32.mrb[45].mxu0 }
 0xde1   :  { %15935 = vmatmul.mubr.msk.f32.gmra.mrb[76].mxu1 %vm25047_vm4, %v15896_v40  ;;  %vm25062_vm4 = vmmov %vm24954_vm0 }
 0xde2   :  { %15937 = vmatprep.mubr.msk.f32.mxu1 %vm25048_vm5, %v11153_v23  ;;  %v15995_v0 = vpop.f32.mrb[46].mxu0  ;;  %vm25063_vm5 = vmmov %vm24954_vm0 }
 0xde3   :  { %v11515_v57 = vpop.f32.mrb[47].mxu0 }
 0xde5   :  { %15938 = vmatmul.mubr.msk.f32.gmra.mrb[78].mxu1 %vm25049_vm6, %v15899_v59  ;;  %vm25064_vm6 = vmmov %vm24954_vm0 }
 0xde6   :  { %v16070_v9 = vpop.f32.mrb[48].mxu0  ;;  %16012 = vmatprep.mubr.msk.f32.mxu1 %vm25050_vm3, %v11445_v8  ;;  %vm25065_vm3 = vmmov %vm24954_vm0 }
 0xde7   :  { %v11807_v56 = vpop.f32.mrb[49].mxu0 }
 0xde8   :  { %16108 = vmatprep.mubr.msk.f32.mxu0 %vm25051_vm7, %v11807_v56  ;;  %vm25066_vm7 = vmmov %vm24954_vm0 }
 0xde9   :  { %16013 = vmatmul.mubr.msk.f32.vlgmr.msra.gmra.mrb[64].mxu1 %vm25052_vm8, %v15974_v48  ;;  %16109 = vmatmul.mubr.msk.f32.vlgmr.msra.gmra.mrb[64].mxu0 %vm25053_vm9, %v16070_v9  ;;  %vm25067_vm8 = vmmov %vm24954_vm0 }
 0xdea   :  { %v16073_v46 = vpop.f32.mrb[50].mxu0  ;;  %16015 = vmatprep.mubr.msk.f32.mxu1 %vm25054_vm10, %v11455_v7  ;;  %17728 = vmatpush3.bf16.msra.mxu1 %v24608_v32  ;;  %vm25068_vm9 = vmmov %vm24954_vm0 }
 0xdeb   :  { %v11817_v60 = vpop.f32.mrb[51].mxu0  ;;  %17725 = vmatprep.subr.bf16.mxu1 %v24618_v38  ;;  %vm25069_vm10 = vmmov %vm24954_vm0 }
 0xdec   :  { %16111 = vmatprep.mubr.msk.f32.mxu0 %vm25055_vm11, %v11817_v60  ;;  %vm25070_vm11 = vmmov %vm24954_vm0 }
 0xded   :  { %16016 = vmatmul.mubr.msk.f32.gmra.mrb[66].mxu1 %vm25056_vm12, %v15977_v44  ;;  %16112 = vmatmul.mubr.msk.f32.gmra.mrb[66].mxu0 %vm25057_vm13, %v16073_v46  ;;  %vm25071_vm12 = vmmov %vm24954_vm0 }
 0xdee   :  { %v16076_v16 = vpop.f32.mrb[52].mxu0  ;;  %16018 = vmatprep.mubr.msk.f32.mxu1 %vm25058_vm14, %v11465_v2  ;;  %17729 = vmatpush3.bf16.msra.mxu1 %v24618_v38  ;;  %vm25072_vm13 = vmmov %vm24954_vm0 }
 0xdef   :  { %v11827_v55 = vpop.f32.mrb[53].mxu0  ;;  %17726 = vmatprep.subr.bf16.mxu1 %v24626_v12  ;;  %vm25073_vm14 = vmmov %vm24954_vm0 }
 0xdf0   :  { %16114 = vmatprep.mubr.msk.f32.mxu0 %vm25059_vm15, %v11827_v55  ;;  %vm25074_vm15 = vmmov %vm24954_vm0 }
 0xdf1   :  { %16019 = vmatmul.mubr.msk.f32.gmra.mrb[68].mxu1 %vm24954_vm0, %v15980_v45  ;;  %16115 = vmatmul.mubr.msk.f32.gmra.mrb[68].mxu0 %vm25060_vm1, %v16076_v16  ;;  %vm25075_vm1 = vmmov %vm24954_vm0 }
 0xdf2   :  { %v16079_v32 = vpop.f32.mrb[54].mxu0  ;;  %16021 = vmatprep.mubr.msk.f32.mxu1 %vm25061_vm2, %v11475_v24  ;;  %17730 = vmatpush3.bf16.msra.mxu1 %v24626_v12  ;;  %vm25076_vm2 = vmmov %vm24954_vm0 }
 0xdf3   :  { %v11837_v25 = vpop.f32.mrb[55].mxu0  ;;  %17727 = vmatprep.subr.bf16.mxu1 %v24634_v27 }
 0xdf4   :  { %16117 = vmatprep.mubr.msk.f32.mxu0 %vm25062_vm4, %v11837_v25  ;;  %vm25077_vm4 = vmmov %vm24954_vm0 }
 0xdf5   :  { %16022 = vmatmul.mubr.msk.f32.gmra.mrb[70].mxu1 %vm25063_vm5, %v15983_v22  ;;  %16118 = vmatmul.mubr.msk.f32.gmra.mrb[70].mxu0 %vm25064_vm6, %v16079_v32  ;;  %vm25078_vm5 = vmmov %vm24954_vm0 }
 0xdf6   :  { %v16082_v38 = vpop.f32.mrb[56].mxu0  ;;  %16024 = vmatprep.mubr.msk.f32.mxu1 %vm25065_vm3, %v11485_v30  ;;  %17731 = vmatpush3.bf16.msra.mxu1 %v24634_v27  ;;  %vm25079_vm6 = vmmov %vm24954_vm0  ;;  %vm12222_vm3 = vcmask 7168  }
 0xdf7   :  { %v11847_v51 = vpop.f32.mrb[57].mxu0 }
 0xdf8   :  { %16120 = vmatprep.mubr.msk.f32.mxu0 %vm25066_vm7, %v11847_v51 }
 0xdf9   :  { %16025 = vmatmul.mubr.msk.f32.gmra.mrb[72].mxu1 %vm25067_vm8, %v15986_v13  ;;  %16121 = vmatmul.mubr.msk.f32.gmra.mrb[72].mxu0 %vm25068_vm9, %v16082_v38 }
 0xdfa   :  { %v16085_v12 = vpop.f32.mrb[58].mxu0  ;;  %16027 = vmatprep.mubr.msk.f32.mxu1 %vm25069_vm10, %v11495_v28 }
 0xdfb   :  { %v11857_v52 = vpop.f32.mrb[59].mxu0 }
 0xdfc   :  { %16123 = vmatprep.mubr.msk.f32.mxu0 %vm25070_vm11, %v11857_v52 }
 0xdfd   :  { %16028 = vmatmul.mubr.msk.f32.gmra.mrb[74].mxu1 %vm25071_vm12, %v15989_v19  ;;  %16124 = vmatmul.mubr.msk.f32.gmra.mrb[74].mxu0 %vm25072_vm13, %v16085_v12 }
 0xdfe   :  { %v16088_v43 = vpop.f32.mrb[60].mxu0  ;;  %16030 = vmatprep.mubr.msk.f32.mxu1 %vm25073_vm14, %v11505_v58 }
 0xdff   :  { %v11867_v27 = vpop.f32.mrb[61].mxu0 }
 0xe00   :  { %16126 = vmatprep.mubr.msk.f32.mxu0 %vm25074_vm15, %v11867_v27 }
 0xe01   :  { %16031 = vmatmul.mubr.msk.f32.gmra.mrb[76].mxu1 %vm24954_vm0, %v15992_v61  ;;  %16127 = vmatmul.mubr.msk.f32.gmra.mrb[76].mxu0 %vm25075_vm1, %v16088_v43 }
 0xe02   :  { %16033 = vmatprep.mubr.msk.f32.mxu1 %vm25076_vm2, %v11515_v57  ;;  %v16091_v34 = vpop.f32.mrb[62].mxu0 }
 0xe03   :  { %v11877_v3 = vpop.f32.mrb[63].mxu0 }
 0xe05   :  { %16034 = vmatmul.mubr.msk.f32.gmra.mrb[78].mxu1 %vm25077_vm4, %v15995_v0 }
 0xe06   :  { %16129 = vmatprep.mubr.msk.f32.mxu1 %vm25078_vm5, %v11877_v3 }
 0xe0d   :  { %16130 = vmatmul.mubr.msk.f32.vlgmr.msra.gmra.mrb[78].mxu1 %vm25079_vm6, %v16091_v34 }
 0xebc   :  { %v16014_v17 = vpop.f32.mrb[64].mxu1  ;;  %v16110_v5 = vpop.f32.mrb[64].mxu0 }
 0xebd   :  { %v17732_v50 = vadd.f32 %v16110_v5, %v16014_v17  ;;  %v11646_v39 = vpop.f32.mrb[65].mxu1  ;;  %v12008_v36 = vpop.f32.mrb[65].mxu0 }
 0xebe   :  { %v17733_v31 = vadd.f32 %v12008_v36, %v11646_v39 }
 0xebf   :  { %v12111_v20 = vadd.f32 %v17732_v50, %v24758_v21 }
 0xec0   :  { %v12110_v37 = vadd.f32 %v17733_v31, %v24758_v21  ;;  %v16017_v29 = vpop.f32.mrb[66].mxu1  ;;  %v16113_v35 = vpop.f32.mrb[66].mxu0 }
 0xec1   :  { %v12127_v42 = vsub.f32 0.0, %v12111_v20  ;;  %v17734_v63 = vadd.f32 %v16113_v35, %v16017_v29  ;;  %v11656_v54 = vpop.f32.mrb[67].mxu1  ;;  %v12018_v4 = vpop.f32.mrb[67].mxu0 }
 0xec2   :  { %v12126_v10 = vsub.f32 0.0, %v12110_v37  ;;  %v17735_v33 = vadd.f32 %v12018_v4, %v11656_v54 }
 0xec3   :  { %v12144_v53 = vmul.f32 1.442695, %v12127_v42  ;;  %v12113_v41 = vadd.f32 %v17734_v63, %v24758_v21 }
 0xec4   :  { %v12142_v40 = vmul.f32 1.442695, %v12126_v10  ;;  %v12112_v1 = vadd.f32 %v17735_v33, %v24758_v21  ;;  %v16020_v59 = vpop.f32.mrb[68].mxu1  ;;  %v16116_v23 = vpop.f32.mrb[68].mxu0 }
 0xec5   :  { %18008 = vpow2.f32 %v12144_v53  ;;  %v12129_v47 = vsub.f32 0.0, %v12113_v41  ;;  %v17736_v11 = vadd.f32 %v16116_v23, %v16020_v59  ;;  %v11666_v48 = vpop.f32.mrb[69].mxu1  ;;  %v12028_v8 = vpop.f32.mrb[69].mxu0 }
 0xec6   :  { %18010 = vpow2.f32 %v12142_v40  ;;  %v12128_v26 = vsub.f32 0.0, %v12112_v1  ;;  %v17737_v15 = vadd.f32 %v12028_v8, %v11666_v48 }
 0xec7   :  { %v12148_v49 = vmul.f32 1.442695, %v12129_v47  ;;  %v12115_v44 = vadd.f32 %v17736_v11, %v24758_v21 }
 0xec8   :  { %v12146_v7 = vmul.f32 1.442695, %v12128_v26  ;;  %v12114_v18 = vadd.f32 %v17737_v15, %v24758_v21  ;;  %v16023_v14 = vpop.f32.mrb[70].mxu1  ;;  %v16119_v62 = vpop.f32.mrb[70].mxu0 }
 0xec9   :  { %18012 = vpow2.f32 %v12148_v49  ;;  %v12131_v45 = vsub.f32 0.0, %v12115_v44  ;;  %v17738_v2 = vadd.f32 %v16119_v62, %v16023_v14  ;;  %v11676_v6 = vpop.f32.mrb[71].mxu1  ;;  %v12038_v22 = vpop.f32.mrb[71].mxu0 }
 0xeca   :  { %18014 = vpow2.f32 %v12146_v7  ;;  %v12130_v24 = vsub.f32 0.0, %v12114_v18  ;;  %v17739_v13 = vadd.f32 %v12038_v22, %v11676_v6 }
 0xecb   :  { %v12152_v30 = vmul.f32 1.442695, %v12131_v45  ;;  %v12117_v19 = vadd.f32 %v17738_v2, %v24758_v21 }
 0xecc   :  { %v12150_v28 = vmul.f32 1.442695, %v12130_v24  ;;  %v12116_v61 = vadd.f32 %v17739_v13, %v24758_v21  ;;  %v16026_v58 = vpop.f32.mrb[72].mxu1  ;;  %v16122_v0 = vpop.f32.mrb[72].mxu0 }
 0xecd   :  { %18016 = vpow2.f32 %v12152_v30  ;;  %v12133_v57 = vsub.f32 0.0, %v12117_v19  ;;  %v17740_v9 = vadd.f32 %v16122_v0, %v16026_v58  ;;  %v11686_v56 = vpop.f32.mrb[73].mxu1  ;;  %v12048_v46 = vpop.f32.mrb[73].mxu0 }
 0xece   :  { %18018 = vpow2.f32 %v12150_v28  ;;  %v12132_v60 = vsub.f32 0.0, %v12116_v61  ;;  %v17741_v16 = vadd.f32 %v12048_v46, %v11686_v56 }
 0xecf   :  { %v18009_v55 = vpop.eup %18008  ;;  %v12156_v32 = vmul.f32 1.442695, %v12133_v57  ;;  %v12119_v25 = vadd.f32 %v17740_v9, %v24758_v21 }
 0xed0   :  { %v18011_v38 = vpop.eup %18010  ;;  %v12175_v51 = vadd.f32 1.0, %v18009_v55  ;;  %v12154_v12 = vmul.f32 1.442695, %v12132_v60  ;;  %v12118_v52 = vadd.f32 %v17741_v16, %v24758_v21  ;;  %v16029_v43 = vpop.f32.mrb[74].mxu1 }
 0xed1   :  { %v16125_v27 = vpop.f32.mrb[74].mxu0  ;;  %v12174_v34 = vadd.f32 1.0, %v18011_v38  ;;  %18020 = vpow2.f32 %v12156_v32  ;;  %v12135_v3 = vsub.f32 0.0, %v12119_v25  ;;  %v11696_v5 = vpop.f32.mrb[75].mxu1 }
 0xed2   :  { %v17742_v17 = vadd.f32 %v16125_v27, %v16029_v43  ;;  %v12058_v50 = vpop.f32.mrb[75].mxu0  ;;  %18022 = vrcp.f32 %v12175_v51  ;;  %v12134_v39 = vsub.f32 0.0, %v12118_v52 }
 0xed3   :  { %v17743_v36 = vadd.f32 %v12058_v50, %v11696_v5  ;;  %v18013_v31 = vpop.eup %18012  ;;  %18024 = vrcp.f32 %v12174_v34  ;;  %v12160_v20 = vmul.f32 1.442695, %v12135_v3 }
 0xed4   :  { %v12121_v37 = vadd.f32 %v17742_v17, %v24758_v21  ;;  %v18015_v29 = vpop.eup %18014  ;;  %v12177_v35 = vadd.f32 1.0, %v18013_v31  ;;  %18026 = vpow2.f32 %v12154_v12  ;;  %v12158_v42 = vmul.f32 1.442695, %v12134_v39  ;;  %v16032_v54 = vpop.f32.mrb[76].mxu1 }
 0xed5   :  { %v12120_v63 = vadd.f32 %v17743_v36, %v24758_v21  ;;  %v16128_v4 = vpop.f32.mrb[76].mxu0  ;;  %v12176_v10 = vadd.f32 1.0, %v18015_v29  ;;  %18028 = vpow2.f32 %v12160_v20  ;;  %v11706_v41 = vpop.f32.mrb[77].mxu1 }
 0xed6   :  { %v12137_v33 = vsub.f32 0.0, %v12121_v37  ;;  %v17744_v53 = vadd.f32 %v16128_v4, %v16032_v54  ;;  %v12068_v40 = vpop.f32.mrb[77].mxu0  ;;  %18030 = vrcp.f32 %v12177_v35 }
 0xed7   :  { %v12136_v1 = vsub.f32 0.0, %v12120_v63  ;;  %v17745_v59 = vadd.f32 %v12068_v40, %v11706_v41  ;;  %v18017_v23 = vpop.eup %18016  ;;  %18032 = vrcp.f32 %v12176_v10 }
 0xed8   :  { %v12164_v47 = vmul.f32 1.442695, %v12137_v33  ;;  %v12123_v11 = vadd.f32 %v17744_v53, %v24758_v21  ;;  %v18019_v48 = vpop.eup %18018  ;;  %v12179_v8 = vadd.f32 1.0, %v18017_v23  ;;  %18034 = vpow2.f32 %v12158_v42 }
 0xed9   :  { %v12162_v26 = vmul.f32 1.442695, %v12136_v1  ;;  %v12122_v15 = vadd.f32 %v17745_v59, %v24758_v21  ;;  %v12178_v49 = vadd.f32 1.0, %v18019_v48 }
 0xeda   :  { %18036 = vpow2.f32 %v12164_v47  ;;  %v12139_v44 = vsub.f32 0.0, %v12123_v11 }
 0xedb   :  { %18038 = vrcp.f32 %v12179_v8  ;;  %v12138_v7 = vsub.f32 0.0, %v12122_v15  ;;  %v18021_v18 = vpop.eup %18020 }
 0xedc   :  { %18040 = vrcp.f32 %v12178_v49  ;;  %v12168_v14 = vmul.f32 1.442695, %v12139_v44  ;;  %v18023_v62 = vpop.eup %18022  ;;  %v12181_v45 = vadd.f32 1.0, %v18021_v18 }
 0xedd   :  { %18042 = vpow2.f32 %v12162_v26  ;;  %v12166_v2 = vmul.f32 1.442695, %v12138_v7  ;;  %v18025_v6 = vpop.eup %18024  ;;  %12224 = vst.msk [vmem:[%s24854_s14 + $0x8] sm:$0xff] %vm12222_vm3, %v18023_v62 }
 0xede   :  { %18044 = vpow2.f32 %v12168_v14  ;;  %v18027_v22 = vpop.eup %18026  ;;  %12223 = vst.msk [vmem:[%s24854_s14] sm:$0xff] %vm12222_vm3, %v18025_v6 }
 0xedf   :  { %18046 = vrcp.f32 %v12181_v45  ;;  %v18029_v24 = vpop.eup %18028  ;;  %v12180_v13 = vadd.f32 1.0, %v18027_v22 }
 0xee0   :  { %18048 = vpow2.f32 %v12166_v2  ;;  %v18031_v30 = vpop.eup %18030  ;;  %v12183_v19 = vadd.f32 1.0, %v18029_v24  ;;  %v16131_v28 = vpop.f32.mrb[78].mxu1 }
 0xee1   :  { %v18033_v61 = vpop.eup %18032  ;;  %12226 = vst.msk [vmem:[%s24854_s14 + $0x18] sm:$0xff] %vm12222_vm3, %v18031_v30  ;;  %18050 = vrcp.f32 %v12180_v13  ;;  %v12125_v58 = vadd.f32 %v16131_v28, %v24758_v21  ;;  %v12078_v0 = vpop.f32.mrb[79].mxu1 }
 0xee2   :  { %v18035_v57 = vpop.eup %18034  ;;  %12225 = vst.msk [vmem:[%s24854_s14 + $0x10] sm:$0xff] %vm12222_vm3, %v18033_v61  ;;  %18052 = vrcp.f32 %v12183_v19  ;;  %v12124_v9 = vadd.f32 %v24758_v21, %v12078_v0 }
 0xee3   :  { %v12182_v46 = vadd.f32 1.0, %v18035_v57  ;;  %v12141_v60 = vsub.f32 0.0, %v12125_v58 }
 0xee4   :  { %v18037_v56 = vpop.eup %18036  ;;  %v12140_v32 = vsub.f32 0.0, %v12124_v9 }
 0xee5   :  { %v18039_v16 = vpop.eup %18038  ;;  %v12185_v55 = vadd.f32 1.0, %v18037_v56  ;;  %18054 = vrcp.f32 %v12182_v46  ;;  %v12172_v38 = vmul.f32 1.442695, %v12141_v60 }
 0xee6   :  { %v18041_v25 = vpop.eup %18040  ;;  %12228 = vst.msk [vmem:[%s24854_s14 + $0x28] sm:$0xff] %vm12222_vm3, %v18039_v16  ;;  %v12170_v21 = vmul.f32 1.442695, %v12140_v32 }
 0xee7   :  { %v18043_v51 = vpop.eup %18042  ;;  %12227 = vst.msk [vmem:[%s24854_s14 + $0x20] sm:$0xff] %vm12222_vm3, %v18041_v25  ;;  %18056 = vrcp.f32 %v12185_v55 }
 0xee8   :  { %v18045_v12 = vpop.eup %18044  ;;  %v12184_v52 = vadd.f32 1.0, %v18043_v51  ;;  %18058 = vpow2.f32 %v12172_v38 }
 0xee9   :  { %v18047_v43 = vpop.eup %18046  ;;  %v12187_v27 = vadd.f32 1.0, %v18045_v12  ;;  %18060 = vpow2.f32 %v12170_v21 }
 0xeea   :  { %v18049_v34 = vpop.eup %18048  ;;  %12230 = vst.msk [vmem:[%s24854_s14 + $0x38] sm:$0xff] %vm12222_vm3, %v18047_v43  ;;  %18062 = vrcp.f32 %v12184_v52 }
 0xeeb   :  { %18064 = vrcp.f32 %v12187_v27  ;;  %v12186_v3 = vadd.f32 1.0, %v18049_v34  ;;  %v18051_v17 = vpop.eup %18050 }
 0xeec   :  { %v18053_v5 = vpop.eup %18052  ;;  %12229 = vst.msk [vmem:[%s24854_s14 + $0x30] sm:$0xff] %vm12222_vm3, %v18051_v17 }
 0xeed   :  { %18066 = vrcp.f32 %v12186_v3  ;;  %12232 = vst.msk [vmem:[%s24854_s14 + $0x48] sm:$0xff] %vm12222_vm3, %v18053_v5 }
 0xeef   :  { %v18055_v50 = vpop.eup %18054 }
 0xef0   :  { %12231 = vst.msk [vmem:[%s24854_s14 + $0x40] sm:$0xff] %vm12222_vm3, %v18055_v50 }
 0xef1   :  { %v18057_v39 = vpop.eup %18056 }
 0xef2   :  { %v18059_v36 = vpop.eup %18058  ;;  %12234 = vst.msk [vmem:[%s24854_s14 + $0x58] sm:$0xff] %vm12222_vm3, %v18057_v39 }
 0xef3   :  { %v18061_v31 = vpop.eup %18060  ;;  %v12189_v20 = vadd.f32 1.0, %v18059_v36 }
 0xef4   :  { %v18063_v37 = vpop.eup %18062  ;;  %v12188_v29 = vadd.f32 1.0, %v18061_v31 }
 0xef5   :  { %v18065_v35 = vpop.eup %18064  ;;  %12233 = vst.msk [vmem:[%s24854_s14 + $0x50] sm:$0xff] %vm12222_vm3, %v18063_v37  ;;  %18068 = vrcp.f32 %v12189_v20 }
 0xef6   :  { %12236 = vst.msk [vmem:[%s24854_s14 + $0x68] sm:$0xff] %vm12222_vm3, %v18065_v35  ;;  %18070 = vrcp.f32 %v12188_v29 }
 0xef7   :  { %v18067_v42 = vpop.eup %18066 }
 0xef8   :  { %12235 = vst.msk [vmem:[%s24854_s14 + $0x60] sm:$0xff] %vm12222_vm3, %v18067_v42 }
 0xeff   :  { %v18069_v63 = vpop.eup %18068 }
 0xf00   :  { %v18071_v54 = vpop.eup %18070  ;;  %12238 = vst.msk [vmem:[%s24854_s14 + $0x78] sm:$0xff] %vm12222_vm3, %v18069_v63 }
 0xf01   :  { %12237 = vst.msk [vmem:[%s24854_s14 + $0x70] sm:$0xff] %vm12222_vm3, %v18071_v54 }
 0xf02   :  { %12243 = vsyncpa [#allocation3], 1 }

</bundles_post_ra>
